<compile_context>
chip_gen: v7x
topology: tpu7x:2x2x1
jax: 0.10.0
libtpu: 0.0.40
codegen_flags: <defaults>
</compile_context>

<pallas_src>
import functools

import jax
import jax.numpy as jnp
from jax.experimental import pallas as pl
from jax.experimental.pallas import tpu as pltpu


# --------------------------------------------------------------------------- #
# Kernel: one grid step = (one batch tile) x (one encoder layer)
# --------------------------------------------------------------------------- #
def encoder_stack_kernel(mask_ref, x_ref,
                         wqkv_ref, bqkv_ref, wo_ref,
                         w1_ref, b1_ref, w2_ref, small_ref,
                         o_ref, act_ref, ctx_ref, *, num_heads, compute_dtype):
    layer = pl.program_id(1)
    n_layers = pl.num_programs(1)
    f32 = jnp.float32

    # Layer 0 loads the batch tile from the input; later layers reuse the
    # activation carried in the VMEM scratch (no HBM round-trip between layers).
    @pl.when(layer == 0)
    def _():
        act_ref[...] = x_ref[...].astype(f32)

    x = act_ref[...]                              # (Bt, S, D) float32
    Bt, S, D = x.shape
    H = num_heads
    Dh = D // H
    scale = 1.0 / float(Dh) ** 0.5

    xf = x.reshape(Bt * S, D)                     # flatten -> big MXU M dim
    x_lp = xf.astype(compute_dtype)

    # Packed small operands: rows 0=bo, 1=b2, 2=ln1_g, 3=ln1_b, 4=ln2_g, 5=ln2_b
    small = small_ref[0]                          # (8, D) float32
    bo, b2 = small[0:1, :], small[1:2, :]
    ln1_g, ln1_b = small[2:3, :], small[3:4, :]
    ln2_g, ln2_b = small[4:5, :], small[5:6, :]

    # ---- fused QKV: one (Bt*S, D) @ (D, 3D) MXU pass (f32 accumulation) -----
    qkv = jnp.dot(x_lp, wqkv_ref[0], preferred_element_type=f32) + bqkv_ref[0]
    q = (qkv[:, 0 * D:1 * D] * scale).reshape(Bt, S, D).astype(compute_dtype)
    k = qkv[:, 1 * D:2 * D].reshape(Bt, S, D).astype(compute_dtype)
    v = qkv[:, 2 * D:3 * D].reshape(Bt, S, D).astype(compute_dtype)

    mask = mask_ref[...]                          # (S, S) — broadcasts over batch

    # ---- attention: per-head softmax(QK^T)V written into ctx scratch --------
    for h in range(H):                            # static unroll over heads
        sl = slice(h * Dh, (h + 1) * Dh)
        s = jnp.einsum("bqd,bkd->bqk", q[:, :, sl], k[:, :, sl],
                       preferred_element_type=f32) + mask
        s = s - jnp.max(s, axis=-1, keepdims=True)
        p = jnp.exp(s)
        p = p / jnp.sum(p, axis=-1, keepdims=True)          # exact division
        ctx_ref[:, :, sl] = jnp.einsum("bqk,bkd->bqd", p.astype(compute_dtype),
                                       v[:, :, sl], preferred_element_type=f32)

    # ---- single full-depth out-projection (K = D, not K = Dh) ---------------
    ctx = ctx_ref[...].reshape(Bt * S, D).astype(compute_dtype)
    attn = jnp.dot(ctx, wo_ref[0], preferred_element_type=f32) + bo

    # ---- residual + LayerNorm 1 (float32 elementwise) ------------------------
    h1 = xf + attn
    mu = jnp.mean(h1, axis=-1, keepdims=True)
    var = jnp.mean(jnp.square(h1 - mu), axis=-1, keepdims=True)
    h1 = (h1 - mu) * jax.lax.rsqrt(var + 1e-5) * ln1_g + ln1_b

    # ---- feed-forward ---------------------------------------------------------
    f = jnp.dot(h1.astype(compute_dtype), w1_ref[0],
                preferred_element_type=f32) + b1_ref[0]
    f = jnp.maximum(f, 0.0)
    f = jnp.dot(f.astype(compute_dtype), w2_ref[0],
                preferred_element_type=f32) + b2

    # ---- residual + LayerNorm 2 ----------------------------------------------
    h2 = h1 + f
    mu2 = jnp.mean(h2, axis=-1, keepdims=True)
    var2 = jnp.mean(jnp.square(h2 - mu2), axis=-1, keepdims=True)
    out = (h2 - mu2) * jax.lax.rsqrt(var2 + 1e-5) * ln2_g + ln2_b

    act_ref[...] = out.reshape(Bt, S, D)          # carry to next layer

    @pl.when(layer == n_layers - 1)
    def _():
        o_ref[...] = out.reshape(Bt, S, D).astype(o_ref.dtype)


# --------------------------------------------------------------------------- #
# Host-side wrapper
# --------------------------------------------------------------------------- #
def _pick_batch_tile(B, S, max_rows=512, min_tiles=1):
    """Largest batch tile with Bt*S <= max_rows rows; min_tiles=1 by default
    (single-TC v5e/v6e gain nothing from splitting the batch)."""
    want = min(min_tiles, B)
    cands = [bt for bt in range(1, B + 1)
             if B % bt == 0 and bt * S <= max(max_rows, S) and B // bt >= want]
    return max(cands) if cands else 1


def _stack_params(layer_params, compute_dtype):
    """Stack per-layer params along a leading L axis; fuse QKV; pack small ops."""
    f32 = jnp.float32
    L = len(layer_params)
    D = layer_params[0]["wq"].shape[0]

    def stack(name, dtype):
        return jnp.stack([p[name] for p in layer_params]).astype(dtype)

    wqkv = jnp.concatenate([stack("wq", compute_dtype),
                            stack("wk", compute_dtype),
                            stack("wv", compute_dtype)], axis=-1)    # (L, D, 3D)
    bqkv = jnp.concatenate([stack("bq", f32), stack("bk", f32),
                            stack("bv", f32)], axis=-1)              # (L, 1, 3D)
    # Packed (L, 8, D): rows 0=bo, 1=b2, 2=ln1_g, 3=ln1_b, 4=ln2_g, 5=ln2_b, 6-7=pad
    small = jnp.concatenate(
        [stack("bo", f32), stack("b2", f32),
         stack("ln1_g", f32), stack("ln1_b", f32),
         stack("ln2_g", f32), stack("ln2_b", f32),
         jnp.zeros((L, 2, D), f32)], axis=1)                         # (L, 8, D)

    return dict(
        wqkv=wqkv, bqkv=bqkv,
        wo=stack("wo", compute_dtype),
        w1=stack("w1", compute_dtype), b1=stack("b1", f32),
        w2=stack("w2", compute_dtype), small=small,
    )


def _vmem_estimate(Bt, S, D, Dff, x_item, out_item, w_item):
    """Bytes for the live set: double-buffered pipeline blocks + scratch + temps."""
    rows = Bt * S
    wblk = (3 * D * D + D * D + D * Dff + Dff * D) * w_item \
        + (3 * D + Dff + 8 * D) * 4
    io_blk = rows * D * (x_item + out_item) + S * S * 4
    blocks = 2 * (wblk + io_blk)                     # double-buffered
    scratch = 2 * rows * D * 4                       # act + ctx f32 scratch
    inter = rows * (3 * D * 4 + 3 * D * w_item       # qkv f32 + q/k/v bf16
                    + 4 * D * 4                      # attn / h1 / h2 / out f32
                    + Dff * (4 + w_item))            # ffn hidden f32 + bf16
    inter += 3 * Bt * S * S * 4                      # per-head scores / probs
    return blocks + scratch + inter


def encoder(x, src_mask, layer_params, num_heads, *,
            compute_dtype=jnp.bfloat16, batch_tile=None):
    """Matches Encoder.forward: sequentially apply each encoder layer (fused)."""
    B, S, D = x.shape
    L = len(layer_params)
    Dff = layer_params[0]["w1"].shape[1]
    assert D % num_heads == 0, "d_model must be divisible by num_heads"

    if src_mask is None:
        src_mask = jnp.zeros((S, S), jnp.float32)
    src_mask = src_mask.astype(jnp.float32)

    Bt = batch_tile or _pick_batch_tile(B, S)
    assert B % Bt == 0
    sp = _stack_params(layer_params, compute_dtype)

    # VMEM budget from the actual live set, clamped to ~75% of physical VMEM.
    w_item = jnp.dtype(compute_dtype).itemsize
    est = _vmem_estimate(Bt, S, D, Dff, x.dtype.itemsize, x.dtype.itemsize, w_item)
    try:
        phys = int(pltpu.get_tpu_info().vmem_capacity_bytes)
    except Exception:
        phys = 64 << 20                                # conservative (v7x per-TC)
    vmem_limit = int(min(max(2 * est, 32 << 20), int(0.75 * phys)))

    def wspec(r, c):
        return pl.BlockSpec((1, r, c), lambda b, l: (l, 0, 0))

    in_specs = [
        pl.BlockSpec((S, S), lambda b, l: (0, 0)),            # mask
        pl.BlockSpec((Bt, S, D), lambda b, l: (b, 0, 0)),     # x
        wspec(D, 3 * D), wspec(1, 3 * D),                     # wqkv, bqkv
        wspec(D, D),                                          # wo
        wspec(D, Dff), wspec(1, Dff),                         # w1, b1
        wspec(Dff, D),                                        # w2
        wspec(8, D),                                          # packed small operands
    ]

    call = pl.pallas_call(
        functools.partial(encoder_stack_kernel,
                          num_heads=num_heads, compute_dtype=compute_dtype),
        out_shape=jax.ShapeDtypeStruct((B, S, D), x.dtype),
        grid=(B // Bt, L),
        in_specs=in_specs,
        out_specs=pl.BlockSpec((Bt, S, D), lambda b, l: (b, 0, 0)),
        scratch_shapes=[pltpu.VMEM((Bt, S, D), jnp.float32),   # carried activation
                        pltpu.VMEM((Bt, S, D), jnp.float32)],  # attention context
        compiler_params=pltpu.CompilerParams(
            dimension_semantics=("parallel", "arbitrary"),
            vmem_limit_bytes=vmem_limit),
    )
    return call(src_mask, x,
                sp["wqkv"], sp["bqkv"], sp["wo"],
                sp["w1"], sp["b1"], sp["w2"], sp["small"])


# --------------------------------------------------------------------------- #
# Pure-JAX reference (compute_dtype=float32 -> exact f32 reference;
# compute_dtype=bfloat16 -> same quantization points as the kernel)
# --------------------------------------------------------------------------- #
def _layernorm(h, g, b, eps=1e-5):
    mu = h.mean(-1, keepdims=True)
    var = jnp.mean(jnp.square(h - mu), axis=-1, keepdims=True)
    return (h - mu) * jax.lax.rsqrt(var + eps) * g + b


def _ref_layer(x, mask, p, num_heads, compute_dtype):
    f32 = jnp.float32
    cd = compute_dtype
    B, S, D = x.shape
    H = num_heads
    Dh = D // H
    scale = 1.0 / float(Dh) ** 0.5

    def mm(a, w):
        return jnp.einsum("...d,df->...f", a.astype(cd), w.astype(cd),
                          preferred_element_type=f32)

    q = mm(x, p["wq"]) + p["bq"]
    k = mm(x, p["wk"]) + p["bk"]
    v = mm(x, p["wv"]) + p["bv"]
    q = (q * scale).reshape(B, S, H, Dh).astype(cd)
    k = k.reshape(B, S, H, Dh).astype(cd)
    v = v.reshape(B, S, H, Dh).astype(cd)
    s = jnp.einsum("bqhd,bkhd->bhqk", q, k, preferred_element_type=f32) + mask
    s = s - s.max(-1, keepdims=True)
    pr = jnp.exp(s)
    pr = pr / pr.sum(-1, keepdims=True)
    a = jnp.einsum("bhqk,bkhd->bqhd", pr.astype(cd), v, preferred_element_type=f32)
    a = mm(a.reshape(B, S, D), p["wo"]) + p["bo"]

    h1 = _layernorm(x + a, p["ln1_g"], p["ln1_b"])
    f = jnp.maximum(mm(h1, p["w1"]) + p["b1"], 0.0)
    f = mm(f, p["w2"]) + p["b2"]
    return _layernorm(h1 + f, p["ln2_g"], p["ln2_b"])


def _ref_encoder(x, mask, layer_params, num_heads, compute_dtype=jnp.float32):
    for p in layer_params:
        x = _ref_layer(x, mask, p, num_heads, compute_dtype)
    return x


def make_layer_params(key, d_model, d_ff):
    ks = jax.random.split(key, 6)
    s = 1.0 / (d_model ** 0.5)
    return {
        "wq": jax.random.normal(ks[0], (d_model, d_model), jnp.float32) * s,
        "bq": jnp.zeros((1, d_model), jnp.float32),
        "wk": jax.random.normal(ks[1], (d_model, d_model), jnp.float32) * s,
        "bk": jnp.zeros((1, d_model), jnp.float32),
        "wv": jax.random.normal(ks[2], (d_model, d_model), jnp.float32) * s,
        "bv": jnp.zeros((1, d_model), jnp.float32),
        "wo": jax.random.normal(ks[3], (d_model, d_model), jnp.float32) * s,
        "bo": jnp.zeros((1, d_model), jnp.float32),
        "ln1_g": jnp.ones((1, d_model), jnp.float32),
        "ln1_b": jnp.zeros((1, d_model), jnp.float32),
        "w1": jax.random.normal(ks[4], (d_model, d_ff), jnp.float32) * s,
        "b1": jnp.zeros((1, d_ff), jnp.float32),
        "w2": jax.random.normal(ks[5], (d_ff, d_model), jnp.float32) * (1.0 / d_ff ** 0.5),
        "b2": jnp.zeros((1, d_model), jnp.float32),
        "ln2_g": jnp.ones((1, d_model), jnp.float32),
        "ln2_b": jnp.zeros((1, d_model), jnp.float32),
    }


if __name__ == "__main__":
    # Small but lane-dense shapes: batch=8, seq=32, d_model=128, 4 heads,
    # d_ff=256, 2 layers.
    B, S, D = 8, 32, 128
    H, DFF = 4, 256
    N_LAYERS = 2

    key = jax.random.PRNGKey(0)
    kx, *kls = jax.random.split(key, 1 + N_LAYERS)
    x = jax.random.normal(kx, (B, S, D), jnp.float32)
    # Additive causal mask (finite large-negative, avoids inf-inf NaN edge case).
    causal = jnp.tril(jnp.ones((S, S), jnp.bool_))
    src_mask = jnp.where(causal, 0.0, -1e9).astype(jnp.float32)
    params = [make_layer_params(k, D, DFF) for k in kls]

    out = encoder(x, src_mask, params, H)            # bf16 matmuls, f32 accum
    out = jax.block_until_ready(out)
    assert out.shape == (B, S, D)

    # Check against a reference with identical quantization points (bf16 matmul
    # inputs, f32 accumulation) — tolerance covers exp/rsqrt lowering deltas.
    ref_bf16 = _ref_encoder(x, src_mask, params, H, compute_dtype=jnp.bfloat16)
    err_q = float(jnp.max(jnp.abs(out - ref_bf16)))
    assert err_q < 3e-2, f"bf16-ref err={err_q}"

    # Looser check against the exact float32 reference (ground-truth semantics).
    ref_f32 = _ref_encoder(x, src_mask, params, H, compute_dtype=jnp.float32)
    err_f = float(jnp.max(jnp.abs(out - ref_f32)))
    assert err_f < 8e-2, f"f32-ref err={err_f}"

    print("KERNEL_OK")
</pallas_src>

<mosaic_0001>
module attributes {stable_mosaic.version = 11 : i64} {
  func.func @encoder_stack_kernel(%arg0: i32, %arg1: i32, %arg2: memref<32x32xf32, #tpu.memory_space<vmem>>, %arg3: memref<8x32x128xf32, #tpu.memory_space<vmem>>, %arg4: memref<1x128x384xbf16, #tpu.memory_space<vmem>>, %arg5: memref<1x1x384xf32, #tpu.memory_space<vmem>>, %arg6: memref<1x128x128xbf16, #tpu.memory_space<vmem>>, %arg7: memref<1x128x256xbf16, #tpu.memory_space<vmem>>, %arg8: memref<1x1x256xf32, #tpu.memory_space<vmem>>, %arg9: memref<1x256x128xbf16, #tpu.memory_space<vmem>>, %arg10: memref<1x8x128xf32, #tpu.memory_space<vmem>>, %arg11: memref<8x32x128xf32, #tpu.memory_space<vmem>>, %arg12: memref<8x32x128xf32, #tpu.memory_space<vmem>>, %arg13: memref<8x32x128xf32, #tpu.memory_space<vmem>>) attributes {dimension_semantics = [#tpu.dimension_semantics<parallel>, #tpu.dimension_semantics<arbitrary>], iteration_bounds = array<i64: 1, 2>, scalar_prefetch = 0 : i64, scratch_operands = 2 : i64, tpu.core_type = #tpu.core_type<tc>, window_params = [{pipeline_mode = #tpu.pipeline_mode<synchronous>, transform_indices = @transform_0, window_bounds = array<i64: 32, 32>}, {transform_indices = @transform_1, window_bounds = array<i64: 8, 32, 128>}, {transform_indices = @transform_2, window_bounds = array<i64: 1, 128, 384>}, {transform_indices = @transform_3, window_bounds = array<i64: 1, 1, 384>}, {transform_indices = @transform_4, window_bounds = array<i64: 1, 128, 128>}, {transform_indices = @transform_5, window_bounds = array<i64: 1, 128, 256>}, {transform_indices = @transform_6, window_bounds = array<i64: 1, 1, 256>}, {transform_indices = @transform_7, window_bounds = array<i64: 1, 256, 128>}, {transform_indices = @transform_8, window_bounds = array<i64: 1, 8, 128>}, {transform_indices = @transform_9, window_bounds = array<i64: 8, 32, 128>}]} {
    %c0_i32 = arith.constant 0 : i32
    %0 = arith.cmpi eq, %arg1, %c0_i32 : i32
    %1 = arith.extui %0 : i1 to i32
    %c0_i32_0 = arith.constant 0 : i32
    %2 = arith.cmpi ne, %1, %c0_i32_0 : i32
    scf.if %2 {
      %c0_73 = arith.constant 0 : index
      %c0_74 = arith.constant 0 : index
      %c0_75 = arith.constant 0 : index
      %184 = vector.load %arg3[%c0_73, %c0_74, %c0_75] : memref<8x32x128xf32, #tpu.memory_space<vmem>>, vector<8x32x128xf32>
      %c0_76 = arith.constant 0 : index
      %c0_77 = arith.constant 0 : index
      %c0_78 = arith.constant 0 : index
      %185 = vector.load %arg12[%c0_76, %c0_77, %c0_78] : memref<8x32x128xf32, #tpu.memory_space<vmem>>, vector<8x32x128xf32>
      tpu.vector_store %arg12[%c0_76, %c0_77, %c0_78], %184 {strides = array<i32>} : memref<8x32x128xf32, #tpu.memory_space<vmem>>, vector<8x32x128xf32>,
    } else {
    }
    %c0 = arith.constant 0 : index
    %c0_1 = arith.constant 0 : index
    %c0_2 = arith.constant 0 : index
    %3 = vector.load %arg12[%c0, %c0_1, %c0_2] : memref<8x32x128xf32, #tpu.memory_space<vmem>>, vector<8x32x128xf32>
    %4 = vector.shape_cast %3 : vector<8x32x128xf32> to vector<256x128xf32>
    %5 = arith.truncf %4 : vector<256x128xf32> to vector<256x128xbf16>
    %c0_3 = arith.constant 0 : index
    %c0_4 = arith.constant 0 : index
    %c0_5 = arith.constant 0 : index
    %6 = vector.load %arg10[%c0_3, %c0_4, %c0_5] : memref<1x8x128xf32, #tpu.memory_space<vmem>>, vector<1x8x128xf32>
    %7 = vector.shape_cast %6 : vector<1x8x128xf32> to vector<8x128xf32>
    %8 = vector.extract_strided_slice %7 {offsets = [0, 0], sizes = [1, 128], strides = [1, 1]} : vector<8x128xf32> to vector<1x128xf32>
    %9 = vector.extract_strided_slice %7 {offsets = [1, 0], sizes = [1, 128], strides = [1, 1]} : vector<8x128xf32> to vector<1x128xf32>
    %10 = vector.extract_strided_slice %7 {offsets = [2, 0], sizes = [1, 128], strides = [1, 1]} : vector<8x128xf32> to vector<1x128xf32>
    %11 = vector.extract_strided_slice %7 {offsets = [3, 0], sizes = [1, 128], strides = [1, 1]} : vector<8x128xf32> to vector<1x128xf32>
    %12 = vector.extract_strided_slice %7 {offsets = [4, 0], sizes = [1, 128], strides = [1, 1]} : vector<8x128xf32> to vector<1x128xf32>
    %13 = vector.extract_strided_slice %7 {offsets = [5, 0], sizes = [1, 128], strides = [1, 1]} : vector<8x128xf32> to vector<1x128xf32>
    %c0_6 = arith.constant 0 : index
    %c0_7 = arith.constant 0 : index
    %c0_8 = arith.constant 0 : index
    %14 = vector.load %arg4[%c0_6, %c0_7, %c0_8] : memref<1x128x384xbf16, #tpu.memory_space<vmem>>, vector<1x128x384xbf16>
    %15 = vector.shape_cast %14 : vector<1x128x384xbf16> to vector<128x384xbf16>
    %cst = arith.constant dense<0.000000e+00> : vector<256x384xf32>
    %16 = tpu.matmul %5, %15, %cst {dimension_numbers = #tpu.dot_dimension_numbers<[1], [0], [0], [1], [0, 0, 1, 1], [], []>} : vector<256x128xbf16>, vector<128x384xbf16>, vector<256x384xf32> -> vector<256x384xf32>
    %c0_9 = arith.constant 0 : index
    %c0_10 = arith.constant 0 : index
    %c0_11 = arith.constant 0 : index
    %17 = vector.load %arg5[%c0_9, %c0_10, %c0_11] : memref<1x1x384xf32, #tpu.memory_space<vmem>>, vector<1x1x384xf32>
    %18 = vector.shape_cast %17 : vector<1x1x384xf32> to vector<1x384xf32>
    %19 = vector.broadcast %18 : vector<1x384xf32> to vector<256x384xf32>
    %20 = arith.addf %16, %19 : vector<256x384xf32>
    %21 = vector.extract_strided_slice %20 {offsets = [0, 0], sizes = [256, 128], strides = [1, 1]} : vector<256x384xf32> to vector<256x128xf32>
    %cst_12 = arith.constant 0.176776692 : f32
    %22 = vector.broadcast %cst_12 : f32 to vector<256x128xf32>
    %23 = arith.mulf %21, %22 : vector<256x128xf32>
    %24 = vector.shape_cast %23 : vector<256x128xf32> to vector<8x32x128xf32>
    %25 = arith.truncf %24 : vector<8x32x128xf32> to vector<8x32x128xbf16>
    %26 = vector.extract_strided_slice %20 {offsets = [0, 128], sizes = [256, 128], strides = [1, 1]} : vector<256x384xf32> to vector<256x128xf32>
    %27 = vector.shape_cast %26 : vector<256x128xf32> to vector<8x32x128xf32>
    %28 = arith.truncf %27 : vector<8x32x128xf32> to vector<8x32x128xbf16>
    %29 = vector.extract_strided_slice %20 {offsets = [0, 256], sizes = [256, 128], strides = [1, 1]} : vector<256x384xf32> to vector<256x128xf32>
    %30 = vector.shape_cast %29 : vector<256x128xf32> to vector<8x32x128xf32>
    %31 = arith.truncf %30 : vector<8x32x128xf32> to vector<8x32x128xbf16>
    %c0_13 = arith.constant 0 : index
    %c0_14 = arith.constant 0 : index
    %32 = vector.load %arg2[%c0_13, %c0_14] : memref<32x32xf32, #tpu.memory_space<vmem>>, vector<32x32xf32>
    %33 = vector.extract_strided_slice %25 {offsets = [0, 0, 0], sizes = [8, 32, 32], strides = [1, 1, 1]} : vector<8x32x128xbf16> to vector<8x32x32xbf16>
    %34 = vector.extract_strided_slice %28 {offsets = [0, 0, 0], sizes = [8, 32, 32], strides = [1, 1, 1]} : vector<8x32x128xbf16> to vector<8x32x32xbf16>
    "tpu.trace_start"() <{level = 10 : i32, message = "bqd,bkd->bqk"}> : () -> ()
    %cst_15 = arith.constant dense<0.000000e+00> : vector<8x32x32xf32>
    %35 = tpu.matmul %33, %34, %cst_15 {dimension_numbers = #tpu.dot_dimension_numbers<[2], [2], [1], [1], [0, 0, 0, 1, 1, 1], [0], [0]>} : vector<8x32x32xbf16>, vector<8x32x32xbf16>, vector<8x32x32xf32> -> vector<8x32x32xf32>
    "tpu.trace_stop"() : () -> ()
    %36 = vector.shape_cast %32 : vector<32x32xf32> to vector<1x32x32xf32>
    %37 = vector.broadcast %36 : vector<1x32x32xf32> to vector<8x32x32xf32>
    %38 = arith.addf %35, %37 : vector<8x32x32xf32>
    %cst_16 = arith.constant dense<0xFF800000> : vector<8x32xf32>
    %39 = vector.multi_reduction <maximumf>, %38, %cst_16 [2] : vector<8x32x32xf32> to vector<8x32xf32>
    %40 = vector.shape_cast %39 : vector<8x32xf32> to vector<8x32x1xf32>
    %41 = vector.broadcast %40 : vector<8x32x1xf32> to vector<8x32x32xf32>
    %42 = arith.subf %38, %41 : vector<8x32x32xf32>
    %43 = math.exp %42 : vector<8x32x32xf32>
    %cst_17 = arith.constant dense<0.000000e+00> : vector<8x32xf32>
    %44 = vector.multi_reduction <add>, %43, %cst_17 [2] : vector<8x32x32xf32> to vector<8x32xf32>
    %45 = vector.shape_cast %44 : vector<8x32xf32> to vector<8x32x1xf32>
    %46 = vector.broadcast %45 : vector<8x32x1xf32> to vector<8x32x32xf32>
    %47 = arith.divf %43, %46 : vector<8x32x32xf32>
    %48 = arith.truncf %47 : vector<8x32x32xf32> to vector<8x32x32xbf16>
    %49 = vector.extract_strided_slice %31 {offsets = [0, 0, 0], sizes = [8, 32, 32], strides = [1, 1, 1]} : vector<8x32x128xbf16> to vector<8x32x32xbf16>
    "tpu.trace_start"() <{level = 10 : i32, message = "bqk,bkd->bqd"}> : () -> ()
    %cst_18 = arith.constant dense<0.000000e+00> : vector<8x32x32xf32>
    %50 = tpu.matmul %48, %49, %cst_18 {dimension_numbers = #tpu.dot_dimension_numbers<[2], [1], [1], [2], [0, 0, 0, 1, 1, 2], [0], [0]>} : vector<8x32x32xbf16>, vector<8x32x32xbf16>, vector<8x32x32xf32> -> vector<8x32x32xf32>
    "tpu.trace_stop"() : () -> ()
    %c0_19 = arith.constant 0 : index
    %c0_20 = arith.constant 0 : index
    %c0_21 = arith.constant 0 : index
    %51 = vector.load %arg13[%c0_19, %c0_20, %c0_21] : memref<8x32x128xf32, #tpu.memory_space<vmem>>, vector<8x32x32xf32>
    tpu.vector_store %arg13[%c0_19, %c0_20, %c0_21], %50 {strides = array<i32>} : memref<8x32x128xf32, #tpu.memory_space<vmem>>, vector<8x32x32xf32>,
    %52 = vector.extract_strided_slice %25 {offsets = [0, 0, 32], sizes = [8, 32, 32], strides = [1, 1, 1]} : vector<8x32x128xbf16> to vector<8x32x32xbf16>
    %53 = vector.extract_strided_slice %28 {offsets = [0, 0, 32], sizes = [8, 32, 32], strides = [1, 1, 1]} : vector<8x32x128xbf16> to vector<8x32x32xbf16>
    "tpu.trace_start"() <{level = 10 : i32, message = "bqd,bkd->bqk"}> : () -> ()
    %cst_22 = arith.constant dense<0.000000e+00> : vector<8x32x32xf32>
    %54 = tpu.matmul %52, %53, %cst_22 {dimension_numbers = #tpu.dot_dimension_numbers<[2], [2], [1], [1], [0, 0, 0, 1, 1, 1], [0], [0]>} : vector<8x32x32xbf16>, vector<8x32x32xbf16>, vector<8x32x32xf32> -> vector<8x32x32xf32>
    "tpu.trace_stop"() : () -> ()
    %55 = vector.shape_cast %32 : vector<32x32xf32> to vector<1x32x32xf32>
    %56 = vector.broadcast %55 : vector<1x32x32xf32> to vector<8x32x32xf32>
    %57 = arith.addf %54, %56 : vector<8x32x32xf32>
    %cst_23 = arith.constant dense<0xFF800000> : vector<8x32xf32>
    %58 = vector.multi_reduction <maximumf>, %57, %cst_23 [2] : vector<8x32x32xf32> to vector<8x32xf32>
    %59 = vector.shape_cast %58 : vector<8x32xf32> to vector<8x32x1xf32>
    %60 = vector.broadcast %59 : vector<8x32x1xf32> to vector<8x32x32xf32>
    %61 = arith.subf %57, %60 : vector<8x32x32xf32>
    %62 = math.exp %61 : vector<8x32x32xf32>
    %cst_24 = arith.constant dense<0.000000e+00> : vector<8x32xf32>
    %63 = vector.multi_reduction <add>, %62, %cst_24 [2] : vector<8x32x32xf32> to vector<8x32xf32>
    %64 = vector.shape_cast %63 : vector<8x32xf32> to vector<8x32x1xf32>
    %65 = vector.broadcast %64 : vector<8x32x1xf32> to vector<8x32x32xf32>
    %66 = arith.divf %62, %65 : vector<8x32x32xf32>
    %67 = arith.truncf %66 : vector<8x32x32xf32> to vector<8x32x32xbf16>
    %68 = vector.extract_strided_slice %31 {offsets = [0, 0, 32], sizes = [8, 32, 32], strides = [1, 1, 1]} : vector<8x32x128xbf16> to vector<8x32x32xbf16>
    "tpu.trace_start"() <{level = 10 : i32, message = "bqk,bkd->bqd"}> : () -> ()
    %cst_25 = arith.constant dense<0.000000e+00> : vector<8x32x32xf32>
    %69 = tpu.matmul %67, %68, %cst_25 {dimension_numbers = #tpu.dot_dimension_numbers<[2], [1], [1], [2], [0, 0, 0, 1, 1, 2], [0], [0]>} : vector<8x32x32xbf16>, vector<8x32x32xbf16>, vector<8x32x32xf32> -> vector<8x32x32xf32>
    "tpu.trace_stop"() : () -> ()
    %c0_26 = arith.constant 0 : index
    %c0_27 = arith.constant 0 : index
    %c32 = arith.constant 32 : index
    %70 = vector.load %arg13[%c0_26, %c0_27, %c32] : memref<8x32x128xf32, #tpu.memory_space<vmem>>, vector<8x32x32xf32>
    tpu.vector_store %arg13[%c0_26, %c0_27, %c32], %69 {strides = array<i32>} : memref<8x32x128xf32, #tpu.memory_space<vmem>>, vector<8x32x32xf32>,
    %71 = vector.extract_strided_slice %25 {offsets = [0, 0, 64], sizes = [8, 32, 32], strides = [1, 1, 1]} : vector<8x32x128xbf16> to vector<8x32x32xbf16>
    %72 = vector.extract_strided_slice %28 {offsets = [0, 0, 64], sizes = [8, 32, 32], strides = [1, 1, 1]} : vector<8x32x128xbf16> to vector<8x32x32xbf16>
    "tpu.trace_start"() <{level = 10 : i32, message = "bqd,bkd->bqk"}> : () -> ()
    %cst_28 = arith.constant dense<0.000000e+00> : vector<8x32x32xf32>
    %73 = tpu.matmul %71, %72, %cst_28 {dimension_numbers = #tpu.dot_dimension_numbers<[2], [2], [1], [1], [0, 0, 0, 1, 1, 1], [0], [0]>} : vector<8x32x32xbf16>, vector<8x32x32xbf16>, vector<8x32x32xf32> -> vector<8x32x32xf32>
    "tpu.trace_stop"() : () -> ()
    %74 = vector.shape_cast %32 : vector<32x32xf32> to vector<1x32x32xf32>
    %75 = vector.broadcast %74 : vector<1x32x32xf32> to vector<8x32x32xf32>
    %76 = arith.addf %73, %75 : vector<8x32x32xf32>
    %cst_29 = arith.constant dense<0xFF800000> : vector<8x32xf32>
    %77 = vector.multi_reduction <maximumf>, %76, %cst_29 [2] : vector<8x32x32xf32> to vector<8x32xf32>
    %78 = vector.shape_cast %77 : vector<8x32xf32> to vector<8x32x1xf32>
    %79 = vector.broadcast %78 : vector<8x32x1xf32> to vector<8x32x32xf32>
    %80 = arith.subf %76, %79 : vector<8x32x32xf32>
    %81 = math.exp %80 : vector<8x32x32xf32>
    %cst_30 = arith.constant dense<0.000000e+00> : vector<8x32xf32>
    %82 = vector.multi_reduction <add>, %81, %cst_30 [2] : vector<8x32x32xf32> to vector<8x32xf32>
    %83 = vector.shape_cast %82 : vector<8x32xf32> to vector<8x32x1xf32>
    %84 = vector.broadcast %83 : vector<8x32x1xf32> to vector<8x32x32xf32>
    %85 = arith.divf %81, %84 : vector<8x32x32xf32>
    %86 = arith.truncf %85 : vector<8x32x32xf32> to vector<8x32x32xbf16>
    %87 = vector.extract_strided_slice %31 {offsets = [0, 0, 64], sizes = [8, 32, 32], strides = [1, 1, 1]} : vector<8x32x128xbf16> to vector<8x32x32xbf16>
    "tpu.trace_start"() <{level = 10 : i32, message = "bqk,bkd->bqd"}> : () -> ()
    %cst_31 = arith.constant dense<0.000000e+00> : vector<8x32x32xf32>
    %88 = tpu.matmul %86, %87, %cst_31 {dimension_numbers = #tpu.dot_dimension_numbers<[2], [1], [1], [2], [0, 0, 0, 1, 1, 2], [0], [0]>} : vector<8x32x32xbf16>, vector<8x32x32xbf16>, vector<8x32x32xf32> -> vector<8x32x32xf32>
    "tpu.trace_stop"() : () -> ()
    %c0_32 = arith.constant 0 : index
    %c0_33 = arith.constant 0 : index
    %c64 = arith.constant 64 : index
    %89 = vector.load %arg13[%c0_32, %c0_33, %c64] : memref<8x32x128xf32, #tpu.memory_space<vmem>>, vector<8x32x32xf32>
    tpu.vector_store %arg13[%c0_32, %c0_33, %c64], %88 {strides = array<i32>} : memref<8x32x128xf32, #tpu.memory_space<vmem>>, vector<8x32x32xf32>,
    %90 = vector.extract_strided_slice %25 {offsets = [0, 0, 96], sizes = [8, 32, 32], strides = [1, 1, 1]} : vector<8x32x128xbf16> to vector<8x32x32xbf16>
    %91 = vector.extract_strided_slice %28 {offsets = [0, 0, 96], sizes = [8, 32, 32], strides = [1, 1, 1]} : vector<8x32x128xbf16> to vector<8x32x32xbf16>
    "tpu.trace_start"() <{level = 10 : i32, message = "bqd,bkd->bqk"}> : () -> ()
    %cst_34 = arith.constant dense<0.000000e+00> : vector<8x32x32xf32>
    %92 = tpu.matmul %90, %91, %cst_34 {dimension_numbers = #tpu.dot_dimension_numbers<[2], [2], [1], [1], [0, 0, 0, 1, 1, 1], [0], [0]>} : vector<8x32x32xbf16>, vector<8x32x32xbf16>, vector<8x32x32xf32> -> vector<8x32x32xf32>
    "tpu.trace_stop"() : () -> ()
    %93 = vector.shape_cast %32 : vector<32x32xf32> to vector<1x32x32xf32>
    %94 = vector.broadcast %93 : vector<1x32x32xf32> to vector<8x32x32xf32>
    %95 = arith.addf %92, %94 : vector<8x32x32xf32>
    %cst_35 = arith.constant dense<0xFF800000> : vector<8x32xf32>
    %96 = vector.multi_reduction <maximumf>, %95, %cst_35 [2] : vector<8x32x32xf32> to vector<8x32xf32>
    %97 = vector.shape_cast %96 : vector<8x32xf32> to vector<8x32x1xf32>
    %98 = vector.broadcast %97 : vector<8x32x1xf32> to vector<8x32x32xf32>
    %99 = arith.subf %95, %98 : vector<8x32x32xf32>
    %100 = math.exp %99 : vector<8x32x32xf32>
    %cst_36 = arith.constant dense<0.000000e+00> : vector<8x32xf32>
    %101 = vector.multi_reduction <add>, %100, %cst_36 [2] : vector<8x32x32xf32> to vector<8x32xf32>
    %102 = vector.shape_cast %101 : vector<8x32xf32> to vector<8x32x1xf32>
    %103 = vector.broadcast %102 : vector<8x32x1xf32> to vector<8x32x32xf32>
    %104 = arith.divf %100, %103 : vector<8x32x32xf32>
    %105 = arith.truncf %104 : vector<8x32x32xf32> to vector<8x32x32xbf16>
    %106 = vector.extract_strided_slice %31 {offsets = [0, 0, 96], sizes = [8, 32, 32], strides = [1, 1, 1]} : vector<8x32x128xbf16> to vector<8x32x32xbf16>
    "tpu.trace_start"() <{level = 10 : i32, message = "bqk,bkd->bqd"}> : () -> ()
    %cst_37 = arith.constant dense<0.000000e+00> : vector<8x32x32xf32>
    %107 = tpu.matmul %105, %106, %cst_37 {dimension_numbers = #tpu.dot_dimension_numbers<[2], [1], [1], [2], [0, 0, 0, 1, 1, 2], [0], [0]>} : vector<8x32x32xbf16>, vector<8x32x32xbf16>, vector<8x32x32xf32> -> vector<8x32x32xf32>
    "tpu.trace_stop"() : () -> ()
    %c0_38 = arith.constant 0 : index
    %c0_39 = arith.constant 0 : index
    %c96 = arith.constant 96 : index
    %108 = vector.load %arg13[%c0_38, %c0_39, %c96] : memref<8x32x128xf32, #tpu.memory_space<vmem>>, vector<8x32x32xf32>
    tpu.vector_store %arg13[%c0_38, %c0_39, %c96], %107 {strides = array<i32>} : memref<8x32x128xf32, #tpu.memory_space<vmem>>, vector<8x32x32xf32>,
    %c0_40 = arith.constant 0 : index
    %c0_41 = arith.constant 0 : index
    %c0_42 = arith.constant 0 : index
    %109 = vector.load %arg13[%c0_40, %c0_41, %c0_42] : memref<8x32x128xf32, #tpu.memory_space<vmem>>, vector<8x32x128xf32>
    %110 = vector.shape_cast %109 : vector<8x32x128xf32> to vector<256x128xf32>
    %111 = arith.truncf %110 : vector<256x128xf32> to vector<256x128xbf16>
    %c0_43 = arith.constant 0 : index
    %c0_44 = arith.constant 0 : index
    %c0_45 = arith.constant 0 : index
    %112 = vector.load %arg6[%c0_43, %c0_44, %c0_45] : memref<1x128x128xbf16, #tpu.memory_space<vmem>>, vector<1x128x128xbf16>
    %113 = vector.shape_cast %112 : vector<1x128x128xbf16> to vector<128x128xbf16>
    %cst_46 = arith.constant dense<0.000000e+00> : vector<256x128xf32>
    %114 = tpu.matmul %111, %113, %cst_46 {dimension_numbers = #tpu.dot_dimension_numbers<[1], [0], [0], [1], [0, 0, 1, 1], [], []>} : vector<256x128xbf16>, vector<128x128xbf16>, vector<256x128xf32> -> vector<256x128xf32>
    %115 = vector.broadcast %8 : vector<1x128xf32> to vector<256x128xf32>
    %116 = arith.addf %114, %115 : vector<256x128xf32>
    %117 = arith.addf %4, %116 : vector<256x128xf32>
    %cst_47 = arith.constant dense<0.000000e+00> : vector<256xf32>
    %118 = vector.multi_reduction <add>, %117, %cst_47 [1] : vector<256x128xf32> to vector<256xf32>
    %119 = vector.shape_cast %118 : vector<256xf32> to vector<256x1xf32>
    %cst_48 = arith.constant 1.280000e+02 : f32
    %120 = vector.broadcast %cst_48 : f32 to vector<256x1xf32>
    %121 = arith.divf %119, %120 : vector<256x1xf32>
    %122 = vector.broadcast %121 : vector<256x1xf32> to vector<256x128xf32>
    %123 = arith.subf %117, %122 : vector<256x128xf32>
    %124 = arith.mulf %123, %123 : vector<256x128xf32>
    %cst_49 = arith.constant dense<0.000000e+00> : vector<256xf32>
    %125 = vector.multi_reduction <add>, %124, %cst_49 [1] : vector<256x128xf32> to vector<256xf32>
    %126 = vector.shape_cast %125 : vector<256xf32> to vector<256x1xf32>
    %cst_50 = arith.constant 1.280000e+02 : f32
    %127 = vector.broadcast %cst_50 : f32 to vector<256x1xf32>
    %128 = arith.divf %126, %127 : vector<256x1xf32>
    %129 = vector.broadcast %121 : vector<256x1xf32> to vector<256x128xf32>
    %130 = arith.subf %117, %129 : vector<256x128xf32>
    %cst_51 = arith.constant 9.99999974E-6 : f32
    %131 = vector.broadcast %cst_51 : f32 to vector<256x1xf32>
    %132 = arith.addf %128, %131 : vector<256x1xf32>
    %133 = math.rsqrt %132 : vector<256x1xf32>
    %134 = vector.broadcast %133 : vector<256x1xf32> to vector<256x128xf32>
    %135 = arith.mulf %130, %134 : vector<256x128xf32>
    %136 = vector.broadcast %10 : vector<1x128xf32> to vector<256x128xf32>
    %137 = arith.mulf %135, %136 : vector<256x128xf32>
    %138 = vector.broadcast %11 : vector<1x128xf32> to vector<256x128xf32>
    %139 = arith.addf %137, %138 : vector<256x128xf32>
    %140 = arith.truncf %139 : vector<256x128xf32> to vector<256x128xbf16>
    %c0_52 = arith.constant 0 : index
    %c0_53 = arith.constant 0 : index
    %c0_54 = arith.constant 0 : index
    %141 = vector.load %arg7[%c0_52, %c0_53, %c0_54] : memref<1x128x256xbf16, #tpu.memory_space<vmem>>, vector<1x128x256xbf16>
    %142 = vector.shape_cast %141 : vector<1x128x256xbf16> to vector<128x256xbf16>
    %cst_55 = arith.constant dense<0.000000e+00> : vector<256x256xf32>
    %143 = tpu.matmul %140, %142, %cst_55 {dimension_numbers = #tpu.dot_dimension_numbers<[1], [0], [0], [1], [0, 0, 1, 1], [], []>} : vector<256x128xbf16>, vector<128x256xbf16>, vector<256x256xf32> -> vector<256x256xf32>
    %c0_56 = arith.constant 0 : index
    %c0_57 = arith.constant 0 : index
    %c0_58 = arith.constant 0 : index
    %144 = vector.load %arg8[%c0_56, %c0_57, %c0_58] : memref<1x1x256xf32, #tpu.memory_space<vmem>>, vector<1x1x256xf32>
    %145 = vector.shape_cast %144 : vector<1x1x256xf32> to vector<1x256xf32>
    %146 = vector.broadcast %145 : vector<1x256xf32> to vector<256x256xf32>
    %147 = arith.addf %143, %146 : vector<256x256xf32>
    %cst_59 = arith.constant 0.000000e+00 : f32
    %148 = vector.broadcast %cst_59 : f32 to vector<256x256xf32>
    %149 = arith.maximumf %147, %148 : vector<256x256xf32>
    %150 = arith.truncf %149 : vector<256x256xf32> to vector<256x256xbf16>
    %c0_60 = arith.constant 0 : index
    %c0_61 = arith.constant 0 : index
    %c0_62 = arith.constant 0 : index
    %151 = vector.load %arg9[%c0_60, %c0_61, %c0_62] : memref<1x256x128xbf16, #tpu.memory_space<vmem>>, vector<1x256x128xbf16>
    %152 = vector.shape_cast %151 : vector<1x256x128xbf16> to vector<256x128xbf16>
    %cst_63 = arith.constant dense<0.000000e+00> : vector<256x128xf32>
    %153 = tpu.matmul %150, %152, %cst_63 {dimension_numbers = #tpu.dot_dimension_numbers<[1], [0], [0], [1], [0, 0, 1, 1], [], []>} : vector<256x256xbf16>, vector<256x128xbf16>, vector<256x128xf32> -> vector<256x128xf32>
    %154 = vector.broadcast %9 : vector<1x128xf32> to vector<256x128xf32>
    %155 = arith.addf %153, %154 : vector<256x128xf32>
    %156 = arith.addf %139, %155 : vector<256x128xf32>
    %cst_64 = arith.constant dense<0.000000e+00> : vector<256xf32>
    %157 = vector.multi_reduction <add>, %156, %cst_64 [1] : vector<256x128xf32> to vector<256xf32>
    %158 = vector.shape_cast %157 : vector<256xf32> to vector<256x1xf32>
    %cst_65 = arith.constant 1.280000e+02 : f32
    %159 = vector.broadcast %cst_65 : f32 to vector<256x1xf32>
    %160 = arith.divf %158, %159 : vector<256x1xf32>
    %161 = vector.broadcast %160 : vector<256x1xf32> to vector<256x128xf32>
    %162 = arith.subf %156, %161 : vector<256x128xf32>
    %163 = arith.mulf %162, %162 : vector<256x128xf32>
    %cst_66 = arith.constant dense<0.000000e+00> : vector<256xf32>
    %164 = vector.multi_reduction <add>, %163, %cst_66 [1] : vector<256x128xf32> to vector<256xf32>
    %165 = vector.shape_cast %164 : vector<256xf32> to vector<256x1xf32>
    %cst_67 = arith.constant 1.280000e+02 : f32
    %166 = vector.broadcast %cst_67 : f32 to vector<256x1xf32>
    %167 = arith.divf %165, %166 : vector<256x1xf32>
    %168 = vector.broadcast %160 : vector<256x1xf32> to vector<256x128xf32>
    %169 = arith.subf %156, %168 : vector<256x128xf32>
    %cst_68 = arith.constant 9.99999974E-6 : f32
    %170 = vector.broadcast %cst_68 : f32 to vector<256x1xf32>
    %171 = arith.addf %167, %170 : vector<256x1xf32>
    %172 = math.rsqrt %171 : vector<256x1xf32>
    %173 = vector.broadcast %172 : vector<256x1xf32> to vector<256x128xf32>
    %174 = arith.mulf %169, %173 : vector<256x128xf32>
    %175 = vector.broadcast %12 : vector<1x128xf32> to vector<256x128xf32>
    %176 = arith.mulf %174, %175 : vector<256x128xf32>
    %177 = vector.broadcast %13 : vector<1x128xf32> to vector<256x128xf32>
    %178 = arith.addf %176, %177 : vector<256x128xf32>
    %179 = vector.shape_cast %178 : vector<256x128xf32> to vector<8x32x128xf32>
    %c0_69 = arith.constant 0 : index
    %c0_70 = arith.constant 0 : index
    %c0_71 = arith.constant 0 : index
    %180 = vector.load %arg12[%c0_69, %c0_70, %c0_71] : memref<8x32x128xf32, #tpu.memory_space<vmem>>, vector<8x32x128xf32>
    tpu.vector_store %arg12[%c0_69, %c0_70, %c0_71], %179 {strides = array<i32>} : memref<8x32x128xf32, #tpu.memory_space<vmem>>, vector<8x32x128xf32>,
    %c1_i32 = arith.constant 1 : i32
    %181 = arith.cmpi eq, %arg1, %c1_i32 : i32
    %182 = arith.extui %181 : i1 to i32
    %c0_i32_72 = arith.constant 0 : i32
    %183 = arith.cmpi ne, %182, %c0_i32_72 : i32
    scf.if %183 {
      %184 = vector.shape_cast %178 : vector<256x128xf32> to vector<8x32x128xf32>
      %c0_73 = arith.constant 0 : index
      %c0_74 = arith.constant 0 : index
      %c0_75 = arith.constant 0 : index
      %185 = vector.load %arg11[%c0_73, %c0_74, %c0_75] : memref<8x32x128xf32, #tpu.memory_space<vmem>>, vector<8x32x128xf32>
      tpu.vector_store %arg11[%c0_73, %c0_74, %c0_75], %184 {strides = array<i32>} : memref<8x32x128xf32, #tpu.memory_space<vmem>>, vector<8x32x128xf32>,
    } else {
    }
    return
  }
  func.func @transform_0(%arg0: i32, %arg1: i32) -> (i32, i32) {
    %c0_i32 = arith.constant 0 : i32
    %c0_i32_0 = arith.constant 0 : i32
    %c0_i32_1 = arith.constant 0 : i32
    return %c0_i32, %c0_i32_0 : i32, i32
  }
  func.func @transform_1(%arg0: i32, %arg1: i32) -> (i32, i32, i32) {
    %c0_i32 = arith.constant 0 : i32
    %c0_i32_0 = arith.constant 0 : i32
    %c0_i32_1 = arith.constant 0 : i32
    return %arg0, %c0_i32, %c0_i32_0 : i32, i32, i32
  }
  func.func @transform_2(%arg0: i32, %arg1: i32) -> (i32, i32, i32) {
    %c0_i32 = arith.constant 0 : i32
    %c0_i32_0 = arith.constant 0 : i32
    %c0_i32_1 = arith.constant 0 : i32
    return %arg1, %c0_i32, %c0_i32_0 : i32, i32, i32
  }
  func.func @transform_3(%arg0: i32, %arg1: i32) -> (i32, i32, i32) {
    %c0_i32 = arith.constant 0 : i32
    %c0_i32_0 = arith.constant 0 : i32
    %c0_i32_1 = arith.constant 0 : i32
    return %arg1, %c0_i32, %c0_i32_0 : i32, i32, i32
  }
  func.func @transform_4(%arg0: i32, %arg1: i32) -> (i32, i32, i32) {
    %c0_i32 = arith.constant 0 : i32
    %c0_i32_0 = arith.constant 0 : i32
    %c0_i32_1 = arith.constant 0 : i32
    return %arg1, %c0_i32, %c0_i32_0 : i32, i32, i32
  }
  func.func @transform_5(%arg0: i32, %arg1: i32) -> (i32, i32, i32) {
    %c0_i32 = arith.constant 0 : i32
    %c0_i32_0 = arith.constant 0 : i32
    %c0_i32_1 = arith.constant 0 : i32
    return %arg1, %c0_i32, %c0_i32_0 : i32, i32, i32
  }
  func.func @transform_6(%arg0: i32, %arg1: i32) -> (i32, i32, i32) {
    %c0_i32 = arith.constant 0 : i32
    %c0_i32_0 = arith.constant 0 : i32
    %c0_i32_1 = arith.constant 0 : i32
    return %arg1, %c0_i32, %c0_i32_0 : i32, i32, i32
  }
  func.func @transform_7(%arg0: i32, %arg1: i32) -> (i32, i32, i32) {
    %c0_i32 = arith.constant 0 : i32
    %c0_i32_0 = arith.constant 0 : i32
    %c0_i32_1 = arith.constant 0 : i32
    return %arg1, %c0_i32, %c0_i32_0 : i32, i32, i32
  }
  func.func @transform_8(%arg0: i32, %arg1: i32) -> (i32, i32, i32) {
    %c0_i32 = arith.constant 0 : i32
    %c0_i32_0 = arith.constant 0 : i32
    %c0_i32_1 = arith.constant 0 : i32
    return %arg1, %c0_i32, %c0_i32_0 : i32, i32, i32
  }
  func.func @transform_9(%arg0: i32, %arg1: i32) -> (i32, i32, i32) {
    %c0_i32 = arith.constant 0 : i32
    %c0_i32_0 = arith.constant 0 : i32
    %c0_i32_1 = arith.constant 0 : i32
    return %arg0, %c0_i32, %c0_i32_0 : i32, i32, i32
  }
}

</mosaic_0001>

<bundles_post_ra>
// kernel: tpu_custom_call.1
= control target key start
LH: loop header
LB: loop body
LE: loop exit
PB: predicated region body
PF: predicated region fallthrough
CT: control target
= control target key end

     0   :  { %s16537_s0 = inlined_call_operand.hbm [shape: f32[32,32], index: 0, kind: input, shape index: {}]   ;;  %s16538_s1 = inlined_call_operand.hbm [shape: f32[8,32,128], index: 1, kind: input, shape index: {}]   ;;  %s16539_s2 = inlined_call_operand.hbm [shape: bf16[2,128,384], index: 2, kind: input, shape index: {}]   ;;  %s16540_s3 = inlined_call_operand.vmem [shape: f32[2,1,384], index: 3, kind: input, shape index: {}]   ;;  %s16541_s4 = inlined_call_operand.hbm [shape: bf16[2,128,128], index: 4, kind: input, shape index: {}]   ;;  %s16542_s5 = inlined_call_operand.hbm [shape: bf16[2,128,256], index: 5, kind: input, shape index: {}]   ;;  %s16543_s6 = inlined_call_operand.vmem [shape: f32[2,1,256], index: 6, kind: input, shape index: {}]   ;;  %s16544_s7 = inlined_call_operand.hbm [shape: bf16[2,256,128], index: 7, kind: input, shape index: {}]   ;;  %s16545_s8 = inlined_call_operand.vmem [shape: f32[2,8,128], index: 8, kind: input, shape index: {}]   ;;  %s16546_s9 = inlined_call_operand.hbm [shape: f32[8,32,128], index: 9, kind: output, shape index: {}]  }
   0x1   :  { %16685 = sst [smem:[#allocation96_spill]] %s16537_s0 }
   0x2   :  { %16686 = sst [smem:[#allocation97_spill]] %s16539_s2 }
   0x3   :  { %16687 = sst [smem:[#allocation98_spill]] %s16540_s3 }
   0x4   :  { %16688 = sst [smem:[#allocation99_spill]] %s16541_s4 }
   0x5   :  { %16689 = sst [smem:[#allocation100_spill]] %s16542_s5 }
   0x6   :  { %16690 = sst [smem:[#allocation101_spill]] %s16545_s8 }
   0x7   :  { %16691 = sst [smem:[#allocation102_spill]] %s16546_s9 }
   0x8   :  { %14 = vsyncpa [#allocation5], 0 }
   0x9   :  { %15 = vsyncpa [#allocation8], 0 }
   0xa   :  { %16 = vsyncpa [#allocation6], 0  ;;  %s12070_s30 = smov 0   ;;  %s12072_s10 = smov 0  }
   0xb   :  { %s12074_s11 = smov 0   ;;  %s12076_s12 = smov 0  }
   0xc   :  { %s12078_s13 = smov 0   ;;  %s12080_s14 = smov 0  }
   0xd LB: > { %s12099_s15 = sadd.s32 4294967295, %s11999_s14   ;;  %p95_p0 = scmp.ne.s32.totalorder %s11987_s11, %s11983_s10  ;;  %s11999_s14 = sphi %s12080_s14, %s22_s14   ;;  %s11995_s13 = sphi %s12078_s13, %s17034_s13   ;;  %s11991_s12 = sphi %s12076_s12, %s17033_s12   ;;  %s11987_s11 = sphi %s12074_s11, %s17032_s11   ;;  %s11983_s10 = sphi %s12072_s10, %s17031_s10   ;;  %s11979_s30 = sphi %s12070_s30, %s17030_s30  }
   0xe   : > { %p96_p1 = scmp.eq.s32.totalorder %s11999_s14, 0  ;;  %p101_p2 = scmp.ne.s32.totalorder %s11983_s10, %s11979_s30 }
   0xf   : > { %p16547_p3 = scmp.eq.s32.totalorder %s12099_s15, 0  ;;  %p9529_p5 = scmp.ge.s32.totalorder %s11999_s14, 1 }
  0x10   : > { %p97_p4 = por %p96_p1, %p95_p0  ;;  %p294_p7 = scmp.lt.s32.totalorder %s11999_s14, 3 }
  0x11   : > { %p12110_p6 = por %p16547_p3, %p101_p2  ;;  %s12001_s19 = smov [#allocation4]  }
  0x12   : > { %p12115_p8 = pnand %p9529_p5, %p294_p7  ;;  %s306_s20 = sshll.u32 %s12001_s19, 4  ;;  %s307_s20 = int_to_ptr.vmem [resolvable:$true] %s306_s20 }
  0x13   : > { %s16692_s17 = scalar_select %p12110_p6, 1, 0 }
  0x14   : > { %s16693_s18 = scalar_select %p12115_p8, 1, 0 }
  0x15   : > { %p10880_p9 = pneg %p12115_p8  ;;  %p10902_p10 = scmp.lt.s32.totalorder %s11999_s14, 2 }
  0x16   : > { %s31_s23 = sadd.s32 1, %s11995_s13  ;;  %s16696_s0 = sld [smem:[#allocation96_spill]] }
  0x17   : > { %p12124_p11 = pnand %p10880_p9, %p16547_p3  ;;  %p12128_p12 = pnand %p10902_p10, %p97_p4 }
  0x19   : > { %s16694_s21 = scalar_select %p12124_p11, 1, 0 }
  0x1a   : > { %s16695_s22 = scalar_select %p12128_p12, 1, 0 }
  0x1b   : > { %p16556_p0 = pneg %p12124_p11 }
  0x1c   : > { %s11735_s26 = scalar_lea.hbm %s16696_s0, 512 }
  0x1d   : > { %p11736_p13 = scmp.ne.s32.totalorder %s16696_s0, %s11735_s26  ;;  %p11742_p4 = scmp.lt.u32.totalorder %s11735_s26, %s16696_s0 }
  0x1f   : > { %p11738_p1 = pnand %p16556_p0, %p11736_p13 }
  0x21   : > { %p11739_p2 = pneg %p11738_p1 }
  0x23   : > { %p11744_p5 = pnand %p11742_p4, %p11739_p2 }
  0x25   : > { %11747 = shalt.err (!%p11744_p5)
}
  0x26   : > { %s11748_s19 = scalar_lea.vmem %s307_s20, 512  ;;  %p11756_p3 = scmp.lt.s32.totalorder %s307_s20, %s307_s20 }
  0x27   : > { %p11749_p7 = scmp.ne.s32.totalorder %s307_s20, %s11748_s19  ;;  %p11757_p6 = scmp.lt.s32.totalorder %s11748_s19, %s11748_s19 }
  0x29   : > { %p11751_p9 = pnand %p11749_p7, %p16556_p0  ;;  %p11758_p8 = por %p11757_p6, %p11756_p3 }
  0x2b   : > { %p11752_p10 = pneg %p11751_p9 }
  0x2d   : > { %p11759_p12 = pnand %p11758_p8, %p11752_p10 }
  0x2f   : > { %11762 = shalt.err (!%p11759_p12)
}
  0x30   : > { %s16552_s24 = smov 128   ;;  %s16554_s25 = smov 8  }
  0x31   : > { %10883 = dma.hbm_to_vmem [thread:$0]  (!%p12124_p11), %s16696_s0, 512, %s307_s20, [#allocation5], %s16552_s24, %s16552_s24, %s16554_s25  }
  0x32   : > { %p32_p3 = scmp.ge.s32.totalorder %s31_s23, 2  ;;  %s337_s28 = sand.u32 1, %s11999_s14  }
  0x33   : > { %s12160_s29 = sand.u32 1, %s11987_s11   ;;  %s10857_s16 = smul.u32 3072, %s11995_s13 }
  0x34   : > { %s17036_s23 = smov (%p32_p3, %s31_s23), 0  ;;  %s10856_s30 = smul.u32 192, %s12160_s29 }
  0x35   : > { %16697 = sst [smem:[#allocation18_spill]] %s17036_s23  ;;  %s85_s19 = ssub.s32 %s11995_s13, %s17036_s23 }
  0x36   : > { %p86_p6 = scmp.eq.s32.totalorder %s85_s19, 0  ;;  %s16698_s2 = sld [smem:[#allocation97_spill]] }
  0x37   : > { %s341_s20 = scalar_lea.vmem [#allocation9], %s10856_s30  ;;  %s16699_s27 = sadd.s32 1, %s11987_s11 }
  0x38   : > { %s348_s26 = sshll.u32 %s341_s20, 4  ;;  %s12181_s0 = scalar_lea.sflag [#allocation5], %s337_s28  ;;  %s12178_s26 = int_to_ptr.vmem [resolvable:$true] %s348_s26 }
  0x39   : > { %s12176_s24 = scalar_select %p86_p6, %s11987_s11, %s16699_s27  }
  0x3a   : > { %p16701_p12 = scmp.ne.s32.totalorder %s16695_s22, 0 }
  0x3b   : > { %16700 = sst [smem:[#allocation19_spill]] %s12176_s24 }
  0x3c   : > { %s12171_s3 = scalar_lea.hbm %s16698_s2, %s10857_s16  ;;  %p12187_p13 = pneg %p16701_p12 }
  0x3d   : > { %s11763_s19 = scalar_lea.hbm %s12171_s3, 3072  ;;  %s11768_s30 = scalar_lea.hbm %s16698_s2, 6144 }
  0x3e   : > { %p11764_p8 = scmp.ne.s32.totalorder %s12171_s3, %s11763_s19  ;;  %p11769_p4 = scmp.lt.u32.totalorder %s12171_s3, %s16698_s2 }
  0x3f   : > { %s16702_s8 = scalar_select %p12187_p13, 1, 0 }
  0x40   : > { %p11766_p1 = pnand %p12187_p13, %p11764_p8  ;;  %p11770_p5 = scmp.lt.u32.totalorder %s11768_s30, %s11763_s19 }
  0x41   : > { %p11772_p9 = scmp.lt.u32.totalorder %s11763_s19, %s12171_s3 }
  0x42   : > { %p11767_p2 = pneg %p11766_p1  ;;  %p11771_p7 = por %p11770_p5, %p11769_p4 }
  0x44   : > { %p11773_p10 = por %p11772_p9, %p11771_p7 }
  0x46   : > { %p11774_p3 = pnand %p11773_p10, %p11767_p2 }
  0x48   : > { %11777 = shalt.err (!%p11774_p3)
}
  0x49   : > { %s11778_s28 = scalar_lea.vmem %s12178_s26, 3072  ;;  %s12004_s9 = smov [#allocation9]  }
  0x4a   : > { %p11779_p6 = scmp.ne.s32.totalorder %s12178_s26, %s11778_s28  ;;  %s11783_s16 = sshll.u32 %s12004_s9, 4  ;;  %s11784_s16 = int_to_ptr.vmem [resolvable:$false] %s11783_s16 }
  0x4b   : > { %s11785_s20 = scalar_lea.vmem %s11784_s16, 6144  ;;  %p11786_p0 = scmp.lt.s32.totalorder %s12178_s26, %s11784_s16 }
  0x4c   : > { %p11781_p8 = pnand %p11779_p6, %p12187_p13  ;;  %p11787_p11 = scmp.lt.s32.totalorder %s11785_s20, %s11778_s28 }
  0x4e   : > { %p11782_p1 = pneg %p11781_p8  ;;  %p11788_p4 = por %p11787_p11, %p11786_p0 }
  0x50   : > { %p11789_p5 = pnand %p11788_p4, %p11782_p1 }
  0x52   : > { %11792 = shalt.err (!%p11789_p5)
}
  0x53   : > { %s12005_s19 = smov 192   ;;  %s12006_s30 = smov 12  }
  0x54   : > { %10890 = dma.hbm_to_vmem [thread:$0]  (!%p16701_p12), %s12171_s3, 3072, %s12178_s26, %s12181_s0, %s12005_s19, %s12005_s19, %s12006_s30  }
  0x55   : > { %s9749_s27 = sshll.u32 %s11995_s13, 10  ;;  %s16703_s4 = sld [smem:[#allocation99_spill]] }
  0x56   : > { %s16704_s16 = sshll.u32 %s12160_s29, 6  ;;  %s16562_s23 = sshll.u32 %s12160_s29, 7 }
  0x57   : > { %s369_s20 = scalar_lea.vmem [#allocation10], %s16704_s16 }
  0x58   : > { %s376_s2 = sshll.u32 %s369_s20, 4  ;;  %s12219_s2 = int_to_ptr.vmem [resolvable:$true] %s376_s2 }
  0x5b   : > { %s12215_s28 = scalar_lea.hbm %s16703_s4, %s9749_s27  ;;  %s11798_s25 = scalar_lea.hbm %s16703_s4, 2048 }
  0x5c   : > { %s11793_s24 = scalar_lea.hbm %s12215_s28, 1024  ;;  %p11799_p7 = scmp.lt.u32.totalorder %s12215_s28, %s16703_s4 }
  0x5d   : > { %p11794_p11 = scmp.ne.s32.totalorder %s12215_s28, %s11793_s24  ;;  %p11800_p9 = scmp.lt.u32.totalorder %s11798_s25, %s11793_s24 }
  0x5e   : > { %p11802_p3 = scmp.lt.u32.totalorder %s11793_s24, %s12215_s28 }
  0x5f   : > { %p11796_p0 = pnand %p11794_p11, %p12187_p13  ;;  %p11801_p10 = por %p11800_p9, %p11799_p7 }
  0x61   : > { %p11797_p2 = pneg %p11796_p0  ;;  %p11803_p6 = por %p11802_p3, %p11801_p10 }
  0x63   : > { %p11804_p8 = pnand %p11803_p6, %p11797_p2 }
  0x65   : > { %11807 = shalt.err (!%p11804_p8)
}
  0x66   : > { %s11808_s27 = scalar_lea.vmem %s12219_s2, 1024  ;;  %s12007_s9 = smov [#allocation10]  }
  0x67   : > { %p11809_p1 = scmp.ne.s32.totalorder %s12219_s2, %s11808_s27  ;;  %s11813_s16 = sshll.u32 %s12007_s9, 4  ;;  %s11814_s16 = int_to_ptr.vmem [resolvable:$false] %s11813_s16 }
  0x68   : > { %s11815_s20 = scalar_lea.vmem %s11814_s16, 2048  ;;  %p11816_p11 = scmp.lt.s32.totalorder %s12219_s2, %s11814_s16 }
  0x69   : > { %p11811_p4 = pnand %p11809_p1, %p12187_p13  ;;  %p11817_p0 = scmp.lt.s32.totalorder %s11815_s20, %s11808_s27 }
  0x6b   : > { %p11812_p5 = pneg %p11811_p4  ;;  %p11818_p7 = por %p11817_p0, %p11816_p11 }
  0x6d   : > { %p11819_p9 = pnand %p11818_p7, %p11812_p5 }
  0x6f   : > { %11822 = shalt.err (!%p11819_p9)
}
  0x70   : > { %s16560_s24 = smov 64   ;;  %s16561_s3 = smov 4  }
  0x71   : > { %10893 = dma.hbm_to_vmem [thread:$0]  (!%p16701_p12), %s12215_s28, 1024, %s12219_s2, %s12181_s0, %s16560_s24, %s16560_s24, %s16561_s3  }
  0x72   : > { %s9750_s26 = sshll.u32 %s11995_s13, 11  ;;  %s16705_s5 = sld [smem:[#allocation100_spill]] }
  0x73   : > { %s390_s27 = scalar_lea.vmem [#allocation11], %s16562_s23 }
  0x74   : > { %s397_s9 = sshll.u32 %s390_s27, 4  ;;  %s12257_s9 = int_to_ptr.vmem [resolvable:$true] %s397_s9 }
  0x78   : > { %s12253_s30 = scalar_lea.hbm %s16705_s5, %s9750_s26  ;;  %s11828_s20 = scalar_lea.hbm %s16705_s5, 4096 }
  0x79   : > { %s11823_s16 = scalar_lea.hbm %s12253_s30, 2048  ;;  %p11829_p6 = scmp.lt.u32.totalorder %s12253_s30, %s16705_s5 }
  0x7a   : > { %p11824_p2 = scmp.ne.s32.totalorder %s12253_s30, %s11823_s16  ;;  %p11830_p8 = scmp.lt.u32.totalorder %s11828_s20, %s11823_s16 }
  0x7b   : > { %p11832_p4 = scmp.lt.u32.totalorder %s11823_s16, %s12253_s30 }
  0x7c   : > { %p11826_p10 = pnand %p11824_p2, %p12187_p13  ;;  %p11831_p1 = por %p11830_p8, %p11829_p6 }
  0x7e   : > { %p11827_p3 = pneg %p11826_p10  ;;  %p11833_p5 = por %p11832_p4, %p11831_p1 }
  0x80   : > { %p11834_p11 = pnand %p11833_p5, %p11827_p3 }
  0x82   : > { %11837 = shalt.err (!%p11834_p11)
}
  0x83   : > { %s11838_s27 = scalar_lea.vmem %s12257_s9, 2048  ;;  %s12010_s2 = smov [#allocation11]  }
  0x84   : > { %p11839_p0 = scmp.ne.s32.totalorder %s12257_s9, %s11838_s27  ;;  %s11843_s28 = sshll.u32 %s12010_s2, 4  ;;  %s11844_s28 = int_to_ptr.vmem [resolvable:$false] %s11843_s28 }
  0x85   : > { %s11845_s25 = scalar_lea.vmem %s11844_s28, 4096  ;;  %p11846_p2 = scmp.lt.s32.totalorder %s12257_s9, %s11844_s28 }
  0x86   : > { %p11841_p7 = pnand %p11839_p0, %p12187_p13  ;;  %p11847_p10 = scmp.lt.s32.totalorder %s11845_s25, %s11838_s27 }
  0x88   : > { %p11842_p9 = pneg %p11841_p7  ;;  %p11848_p6 = por %p11847_p10, %p11846_p2 }
  0x8a   : > { %p11849_p8 = pnand %p11848_p6, %p11842_p9 }
  0x8c   : > { %11852 = shalt.err (!%p11849_p8)
}
  0x8d   : > { %s16706_s16 = smov 8   ;;  %s16707_s20 = smov 128  }
  0x8e   : > { %10896 = dma.hbm_to_vmem [thread:$0]  (!%p16701_p12), %s12253_s30, 2048, %s12257_s9, %s12181_s0, %s16707_s20, %s16707_s20, %s16706_s16  }
  0x8f   : > { %s12011_s19 = smov [#allocation7]   ;;  %s12289_s25 = scalar_lea.hbm %s16544_s7, %s9750_s26 }
  0x90   : > { %s323_s2 = sshll.u32 %s12011_s19, 4  ;;  %s11853_s23 = scalar_lea.hbm %s16538_s1, 4096  ;;  %s324_s2 = int_to_ptr.vmem [resolvable:$true] %s323_s2 }
  0x91   : > { %p11854_p3 = scmp.ne.s32.totalorder %s16538_s1, %s11853_s23  ;;  %p16708_p1 = scmp.ne.s32.totalorder %s16694_s21, 0 }
  0x92   : > { %p11860_p0 = scmp.lt.u32.totalorder %s11853_s23, %s16538_s1 }
  0x93   : > { %p16709_p4 = pneg %p16708_p1 }
  0x95   : > { %p11856_p5 = pnand %p11854_p3, %p16709_p4 }
  0x97   : > { %p11857_p11 = pneg %p11856_p5 }
  0x99   : > { %p11862_p7 = pnand %p11860_p0, %p11857_p11 }
  0x9b   : > { %11865 = shalt.err (!%p11862_p7)
}
  0x9c   : > { %s11866_s26 = scalar_lea.vmem %s324_s2, 4096  ;;  %p16710_p2 = pmov %p16709_p4 }
  0x9d   : > { %p11867_p9 = scmp.ne.s32.totalorder %s324_s2, %s11866_s26  ;;  %p11874_p8 = scmp.lt.s32.totalorder %s324_s2, %s324_s2 }
  0x9e   : > { %p11875_p12 = scmp.lt.s32.totalorder %s11866_s26, %s11866_s26 }
  0x9f   : > { %p11869_p10 = pnand %p11867_p9, %p16710_p2 }
  0xa0   : > { %p11876_p13 = por %p11875_p12, %p11874_p8 }
  0xa1   : > { %p11870_p6 = pneg %p11869_p10 }
  0xa3   : > { %p11877_p3 = pnand %p11876_p13, %p11870_p6 }
  0xa5   : > { %11880 = shalt.err (!%p11877_p3)
}
  0xa6   : > { %10886 = dma.hbm_to_vmem [thread:$0]  (!%p16708_p1), %s16538_s1, 4096, %s324_s2, [#allocation8], %s16707_s20, %s16707_s20, %s16706_s16  }
  0xa7   : > { %s16711_s23 = sshll.u32 %s12160_s29, 7  ;;  %s11881_s19 = scalar_lea.hbm %s12289_s25, 2048 }
  0xa8   : > { %s418_s24 = scalar_lea.vmem [#allocation12], %s16711_s23  ;;  %p11882_p12 = scmp.ne.s32.totalorder %s12289_s25, %s11881_s19 }
  0xa9   : > { %s425_s3 = sshll.u32 %s418_s24, 4  ;;  %p16712_p13 = scmp.ne.s32.totalorder %s16702_s8, 0  ;;  %s12316_s3 = int_to_ptr.vmem [resolvable:$true] %s425_s3 }
  0xaa   : > { %s11886_s27 = scalar_lea.hbm %s16544_s7, 4096  ;;  %p11887_p11 = scmp.lt.u32.totalorder %s12289_s25, %s16544_s7 }
  0xab   : > { %p11884_p4 = pnand %p11882_p12, %p16712_p13  ;;  %p11888_p0 = scmp.lt.u32.totalorder %s11886_s27, %s11881_s19 }
  0xac   : > { %p11890_p7 = scmp.lt.u32.totalorder %s11881_s19, %s12289_s25 }
  0xad   : > { %p11885_p5 = pneg %p11884_p4  ;;  %p11889_p1 = por %p11888_p0, %p11887_p11 }
  0xaf   : > { %p11891_p9 = por %p11890_p7, %p11889_p1 }
  0xb1   : > { %p11892_p2 = pnand %p11891_p9, %p11885_p5 }
  0xb3   : > { %11895 = shalt.err (!%p11892_p2)
}
  0xb4   : > { %s11896_s29 = scalar_lea.vmem %s12316_s3, 2048  ;;  %s12012_s16 = smov [#allocation12]  }
  0xb5   : > { %p11897_p10 = scmp.ne.s32.totalorder %s12316_s3, %s11896_s29  ;;  %s11901_s20 = sshll.u32 %s12012_s16, 4  ;;  %s11902_s20 = int_to_ptr.vmem [resolvable:$false] %s11901_s20 }
  0xb6   : > { %s11903_s2 = scalar_lea.vmem %s11902_s20, 4096  ;;  %p11904_p3 = scmp.lt.s32.totalorder %s12316_s3, %s11902_s20 }
  0xb7   : > { %p11899_p6 = pnand %p11897_p10, %p16712_p13  ;;  %p11905_p12 = scmp.lt.s32.totalorder %s11903_s2, %s11896_s29 }
  0xb9   : > { %p11900_p8 = pneg %p11899_p6  ;;  %p11906_p4 = por %p11905_p12, %p11904_p3 }
  0xbb   : > { %p11907_p11 = pnand %p11906_p4, %p11900_p8 }
  0xbd   : > { %11910 = shalt.err (!%p11907_p11)
}
  0xbe   : > { %p16713_p5 = scmp.ne.s32.totalorder %s16695_s22, 0  ;;  %s16714_s26 = smov 4  }
  0xbf   : > { %s16715_s4 = smov 64   ;;  %p16716_p13 = scmp.ne.s32.totalorder %s16693_s18, 0 }
  0xc0   : > { %10899 = dma.hbm_to_vmem [thread:$0]  (!%p16713_p5), %s12289_s25, 2048, %s12316_s3, %s12181_s0, %s16715_s4, %s16715_s4, %s16714_s26  }
  0xc1   : > { %444 = sbr.rel (%p16716_p13) target bundleno = 4962 (0x1362), region = 56 }
  0xc8   : > { %p16717_p0 = scmp.eq.s32.totalorder %s12099_s15, 0 }
  0xca   : > { %11962 = dma.done.wait (%p16717_p0), [#allocation5], 512   ;;  %p16718_p1 = pmov %p16717_p0 }
  0xcb   : > { %p16719_p7 = pmov %p16717_p0 }
  0xcc   : > { %11964 = vsyncadd (%p16718_p1), [#allocation5], 4294966784 }
  0xcd   : > { %11966 = dma.done.wait (%p16719_p7), [#allocation8], 4096   ;;  %p16720_p9 = pmov %p16717_p0 }
  0xce   : > { %s454_s22 = sand.u32 1, %s12099_s15   ;;  %s456_s0 = sand.u32 1, %s11983_s10  }
  0xcf   : > { %11968 = vsyncadd (%p16720_p9), [#allocation8], 4294963200  ;;  %s10858_s8 = smul.u32 192, %s456_s0  ;;  %s455_s18 = scalar_lea.sflag [#allocation5], %s454_s22 }
  0xd0   : > { %p16721_p2 = scmp.ne.s32.totalorder %s16692_s17, 0 }
  0xd1   : > { %s12355_s25 = scalar_lea.vmem [#allocation9], %s10858_s8 }
  0xd2   : > { %11970 = dma.done.wait (%p16721_p2), %s455_s18, 8192  }
  0xd3   : > { %11972 = vsyncadd (%p16721_p2), %s455_s18, 4294959104  ;;  %s9546_s5 = sshll.u32 %s456_s0, 6  ;;  %s9547_s23 = sshll.u32 %s456_s0, 7 }
  0xd4   : > { %p543_p10 = scmp.lt.s32.totalorder %s11991_s12, 1  ;;  %s16722_s16 = sld [smem:[#allocation98_spill]] }
  0xd5   : > { %s16723_s26 = sld [smem:[#allocation101_spill]]  ;;  %s12378_s22 = scalar_lea.vmem [#allocation10], %s9546_s5 }
  0xd6   : > { %s544_s24 = scalar_select %p543_p10, %s11991_s12, 1 }
  0xd7   : > { %s12380_s0 = scalar_lea.vmem [#allocation11], %s9547_s23  ;;  %s12382_s8 = scalar_lea.vmem [#allocation12], %s9547_s23 }
  0xd8   : > { %s10859_s3 = smul.u32 3, %s544_s24  ;;  %s9549_s19 = sshll.u32 %s544_s24, 1 }
  0xd9   : > { %s12366_s27 = scalar_lea.vmem %s16543_s6, %s9549_s19  ;;  %s9550_s30 = sshll.u32 %s544_s24, 3 }
  0xda   : > { %s12371_s20 = scalar_lea.vmem %s16722_s16, %s10859_s3  ;;  %p9551_p6 = scmp.ne.s32.totalorder %s11991_s12, 0 }
  0xdb   : > { %s12376_s4 = scalar_lea.vmem %s16723_s26, %s9550_s30  ;;  %v561_v0 = vld [vmem:[#allocation7] sm:$0xff] (!%p9551_p6)  ;;  %v562_v1 = vld [vmem:[#allocation7 + $0x8] sm:$0xff] (!%p9551_p6)  ;;  %v563_v2 = vld [vmem:[#allocation7 + $0x10] sm:$0xff] (!%p9551_p6) }
  0xdc   : > { %560 = sbr.rel (%p9551_p6) target bundleno = 236 (0xec), region = 84  ;;  %593 = vst [vmem:[#allocation2] sm:$0xff] (!%p9551_p6), %v561_v0  ;;  %594 = vst [vmem:[#allocation2 + $0x8] sm:$0xff] (!%p9551_p6), %v562_v1  ;;  %v564_v3 = vld [vmem:[#allocation7 + $0x18] sm:$0xff] (!%p9551_p6)  ;;  %v565_v4 = vld [vmem:[#allocation7 + $0x20] sm:$0xff] (!%p9551_p6) }
  0xdd   : > { %595 = vst [vmem:[#allocation2 + $0x10] sm:$0xff] (!%p9551_p6), %v563_v2  ;;  %v566_v5 = vld [vmem:[#allocation7 + $0x28] sm:$0xff] (!%p9551_p6)  ;;  %596 = vst [vmem:[#allocation2 + $0x18] sm:$0xff] (!%p9551_p6), %v564_v3  ;;  %v567_v6 = vld [vmem:[#allocation7 + $0x30] sm:$0xff] (!%p9551_p6) }
  0xde   : > { %597 = vst [vmem:[#allocation2 + $0x20] sm:$0xff] (!%p9551_p6), %v565_v4  ;;  %598 = vst [vmem:[#allocation2 + $0x28] sm:$0xff] (!%p9551_p6), %v566_v5  ;;  %v568_v7 = vld [vmem:[#allocation7 + $0x38] sm:$0xff] (!%p9551_p6)  ;;  %v569_v8 = vld [vmem:[#allocation7 + $0x40] sm:$0xff] (!%p9551_p6) }
  0xdf   : > { %599 = vst [vmem:[#allocation2 + $0x30] sm:$0xff] (!%p9551_p6), %v567_v6  ;;  %600 = vst [vmem:[#allocation2 + $0x38] sm:$0xff] (!%p9551_p6), %v568_v7  ;;  %v570_v9 = vld [vmem:[#allocation7 + $0x48] sm:$0xff] (!%p9551_p6)  ;;  %v571_v10 = vld [vmem:[#allocation7 + $0x50] sm:$0xff] (!%p9551_p6) }
  0xe0   : > { %601 = vst [vmem:[#allocation2 + $0x40] sm:$0xff] (!%p9551_p6), %v569_v8  ;;  %v572_v11 = vld [vmem:[#allocation7 + $0x58] sm:$0xff] (!%p9551_p6)  ;;  %602 = vst [vmem:[#allocation2 + $0x48] sm:$0xff] (!%p9551_p6), %v570_v9  ;;  %v573_v12 = vld [vmem:[#allocation7 + $0x60] sm:$0xff] (!%p9551_p6) }
  0xe1   : > { %603 = vst [vmem:[#allocation2 + $0x50] sm:$0xff] (!%p9551_p6), %v571_v10  ;;  %604 = vst [vmem:[#allocation2 + $0x58] sm:$0xff] (!%p9551_p6), %v572_v11  ;;  %v574_v13 = vld [vmem:[#allocation7 + $0x68] sm:$0xff] (!%p9551_p6)  ;;  %v575_v14 = vld [vmem:[#allocation7 + $0x70] sm:$0xff] (!%p9551_p6) }
  0xe2   : > { %605 = vst [vmem:[#allocation2 + $0x60] sm:$0xff] (!%p9551_p6), %v573_v12  ;;  %606 = vst [vmem:[#allocation2 + $0x68] sm:$0xff] (!%p9551_p6), %v574_v13  ;;  %v576_v15 = vld [vmem:[#allocation7 + $0x78] sm:$0xff] (!%p9551_p6)  ;;  %v577_v16 = vld [vmem:[#allocation7 + $0x80] sm:$0xff] (!%p9551_p6) }
  0xe3   : > { %607 = vst [vmem:[#allocation2 + $0x70] sm:$0xff] %v575_v14  ;;  %v578_v17 = vld [vmem:[#allocation7 + $0x88] sm:$0xff]  ;;  %608 = vst [vmem:[#allocation2 + $0x78] sm:$0xff] %v576_v15  ;;  %v579_v18 = vld [vmem:[#allocation7 + $0x90] sm:$0xff] }
  0xe4   : > { %609 = vst [vmem:[#allocation2 + $0x80] sm:$0xff] %v577_v16  ;;  %610 = vst [vmem:[#allocation2 + $0x88] sm:$0xff] %v578_v17  ;;  %v580_v19 = vld [vmem:[#allocation7 + $0x98] sm:$0xff]  ;;  %v581_v20 = vld [vmem:[#allocation7 + $0xa0] sm:$0xff] }
  0xe5   : > { %611 = vst [vmem:[#allocation2 + $0x90] sm:$0xff] %v579_v18  ;;  %612 = vst [vmem:[#allocation2 + $0x98] sm:$0xff] %v580_v19  ;;  %v582_v21 = vld [vmem:[#allocation7 + $0xa8] sm:$0xff]  ;;  %v583_v22 = vld [vmem:[#allocation7 + $0xb0] sm:$0xff] }
  0xe6   : > { %613 = vst [vmem:[#allocation2 + $0xa0] sm:$0xff] %v581_v20  ;;  %v584_v23 = vld [vmem:[#allocation7 + $0xb8] sm:$0xff]  ;;  %614 = vst [vmem:[#allocation2 + $0xa8] sm:$0xff] %v582_v21  ;;  %v585_v24 = vld [vmem:[#allocation7 + $0xc0] sm:$0xff] }
  0xe7   : > { %615 = vst [vmem:[#allocation2 + $0xb0] sm:$0xff] %v583_v22  ;;  %616 = vst [vmem:[#allocation2 + $0xb8] sm:$0xff] %v584_v23  ;;  %v586_v25 = vld [vmem:[#allocation7 + $0xc8] sm:$0xff]  ;;  %v587_v26 = vld [vmem:[#allocation7 + $0xd0] sm:$0xff] }
  0xe8   : > { %617 = vst [vmem:[#allocation2 + $0xc0] sm:$0xff] %v585_v24  ;;  %618 = vst [vmem:[#allocation2 + $0xc8] sm:$0xff] %v586_v25  ;;  %v588_v27 = vld [vmem:[#allocation7 + $0xd8] sm:$0xff]  ;;  %v589_v28 = vld [vmem:[#allocation7 + $0xe0] sm:$0xff] }
  0xe9   : > { %619 = vst [vmem:[#allocation2 + $0xd0] sm:$0xff] %v587_v26  ;;  %v590_v29 = vld [vmem:[#allocation7 + $0xe8] sm:$0xff]  ;;  %620 = vst [vmem:[#allocation2 + $0xd8] sm:$0xff] %v588_v27  ;;  %v591_v30 = vld [vmem:[#allocation7 + $0xf0] sm:$0xff] }
  0xea   : > { %621 = vst [vmem:[#allocation2 + $0xe0] sm:$0xff] %v589_v28  ;;  %622 = vst [vmem:[#allocation2 + $0xe8] sm:$0xff] %v590_v29  ;;  %v592_v31 = vld [vmem:[#allocation7 + $0xf8] sm:$0xff] }
  0xeb   : > { %623 = vst [vmem:[#allocation2 + $0xf0] sm:$0xff] %v591_v30  ;;  %624 = vst [vmem:[#allocation2 + $0xf8] sm:$0xff] %v592_v31 }
  0xec PF: > { %v10970_v32 = vld [vmem:[%s12355_s25 + $0x4] ss:$12 sps:$4 sm:$0xff]   ;;  %v10972_v33 = vld [vmem:[%s12355_s25] ss:$12 sps:$4 sm:$0xff]   ;;  %v16567_v34 = vmov 0   ;;  %vm1289_vm0 = vcmask 261120  }
  0xed   : > { %883 = vmatprep.mubr.bf16.mxu0 %v16567_v34  ;;  %1003 = vmatprep.mubr.bf16.mxu1 %v16567_v34  ;;  %v10973_v35 = vld [vmem:[%s12355_s25 + $0x1c] ss:$12 sps:$4 sm:$0xff]   ;;  %v10975_v36 = vld [vmem:[%s12355_s25 + $0x18] ss:$12 sps:$4 sm:$0xff]   ;;  %v10976_v37 = vld [vmem:[%s12355_s25 + $0x34] ss:$12 sps:$4 sm:$0xff]  }
  0xee   : > { %851 = vmatprep.subr.bf16.mxu0 %v10970_v32  ;;  %10776 = vmatprep.subr.bf16.mxu1 %v10970_v32  ;;  %v10978_v38 = vld [vmem:[%s12355_s25 + $0x30] ss:$12 sps:$4 sm:$0xff]   ;;  %v10979_v39 = vld [vmem:[%s12355_s25 + $0x4c] ss:$12 sps:$4 sm:$0xff]   ;;  %v10981_v40 = vld [vmem:[%s12355_s25 + $0x48] ss:$12 sps:$4 sm:$0xff]  }
  0xef   : > { %852 = vmatpush1.bf16.msra.mxu0 %v10972_v33  ;;  %10784 = vmatpush1.bf16.msra.mxu1 %v10972_v33  ;;  %v10982_v41 = vld [vmem:[%s12355_s25 + $0x64] ss:$12 sps:$4 sm:$0xff]   ;;  %v10984_v42 = vld [vmem:[%s12355_s25 + $0x60] ss:$12 sps:$4 sm:$0xff]   ;;  %v10985_v43 = vld [vmem:[%s12355_s25 + $0x7c] ss:$12 sps:$4 sm:$0xff]  }
  0xf0   : > { %853 = vmatprep.subr.bf16.mxu0 %v10973_v35  ;;  %10777 = vmatprep.subr.bf16.mxu1 %v10973_v35  ;;  %v10987_v44 = vld [vmem:[%s12355_s25 + $0x78] ss:$12 sps:$4 sm:$0xff]   ;;  %v10988_v45 = vld [vmem:[%s12355_s25 + $0x94] ss:$12 sps:$4 sm:$0xff]   ;;  %v10990_v46 = vld [vmem:[%s12355_s25 + $0x90] ss:$12 sps:$4 sm:$0xff]  }
  0xf1   : > { %v10991_v47 = vld [vmem:[%s12355_s25 + $0xac] ss:$12 sps:$4 sm:$0xff]   ;;  %v10993_v48 = vld [vmem:[%s12355_s25 + $0xa8] ss:$12 sps:$4 sm:$0xff]   ;;  %v625_v49 = vld [vmem:[#allocation2] sm:$0xff]  ;;  %s12014_s18 = smov 96  }
  0xf2   : > { %v626_v50 = vld [vmem:[#allocation2 + $0x8] sm:$0xff]  ;;  %v649_v51 = vld [vmem:[#allocation2 + $0xc0] sm:$0xff]  ;;  %v627_v57 = vld [vmem:[#allocation2 + $0x10] sm:$0xff]  ;;  %s12016_s5 = smov 32   ;;  %vm4202_vm1 = vcmask 523520   ;;  %vm5771_vm2 = vcmask 785920  }
  0xf3   : > { %854 = vmatpush1.bf16.msra.mxu0 %v10975_v36  ;;  %10785 = vmatpush1.bf16.msra.mxu1 %v10975_v36  ;;  %v650_v52 = vld [vmem:[#allocation2 + $0xc8] sm:$0xff]  ;;  %v657_v54 = vpack.c.bf16 %v626_v50, %v625_v49  ;;  %v628_v58 = vld [vmem:[#allocation2 + $0x18] sm:$0xff]  ;;  %v651_v59 = vld [vmem:[#allocation2 + $0xd0] sm:$0xff]  ;;  %vm7340_vm3 = vcmask 1048320   ;;  %p9744_p8 = scmp.ne.s32.totalorder %s11991_s12, 1 }
  0xf4   : > { %855 = vmatprep.subr.bf16.mxu0 %v10976_v37  ;;  %10778 = vmatprep.subr.bf16.mxu1 %v10976_v37  ;;  %v10994_v53 = vld [vmem:[%s12355_s25 + $0x8] ss:$12 sps:$4 sm:$0xff]   ;;  %v12404_v55 = vpack.c.bf16 %v650_v52, %v649_v51  ;;  %v10995_v56 = vld [vmem:[%s12355_s25 + $0x20] ss:$12 sps:$4 sm:$0xff]   ;;  %v652_v60 = vld [vmem:[#allocation2 + $0xd8] sm:$0xff]  ;;  %v658_v62 = vpack.c.bf16 %v628_v58, %v627_v57 }
  0xf5   : > { %v10996_v61 = vld [vmem:[%s12355_s25 + $0x38] ss:$12 sps:$4 sm:$0xff]   ;;  %v12411_v63 = vpack.c.bf16 %v652_v60, %v651_v59  ;;  %v10997_v0 = vld [vmem:[%s12355_s25 + $0x50] ss:$12 sps:$4 sm:$0xff]   ;;  %v630_v2 = vld [vmem:[#allocation2 + $0x28] sm:$0xff] }
  0xf6   : > { %v629_v1 = vld [vmem:[#allocation2 + $0x20] sm:$0xff]  ;;  %v654_v4 = vld [vmem:[#allocation2 + $0xe8] sm:$0xff]  ;;  %v631_v9 = vld [vmem:[#allocation2 + $0x30] sm:$0xff] }
  0xf7   : > { %856 = vmatpush1.bf16.msra.mxu0 %v10978_v38  ;;  %10786 = vmatpush1.bf16.msra.mxu1 %v10978_v38  ;;  %v653_v3 = vld [vmem:[#allocation2 + $0xe0] sm:$0xff]  ;;  %v10998_v5 = vld [vmem:[%s12355_s25 + $0x68] ss:$12 sps:$4 sm:$0xff]   ;;  %v659_v6 = vpack.c.bf16 %v630_v2, %v629_v1  ;;  %v632_v10 = vld [vmem:[#allocation2 + $0x38] sm:$0xff] }
  0xf8   : > { %857 = vmatprep.subr.bf16.mxu0 %v10979_v39  ;;  %10779 = vmatprep.subr.bf16.mxu1 %v10979_v39  ;;  %v12418_v7 = vpack.c.bf16 %v654_v4, %v653_v3  ;;  %v10999_v8 = vld [vmem:[%s12355_s25 + $0x80] ss:$12 sps:$4 sm:$0xff]   ;;  %v655_v11 = vld [vmem:[#allocation2 + $0xf0] sm:$0xff]  ;;  %v656_v12 = vld [vmem:[#allocation2 + $0xf8] sm:$0xff]  ;;  %v660_v14 = vpack.c.bf16 %v632_v10, %v631_v9 }
  0xf9   : > { %v11000_v13 = vld [vmem:[%s12355_s25 + $0x98] ss:$12 sps:$4 sm:$0xff]   ;;  %v12425_v15 = vpack.c.bf16 %v656_v12, %v655_v11  ;;  %v11001_v16 = vld [vmem:[%s12355_s25 + $0xb0] ss:$12 sps:$4 sm:$0xff]   ;;  %v634_v18 = vld [vmem:[#allocation2 + $0x48] sm:$0xff]  ;;  %s12015_s25 = smov 64  }
  0xfa   : > { %v633_v17 = vld [vmem:[#allocation2 + $0x40] sm:$0xff]  ;;  %v635_v20 = vld [vmem:[#allocation2 + $0x50] sm:$0xff]  ;;  %v636_v21 = vld [vmem:[#allocation2 + $0x58] sm:$0xff] }
  0xfb   : > { %858 = vmatpush1.bf16.msra.mxu0 %v10981_v40  ;;  %10787 = vmatpush1.bf16.msra.mxu1 %v10981_v40  ;;  %v661_v19 = vpack.c.bf16 %v634_v18, %v633_v17  ;;  %v662_v22 = vpack.c.bf16 %v636_v21, %v635_v20  ;;  %v637_v23 = vld [vmem:[#allocation2 + $0x60] sm:$0xff]  ;;  %v638_v24 = vld [vmem:[#allocation2 + $0x68] sm:$0xff]  ;;  %v639_v26 = vld [vmem:[#allocation2 + $0x70] sm:$0xff] }
  0xfc   : > { %859 = vmatprep.subr.bf16.mxu0 %v10982_v41  ;;  %10780 = vmatprep.subr.bf16.mxu1 %v10982_v41  ;;  %v663_v25 = vpack.c.bf16 %v638_v24, %v637_v23  ;;  %v640_v27 = vld [vmem:[#allocation2 + $0x78] sm:$0xff]  ;;  %v641_v29 = vld [vmem:[#allocation2 + $0x80] sm:$0xff]  ;;  %v642_v30 = vld [vmem:[#allocation2 + $0x88] sm:$0xff] }
  0xfd   : > { %v664_v28 = vpack.c.bf16 %v640_v27, %v639_v26  ;;  %v665_v31 = vpack.c.bf16 %v642_v30, %v641_v29  ;;  %v643_v32 = vld [vmem:[#allocation2 + $0x90] sm:$0xff]  ;;  %v644_v33 = vld [vmem:[#allocation2 + $0x98] sm:$0xff]  ;;  %v645_v35 = vld [vmem:[#allocation2 + $0xa0] sm:$0xff] }
  0xfe   : > { %v646_v36 = vld [vmem:[#allocation2 + $0xa8] sm:$0xff]  ;;  %v666_v37 = vpack.c.bf16 %v644_v33, %v643_v32  ;;  %v647_v39 = vld [vmem:[#allocation2 + $0xb0] sm:$0xff]  ;;  %v648_v40 = vld [vmem:[#allocation2 + $0xb8] sm:$0xff] }
  0xff   : > { %860 = vmatpush1.bf16.msra.mxu0 %v10984_v42  ;;  %10788 = vmatpush1.bf16.msra.mxu1 %v10984_v42  ;;  %v667_v38 = vpack.c.bf16 %v646_v36, %v645_v35  ;;  %v668_v41 = vpack.c.bf16 %v648_v40, %v647_v39  ;;  %v708_v42 = vlaneseq }
 0x100   : > { %861 = vmatprep.subr.bf16.mxu0 %v10985_v43  ;;  %10781 = vmatprep.subr.bf16.mxu1 %v10985_v43 }
 0x101   : > { %v12441_v43 = vshrl.u32 %v708_v42, 7 }
 0x103   : > { %862 = vmatpush1.bf16.msra.mxu0 %v10987_v44  ;;  %10789 = vmatpush1.bf16.msra.mxu1 %v10987_v44  ;;  %16724 = vst [vmem:[#allocation20_spill] sm:$0xff] %v12441_v43  ;;  %v12444_v44 = vsub.s32 0, %v12441_v43 }
 0x104   : > { %863 = vmatprep.subr.bf16.mxu0 %v10988_v45  ;;  %10782 = vmatprep.subr.bf16.mxu1 %v10988_v45  ;;  %v12447_v45 = vld [vmem:[%s12371_s20] sm:$0x7] }
 0x105   : > { %16725 = vst [vmem:[#allocation21_spill] sm:$0xff] %v12444_v44 }
 0x107   : > { %864 = vmatpush1.bf16.msra.mxu0 %v10990_v46  ;;  %10790 = vmatpush1.bf16.msra.mxu1 %v10990_v46  ;;  %v12450_v46 = vsub.s32 1, %v12441_v43 }
 0x108   : > { %865 = vmatprep.subr.bf16.mxu0 %v10991_v47  ;;  %10783 = vmatprep.subr.bf16.mxu1 %v10991_v47  ;;  %v12454_v47 = vrot.slane %v12447_v45, %v12444_v44 }
 0x109   : > { %16726 = vst [vmem:[#allocation22_spill] sm:$0xff] %v12450_v46  ;;  %v12458_v49 = vrot.slane %v12447_v45, %v12450_v46 }
 0x10b   : > { %866 = vmatpush1.bf16.msra.mxu0 %v10993_v48  ;;  %10791 = vmatpush1.bf16.msra.mxu1 %v10993_v48 }
 0x10c   : > { %10168 = vmatprep.subr.bf16.mxu1 %v10994_v53 }
 0x10e   : > { %884 = vmatmul.mubr.bf16.vlgmr.msra.gmra.mrb[0].mxu0 %v657_v54  ;;  %1004 = vmatmul.mubr.bf16.vlgmr.msra.gmra.mrb[0].mxu1 %v12404_v55 }
 0x10f   : > { %893 = vmatprep.mubr.bf16.mxu0 %v16567_v34  ;;  %1013 = vmatprep.mubr.bf16.mxu1 %v16567_v34 }
 0x110   : > { %10169 = vmatpush3.bf16.msra.mxu1 %v10994_v53 }
 0x111   : > { %10170 = vmatprep.subr.bf16.mxu1 %v10995_v56 }
 0x114   : > { %10171 = vmatpush3.bf16.msra.mxu1 %v10995_v56 }
 0x115   : > { %10172 = vmatprep.subr.bf16.mxu1 %v10996_v61 }
 0x116   : > { %894 = vmatmul.mubr.bf16.gmra.mrb[4].mxu0 %v658_v62  ;;  %1014 = vmatmul.mubr.bf16.gmra.mrb[4].mxu1 %v12411_v63 }
 0x117   : > { %903 = vmatprep.mubr.bf16.mxu0 %v16567_v34  ;;  %1023 = vmatprep.mubr.bf16.mxu1 %v16567_v34 }
 0x118   : > { %10173 = vmatpush3.bf16.msra.mxu1 %v10996_v61 }
 0x119   : > { %10174 = vmatprep.subr.bf16.mxu1 %v10997_v0 }
 0x11c   : > { %10175 = vmatpush3.bf16.msra.mxu1 %v10997_v0 }
 0x11d   : > { %10176 = vmatprep.subr.bf16.mxu1 %v10998_v5 }
 0x11e   : > { %904 = vmatmul.mubr.bf16.gmra.mrb[8].mxu0 %v659_v6  ;;  %1024 = vmatmul.mubr.bf16.gmra.mrb[8].mxu1 %v12418_v7 }
 0x11f   : > { %913 = vmatprep.mubr.bf16.mxu0 %v16567_v34  ;;  %1033 = vmatprep.mubr.bf16.mxu1 %v16567_v34 }
 0x120   : > { %10177 = vmatpush3.bf16.msra.mxu1 %v10998_v5 }
 0x121   : > { %10178 = vmatprep.subr.bf16.mxu1 %v10999_v8 }
 0x124   : > { %10179 = vmatpush3.bf16.msra.mxu1 %v10999_v8 }
 0x125   : > { %10180 = vmatprep.subr.bf16.mxu1 %v11000_v13 }
 0x126   : > { %914 = vmatmul.mubr.bf16.gmra.mrb[12].mxu0 %v660_v14  ;;  %1034 = vmatmul.mubr.bf16.gmra.mrb[12].mxu1 %v12425_v15 }
 0x127   : > { %923 = vmatprep.mubr.bf16.mxu0 %v16567_v34  ;;  %10184 = vmatprep.mubr.bf16.mxu1 %v657_v54 }
 0x128   : > { %10181 = vmatpush3.bf16.msra.mxu1 %v11000_v13 }
 0x129   : > { %10182 = vmatprep.subr.bf16.mxu1 %v11001_v16 }
 0x12c   : > { %10183 = vmatpush3.bf16.msra.mxu1 %v11001_v16 }
 0x12e   : > { %924 = vmatmul.mubr.bf16.gmra.mrb[16].mxu0 %v661_v19 }
 0x12f   : > { %933 = vmatprep.mubr.bf16.mxu0 %v16567_v34  ;;  %10185 = vmatmul.mubr.bf16.vlgmr.msra.gmra.mrb[16].mxu1 %v658_v62 }
 0x130   : > { %10188 = vmatprep.mubr.bf16.mxu1 %v659_v6 }
 0x136   : > { %934 = vmatmul.mubr.bf16.gmra.mrb[20].mxu0 %v662_v22 }
 0x137   : > { %943 = vmatprep.mubr.bf16.mxu0 %v16567_v34  ;;  %10189 = vmatmul.mubr.bf16.gmra.mrb[20].mxu1 %v660_v14 }
 0x138   : > { %10192 = vmatprep.mubr.bf16.mxu1 %v661_v19 }
 0x13e   : > { %944 = vmatmul.mubr.bf16.gmra.mrb[24].mxu0 %v663_v25 }
 0x13f   : > { %953 = vmatprep.mubr.bf16.mxu0 %v16567_v34  ;;  %10193 = vmatmul.mubr.bf16.gmra.mrb[24].mxu1 %v662_v22 }
 0x140   : > { %10196 = vmatprep.mubr.bf16.mxu1 %v663_v25 }
 0x146   : > { %954 = vmatmul.mubr.bf16.gmra.mrb[28].mxu0 %v664_v28 }
 0x147   : > { %963 = vmatprep.mubr.bf16.mxu0 %v16567_v34  ;;  %10197 = vmatmul.mubr.bf16.gmra.mrb[28].mxu1 %v664_v28 }
 0x148   : > { %10200 = vmatprep.mubr.bf16.mxu1 %v665_v31 }
 0x14e   : > { %964 = vmatmul.mubr.bf16.gmra.mrb[32].mxu0 %v665_v31 }
 0x14f   : > { %973 = vmatprep.mubr.bf16.mxu0 %v16567_v34  ;;  %10201 = vmatmul.mubr.bf16.gmra.mrb[32].mxu1 %v666_v37 }
 0x150   : > { %10204 = vmatprep.mubr.bf16.mxu1 %v667_v38 }
 0x156   : > { %974 = vmatmul.mubr.bf16.gmra.mrb[36].mxu0 %v666_v37 }
 0x157   : > { %983 = vmatprep.mubr.bf16.mxu0 %v16567_v34  ;;  %10205 = vmatmul.mubr.bf16.gmra.mrb[36].mxu1 %v668_v41 }
 0x158   : > { %10208 = vmatprep.mubr.bf16.mxu1 %v12404_v55 }
 0x15e   : > { %984 = vmatmul.mubr.bf16.gmra.mrb[40].mxu0 %v667_v38 }
 0x15f   : > { %993 = vmatprep.mubr.bf16.mxu0 %v16567_v34  ;;  %10209 = vmatmul.mubr.bf16.gmra.mrb[40].mxu1 %v12411_v63 }
 0x160   : > { %10212 = vmatprep.mubr.bf16.mxu1 %v12418_v7 }
 0x166   : > { %994 = vmatmul.mubr.bf16.gmra.mrb[44].mxu0 %v668_v41 }
 0x167   : > { %10213 = vmatmul.mubr.bf16.gmra.mrb[44].mxu1 %v12425_v15 }
 0x1e1   : > { %v885_v48 = vpop.f32.mrb[0].mxu0  ;;  %v1005_v50 = vpop.f32.mrb[0].mxu1 }
 0x1e2   : > { %v886_v51 = vadd.f32 %v885_v48, %v12454_v47  ;;  %v887_v52 = vpop.f32.mrb[1].mxu0  ;;  %v1006_v53 = vadd.f32 %v1005_v50, %v12454_v47  ;;  %v1007_v54 = vpop.f32.mrb[1].mxu1 }
 0x1e3   : > { %v889_v55 = vpop.f32.mrb[2].mxu0  ;;  %v1008_v56 = vadd.f32 %v1007_v54, %v12458_v49  ;;  %v1009_v57 = vpop.f32.mrb[2].mxu1  ;;  %v888_v63 = vadd.f32 %v887_v52, %v12458_v49 }
 0x1e4   : > { %v890_v58 = vadd.f32 %v889_v55, %v12454_v47  ;;  %v891_v59 = vpop.f32.mrb[3].mxu0  ;;  %v1229_v60 = vmul.f32 0.17677669, %v1006_v53  ;;  %v1010_v61 = vadd.f32 %v1009_v57, %v12454_v47  ;;  %v1011_v62 = vpop.f32.mrb[3].mxu1  ;;  %v1205_v2 = vmul.f32 0.17677669, %v886_v51 }
 0x1e5   : > { %v892_v0 = vadd.f32 %v891_v59, %v12458_v49  ;;  %v1012_v1 = vadd.f32 %v1011_v62, %v12458_v49 }
 0x1e6   : > { %v1206_v3 = vmul.f32 0.17677669, %v890_v58  ;;  %v1230_v4 = vmul.f32 0.17677669, %v1010_v61 }
 0x1e7   : > { %v12468_v5 = vpack.c.bf16 %v892_v0, %v888_v63  ;;  %v12470_v6 = vpack.c.bf16 %v1012_v1, %v1008_v56 }
 0x1e8   : > { %v12472_v7 = vpack.c.bf16 %v1206_v3, %v1205_v2  ;;  %v12474_v8 = vpack.c.bf16 %v1230_v4, %v1229_v60 }
 0x1e9   : > { %16727 = vst [vmem:[#allocation23_spill] sm:$0xff] %v12468_v5  ;;  %16728 = vst [vmem:[#allocation24_spill] sm:$0xff] %v12470_v6  ;;  %v895_v9 = vpop.f32.mrb[4].mxu0  ;;  %10792 = vmatprep.subr.msk.bf16.mxu1 %vm1289_vm0, %v12468_v5  ;;  %v1297_v10 = vsel %vm1289_vm0, %v12468_v5, 0  ;;  %v1015_v11 = vpop.f32.mrb[4].mxu1 }
 0x1ea   : > { %16729 = vst [vmem:[#allocation25_spill] sm:$0xff] %v12472_v7  ;;  %16730 = vst [vmem:[#allocation26_spill] sm:$0xff] %v12474_v8  ;;  %v896_v12 = vadd.f32 %v895_v9, %v12454_v47  ;;  %v897_v13 = vpop.f32.mrb[5].mxu0  ;;  %10217 = vmatpush3.bf16.xpose.msra.mxu1 %v1297_v10  ;;  %10220 = vmatprep.mubr.msk.bf16.mxu1 %vm1289_vm0, %v12472_v7  ;;  %v1016_v14 = vadd.f32 %v1015_v11, %v12454_v47  ;;  %v1017_v15 = vpop.f32.mrb[5].mxu1 }
 0x1eb   : > { %v899_v16 = vpop.f32.mrb[6].mxu0  ;;  %v1018_v17 = vadd.f32 %v1017_v15, %v12458_v49  ;;  %v1019_v18 = vpop.f32.mrb[6].mxu1  ;;  %v898_v24 = vadd.f32 %v897_v13, %v12458_v49 }
 0x1ec   : > { %v900_v19 = vadd.f32 %v899_v16, %v12454_v47  ;;  %v901_v20 = vpop.f32.mrb[7].mxu0  ;;  %v1231_v21 = vmul.f32 0.17677669, %v1016_v14  ;;  %v1020_v22 = vadd.f32 %v1019_v18, %v12454_v47  ;;  %v1021_v23 = vpop.f32.mrb[7].mxu1  ;;  %v1207_v27 = vmul.f32 0.17677669, %v896_v12 }
 0x1ed   : > { %v902_v25 = vadd.f32 %v901_v20, %v12458_v49  ;;  %v1022_v26 = vadd.f32 %v1021_v23, %v12458_v49 }
 0x1ee   : > { %v1208_v28 = vmul.f32 0.17677669, %v900_v19  ;;  %v1232_v29 = vmul.f32 0.17677669, %v1020_v22 }
 0x1ef   : > { %v12490_v30 = vpack.c.bf16 %v902_v25, %v898_v24  ;;  %v12492_v31 = vpack.c.bf16 %v1022_v26, %v1018_v17 }
 0x1f0   : > { %v12494_v32 = vpack.c.bf16 %v1208_v28, %v1207_v27  ;;  %v12496_v33 = vpack.c.bf16 %v1232_v29, %v1231_v21  ;;  %v16566_v21 = vsub.s32 2, %v12441_v43 }
 0x1f1   : > { %16731 = vst [vmem:[#allocation27_spill] sm:$0xff] %v12490_v30  ;;  %16732 = vst [vmem:[#allocation28_spill] sm:$0xff] %v12492_v31  ;;  %v905_v35 = vpop.f32.mrb[8].mxu0  ;;  %10793 = vmatprep.subr.msk.bf16.mxu1 %vm1289_vm0, %v12490_v30  ;;  %v1300_v36 = vsel %vm1289_vm0, %v12490_v30, 0  ;;  %v1025_v37 = vpop.f32.mrb[8].mxu1 }
 0x1f2   : > { %16733 = vst [vmem:[#allocation29_spill] sm:$0xff] %v12496_v33  ;;  %v906_v38 = vadd.f32 %v905_v35, %v12454_v47  ;;  %v907_v39 = vpop.f32.mrb[9].mxu0  ;;  %10219 = vmatpush3.bf16.xpose.msra.mxu1 %v1300_v36  ;;  %v1026_v40 = vadd.f32 %v1025_v37, %v12454_v47  ;;  %v1027_v41 = vpop.f32.mrb[9].mxu1  ;;  %v12546_v37 = vrot.slane %v12447_v45, %v16566_v21 }
 0x1f3   : > { %v909_v42 = vpop.f32.mrb[10].mxu0  ;;  %v1028_v48 = vadd.f32 %v1027_v41, %v12458_v49  ;;  %v1029_v50 = vpop.f32.mrb[10].mxu1  ;;  %v908_v56 = vadd.f32 %v907_v39, %v12458_v49 }
 0x1f4   : > { %v910_v51 = vadd.f32 %v909_v42, %v12454_v47  ;;  %v911_v52 = vpop.f32.mrb[11].mxu0  ;;  %v1233_v53 = vmul.f32 0.17677669, %v1026_v40  ;;  %v1030_v54 = vadd.f32 %v1029_v50, %v12454_v47  ;;  %v1031_v55 = vpop.f32.mrb[11].mxu1  ;;  %v1209_v59 = vmul.f32 0.17677669, %v906_v38 }
 0x1f5   : > { %v912_v57 = vadd.f32 %v911_v52, %v12458_v49  ;;  %v1032_v58 = vadd.f32 %v1031_v55, %v12458_v49 }
 0x1f6   : > { %v1210_v60 = vmul.f32 0.17677669, %v910_v51  ;;  %v1234_v61 = vmul.f32 0.17677669, %v1030_v54 }
 0x1f7   : > { %v12510_v62 = vpack.c.bf16 %v912_v57, %v908_v56  ;;  %v12512_v63 = vpack.c.bf16 %v1032_v58, %v1028_v48 }
 0x1f8   : > { %v12514_v0 = vpack.c.bf16 %v1210_v60, %v1209_v59  ;;  %v12516_v1 = vpack.c.bf16 %v1234_v61, %v1233_v53 }
 0x1f9   : > { %16734 = vst [vmem:[#allocation30_spill] sm:$0xff] %v12510_v62  ;;  %16735 = vst [vmem:[#allocation31_spill] sm:$0xff] %v12512_v63  ;;  %v915_v2 = vpop.f32.mrb[12].mxu0  ;;  %10221 = vmatmul.mubr.msk.bf16.vlgmr.msra.gmra.mrb[48].mxu1 %vm1289_vm0, %v12494_v32  ;;  %10794 = vmatprep.subr.msk.bf16.mxu1 %vm1289_vm0, %v12510_v62  ;;  %v1358_v3 = vsel %vm1289_vm0, %v12510_v62, 0  ;;  %v1035_v4 = vpop.f32.mrb[12].mxu1 }
 0x1fa   : > { %16736 = vst [vmem:[#allocation32_spill] sm:$0xff] %v12516_v1  ;;  %v916_v9 = vadd.f32 %v915_v2, %v12454_v47  ;;  %v917_v10 = vpop.f32.mrb[13].mxu0  ;;  %10225 = vmatpush3.bf16.xpose.msra.mxu1 %v1358_v3  ;;  %10228 = vmatprep.mubr.msk.bf16.mxu1 %vm1289_vm0, %v12514_v0  ;;  %v1036_v11 = vadd.f32 %v1035_v4, %v12454_v47  ;;  %v1037_v12 = vpop.f32.mrb[13].mxu1 }
 0x1fb   : > { %v919_v13 = vpop.f32.mrb[14].mxu0  ;;  %v1038_v14 = vadd.f32 %v1037_v12, %v12458_v49  ;;  %v1039_v15 = vpop.f32.mrb[14].mxu1  ;;  %v918_v22 = vadd.f32 %v917_v10, %v12458_v49 }
 0x1fc   : > { %v920_v16 = vadd.f32 %v919_v13, %v12454_v47  ;;  %v921_v17 = vpop.f32.mrb[15].mxu0  ;;  %v1235_v18 = vmul.f32 0.17677669, %v1036_v11  ;;  %v1040_v19 = vadd.f32 %v1039_v15, %v12454_v47  ;;  %v1041_v20 = vpop.f32.mrb[15].mxu1  ;;  %v1211_v25 = vmul.f32 0.17677669, %v916_v9 }
 0x1fd   : > { %v922_v23 = vadd.f32 %v921_v17, %v12458_v49  ;;  %v1042_v24 = vadd.f32 %v1041_v20, %v12458_v49 }
 0x1fe   : > { %v1212_v26 = vmul.f32 0.17677669, %v920_v16  ;;  %v1236_v27 = vmul.f32 0.17677669, %v1040_v19 }
 0x1ff   : > { %v12535_v28 = vpack.c.bf16 %v922_v23, %v918_v22  ;;  %v12537_v29 = vpack.c.bf16 %v1042_v24, %v1038_v14 }
 0x200   : > { %v12539_v35 = vpack.c.bf16 %v1212_v26, %v1211_v25  ;;  %v12541_v36 = vpack.c.bf16 %v1236_v27, %v1235_v18 }
 0x201   : > { %16737 = vst [vmem:[#allocation33_spill] sm:$0xff] %v12537_v29  ;;  %v925_v38 = vpop.f32.mrb[16].mxu0  ;;  %10795 = vmatprep.subr.msk.bf16.mxu1 %vm1289_vm0, %v12535_v28  ;;  %v1361_v39 = vsel %vm1289_vm0, %v12535_v28, 0 }
 0x202   : > { %16738 = vst [vmem:[#allocation34_spill] sm:$0xff] %v12541_v36  ;;  %v926_v40 = vadd.f32 %v925_v38, %v12454_v47  ;;  %v927_v41 = vpop.f32.mrb[17].mxu0  ;;  %10227 = vmatpush3.bf16.xpose.msra.mxu1 %v1361_v39  ;;  %v10186_v42 = vpop.f32.mrb[16].mxu1 }
 0x203   : > { %v929_v48 = vpop.f32.mrb[18].mxu0  ;;  %v1087_v50 = vadd.f32 %v10186_v42, %v12546_v37  ;;  %v1078_v51 = vpop.f32.mrb[17].mxu1  ;;  %v928_v55 = vadd.f32 %v927_v41, %v12458_v49 }
 0x204   : > { %v930_v52 = vadd.f32 %v929_v48, %v12454_v47  ;;  %v931_v45 = vpop.f32.mrb[19].mxu0  ;;  %v1079_v53 = vadd.f32 %v1078_v51, %v12546_v37  ;;  %v10187_v54 = vpop.f32.mrb[18].mxu1  ;;  %v1213_v59 = vmul.f32 0.17677669, %v926_v40 }
 0x205   : > { %v932_v56 = vadd.f32 %v931_v45, %v12458_v49  ;;  %v1090_v57 = vadd.f32 %v10187_v54, %v12546_v37  ;;  %v1081_v58 = vpop.f32.mrb[19].mxu1 }
 0x206   : > { %v1214_v60 = vmul.f32 0.17677669, %v930_v52  ;;  %v1082_v61 = vadd.f32 %v1081_v58, %v12546_v37 }
 0x207   : > { %v12560_v2 = vpack.c.bf16 %v932_v56, %v928_v55  ;;  %v12562_v3 = vpack.c.bf16 %v1090_v57, %v1087_v50 }
 0x208   : > { %v12564_v4 = vpack.c.bf16 %v1214_v60, %v1213_v59  ;;  %v12566_v9 = vpack.c.bf16 %v1082_v61, %v1079_v53 }
 0x209   : > { %16739 = vst [vmem:[#allocation35_spill] sm:$0xff] %v12560_v2  ;;  %16740 = vst [vmem:[#allocation36_spill] sm:$0xff] %v12562_v3  ;;  %v935_v10 = vpop.f32.mrb[20].mxu0  ;;  %10229 = vmatmul.mubr.msk.bf16.vlgmr.msra.gmra.mrb[52].mxu1 %vm1289_vm0, %v12539_v35  ;;  %10796 = vmatprep.subr.msk.bf16.mxu1 %vm1289_vm0, %v12560_v2  ;;  %v1419_v11 = vsel %vm1289_vm0, %v12560_v2, 0 }
 0x20a   : > { %16741 = vst [vmem:[#allocation37_spill] sm:$0xff] %v12564_v4  ;;  %16742 = vst [vmem:[#allocation38_spill] sm:$0xff] %v12566_v9  ;;  %v936_v12 = vadd.f32 %v935_v10, %v12454_v47  ;;  %v937_v13 = vpop.f32.mrb[21].mxu0  ;;  %10233 = vmatpush3.bf16.xpose.msra.mxu1 %v1419_v11  ;;  %10236 = vmatprep.mubr.msk.bf16.mxu1 %vm1289_vm0, %v12564_v4  ;;  %v10190_v14 = vpop.f32.mrb[20].mxu1 }
 0x20b   : > { %v939_v15 = vpop.f32.mrb[22].mxu0  ;;  %v1103_v16 = vadd.f32 %v10190_v14, %v12546_v37  ;;  %v1094_v17 = vpop.f32.mrb[21].mxu1  ;;  %v938_v23 = vadd.f32 %v937_v13, %v12458_v49 }
 0x20c   : > { %v940_v18 = vadd.f32 %v939_v15, %v12454_v47  ;;  %v941_v19 = vpop.f32.mrb[23].mxu0  ;;  %v1095_v20 = vadd.f32 %v1094_v17, %v12546_v37  ;;  %v10191_v22 = vpop.f32.mrb[22].mxu1  ;;  %v1215_v27 = vmul.f32 0.17677669, %v936_v12 }
 0x20d   : > { %v942_v24 = vadd.f32 %v941_v19, %v12458_v49  ;;  %v1106_v25 = vadd.f32 %v10191_v22, %v12546_v37  ;;  %v1097_v26 = vpop.f32.mrb[23].mxu1 }
 0x20e   : > { %v1216_v38 = vmul.f32 0.17677669, %v940_v18  ;;  %v1098_v39 = vadd.f32 %v1097_v26, %v12546_v37 }
 0x20f   : > { %v12584_v40 = vpack.c.bf16 %v942_v24, %v938_v23  ;;  %v12586_v41 = vpack.c.bf16 %v1106_v25, %v1103_v16 }
 0x210   : > { %v12588_v42 = vpack.c.bf16 %v1216_v38, %v1215_v27  ;;  %v12590_v48 = vpack.c.bf16 %v1098_v39, %v1095_v20 }
 0x211   : > { %16743 = vst [vmem:[#allocation39_spill] sm:$0xff] %v12584_v40  ;;  %16744 = vst [vmem:[#allocation40_spill] sm:$0xff] %v12586_v41  ;;  %v945_v50 = vpop.f32.mrb[24].mxu0  ;;  %10797 = vmatprep.subr.msk.bf16.mxu1 %vm1289_vm0, %v12584_v40  ;;  %v1422_v51 = vsel %vm1289_vm0, %v12584_v40, 0 }
 0x212   : > { %16745 = vst [vmem:[#allocation41_spill] sm:$0xff] %v12588_v42  ;;  %16746 = vst [vmem:[#allocation42_spill] sm:$0xff] %v12590_v48  ;;  %v946_v52 = vadd.f32 %v945_v50, %v12454_v47  ;;  %v947_v45 = vpop.f32.mrb[25].mxu0  ;;  %10235 = vmatpush3.bf16.xpose.msra.mxu1 %v1422_v51  ;;  %v10194_v53 = vpop.f32.mrb[24].mxu1 }
 0x213   : > { %v949_v54 = vpop.f32.mrb[26].mxu0  ;;  %v1119_v55 = vadd.f32 %v10194_v53, %v12546_v37  ;;  %v1110_v56 = vpop.f32.mrb[25].mxu1  ;;  %v948_v61 = vadd.f32 %v947_v45, %v12458_v49 }
 0x214   : > { %v950_v57 = vadd.f32 %v949_v54, %v12454_v47  ;;  %v951_v58 = vpop.f32.mrb[27].mxu0  ;;  %v1111_v59 = vadd.f32 %v1110_v56, %v12546_v37  ;;  %v10195_v60 = vpop.f32.mrb[26].mxu1  ;;  %v1217_v13 = vmul.f32 0.17677669, %v946_v52 }
 0x215   : > { %v952_v10 = vadd.f32 %v951_v58, %v12458_v49  ;;  %v1122_v11 = vadd.f32 %v10195_v60, %v12546_v37  ;;  %v1113_v12 = vpop.f32.mrb[27].mxu1 }
 0x216   : > { %v1218_v14 = vmul.f32 0.17677669, %v950_v57  ;;  %v1114_v15 = vadd.f32 %v1113_v12, %v12546_v37 }
 0x217   : > { %v12604_v16 = vpack.c.bf16 %v952_v10, %v948_v61  ;;  %v12606_v17 = vpack.c.bf16 %v1122_v11, %v1119_v55 }
 0x218   : > { %v12608_v18 = vpack.c.bf16 %v1218_v14, %v1217_v13  ;;  %v12610_v19 = vpack.c.bf16 %v1114_v15, %v1111_v59 }
 0x219   : > { %16747 = vst [vmem:[#allocation43_spill] sm:$0xff] %v12606_v17  ;;  %v955_v20 = vpop.f32.mrb[28].mxu0  ;;  %10237 = vmatmul.mubr.msk.bf16.vlgmr.msra.gmra.mrb[56].mxu1 %vm1289_vm0, %v12588_v42  ;;  %10798 = vmatprep.subr.msk.bf16.mxu1 %vm1289_vm0, %v12604_v16  ;;  %v1480_v22 = vsel %vm1289_vm0, %v12604_v16, 0 }
 0x21a   : > { %16748 = vst [vmem:[#allocation44_spill] sm:$0xff] %v12608_v18  ;;  %16749 = vst [vmem:[#allocation45_spill] sm:$0xff] %v12610_v19  ;;  %v956_v23 = vadd.f32 %v955_v20, %v12454_v47  ;;  %v957_v24 = vpop.f32.mrb[29].mxu0  ;;  %10241 = vmatpush3.bf16.xpose.msra.mxu1 %v1480_v22  ;;  %10244 = vmatprep.mubr.msk.bf16.mxu1 %vm1289_vm0, %v12608_v18  ;;  %v10198_v25 = vpop.f32.mrb[28].mxu1 }
 0x21b   : > { %v959_v26 = vpop.f32.mrb[30].mxu0  ;;  %v1135_v27 = vadd.f32 %v10198_v25, %v12546_v37  ;;  %v1126_v38 = vpop.f32.mrb[29].mxu1  ;;  %v958_v45 = vadd.f32 %v957_v24, %v12458_v49 }
 0x21c   : > { %v960_v39 = vadd.f32 %v959_v26, %v12454_v47  ;;  %v961_v50 = vpop.f32.mrb[31].mxu0  ;;  %v1127_v51 = vadd.f32 %v1126_v38, %v12546_v37  ;;  %v10199_v52 = vpop.f32.mrb[30].mxu1  ;;  %v1219_v56 = vmul.f32 0.17677669, %v956_v23 }
 0x21d   : > { %v962_v53 = vadd.f32 %v961_v50, %v12458_v49  ;;  %v1138_v54 = vadd.f32 %v10199_v52, %v12546_v37  ;;  %v1129_v55 = vpop.f32.mrb[31].mxu1 }
 0x21e   : > { %v1220_v57 = vmul.f32 0.17677669, %v960_v39  ;;  %v1130_v58 = vadd.f32 %v1129_v55, %v12546_v37 }
 0x21f   : > { %v12628_v59 = vpack.c.bf16 %v962_v53, %v958_v45  ;;  %v12630_v60 = vpack.c.bf16 %v1138_v54, %v1135_v27 }
 0x220   : > { %v12632_v61 = vpack.c.bf16 %v1220_v57, %v1219_v56  ;;  %v12634_v10 = vpack.c.bf16 %v1130_v58, %v1127_v51 }
 0x221   : > { %16750 = vst [vmem:[#allocation46_spill] sm:$0xff] %v12630_v60  ;;  %v965_v11 = vpop.f32.mrb[32].mxu0  ;;  %10799 = vmatprep.subr.msk.bf16.mxu1 %vm1289_vm0, %v12628_v59  ;;  %v1483_v12 = vsel %vm1289_vm0, %v12628_v59, 0 }
 0x222   : > { %16751 = vst [vmem:[#allocation47_spill] sm:$0xff] %v12632_v61  ;;  %16752 = vst [vmem:[#allocation48_spill] sm:$0xff] %v12634_v10  ;;  %v966_v13 = vadd.f32 %v965_v11, %v12454_v47  ;;  %v967_v14 = vpop.f32.mrb[33].mxu0  ;;  %10243 = vmatpush3.bf16.xpose.msra.mxu1 %v1483_v12  ;;  %v10202_v15 = vpop.f32.mrb[32].mxu1 }
 0x223   : > { %v969_v20 = vpop.f32.mrb[34].mxu0  ;;  %v1151_v22 = vadd.f32 %v10202_v15, %v12546_v37  ;;  %v1142_v23 = vpop.f32.mrb[33].mxu1  ;;  %v968_v38 = vadd.f32 %v967_v14, %v12458_v49 }
 0x224   : > { %v970_v24 = vadd.f32 %v969_v20, %v12454_v47  ;;  %v971_v25 = vpop.f32.mrb[35].mxu0  ;;  %v1143_v26 = vadd.f32 %v1142_v23, %v12546_v37  ;;  %v10203_v27 = vpop.f32.mrb[34].mxu1  ;;  %v1221_v52 = vmul.f32 0.17677669, %v966_v13 }
 0x225   : > { %v972_v39 = vadd.f32 %v971_v25, %v12458_v49  ;;  %v1154_v50 = vadd.f32 %v10203_v27, %v12546_v37  ;;  %v1145_v51 = vpop.f32.mrb[35].mxu1 }
 0x226   : > { %v1222_v45 = vmul.f32 0.17677669, %v970_v24  ;;  %v1146_v53 = vadd.f32 %v1145_v51, %v12546_v37 }
 0x227   : > { %v12648_v54 = vpack.c.bf16 %v972_v39, %v968_v38  ;;  %v12650_v55 = vpack.c.bf16 %v1154_v50, %v1151_v22 }
 0x228   : > { %v12652_v56 = vpack.c.bf16 %v1222_v45, %v1221_v52  ;;  %v12654_v57 = vpack.c.bf16 %v1146_v53, %v1143_v26 }
 0x229   : > { %16753 = vst [vmem:[#allocation49_spill] sm:$0xff] %v12648_v54  ;;  %16754 = vst [vmem:[#allocation50_spill] sm:$0xff] %v12650_v55  ;;  %v975_v58 = vpop.f32.mrb[36].mxu0  ;;  %10245 = vmatmul.mubr.msk.bf16.vlgmr.msra.gmra.mrb[60].mxu1 %vm1289_vm0, %v12632_v61  ;;  %10800 = vmatprep.subr.msk.bf16.mxu0 %vm1289_vm0, %v12648_v54  ;;  %v1541_v11 = vsel %vm1289_vm0, %v12648_v54, 0 }
 0x22a   : > { %16755 = vst [vmem:[#allocation51_spill] sm:$0xff] %v12652_v56  ;;  %16756 = vst [vmem:[#allocation52_spill] sm:$0xff] %v12654_v57  ;;  %v976_v12 = vadd.f32 %v975_v58, %v12454_v47  ;;  %v977_v13 = vpop.f32.mrb[37].mxu0  ;;  %10249 = vmatpush3.bf16.xpose.msra.mxu0 %v1541_v11  ;;  %10252 = vmatprep.mubr.msk.bf16.mxu0 %vm1289_vm0, %v12652_v56  ;;  %v10206_v14 = vpop.f32.mrb[36].mxu1 }
 0x22b   : > { %v979_v15 = vpop.f32.mrb[38].mxu0  ;;  %v1167_v20 = vadd.f32 %v10206_v14, %v12546_v37  ;;  %v1158_v22 = vpop.f32.mrb[37].mxu1  ;;  %v978_v27 = vadd.f32 %v977_v13, %v12458_v49 }
 0x22c   : > { %v980_v23 = vadd.f32 %v979_v15, %v12454_v47  ;;  %v981_v24 = vpop.f32.mrb[39].mxu0  ;;  %v1159_v25 = vadd.f32 %v1158_v22, %v12546_v37  ;;  %v10207_v26 = vpop.f32.mrb[38].mxu1  ;;  %v1223_v51 = vmul.f32 0.17677669, %v976_v12 }
 0x22d   : > { %v982_v38 = vadd.f32 %v981_v24, %v12458_v49  ;;  %v1170_v39 = vadd.f32 %v10207_v26, %v12546_v37  ;;  %v1161_v50 = vpop.f32.mrb[39].mxu1 }
 0x22e   : > { %v1224_v52 = vmul.f32 0.17677669, %v980_v23  ;;  %v1162_v45 = vadd.f32 %v1161_v50, %v12546_v37 }
 0x22f   : > { %v12672_v53 = vpack.c.bf16 %v982_v38, %v978_v27  ;;  %v12674_v58 = vpack.c.bf16 %v1170_v39, %v1167_v20 }
 0x230   : > { %v12676_v11 = vpack.c.bf16 %v1224_v52, %v1223_v51  ;;  %v12678_v14 = vpack.c.bf16 %v1162_v45, %v1159_v25 }
 0x231   : > { %16757 = vst [vmem:[#allocation53_spill] sm:$0xff] %v12672_v53  ;;  %16758 = vst [vmem:[#allocation54_spill] sm:$0xff] %v12674_v58  ;;  %v985_v15 = vpop.f32.mrb[40].mxu0  ;;  %10801 = vmatprep.subr.msk.bf16.mxu0 %vm1289_vm0, %v12672_v53  ;;  %v1544_v13 = vsel %vm1289_vm0, %v12672_v53, 0 }
 0x232   : > { %16759 = vst [vmem:[#allocation55_spill] sm:$0xff] %v12676_v11  ;;  %16760 = vst [vmem:[#allocation56_spill] sm:$0xff] %v12678_v14  ;;  %v986_v12 = vadd.f32 %v985_v15, %v12454_v47  ;;  %v987_v22 = vpop.f32.mrb[41].mxu0  ;;  %10251 = vmatpush3.bf16.xpose.msra.mxu0 %v1544_v13  ;;  %v10210_v23 = vpop.f32.mrb[40].mxu1 }
 0x233   : > { %v988_v24 = vadd.f32 %v987_v22, %v12458_v49  ;;  %v989_v20 = vpop.f32.mrb[42].mxu0  ;;  %10804 = vmatprep.subr.msk.bf16.mxu0 %vm1289_vm0, %v12470_v6  ;;  %v1183_v25 = vadd.f32 %v10210_v23, %v12546_v37  ;;  %v1174_v26 = vpop.f32.mrb[41].mxu1  ;;  %v1663_v23 = vsel %vm1289_vm0, %v12470_v6, 0 }
 0x234   : > { %v1225_v27 = vmul.f32 0.17677669, %v986_v12  ;;  %v990_v38 = vadd.f32 %v989_v20, %v12454_v47  ;;  %v991_v39 = vpop.f32.mrb[43].mxu0  ;;  %v1175_v50 = vadd.f32 %v1174_v26, %v12546_v37  ;;  %v10211_v51 = vpop.f32.mrb[42].mxu1 }
 0x235   : > { %v992_v52 = vadd.f32 %v991_v39, %v12458_v49  ;;  %v1186_v45 = vadd.f32 %v10211_v51, %v12546_v37  ;;  %v1177_v15 = vpop.f32.mrb[43].mxu1 }
 0x236   : > { %v1226_v13 = vmul.f32 0.17677669, %v990_v38  ;;  %v1178_v22 = vadd.f32 %v1177_v15, %v12546_v37 }
 0x237   : > { %v12694_v21 = vpack.c.bf16 %v992_v52, %v988_v24  ;;  %v12698_v12 = vpack.c.bf16 %v1186_v45, %v1183_v25 }
 0x238   : > { %v12700_v20 = vpack.c.bf16 %v1226_v13, %v1225_v27  ;;  %v12702_v34 = vpack.c.bf16 %v1178_v22, %v1175_v50 }
 0x239   : > { %16761 = vst [vmem:[#allocation57_spill] sm:$0xff] %v12694_v21  ;;  %16762 = vst [vmem:[#allocation58_spill] sm:$0xff] %v12698_v12  ;;  %v995_v26 = vpop.f32.mrb[44].mxu0  ;;  %10253 = vmatmul.mubr.msk.bf16.vlgmr.msra.gmra.mrb[48].mxu0 %vm1289_vm0, %v12676_v11  ;;  %10802 = vmatprep.subr.msk.bf16.mxu1 %vm1289_vm0, %v12694_v21  ;;  %v1602_v24 = vsel %vm1289_vm0, %v12694_v21, 0 }
 0x23a   : > { %16763 = vst [vmem:[#allocation59_spill] sm:$0xff] %v12700_v20  ;;  %16764 = vst [vmem:[#allocation60_spill] sm:$0xff] %v12702_v34  ;;  %v996_v38 = vadd.f32 %v995_v26, %v12454_v47  ;;  %v997_v39 = vpop.f32.mrb[45].mxu0  ;;  %10257 = vmatpush3.bf16.xpose.msra.mxu1 %v1602_v24  ;;  %10265 = vmatpush3.bf16.xpose.msra.mxu0 %v1663_v23  ;;  %v10214_v25 = vpop.f32.mrb[44].mxu1 }
 0x23b   : > { %v998_v27 = vadd.f32 %v997_v39, %v12458_v49  ;;  %v999_v50 = vpop.f32.mrb[46].mxu0  ;;  %10805 = vmatprep.subr.msk.bf16.mxu0 %vm1289_vm0, %v12492_v31  ;;  %10268 = vmatprep.mubr.msk.bf16.mxu0 %vm1289_vm0, %v12474_v8  ;;  %v1199_v51 = vadd.f32 %v10214_v25, %v12546_v37  ;;  %v1190_v52 = vpop.f32.mrb[45].mxu1 }
 0x23c   : > { %v1227_v45 = vmul.f32 0.17677669, %v996_v38  ;;  %v1000_v15 = vadd.f32 %v999_v50, %v12454_v47  ;;  %v1001_v13 = vpop.f32.mrb[47].mxu0  ;;  %10260 = vmatprep.mubr.msk.bf16.mxu1 %vm1289_vm0, %v12700_v20  ;;  %v1191_v22 = vadd.f32 %v1190_v52, %v12546_v37  ;;  %v10215_v23 = vpop.f32.mrb[46].mxu1  ;;  %v1666_v47 = vsel %vm1289_vm0, %v12492_v31, 0  ;;  %v12768_v52 = vld [vmem:[#allocation4 + $0x18] sm:$0xff] }
 0x23d   : > { %v1002_v26 = vadd.f32 %v1001_v13, %v12458_v49  ;;  %v1202_v24 = vadd.f32 %v10215_v23, %v12546_v37  ;;  %v1193_v39 = vpop.f32.mrb[47].mxu1  ;;  %v12773_v13 = vld [vmem:[#allocation4 + $0x8] sm:$0xff] }
 0x23e   : > { %v1228_v46 = vmul.f32 0.17677669, %v1000_v15  ;;  %v1194_v43 = vadd.f32 %v1193_v39, %v12546_v37  ;;  %v1724_v37 = vsel %vm1289_vm0, %v12512_v63, 0 }
 0x23f   : > { %v12724_v25 = vpack.c.bf16 %v1002_v26, %v998_v27  ;;  %v12728_v38 = vpack.c.bf16 %v1202_v24, %v1199_v51  ;;  %v12766_v27 = vld [vmem:[#allocation4] sm:$0xff] }
 0x240   : > { %v12730_v50 = vpack.c.bf16 %v1228_v46, %v1227_v45  ;;  %v12732_v44 = vpack.c.bf16 %v1194_v43, %v1191_v22  ;;  %v1727_v43 = vsel %vm1289_vm0, %v12537_v29, 0  ;;  %v12764_v46 = vld [vmem:[#allocation4 + $0x10] sm:$0xff] }
 0x241   : > { %16765 = vst [vmem:[#allocation61_spill] sm:$0xff] %v12724_v25  ;;  %16766 = vst [vmem:[#allocation62_spill] sm:$0xff] %v12728_v38  ;;  %10803 = vmatprep.subr.msk.bf16.mxu1 %vm1289_vm0, %v12724_v25  ;;  %v1605_v49 = vsel %vm1289_vm0, %v12724_v25, 0 }
 0x242   : > { %16767 = vst [vmem:[#allocation63_spill] sm:$0xff] %v12730_v50  ;;  %16768 = vst [vmem:[#allocation64_spill] sm:$0xff] %v12732_v44  ;;  %10259 = vmatpush3.bf16.xpose.msra.mxu1 %v1605_v49  ;;  %10267 = vmatpush3.bf16.xpose.msra.mxu0 %v1666_v47 }
 0x243   : > { %10806 = vmatprep.subr.msk.bf16.mxu1 %vm1289_vm0, %v12512_v63  ;;  %10280 = vmatprep.subr.bf16.mxu0 %v12566_v9 }
 0x249   : > { %10269 = vmatmul.mubr.msk.bf16.vlgmr.msra.gmra.mrb[52].mxu0 %vm1289_vm0, %v12496_v33  ;;  %10261 = vmatmul.mubr.msk.bf16.vlgmr.msra.gmra.mrb[64].mxu1 %vm1289_vm0, %v12730_v50 }
 0x24a   : > { %10273 = vmatpush3.bf16.xpose.msra.mxu1 %v1724_v37  ;;  %10276 = vmatprep.mubr.msk.bf16.mxu1 %vm1289_vm0, %v12516_v1 }
 0x24b   : > { %10807 = vmatprep.subr.msk.bf16.mxu1 %vm1289_vm0, %v12537_v29  ;;  %10281 = vmatpush3.bf16.msra.mxu0 %v12566_v9 }
 0x24c   : > { %10282 = vmatprep.subr.bf16.mxu0 %v12562_v3 }
 0x24f   : > { %10283 = vmatpush3.bf16.msra.mxu0 %v12562_v3 }
 0x250   : > { %10296 = vmatprep.subr.bf16.mxu0 %v12610_v19 }
 0x252   : > { %10275 = vmatpush3.bf16.xpose.msra.mxu1 %v1727_v43 }
 0x253   : > { %10288 = vmatprep.subr.bf16.mxu1 %v12590_v48 }
 0x259   : > { %10277 = vmatmul.mubr.msk.bf16.vlgmr.msra.gmra.mrb[68].mxu1 %vm1289_vm0, %v12541_v36 }
 0x25a   : > { %10289 = vmatpush3.bf16.msra.mxu1 %v12590_v48 }
 0x25b   : > { %10290 = vmatprep.subr.bf16.mxu1 %v12586_v41 }
 0x25e   : > { %10291 = vmatpush3.bf16.msra.mxu1 %v12586_v41 }
 0x25f   : > { %10304 = vmatprep.subr.bf16.mxu1 %v12634_v10 }
 0x2cc   : > { %v10222_v51 = vpop.f32.mrb[48].mxu1 }
 0x2cd   : > { %v12771_v45 = vadd.f32 %v10222_v51, %v12764_v46  ;;  %v1336_v15 = vpop.f32.mrb[49].mxu1 }
 0x2ce   : > { %v12776_v22 = vadd.f32 %v1336_v15, %v12766_v27  ;;  %v10223_v23 = vpop.f32.mrb[50].mxu1 }
 0x2cf   : > { %v12779_v26 = vadd.f32 %v10223_v23, %v12768_v52  ;;  %v1339_v24 = vpop.f32.mrb[51].mxu1  ;;  %v1784_v39 = vsel %vm1289_vm0, %v12771_v45, -inf }
 0x2d0   : > { %v12784_v47 = vadd.f32 %v1339_v24, %v12773_v13  ;;  %1785 = vmax.xlane.f32.xlu1 %v1784_v39  ;;  %v1778_v49 = vsel %vm1289_vm0, %v12776_v22, -inf }
 0x2d1   : > { %1779 = vmax.xlane.f32.xlu0 %v1778_v49  ;;  %v1787_v37 = vsel %vm1289_vm0, %v12779_v26, -inf }
 0x2d2   : > { %v1781_v43 = vsel %vm1289_vm0, %v12784_v47, -inf }
 0x2d4   : > { %1788 = vmax.xlane.f32.xlu1 %v1787_v37 }
 0x2d5   : > { %1782 = vmax.xlane.f32.xlu0 %v1781_v43 }
 0x2dc   : > { %v10230_v51 = vpop.f32.mrb[52].mxu1 }
 0x2dd   : > { %v12793_v15 = vadd.f32 %v10230_v51, %v12764_v46  ;;  %v1397_v23 = vpop.f32.mrb[53].mxu1 }
 0x2de   : > { %v10231_v24 = vpop.f32.mrb[54].mxu1  ;;  %v12796_v39 = vadd.f32 %v1397_v23, %v12766_v27 }
 0x2df   : > { %v12799_v38 = vadd.f32 %v10231_v24, %v12768_v52  ;;  %v1400_v49 = vpop.f32.mrb[55].mxu1  ;;  %v1796_v37 = vsel %vm1289_vm0, %v12793_v15, -inf }
 0x2e0   : > { %1797 = vmax.xlane.f32.xlu0 %v1796_v37  ;;  %v12804_v41 = vadd.f32 %v1400_v49, %v12773_v13  ;;  %v1790_v51 = vsel %vm1289_vm0, %v12796_v39, -inf }
 0x2e1   : > { %v1799_v43 = vsel %vm1289_vm0, %v12799_v38, -inf }
 0x2e2   : > { %1800 = vmax.xlane.f32.xlu1 %v1799_v43  ;;  %v1793_v23 = vsel %vm1289_vm0, %v12804_v41, -inf }
 0x2e4   : > { %1791 = vmax.xlane.f32.xlu0 %v1790_v51 }
 0x2e6   : > { %1794 = vmax.xlane.f32.xlu1 %v1793_v23 }
 0x2ec   : > { %v10238_v24 = vpop.f32.mrb[56].mxu1 }
 0x2ed   : > { %v12813_v3 = vadd.f32 %v10238_v24, %v12764_v46  ;;  %v1458_v37 = vpop.f32.mrb[57].mxu1 }
 0x2ee   : > { %v10239_v36 = vpop.f32.mrb[58].mxu1  ;;  %v12816_v49 = vadd.f32 %v1458_v37, %v12766_v27 }
 0x2ef   : > { %v12819_v29 = vadd.f32 %v10239_v36, %v12768_v52  ;;  %v1461_v43 = vpop.f32.mrb[59].mxu1  ;;  %v1808_v51 = vsel %vm1289_vm0, %v12813_v3, -inf }
 0x2f0   : > { %1809 = vmax.xlane.f32.xlu0 %v1808_v51  ;;  %v12824_v63 = vadd.f32 %v1461_v43, %v12773_v13  ;;  %v1802_v24 = vsel %vm1289_vm0, %v12816_v49, -inf }
 0x2f1   : > { %v1811_v23 = vsel %vm1289_vm0, %v12819_v29, -inf }
 0x2f2   : > { %1812 = vmax.xlane.f32.xlu1 %v1811_v23  ;;  %v1805_v36 = vsel %vm1289_vm0, %v12824_v63, -inf }
 0x2f4   : > { %1803 = vmax.xlane.f32.xlu0 %v1802_v24 }
 0x2f6   : > { %1806 = vmax.xlane.f32.xlu1 %v1805_v36 }
 0x2fc   : > { %v10246_v37 = vpop.f32.mrb[60].mxu1 }
 0x2fd   : > { %v12833_v20 = vadd.f32 %v10246_v37, %v12764_v46  ;;  %v1519_v51 = vpop.f32.mrb[61].mxu1 }
 0x2fe   : > { %v10247_v31 = vpop.f32.mrb[62].mxu1  ;;  %v12836_v43 = vadd.f32 %v1519_v51, %v12766_v27 }
 0x2ff   : > { %v12839_v11 = vadd.f32 %v10247_v31, %v12768_v52  ;;  %v1522_v23 = vpop.f32.mrb[63].mxu1  ;;  %v1820_v24 = vsel %vm1289_vm0, %v12833_v20, -inf }
 0x300   : > { %1821 = vmax.xlane.f32.xlu0 %v1820_v24  ;;  %v12844_v6 = vadd.f32 %v1522_v23, %v12773_v13  ;;  %v1814_v37 = vsel %vm1289_vm0, %v12836_v43, -inf }
 0x301   : > { %v1823_v36 = vsel %vm1289_vm0, %v12839_v11, -inf }
 0x302   : > { %1824 = vmax.xlane.f32.xlu1 %v1823_v36  ;;  %v1817_v31 = vsel %vm1289_vm0, %v12844_v6, -inf }
 0x304   : > { %1815 = vmax.xlane.f32.xlu0 %v1814_v37 }
 0x306   : > { %1818 = vmax.xlane.f32.xlu1 %v1817_v31 }
 0x30c   : > { %v10254_v51 = vpop.f32.mrb[48].mxu0 }
 0x30d   : > { %v12853_v56 = vadd.f32 %v10254_v51, %v12764_v46  ;;  %v1580_v24 = vpop.f32.mrb[49].mxu0 }
 0x30e   : > { %v10255_v48 = vpop.f32.mrb[50].mxu0  ;;  %v12856_v23 = vadd.f32 %v1580_v24, %v12766_v27 }
 0x30f   : > { %v12859_v53 = vadd.f32 %v10255_v48, %v12768_v52  ;;  %v1832_v36 = vsel %vm1289_vm0, %v12853_v56, -inf  ;;  %v1583_v37 = vpop.f32.mrb[51].mxu0 }
 0x310   : > { %1833 = vmax.xlane.f32.xlu0 %v1832_v36  ;;  %v12864_v12 = vadd.f32 %v1583_v37, %v12773_v13  ;;  %v1826_v51 = vsel %vm1289_vm0, %v12856_v23, -inf }
 0x311   : > { %v1835_v31 = vsel %vm1289_vm0, %v12859_v53, -inf }
 0x312   : > { %1836 = vmax.xlane.f32.xlu1 %v1835_v31  ;;  %v1829_v48 = vsel %vm1289_vm0, %v12864_v12, -inf }
 0x314   : > { %1827 = vmax.xlane.f32.xlu0 %v1826_v51 }
 0x316   : > { %1830 = vmax.xlane.f32.xlu1 %v1829_v48 }
 0x31c   : > { %v10270_v24 = vpop.f32.mrb[52].mxu0  ;;  %v10262_v42 = vpop.f32.mrb[64].mxu1 }
 0x31d   : > { %v12873_v9 = vadd.f32 %v10270_v24, %v12764_v46  ;;  %v1702_v36 = vpop.f32.mrb[53].mxu0  ;;  %v12876_v37 = vadd.f32 %v10262_v42, %v12764_v46  ;;  %v1641_v54 = vpop.f32.mrb[65].mxu1 }
 0x31e   : > { %v10271_v1 = vpop.f32.mrb[54].mxu0  ;;  %v10263_v31 = vpop.f32.mrb[66].mxu1  ;;  %v12887_v24 = vadd.f32 %v1702_v36, %v12766_v27  ;;  %v12899_v33 = vadd.f32 %v1641_v54, %v12766_v27 }
 0x31f   : > { %v12879_v4 = vadd.f32 %v10271_v1, %v12768_v52  ;;  %v1856_v51 = vsel %vm1289_vm0, %v12873_v9, -inf  ;;  %v12884_v48 = vadd.f32 %v10263_v31, %v12768_v52  ;;  %v1705_v50 = vpop.f32.mrb[55].mxu0  ;;  %v1644_v44 = vpop.f32.mrb[67].mxu1  ;;  %v1844_v40 = vsel %vm1289_vm0, %v12876_v37, -inf }
 0x320   : > { %1857 = vmax.xlane.f32.xlu0 %v1856_v51  ;;  %v12894_v1 = vadd.f32 %v1705_v50, %v12773_v13  ;;  %v1850_v36 = vsel %vm1289_vm0, %v12887_v24, -inf  ;;  %v12904_v51 = vadd.f32 %v1644_v44, %v12773_v13  ;;  %v1838_v50 = vsel %vm1289_vm0, %v12899_v33, -inf }
 0x321   : > { %v1859_v42 = vsel %vm1289_vm0, %v12879_v4, -inf  ;;  %v1847_v31 = vsel %vm1289_vm0, %v12884_v48, -inf }
 0x322   : > { %1860 = vmax.xlane.f32.xlu1 %v1859_v42  ;;  %v1853_v42 = vsel %vm1289_vm0, %v12894_v1, -inf }
 0x324   : > { %1845 = vmax.xlane.f32.xlu0 %v1844_v40  ;;  %v1841_v40 = vsel %vm1289_vm0, %v12904_v51, -inf }
 0x326   : > { %1848 = vmax.xlane.f32.xlu1 %v1847_v31 }
 0x328   : > { %1851 = vmax.xlane.f32.xlu0 %v1850_v36 }
 0x32a   : > { %1854 = vmax.xlane.f32.xlu1 %v1853_v42 }
 0x32c   : > { %v10278_v54 = vpop.f32.mrb[68].mxu1  ;;  %1839 = vmax.xlane.f32.xlu0 %v1838_v50 }
 0x32d   : > { %v12913_v58 = vadd.f32 %v10278_v54, %v12764_v46  ;;  %v1763_v31 = vpop.f32.mrb[69].mxu1 }
 0x32e   : > { %v12916_v44 = vadd.f32 %v1763_v31, %v12766_v27  ;;  %v10279_v8 = vpop.f32.mrb[70].mxu1  ;;  %1842 = vmax.xlane.f32.xlu1 %v1841_v40 }
 0x32f   : > { %v12919_v36 = vadd.f32 %v10279_v8, %v12768_v52  ;;  %v1868_v42 = vsel %vm1289_vm0, %v12913_v58, -inf  ;;  %v1766_v25 = vpop.f32.mrb[71].mxu1 }
 0x330   : > { %1869 = vmax.xlane.f32.xlu0 %v1868_v42  ;;  %v12924_v61 = vadd.f32 %v1766_v25, %v12773_v13  ;;  %v1862_v27 = vsel %vm1289_vm0, %v12916_v44, -inf }
 0x331   : > { %v1871_v46 = vsel %vm1289_vm0, %v12919_v36, -inf }
 0x332   : > { %1872 = vmax.xlane.f32.xlu1 %v1871_v46  ;;  %v1865_v50 = vsel %vm1289_vm0, %v12924_v61, -inf }
 0x334   : > { %1863 = vmax.xlane.f32.xlu0 %v1862_v27 }
 0x336   : > { %1866 = vmax.xlane.f32.xlu1 %v1865_v50 }
 0x35d   : > { %v1786_v8 = vpop.xlane.xlu1 %1785 }
 0x35e   : > { %v1876_v52 = vsub.f32 %v12771_v45, %v1786_v8  ;;  %v1780_v40 = vpop.xlane.xlu0 %1779 }
 0x35f   : > { %v1874_v54 = vsub.f32 %v12776_v22, %v1780_v40 }
 0x360   : > { %v1910_v25 = vmul.f32 1.442695, %v1876_v52 }
 0x361   : > { %v1906_v13 = vmul.f32 1.442695, %v1874_v54  ;;  %v1789_v31 = vpop.xlane.xlu1 %1788 }
 0x362   : > { %11050 = vpow2.f32 %v1910_v25  ;;  %v1877_v42 = vsub.f32 %v12779_v26, %v1789_v31  ;;  %v1783_v34 = vpop.xlane.xlu0 %1782 }
 0x363   : > { %v1875_v46 = vsub.f32 %v12784_v47, %v1783_v34  ;;  %11052 = vpow2.f32 %v1906_v13 }
 0x364   : > { %v1912_v21 = vmul.f32 1.442695, %v1877_v42 }
 0x365   : > { %v1908_v55 = vmul.f32 1.442695, %v1875_v46 }
 0x366   : > { %11054 = vpow2.f32 %v1912_v21 }
 0x367   : > { %11056 = vpow2.f32 %v1908_v55 }
 0x36c   : > { %v12936_v27 = vpop.eup %11050 }
 0x36d   : > { %v1798_v45 = vpop.xlane.xlu0 %1797  ;;  %v1976_v22 = vsel %vm1289_vm0, %v12936_v27, 0.0  ;;  %v12940_v50 = vpop.eup %11052 }
 0x36e   : > { %v1880_v8 = vsub.f32 %v12793_v15, %v1798_v45  ;;  %1977 = vadd.xlane.f32.xlu0 %v1976_v22  ;;  %v1970_v55 = vsel %vm1289_vm0, %v12940_v50, 0.0 }
 0x36f   : > { %v1801_v26 = vpop.xlane.xlu1 %1800 }
 0x370   : > { %v12943_v52 = vpop.eup %11054  ;;  %v1918_v34 = vmul.f32 1.442695, %v1880_v8  ;;  %v1881_v47 = vsub.f32 %v12799_v38, %v1801_v26 }
 0x371   : > { %v1792_v40 = vpop.xlane.xlu0 %1791  ;;  %v1979_v21 = vsel %vm1289_vm0, %v12943_v52, 0.0  ;;  %v12950_v54 = vpop.eup %11056 }
 0x372   : > { %11058 = vpow2.f32 %v1918_v34  ;;  %v1920_v25 = vmul.f32 1.442695, %v1881_v47  ;;  %v1878_v15 = vsub.f32 %v12796_v39, %v1792_v40  ;;  %1980 = vadd.xlane.f32.xlu1 %v1979_v21  ;;  %1971 = vadd.xlane.f32.xlu0 %v1970_v55  ;;  %v1973_v42 = vsel %vm1289_vm0, %v12950_v54, 0.0 }
 0x373   : > { %v1795_v13 = vpop.xlane.xlu1 %1794 }
 0x374   : > { %11060 = vpow2.f32 %v1920_v25  ;;  %v1914_v31 = vmul.f32 1.442695, %v1878_v15  ;;  %v1879_v38 = vsub.f32 %v12804_v41, %v1795_v13 }
 0x376   : > { %11062 = vpow2.f32 %v1914_v31  ;;  %v1916_v46 = vmul.f32 1.442695, %v1879_v38  ;;  %1974 = vadd.xlane.f32.xlu1 %v1973_v42 }
 0x378   : > { %11064 = vpow2.f32 %v1916_v46 }
 0x37c   : > { %v12956_v45 = vpop.eup %11058 }
 0x37d   : > { %v1810_v22 = vpop.xlane.xlu0 %1809  ;;  %v1988_v39 = vsel %vm1289_vm0, %v12956_v45, 0.0 }
 0x37e   : > { %v12960_v8 = vpop.eup %11060  ;;  %v1884_v26 = vsub.f32 %v12813_v3, %v1810_v22  ;;  %1989 = vadd.xlane.f32.xlu0 %v1988_v39 }
 0x37f   : > { %v1813_v34 = vpop.xlane.xlu1 %1812  ;;  %v1991_v41 = vsel %vm1289_vm0, %v12960_v8, 0.0 }
 0x380   : > { %v12965_v47 = vpop.eup %11062  ;;  %v1926_v40 = vmul.f32 1.442695, %v1884_v26  ;;  %v1885_v21 = vsub.f32 %v12819_v29, %v1813_v34  ;;  %1992 = vadd.xlane.f32.xlu1 %v1991_v41 }
 0x381   : > { %v1804_v55 = vpop.xlane.xlu0 %1803  ;;  %v1982_v25 = vsel %vm1289_vm0, %v12965_v47, 0.0 }
 0x382   : > { %v12970_v15 = vpop.eup %11064  ;;  %11066 = vpow2.f32 %v1926_v40  ;;  %v1928_v13 = vmul.f32 1.442695, %v1885_v21  ;;  %v1882_v3 = vsub.f32 %v12816_v49, %v1804_v55  ;;  %1983 = vadd.xlane.f32.xlu0 %v1982_v25 }
 0x383   : > { %v1807_v31 = vpop.xlane.xlu1 %1806  ;;  %v1985_v38 = vsel %vm1289_vm0, %v12970_v15, 0.0 }
 0x384   : > { %11068 = vpow2.f32 %v1928_v13  ;;  %v1922_v42 = vmul.f32 1.442695, %v1882_v3  ;;  %v1883_v29 = vsub.f32 %v12824_v63, %v1807_v31  ;;  %1986 = vadd.xlane.f32.xlu1 %v1985_v38 }
 0x386   : > { %11070 = vpow2.f32 %v1922_v42  ;;  %v1924_v46 = vmul.f32 1.442695, %v1883_v29 }
 0x388   : > { %11072 = vpow2.f32 %v1924_v46 }
 0x38c   : > { %v12976_v22 = vpop.eup %11066 }
 0x38d   : > { %v1822_v39 = vpop.xlane.xlu0 %1821  ;;  %v2000_v26 = vsel %vm1289_vm0, %v12976_v22, 0.0 }
 0x38e   : > { %v12980_v49 = vpop.eup %11068  ;;  %v1888_v34 = vsub.f32 %v12833_v20, %v1822_v39  ;;  %2001 = vadd.xlane.f32.xlu0 %v2000_v26 }
 0x38f   : > { %v1825_v41 = vpop.xlane.xlu1 %1824  ;;  %v2003_v40 = vsel %vm1289_vm0, %v12980_v49, 0.0 }
 0x390   : > { %v12985_v63 = vpop.eup %11070  ;;  %v1934_v21 = vmul.f32 1.442695, %v1888_v34  ;;  %v1889_v55 = vsub.f32 %v12839_v11, %v1825_v41  ;;  %2004 = vadd.xlane.f32.xlu1 %v2003_v40 }
 0x391   : > { %v1816_v25 = vpop.xlane.xlu0 %1815  ;;  %v1994_v13 = vsel %vm1289_vm0, %v12985_v63, 0.0 }
 0x392   : > { %v12990_v3 = vpop.eup %11072  ;;  %11074 = vpow2.f32 %v1934_v21  ;;  %v1936_v31 = vmul.f32 1.442695, %v1889_v55  ;;  %v1886_v20 = vsub.f32 %v12836_v43, %v1816_v25  ;;  %1995 = vadd.xlane.f32.xlu0 %v1994_v13 }
 0x393   : > { %v1819_v38 = vpop.xlane.xlu1 %1818  ;;  %v1997_v42 = vsel %vm1289_vm0, %v12990_v3, 0.0 }
 0x394   : > { %11076 = vpow2.f32 %v1936_v31  ;;  %v1930_v29 = vmul.f32 1.442695, %v1886_v20  ;;  %v1887_v11 = vsub.f32 %v12844_v6, %v1819_v38  ;;  %1998 = vadd.xlane.f32.xlu1 %v1997_v42 }
 0x396   : > { %11078 = vpow2.f32 %v1930_v29  ;;  %v1932_v46 = vmul.f32 1.442695, %v1887_v11 }
 0x398   : > { %11080 = vpow2.f32 %v1932_v46 }
 0x39c   : > { %v12996_v39 = vpop.eup %11074 }
 0x39d   : > { %v1834_v26 = vpop.xlane.xlu0 %1833  ;;  %v2012_v34 = vsel %vm1289_vm0, %v12996_v39, 0.0 }
 0x39e   : > { %v13000_v43 = vpop.eup %11076  ;;  %v1892_v41 = vsub.f32 %v12853_v56, %v1834_v26  ;;  %2013 = vadd.xlane.f32.xlu0 %v2012_v34 }
 0x39f   : > { %v1837_v40 = vpop.xlane.xlu1 %1836  ;;  %v2015_v21 = vsel %vm1289_vm0, %v13000_v43, 0.0 }
 0x3a0   : > { %v13005_v6 = vpop.eup %11078  ;;  %v1942_v55 = vmul.f32 1.442695, %v1892_v41  ;;  %v1893_v25 = vsub.f32 %v12859_v53, %v1837_v40  ;;  %2016 = vadd.xlane.f32.xlu1 %v2015_v21 }
 0x3a1   : > { %v1828_v13 = vpop.xlane.xlu0 %1827  ;;  %v2006_v31 = vsel %vm1289_vm0, %v13005_v6, 0.0 }
 0x3a2   : > { %v13010_v20 = vpop.eup %11080  ;;  %11082 = vpow2.f32 %v1942_v55  ;;  %v1944_v38 = vmul.f32 1.442695, %v1893_v25  ;;  %v1890_v56 = vsub.f32 %v12856_v23, %v1828_v13  ;;  %2007 = vadd.xlane.f32.xlu0 %v2006_v31 }
 0x3a3   : > { %v1831_v42 = vpop.xlane.xlu1 %1830  ;;  %v2009_v29 = vsel %vm1289_vm0, %v13010_v20, 0.0 }
 0x3a4   : > { %11084 = vpow2.f32 %v1944_v38  ;;  %v1938_v11 = vmul.f32 1.442695, %v1890_v56  ;;  %v1891_v53 = vsub.f32 %v12864_v12, %v1831_v42  ;;  %2010 = vadd.xlane.f32.xlu1 %v2009_v29 }
 0x3a6   : > { %11086 = vpow2.f32 %v1938_v11  ;;  %v1940_v46 = vmul.f32 1.442695, %v1891_v53 }
 0x3a8   : > { %11088 = vpow2.f32 %v1940_v46 }
 0x3ac   : > { %v13016_v26 = vpop.eup %11082 }
 0x3ad   : > { %v1858_v34 = vpop.xlane.xlu0 %1857  ;;  %v2024_v41 = vsel %vm1289_vm0, %v13016_v26, 0.0 }
 0x3ae   : > { %v13020_v23 = vpop.eup %11084  ;;  %v1900_v40 = vsub.f32 %v12873_v9, %v1858_v34  ;;  %2025 = vadd.xlane.f32.xlu0 %v2024_v41 }
 0x3af   : > { %v2027_v21 = vsel %vm1289_vm0, %v13020_v23, 0.0 }
 0x3b0   : > { %v13025_v55 = vpop.eup %11086  ;;  %v1958_v12 = vmul.f32 1.442695, %v1900_v40  ;;  %2028 = vadd.xlane.f32.xlu1 %v2027_v21 }
 0x3b1   : > { %v1846_v25 = vpop.xlane.xlu0 %1845  ;;  %v2018_v13 = vsel %vm1289_vm0, %v13025_v55, 0.0 }
 0x3b2   : > { %v13029_v31 = vpop.eup %11088  ;;  %11090 = vpow2.f32 %v1958_v12  ;;  %v1896_v38 = vsub.f32 %v12876_v37, %v1846_v25  ;;  %2019 = vadd.xlane.f32.xlu0 %v2018_v13  ;;  %v1861_v13 = vpop.xlane.xlu1 %1860 }
 0x3b3   : > { %v2021_v9 = vsel %vm1289_vm0, %v13029_v31, 0.0 }
 0x3b4   : > { %v1950_v56 = vmul.f32 1.442695, %v1896_v38  ;;  %2022 = vadd.xlane.f32.xlu1 %v2021_v9  ;;  %v1901_v9 = vsub.f32 %v12879_v4, %v1861_v13 }
 0x3b5   : > { %v1852_v42 = vpop.xlane.xlu0 %1851 }
 0x3b6   : > { %11092 = vpow2.f32 %v1950_v56  ;;  %v1898_v29 = vsub.f32 %v12887_v24, %v1852_v42  ;;  %v1849_v38 = vpop.xlane.xlu1 %1848  ;;  %v1960_v42 = vmul.f32 1.442695, %v1901_v9 }
 0x3b8   : > { %v1954_v11 = vmul.f32 1.442695, %v1898_v29  ;;  %v1897_v29 = vsub.f32 %v12884_v48, %v1849_v38 }
 0x3b9   : > { %v1840_v53 = vpop.xlane.xlu0 %1839 }
 0x3ba   : > { %11094 = vpow2.f32 %v1954_v11  ;;  %v1894_v46 = vsub.f32 %v12899_v33, %v1840_v53  ;;  %v1855_v56 = vpop.xlane.xlu1 %1854  ;;  %v1952_v11 = vmul.f32 1.442695, %v1897_v29 }
 0x3bb   : > { %v1899_v53 = vsub.f32 %v12894_v1, %v1855_v56 }
 0x3bc   : > { %v13036_v34 = vpop.eup %11090  ;;  %v1946_v41 = vmul.f32 1.442695, %v1894_v46 }
 0x3bd   : > { %v2048_v37 = vsel %vm1289_vm0, %v13036_v34, 0.0 }
 0x3be   : > { %11096 = vpow2.f32 %v1946_v41  ;;  %2049 = vadd.xlane.f32.xlu0 %v2048_v37  ;;  %v1843_v46 = vpop.xlane.xlu1 %1842  ;;  %v1870_v41 = vpop.xlane.xlu0 %1869  ;;  %v1956_v37 = vmul.f32 1.442695, %v1899_v53 }
 0x3bf   : > { %11098 = vpow2.f32 %v1960_v42 }
 0x3c0   : > { %v13040_v40 = vpop.eup %11092  ;;  %11100 = vpow2.f32 %v1952_v11 }
 0x3c1   : > { %v2036_v21 = vsel %vm1289_vm0, %v13040_v40, 0.0  ;;  %11102 = vpow2.f32 %v1956_v37 }
 0x3c2   : > { %2037 = vadd.xlane.f32.xlu0 %v2036_v21  ;;  %v1895_v21 = vsub.f32 %v12904_v51, %v1843_v46  ;;  %v1864_v4 = vpop.xlane.xlu0 %1863  ;;  %v13076_v42 = vpop.xlane.xlu1 %1872 }
 0x3c3   : > { %v1902_v38 = vsub.f32 %v12916_v44, %v1864_v4 }
 0x3c4   : > { %v13044_v24 = vpop.eup %11094 }
 0x3c5   : > { %2628 = vrot.lane.b32.xlu1 %v12490_v30, %s12014_s18  ;;  %v2042_v33 = vsel %vm1289_vm0, %v13044_v24, 0.0  ;;  %v1962_v56 = vmul.f32 1.442695, %v1902_v38 }
 0x3c6   : > { %2043 = vadd.xlane.f32.xlu0 %v2042_v33  ;;  %v1904_v33 = vsub.f32 %v12913_v58, %v1870_v41  ;;  %v13084_v53 = vpop.xlane.xlu1 %1866 }
 0x3c8   : > { %v13050_v12 = vpop.eup %11096  ;;  %v1966_v48 = vmul.f32 1.442695, %v1904_v33 }
 0x3c9   : > { %2620 = vrot.lane.b32.xlu1 %v12472_v7, %s12014_s18  ;;  %v2030_v25 = vsel %vm1289_vm0, %v13050_v12, 0.0  ;;  %v13065_v13 = vpop.eup %11098 }
 0x3ca   : > { %2031 = vadd.xlane.f32.xlu0 %v2030_v25  ;;  %v1948_v25 = vmul.f32 1.442695, %v1895_v21  ;;  %v2051_v1 = vsel %vm1289_vm0, %v13065_v13, 0.0  ;;  %v13070_v9 = vpop.eup %11100 }
 0x3cb   : > { %v2039_v58 = vsel %vm1289_vm0, %v13070_v9, 0.0  ;;  %v13074_v51 = vpop.eup %11102 }
 0x3cc   : > { %11104 = vpow2.f32 %v1948_v25  ;;  %v2045_v44 = vsel %vm1289_vm0, %v13074_v51, 0.0 }
 0x3cd   : > { %2699 = vrot.lane.b32.xlu1 %v12510_v62, %s12014_s18  ;;  %11106 = vpow2.f32 %v1966_v48 }
 0x3ce   : > { %11108 = vpow2.f32 %v1962_v56 }
 0x3d6   : > { %v13080_v29 = vpop.eup %11104 }
 0x3d7   : > { %v13082_v11 = vpop.eup %11106  ;;  %v2033_v41 = vsel %vm1289_vm0, %v13080_v29, 0.0 }
 0x3d8   : > { %16769 = vst [vmem:[#allocation65_spill] sm:$0xff] %v13082_v11  ;;  %v2060_v37 = vsel %vm1289_vm0, %v13082_v11, 0.0  ;;  %v13090_v21 = vpop.eup %11108 }
 0x3d9   : > { %v2054_v25 = vsel %vm1289_vm0, %v13090_v21, 0.0 }
 0x3e0   : > { %2626 = vrot.lane.b32.xlu0 %v12468_v5, %s12014_s18 }
 0x3f1   : > { %2052 = vadd.xlane.f32.xlu1 %v2051_v1 }
 0x3f5   : > { %2040 = vadd.xlane.f32.xlu1 %v2039_v58 }
 0x3f9   : > { %2046 = vadd.xlane.f32.xlu1 %v2045_v44 }
 0x3fb   : > { %v1978_v46 = vpop.xlane.xlu0 %1977 }
 0x3fd   : > { %2034 = vadd.xlane.f32.xlu1 %v2033_v41 }
 0x3ff   : > { %v1981_v33 = vpop.xlane.xlu1 %1980  ;;  %2061 = vadd.xlane.f32.xlu0 %v2060_v37  ;;  %v1972_v4 = vpop.xlane.xlu0 %1971 }
 0x400   : > { %11110 = vrcp.f32 %v1981_v33 }
 0x401   : > { %11112 = vrcp.f32 %v1972_v4 }
 0x402   : > { %11114 = vrcp.f32 %v1978_v46 }
 0x403   : > { %v1975_v48 = vpop.xlane.xlu1 %1974  ;;  %2055 = vadd.xlane.f32.xlu0 %v2054_v25 }
 0x404   : > { %11116 = vrcp.f32 %v1975_v48 }
 0x40a   : > { %v11111_v38 = vpop.eup %11110 }
 0x40b   : > { %v1990_v1 = vpop.xlane.xlu0 %1989  ;;  %v11113_v56 = vpop.eup %11112  ;;  %v2073_v62 = vmul.f32 %v11111_v38, %v12943_v52  ;;  %v1905_v38 = vsub.f32 %v12919_v36, %v13076_v42 }
 0x40c   : > { %v11115_v58 = vpop.eup %11114  ;;  %v2067_v33 = vmul.f32 %v11113_v56, %v12940_v50 }
 0x40d   : > { %v1993_v44 = vpop.xlane.xlu1 %1992  ;;  %v2071_v4 = vmul.f32 %v11115_v58, %v12936_v27 }
 0x40e   : > { %v11117_v41 = vpop.eup %11116  ;;  %2622 = vrot.lane.b32.xlu1 %v12494_v32, %s12014_s18  ;;  %11118 = vrcp.f32 %v1993_v44 }
 0x40f   : > { %v1984_v37 = vpop.xlane.xlu0 %1983  ;;  %v2069_v46 = vmul.f32 %v11117_v41, %v12950_v54  ;;  %v2131_v11 = vpack.c.bf16 %v2073_v62, %v2071_v4 }
 0x410   : > { %11120 = vrcp.f32 %v1984_v37 }
 0x411   : > { %11122 = vrcp.f32 %v1990_v1  ;;  %v1987_v25 = vpop.xlane.xlu1 %1986  ;;  %v2130_v48 = vpack.c.bf16 %v2069_v46, %v2067_v33  ;;  %v1968_v33 = vmul.f32 1.442695, %v1905_v38  ;;  %v1903_v46 = vsub.f32 %v12924_v61, %v13084_v53 }
 0x412   : > { %11124 = vrcp.f32 %v1987_v25 }
 0x413   : > { %10284 = vmatprep.mubr.msk.bf16.mxu0 %vm1289_vm0, %v2130_v48 }
 0x414   : > { %10285 = vmatmul.mubr.msk.bf16.vlgmr.msra.gmra.mrb[56].mxu0 %vm1289_vm0, %v2131_v11 }
 0x415   : > { %10297 = vmatpush3.bf16.msra.mxu0 %v12610_v19 }
 0x416   : > { %10298 = vmatprep.subr.bf16.mxu0 %v12606_v17 }
 0x418   : > { %v11119_v52 = vpop.eup %11118 }
 0x419   : > { %10299 = vmatpush3.bf16.msra.mxu0 %v12606_v17  ;;  %2772 = vrot.lane.b32.xlu0 %v12560_v2, %s12014_s18  ;;  %v2081_v11 = vmul.f32 %v11119_v52, %v12960_v8 }
 0x41a   : > { %v11121_v27 = vpop.eup %11120  ;;  %10312 = vmatprep.subr.bf16.mxu0 %v12654_v57 }
 0x41b   : > { %v11123_v50 = vpop.eup %11122  ;;  %v2002_v54 = vpop.xlane.xlu0 %2001  ;;  %v2075_v56 = vmul.f32 %v11121_v27, %v12965_v47 }
 0x41c   : > { %v11125_v62 = vpop.eup %11124  ;;  %v2079_v44 = vmul.f32 %v11123_v50, %v12956_v45  ;;  %v1964_v45 = vmul.f32 1.442695, %v1903_v46 }
 0x41d   : > { %v2005_v1 = vpop.xlane.xlu1 %2004  ;;  %2701 = vrot.lane.b32.xlu0 %v12535_v28, %s12014_s18  ;;  %v2077_v58 = vmul.f32 %v11125_v62, %v12970_v15 }
 0x41e   : > { %11126 = vrcp.f32 %v2005_v1  ;;  %v2133_v36 = vpack.c.bf16 %v2081_v11, %v2079_v44  ;;  %v16773_v44 = vld [vmem:[#allocation47_spill] sm:$0xff] }
 0x41f   : > { %v1996_v41 = vpop.xlane.xlu0 %1995  ;;  %v2132_v37 = vpack.c.bf16 %v2077_v58, %v2075_v56  ;;  %v16772_v56 = vld [vmem:[#allocation60_spill] sm:$0xff] }
 0x420   : > { %11128 = vrcp.f32 %v1996_v41 }
 0x421   : > { %11130 = vrcp.f32 %v2002_v54  ;;  %v1999_v8 = vpop.xlane.xlu1 %1998  ;;  %2693 = vrot.lane.b32.xlu0 %v12514_v0, %s12014_s18  ;;  %10292 = vmatprep.mubr.msk.bf16.mxu1 %vm1289_vm0, %v2132_v37 }
 0x422   : > { %11132 = vrcp.f32 %v1999_v8  ;;  %10293 = vmatmul.mubr.msk.bf16.vlgmr.msra.gmra.mrb[72].mxu1 %vm1289_vm0, %v2133_v36 }
 0x423   : > { %10305 = vmatpush3.bf16.msra.mxu1 %v12634_v10  ;;  %11134 = vpow2.f32 %v1968_v33 }
 0x424   : > { %10306 = vmatprep.subr.bf16.mxu1 %v12630_v60  ;;  %11136 = vpow2.f32 %v1964_v45  ;;  %v16774_v45 = vld [vmem:[#allocation61_spill] sm:$0xff] }
 0x425   : > { %2845 = vrot.lane.b32.xlu0 %v12604_v16, %s12014_s18 }
 0x427   : > { %10307 = vmatpush3.bf16.msra.mxu1 %v12630_v60 }
 0x428   : > { %10320 = vmatprep.subr.bf16.mxu1 %v12678_v14  ;;  %v11127_v61 = vpop.eup %11126 }
 0x429   : > { %2695 = vrot.lane.b32.xlu0 %v12539_v35, %s12014_s18  ;;  %v2089_v4 = vmul.f32 %v11127_v61, %v12980_v49 }
 0x42a   : > { %v11129_v47 = vpop.eup %11128 }
 0x42b   : > { %v11131_v15 = vpop.eup %11130  ;;  %v2014_v42 = vpop.xlane.xlu0 %2013  ;;  %v2083_v48 = vmul.f32 %v11129_v47, %v12985_v63 }
 0x42c   : > { %v11133_v53 = vpop.eup %11132  ;;  %v2087_v50 = vmul.f32 %v11131_v15, %v12976_v22  ;;  %v16770_v22 = vld [vmem:[#allocation50_spill] sm:$0xff] }
 0x42d   : > { %v2017_v25 = vpop.xlane.xlu1 %2016  ;;  %2847 = vrot.lane.b32.xlu0 %v12628_v59, %s12014_s18  ;;  %v2085_v52 = vmul.f32 %v11133_v53, %v12990_v3  ;;  %v13135_v27 = vpop.eup %11134  ;;  %v16771_v3 = vld [vmem:[#allocation57_spill] sm:$0xff] }
 0x42e   : > { %11138 = vrcp.f32 %v2017_v25  ;;  %v2135_v38 = vpack.c.bf16 %v2089_v4, %v2087_v50  ;;  %v2063_v49 = vsel %vm1289_vm0, %v13135_v27, 0.0  ;;  %v13143_v63 = vpop.eup %11136  ;;  %v16780_v50 = vld [vmem:[#allocation63_spill] sm:$0xff] }
 0x42f   : > { %v2008_v54 = vpop.xlane.xlu0 %2007  ;;  %v2134_v62 = vpack.c.bf16 %v2085_v52, %v2083_v48  ;;  %v2057_v1 = vsel %vm1289_vm0, %v13143_v63, 0.0  ;;  %v16775_v48 = vld [vmem:[#allocation26_spill] sm:$0xff] }
 0x430   : > { %11140 = vrcp.f32 %v2008_v54 }
 0x431   : > { %11142 = vrcp.f32 %v2014_v42  ;;  %v2011_v11 = vpop.xlane.xlu1 %2010  ;;  %2839 = vrot.lane.b32.xlu0 %v12608_v18, %s12014_s18  ;;  %10300 = vmatprep.mubr.msk.bf16.mxu0 %vm1289_vm0, %v2134_v62 }
 0x432   : > { %11144 = vrcp.f32 %v2011_v11  ;;  %2064 = vadd.xlane.f32.xlu1 %v2063_v49  ;;  %10301 = vmatmul.mubr.msk.bf16.vlgmr.msra.gmra.mrb[60].mxu0 %vm1289_vm0, %v2135_v38  ;;  %v16781_v38 = vld [vmem:[#allocation37_spill] sm:$0xff] }
 0x433   : > { %10313 = vmatpush3.bf16.msra.mxu0 %v12654_v57 }
 0x434   : > { %10314 = vmatprep.subr.bf16.mxu0 %v16770_v22 }
 0x435   : > { %2991 = vrot.lane.b32.xlu0 %v16771_v3, %s12014_s18 }
 0x436   : > { %2058 = vadd.xlane.f32.xlu1 %v2057_v1 }
 0x437   : > { %10315 = vmatpush3.bf16.msra.mxu0 %v16770_v22 }
 0x438   : > { %10328 = vmatprep.subr.bf16.mxu0 %v16772_v56  ;;  %v11139_v58 = vpop.eup %11138 }
 0x439   : > { %2841 = vrot.lane.b32.xlu0 %v16773_v44, %s12014_s18  ;;  %v2097_v36 = vmul.f32 %v11139_v58, %v13000_v43  ;;  %v16776_v43 = vld [vmem:[#allocation54_spill] sm:$0xff]  ;;  %v16782_v58 = vld [vmem:[#allocation32_spill] sm:$0xff] }
 0x43a   : > { %v11141_v41 = vpop.eup %11140 }
 0x43b   : > { %v11143_v37 = vpop.eup %11142  ;;  %v2026_v33 = vpop.xlane.xlu0 %2025  ;;  %v2091_v61 = vmul.f32 %v11141_v41, %v13005_v6  ;;  %v16778_v6 = vld [vmem:[#allocation39_spill] sm:$0xff] }
 0x43c   : > { %v11145_v46 = vpop.eup %11144  ;;  %v2095_v15 = vmul.f32 %v11143_v37, %v12996_v39  ;;  %v16777_v39 = vld [vmem:[#allocation29_spill] sm:$0xff] }
 0x43d   : > { %v2029_v8 = vpop.xlane.xlu1 %2028  ;;  %2993 = vrot.lane.b32.xlu0 %v16774_v45, %s12014_s18  ;;  %v2093_v47 = vmul.f32 %v11145_v46, %v13010_v20  ;;  %v16779_v20 = vld [vmem:[#allocation64_spill] sm:$0xff]  ;;  %v16783_v46 = vld [vmem:[#allocation49_spill] sm:$0xff] }
 0x43e   : > { %11146 = vrcp.f32 %v2029_v8  ;;  %v2137_v4 = vpack.c.bf16 %v2097_v36, %v2095_v15 }
 0x43f   : > { %v2020_v42 = vpop.xlane.xlu0 %2019  ;;  %v2136_v53 = vpack.c.bf16 %v2093_v47, %v2091_v61  ;;  %v16784_v47 = vld [vmem:[#allocation38_spill] sm:$0xff] }
 0x440   : > { %11148 = vrcp.f32 %v2020_v42  ;;  %v16788_v42 = vld [vmem:[#allocation42_spill] sm:$0xff] }
 0x441   : > { %11150 = vrcp.f32 %v2026_v33  ;;  %v2023_v25 = vpop.xlane.xlu1 %2022  ;;  %3058 = vrot.lane.b32.xlu0 %v16775_v48, %s12014_s18  ;;  %10308 = vmatprep.mubr.msk.bf16.mxu1 %vm1289_vm0, %v2136_v53  ;;  %v16789_v53 = vld [vmem:[#allocation51_spill] sm:$0xff] }
 0x442   : > { %11152 = vrcp.f32 %v2023_v25  ;;  %10309 = vmatmul.mubr.msk.bf16.vlgmr.msra.gmra.mrb[76].mxu1 %vm1289_vm0, %v2137_v4  ;;  %v16790_v25 = vld [vmem:[#allocation24_spill] sm:$0xff] }
 0x443   : > { %10321 = vmatpush3.bf16.msra.mxu1 %v12678_v14 }
 0x444   : > { %10322 = vmatprep.subr.bf16.mxu1 %v16776_v43 }
 0x445   : > { %3060 = vrot.lane.b32.xlu0 %v16777_v39, %s12014_s18 }
 0x447   : > { %10323 = vmatpush3.bf16.msra.mxu1 %v16776_v43  ;;  %2774 = vrot.lane.b32.xlu1 %v16778_v6, %s12014_s18 }
 0x448   : > { %10336 = vmatprep.subr.bf16.mxu1 %v16779_v20  ;;  %v11147_v52 = vpop.eup %11146 }
 0x449   : > { %2987 = vrot.lane.b32.xlu0 %v16780_v50, %s12014_s18  ;;  %v2105_v1 = vmul.f32 %v11147_v52, %v13020_v23  ;;  %v16785_v23 = vld [vmem:[#allocation41_spill] sm:$0xff]  ;;  %v16791_v52 = vld [vmem:[#allocation55_spill] sm:$0xff] }
 0x44a   : > { %v11149_v54 = vpop.eup %11148 }
 0x44b   : > { %v11151_v62 = vpop.eup %11150  ;;  %2766 = vrot.lane.b32.xlu1 %v16781_v38, %s12014_s18  ;;  %v2050_v11 = vpop.xlane.xlu0 %2049  ;;  %v2099_v41 = vmul.f32 %v11149_v54, %v13025_v55  ;;  %v16792_v54 = vld [vmem:[#allocation28_spill] sm:$0xff] }
 0x44c   : > { %v11153_v49 = vpop.eup %11152  ;;  %v2103_v33 = vmul.f32 %v11151_v62, %v13016_v26  ;;  %v16786_v26 = vld [vmem:[#allocation58_spill] sm:$0xff]  ;;  %v16793_v62 = vld [vmem:[#allocation59_spill] sm:$0xff] }
 0x44d   : > { %3131 = vrot.lane.b32.xlu0 %v16782_v58, %s12014_s18  ;;  %v2101_v37 = vmul.f32 %v11153_v49, %v13029_v31  ;;  %v16787_v31 = vld [vmem:[#allocation53_spill] sm:$0xff]  ;;  %v2629_v49 = vpop.permute.xlu1 %2628  ;;  %v16798_v58 = vld [vmem:[#allocation40_spill] sm:$0xff] }
 0x44e   : > { %v2139_v61 = vpack.c.bf16 %v2105_v1, %v2103_v33  ;;  %v16794_v1 = vld [vmem:[#allocation31_spill] sm:$0xff]  ;;  %v16796_v33 = vld [vmem:[#allocation34_spill] sm:$0xff] }
 0x44f   : > { %2918 = vrot.lane.b32.xlu1 %v16783_v46, %s12014_s18  ;;  %v2038_v36 = vpop.xlane.xlu0 %2037  ;;  %v2138_v8 = vpack.c.bf16 %v2101_v37, %v2099_v41  ;;  %v16795_v41 = vld [vmem:[#allocation33_spill] sm:$0xff] }
 0x451   : > { %3572 = vrot.lane.b32.xlu0 %v16784_v47, %s12014_s18  ;;  %10316 = vmatprep.mubr.msk.bf16.mxu0 %vm1289_vm0, %v2138_v8  ;;  %v2621_v37 = vpop.permute.xlu1 %2620 }
 0x452   : > { %10317 = vmatmul.mubr.msk.bf16.vlgmr.msra.gmra.mrb[64].mxu0 %vm1289_vm0, %v2139_v61  ;;  %v16797_v61 = vld [vmem:[#allocation36_spill] sm:$0xff] }
 0x453   : > { %10329 = vmatpush3.bf16.msra.mxu0 %v16772_v56  ;;  %2768 = vrot.lane.b32.xlu1 %v16785_v23, %s12014_s18  ;;  %v2044_v55 = vpop.xlane.xlu0 %2043 }
 0x454   : > { %10330 = vmatprep.subr.bf16.mxu0 %v16786_v26 }
 0x455   : > { %3698 = vrot.lane.b32.xlu0 %v12610_v19, %s12014_s18  ;;  %v13226_v8 = vpop.permute.xlu1 %2699 }
 0x457   : > { %10331 = vmatpush3.bf16.msra.mxu0 %v16786_v26  ;;  %2920 = vrot.lane.b32.xlu1 %v16787_v31, %s12014_s18  ;;  %v2032_v15 = vpop.xlane.xlu0 %2031 }
 0x459   : > { %3635 = vrot.lane.b32.xlu0 %v16788_v42, %s12014_s18 }
 0x45b   : > { %2912 = vrot.lane.b32.xlu1 %v16789_v53, %s12014_s18  ;;  %v2627_v4 = vpop.permute.xlu0 %2626 }
 0x45c   : > { %10808 = vmatprep.subr.msk.bf16.mxu0 %vm1289_vm0, %v2627_v4 }
 0x45d   : > { %3950 = vrot.lane.b32.xlu0 %v16772_v56, %s12014_s18 }
 0x45f   : > { %3064 = vrot.lane.b32.xlu1 %v16790_v25, %s12014_s18 }
 0x461   : > { %3952 = vrot.lane.b32.xlu0 %v16786_v26, %s12014_s18 }
 0x463   : > { %2914 = vrot.lane.b32.xlu1 %v16791_v52, %s12014_s18 }
 0x465   : > { %4013 = vrot.lane.b32.xlu0 %v16779_v20, %s12014_s18 }
 0x467   : > { %3066 = vrot.lane.b32.xlu1 %v16792_v54, %s12014_s18 }
 0x469   : > { %4241 = vrot.lane.b32.xlu0 %v12490_v30, %s12015_s25 }
 0x46b   : > { %2985 = vrot.lane.b32.xlu1 %v16793_v62, %s12014_s18 }
 0x46f   : > { %3137 = vrot.lane.b32.xlu1 %v16794_v1, %s12014_s18 }
 0x473   : > { %3139 = vrot.lane.b32.xlu1 %v16795_v41, %s12014_s18 }
 0x477   : > { %3133 = vrot.lane.b32.xlu1 %v16796_v33, %s12014_s18 }
 0x47b   : > { %3574 = vrot.lane.b32.xlu1 %v16797_v61, %s12014_s18 }
 0x47e   : > { %v2053_v30 = vpop.xlane.xlu1 %2052 }
 0x47f   : > { %3700 = vrot.lane.b32.xlu1 %v12606_v17, %s12014_s18  ;;  %11154 = vrcp.f32 %v2053_v30 }
 0x480   : > { %11156 = vrcp.f32 %v2044_v55 }
 0x481   : > { %11158 = vrcp.f32 %v2050_v11 }
 0x482   : > { %v2041_v26 = vpop.xlane.xlu1 %2040 }
 0x483   : > { %3824 = vrot.lane.b32.xlu1 %v12654_v57, %s12014_s18 }
 0x486   : > { %v2047_v56 = vpop.xlane.xlu1 %2046 }
 0x487   : > { %11160 = vrcp.f32 %v2047_v56  ;;  %3637 = vrot.lane.b32.xlu1 %v16798_v58, %s12014_s18 }
 0x488   : > { %11162 = vrcp.f32 %v2041_v26 }
 0x489   : > { %11164 = vrcp.f32 %v2032_v15  ;;  %v11155_v17 = vpop.eup %11154 }
 0x48a   : > { %11166 = vrcp.f32 %v2038_v36  ;;  %v2035_v61 = vpop.xlane.xlu1 %2034  ;;  %v11157_v50 = vpop.eup %11156  ;;  %v2121_v56 = vmul.f32 %v11155_v17, %v13065_v13 }
 0x48b   : > { %11168 = vrcp.f32 %v2035_v61  ;;  %3826 = vrot.lane.b32.xlu1 %v16770_v22, %s12014_s18  ;;  %v11159_v30 = vpop.eup %11158  ;;  %v2115_v26 = vmul.f32 %v11157_v50, %v13044_v24 }
 0x48c   : > { %v2062_v42 = vpop.xlane.xlu0 %2061  ;;  %v2119_v61 = vmul.f32 %v11159_v30, %v13036_v34  ;;  %v2637_v34 = vsel %vm1289_vm0, %v2627_v4, 0 }
 0x48e   : > { %v2143_v39 = vpack.c.bf16 %v2121_v56, %v2119_v61 }
 0x48f   : > { %3761 = vrot.lane.b32.xlu1 %v12634_v10, %s12014_s18 }
 0x490   : > { %v2056_v58 = vpop.xlane.xlu0 %2055 }
 0x491   : > { %v11161_v11 = vpop.eup %11160 }
 0x492   : > { %v11163_v55 = vpop.eup %11162  ;;  %v2117_v36 = vmul.f32 %v11161_v11, %v13074_v51 }
 0x493   : > { %v11165_v15 = vpop.eup %11164  ;;  %3763 = vrot.lane.b32.xlu1 %v12630_v60, %s12014_s18  ;;  %v2113_v10 = vmul.f32 %v11163_v55, %v13070_v9 }
 0x494   : > { %v11167_v22 = vpop.eup %11166  ;;  %v2142_v57 = vpack.c.bf16 %v2117_v36, %v2115_v26  ;;  %v2107_v17 = vmul.f32 %v11165_v15, %v13050_v12  ;;  %v2773_v51 = vpop.permute.xlu0 %2772 }
 0x495   : > { %v11169_v19 = vpop.eup %11168  ;;  %v2111_v13 = vmul.f32 %v11167_v22, %v13040_v40  ;;  %v2640_v40 = vsel %vm1289_vm0, %v2629_v49, 0  ;;  %v2783_v22 = vsel %vm1289_vm0, %v2773_v51, 0 }
 0x496   : > { %10332 = vmatprep.mubr.msk.bf16.mxu0 %vm1289_vm0, %v2142_v57  ;;  %v2109_v24 = vmul.f32 %v11169_v19, %v13080_v29  ;;  %v16799_v19 = vld [vmem:[#allocation62_spill] sm:$0xff] }
 0x497   : > { %3887 = vrot.lane.b32.xlu1 %v12678_v14, %s12014_s18  ;;  %10333 = vmatmul.mubr.msk.bf16.vlgmr.msra.gmra.mrb[68].mxu0 %vm1289_vm0, %v2143_v39  ;;  %v2141_v57 = vpack.c.bf16 %v2113_v10, %v2111_v13  ;;  %v2623_v10 = vpop.permute.xlu1 %2622 }
 0x498   : > { %10345 = vmatpush3.bf16.xpose.msra.mxu0 %v2637_v34  ;;  %10348 = vmatprep.mubr.msk.bf16.mxu0 %vm1289_vm0, %v2621_v37  ;;  %v2140_v9 = vpack.c.bf16 %v2109_v24, %v2107_v17  ;;  %v2702_v12 = vpop.permute.xlu0 %2701 }
 0x499   : > { %10809 = vmatprep.subr.msk.bf16.mxu0 %vm1289_vm0, %v2629_v49 }
 0x49a   : > { %10324 = vmatprep.mubr.msk.bf16.mxu1 %vm1289_vm0, %v2140_v9  ;;  %v16800_v9 = vld [vmem:[#allocation65_spill] sm:$0xff] }
 0x49b   : > { %3889 = vrot.lane.b32.xlu1 %v16776_v43, %s12014_s18  ;;  %10325 = vmatmul.mubr.msk.bf16.vlgmr.msra.gmra.mrb[80].mxu1 %vm1289_vm0, %v2141_v57 }
 0x49c   : > { %10337 = vmatpush3.bf16.msra.mxu1 %v16779_v20  ;;  %v2694_v29 = vpop.permute.xlu0 %2693 }
 0x49d   : > { %10338 = vmatprep.subr.bf16.mxu1 %v16799_v19 }
 0x49f   : > { %4239 = vrot.lane.b32.xlu1 %v12468_v5, %s12015_s25 }
 0x4a0   : > { %10339 = vmatpush3.bf16.msra.mxu1 %v16799_v19  ;;  %10347 = vmatpush3.bf16.xpose.msra.mxu0 %v2640_v40  ;;  %v2846_v39 = vpop.permute.xlu0 %2845 }
 0x4a1   : > { %10810 = vmatprep.subr.msk.bf16.mxu1 %vm1289_vm0, %v13226_v8  ;;  %10812 = vmatprep.subr.msk.bf16.mxu0 %vm1289_vm0, %v2773_v51 }
 0x4a3   : > { %4015 = vrot.lane.b32.xlu1 %v16799_v19, %s12014_s18 }
 0x4a4   : > { %v2696_v50 = vpop.permute.xlu0 %2695 }
 0x4a7   : > { %10349 = vmatmul.mubr.msk.bf16.vlgmr.msra.gmra.mrb[72].mxu0 %vm1289_vm0, %v2623_v10  ;;  %4235 = vrot.lane.b32.xlu1 %v12472_v7, %s12015_s25 }
 0x4a8   : > { %10361 = vmatpush3.bf16.xpose.msra.mxu0 %v2783_v22  ;;  %v13276_v4 = vpop.permute.xlu0 %2847 }
 0x4ac   : > { %v2840_v49 = vpop.permute.xlu0 %2839 }
 0x4b0   : > { %v13278_v11 = vpop.permute.xlu0 %2991 }
 0x4b4   : > { %v13282_v26 = vpop.permute.xlu0 %2841 }
 0x4b8   : > { %v13289_v51 = vpop.permute.xlu0 %2993 }
 0x4bf   : > { %v2065_v37 = vpop.xlane.xlu1 %2064 }
 0x4c0   : > { %11170 = vrcp.f32 %v2065_v37 }
 0x4c1   : > { %11172 = vrcp.f32 %v2056_v58 }
 0x4c2   : > { %11174 = vrcp.f32 %v2062_v42 }
 0x4c3   : > { %v2059_v30 = vpop.xlane.xlu1 %2058 }
 0x4c4   : > { %11176 = vrcp.f32 %v2059_v30 }
 0x4c7   : > { %v2775_v56 = vpop.permute.xlu1 %2774 }
 0x4c8   : > { %10813 = vmatprep.subr.msk.bf16.mxu0 %vm1289_vm0, %v2775_v56  ;;  %v2786_v55 = vsel %vm1289_vm0, %v2775_v56, 0 }
 0x4c9   : > { %10363 = vmatpush3.bf16.xpose.msra.mxu0 %v2786_v55  ;;  %v2713_v55 = vsel %vm1289_vm0, %v2702_v12, 0 }
 0x4ca   : > { %v11171_v36 = vpop.eup %11170 }
 0x4cb   : > { %v2767_v15 = vpop.permute.xlu1 %2766  ;;  %v11173_v61 = vpop.eup %11172  ;;  %v2129_v42 = vmul.f32 %v11171_v36, %v13135_v27  ;;  %v2710_v27 = vsel %vm1289_vm0, %v13226_v8, 0 }
 0x4cc   : > { %10364 = vmatprep.mubr.msk.bf16.mxu0 %vm1289_vm0, %v2767_v15  ;;  %v11175_v17 = vpop.eup %11174  ;;  %v2123_v13 = vmul.f32 %v11173_v61, %v13090_v21  ;;  %v2856_v61 = vsel %vm1289_vm0, %v2846_v39, 0 }
 0x4cd   : > { %v2127_v57 = vmul.f32 %v11175_v17, %v16800_v9 }
 0x4ce   : > { %v11177_v58 = vpop.eup %11176 }
 0x4cf   : > { %v2919_v24 = vpop.permute.xlu1 %2918  ;;  %v2125_v34 = vmul.f32 %v11177_v58, %v13143_v63  ;;  %v2145_v10 = vpack.c.bf16 %v2129_v42, %v2127_v57  ;;  %v3059_v63 = vpop.permute.xlu0 %3058 }
 0x4d0   : > { %10816 = vmatprep.subr.msk.bf16.mxu0 %vm1289_vm0, %v2919_v24  ;;  %v2929_v21 = vsel %vm1289_vm0, %v2919_v24, 0 }
 0x4d1   : > { %v2144_v40 = vpack.c.bf16 %v2125_v34, %v2123_v13  ;;  %v2859_v13 = vsel %vm1289_vm0, %v13276_v4, 0 }
 0x4d3   : > { %v2769_v22 = vpop.permute.xlu1 %2768  ;;  %10340 = vmatprep.mubr.msk.bf16.mxu1 %vm1289_vm0, %v2144_v40  ;;  %v3061_v56 = vpop.permute.xlu0 %3060 }
 0x4d4   : > { %10341 = vmatmul.mubr.msk.bf16.vlgmr.msra.gmra.mrb[84].mxu1 %vm1289_vm0, %v2145_v10  ;;  %10365 = vmatmul.mubr.msk.bf16.vlgmr.msra.gmra.mrb[76].mxu0 %vm1289_vm0, %v2769_v22  ;;  %v3002_v10 = vsel %vm1289_vm0, %v13278_v11, 0 }
 0x4d5   : > { %10353 = vmatpush3.bf16.xpose.msra.mxu1 %v2710_v27  ;;  %10377 = vmatpush3.bf16.xpose.msra.mxu0 %v2929_v21 }
 0x4d6   : > { %10811 = vmatprep.subr.msk.bf16.mxu1 %vm1289_vm0, %v2702_v12  ;;  %10356 = vmatprep.mubr.msk.bf16.mxu1 %vm1289_vm0, %v2694_v29 }
 0x4d7   : > { %v2921_v37 = vpop.permute.xlu1 %2920  ;;  %v2988_v15 = vpop.permute.xlu0 %2987 }
 0x4d8   : > { %10817 = vmatprep.subr.msk.bf16.mxu0 %vm1289_vm0, %v2921_v37  ;;  %v2932_v8 = vsel %vm1289_vm0, %v2921_v37, 0 }
 0x4db   : > { %v2913_v30 = vpop.permute.xlu1 %2912  ;;  %v3132_v42 = vpop.permute.xlu0 %3131 }
 0x4dc   : > { %10380 = vmatprep.mubr.msk.bf16.mxu0 %vm1289_vm0, %v2913_v30 }
 0x4dd   : > { %10355 = vmatpush3.bf16.xpose.msra.mxu1 %v2713_v55  ;;  %10379 = vmatpush3.bf16.xpose.msra.mxu0 %v2932_v8 }
 0x4de   : > { %10814 = vmatprep.subr.msk.bf16.mxu1 %vm1289_vm0, %v2846_v39 }
 0x4df   : > { %v3065_v36 = vpop.permute.xlu1 %3064  ;;  %v3573_v9 = vpop.permute.xlu0 %3572 }
 0x4e0   : > { %10820 = vmatprep.subr.msk.bf16.mxu0 %vm1289_vm0, %v3065_v36  ;;  %v3075_v12 = vsel %vm1289_vm0, %v3065_v36, 0 }
 0x4e3   : > { %v2915_v29 = vpop.permute.xlu1 %2914  ;;  %v13338_v37 = vpop.permute.xlu0 %3698 }
 0x4e4   : > { %10357 = vmatmul.mubr.msk.bf16.vlgmr.msra.gmra.mrb[88].mxu1 %vm1289_vm0, %v2696_v50  ;;  %10381 = vmatmul.mubr.msk.bf16.vlgmr.msra.gmra.mrb[80].mxu0 %vm1289_vm0, %v2915_v29 }
 0x4e5   : > { %10369 = vmatpush3.bf16.xpose.msra.mxu1 %v2856_v61  ;;  %10372 = vmatprep.mubr.msk.bf16.mxu1 %vm1289_vm0, %v2840_v49 }
 0x4e6   : > { %10393 = vmatpush3.bf16.xpose.msra.mxu0 %v3075_v12  ;;  %10815 = vmatprep.subr.msk.bf16.mxu1 %vm1289_vm0, %v13276_v4 }
 0x4e7   : > { %10396 = vmatprep.mubr.msk.bf16.mxu0 %vm1289_vm0, %v3059_v63  ;;  %v3067_v17 = vpop.permute.xlu1 %3066  ;;  %v10286_v58 = vpop.f32.mrb[56].mxu0  ;;  %v3005_v63 = vsel %vm1289_vm0, %v13289_v51, 0 }
 0x4e8   : > { %2588 = vst.msk [vmem:[#allocation3 + $0x10] sm:$0xff] %vm1289_vm0, %v10286_v58  ;;  %v2186_v50 = vpop.f32.mrb[57].mxu0  ;;  %10821 = vmatprep.subr.msk.bf16.mxu0 %vm1289_vm0, %v3067_v17  ;;  %v3078_v34 = vsel %vm1289_vm0, %v3067_v17, 0  ;;  %v3636_v61 = vpop.permute.xlu0 %3635 }
 0x4e9   : > { %2586 = vst.msk [vmem:[#allocation3] sm:$0xff] %vm1289_vm0, %v2186_v50  ;;  %v10287_v39 = vpop.f32.mrb[58].mxu0 }
 0x4ea   : > { %2589 = vst.msk [vmem:[#allocation3 + $0x18] sm:$0xff] %vm1289_vm0, %v10287_v39  ;;  %v2189_v49 = vpop.f32.mrb[59].mxu0 }
 0x4eb   : > { %2587 = vst.msk [vmem:[#allocation3 + $0x8] sm:$0xff] %vm1289_vm0, %v2189_v49  ;;  %v2986_v24 = vpop.permute.xlu1 %2985 }
 0x4ed   : > { %10371 = vmatpush3.bf16.xpose.msra.mxu1 %v2859_v13 }
 0x4ee   : > { %10395 = vmatpush3.bf16.xpose.msra.mxu0 %v3078_v34  ;;  %10818 = vmatprep.subr.msk.bf16.mxu1 %vm1289_vm0, %v13278_v11 }
 0x4ef   : > { %10408 = vmatprep.subr.bf16.mxu0 %v3573_v9  ;;  %v3138_v57 = vpop.permute.xlu1 %3137 }
 0x4f3   : > { %v3140_v40 = vpop.permute.xlu1 %3139 }
 0x4f4   : > { %10373 = vmatmul.mubr.msk.bf16.vlgmr.msra.gmra.mrb[92].mxu1 %vm1289_vm0, %v13282_v26 }
 0x4f5   : > { %10397 = vmatmul.mubr.msk.bf16.vlgmr.msra.gmra.mrb[84].mxu0 %vm1289_vm0, %v3061_v56  ;;  %10385 = vmatpush3.bf16.xpose.msra.mxu1 %v3002_v10  ;;  %v10294_v4 = vpop.f32.mrb[72].mxu1  ;;  %v3148_v56 = vsel %vm1289_vm0, %v3138_v57, 0 }
 0x4f6   : > { %10388 = vmatprep.mubr.msk.bf16.mxu1 %vm1289_vm0, %v2986_v24  ;;  %10409 = vmatpush3.bf16.msra.mxu0 %v3573_v9  ;;  %2592 = vst.msk [vmem:[#allocation3 + $0x30] sm:$0xff] %vm1289_vm0, %v10294_v4  ;;  %v2241_v22 = vpop.f32.mrb[73].mxu1 }
 0x4f7   : > { %10819 = vmatprep.subr.msk.bf16.mxu1 %vm1289_vm0, %v13289_v51  ;;  %2590 = vst.msk [vmem:[#allocation3 + $0x20] sm:$0xff] %vm1289_vm0, %v2241_v22  ;;  %v3134_v27 = vpop.permute.xlu1 %3133  ;;  %v10295_v26 = vpop.f32.mrb[74].mxu1 }
 0x4f8   : > { %2593 = vst.msk [vmem:[#allocation3 + $0x38] sm:$0xff] %vm1289_vm0, %v10295_v26  ;;  %v2244_v11 = vpop.f32.mrb[75].mxu1 }
 0x4f9   : > { %2591 = vst.msk [vmem:[#allocation3 + $0x28] sm:$0xff] %vm1289_vm0, %v2244_v11 }
 0x4fb   : > { %v3575_v21 = vpop.permute.xlu1 %3574 }
 0x4fc   : > { %10410 = vmatprep.subr.bf16.mxu0 %v3575_v21 }
 0x4fd   : > { %10387 = vmatpush3.bf16.xpose.msra.mxu1 %v3005_v63  ;;  %10411 = vmatpush3.bf16.msra.mxu0 %v3575_v21  ;;  %v13377_v63 = vld [vmem:[#allocation4 + $0x10] sm:$0xff] }
 0x4fe   : > { %10822 = vmatprep.subr.msk.bf16.mxu1 %vm1289_vm0, %v3138_v57  ;;  %10424 = vmatprep.subr.bf16.mxu0 %v13338_v37 }
 0x4ff   : > { %v13342_v30 = vpop.permute.xlu1 %3700 }
 0x503   : > { %v13349_v8 = vpop.permute.xlu1 %3824 }
 0x504   : > { %10389 = vmatmul.mubr.msk.bf16.vlgmr.msra.gmra.mrb[96].mxu1 %vm1289_vm0, %v2988_v15  ;;  %v3151_v15 = vsel %vm1289_vm0, %v3140_v40, 0 }
 0x505   : > { %10401 = vmatpush3.bf16.xpose.msra.mxu1 %v3148_v56  ;;  %10404 = vmatprep.mubr.msk.bf16.mxu1 %vm1289_vm0, %v3132_v42  ;;  %v10302_v55 = vpop.f32.mrb[60].mxu0 }
 0x506   : > { %2596 = vst.msk [vmem:[#allocation3 + $0x50] sm:$0xff] %vm1289_vm0, %v10302_v55  ;;  %10823 = vmatprep.subr.msk.bf16.mxu1 %vm1289_vm0, %v3140_v40  ;;  %v2296_v51 = vpop.f32.mrb[61].mxu0 }
 0x507   : > { %2594 = vst.msk [vmem:[#allocation3 + $0x40] sm:$0xff] %vm1289_vm0, %v2296_v51  ;;  %v10303_v36 = vpop.f32.mrb[62].mxu0  ;;  %v3638_v12 = vpop.permute.xlu1 %3637 }
 0x508   : > { %2597 = vst.msk [vmem:[#allocation3 + $0x58] sm:$0xff] %vm1289_vm0, %v10303_v36  ;;  %v2299_v29 = vpop.f32.mrb[63].mxu0  ;;  %v13382_v36 = vld [vmem:[#allocation4] sm:$0xff] }
 0x509   : > { %2595 = vst.msk [vmem:[#allocation3 + $0x48] sm:$0xff] %vm1289_vm0, %v2299_v29 }
 0x50b   : > { %v13355_v17 = vpop.permute.xlu1 %3826 }
 0x50c   : > { %16801 = vst [vmem:[#allocation39_spill] sm:$0xff] %v13355_v17 }
 0x50d   : > { %10403 = vmatpush3.bf16.xpose.msra.mxu1 %v3151_v15 }
 0x50e   : > { %10416 = vmatprep.subr.bf16.mxu1 %v3636_v61 }
 0x50f   : > { %v13361_v49 = vpop.permute.xlu1 %3761 }
 0x510   : > { %16802 = vst [vmem:[#allocation37_spill] sm:$0xff] %v13361_v49 }
 0x514   : > { %10405 = vmatmul.mubr.msk.bf16.vlgmr.msra.gmra.mrb[100].mxu1 %vm1289_vm0, %v3134_v27 }
 0x515   : > { %10417 = vmatpush3.bf16.msra.mxu1 %v3636_v61  ;;  %v10310_v58 = vpop.f32.mrb[76].mxu1 }
 0x516   : > { %2600 = vst.msk [vmem:[#allocation3 + $0x70] sm:$0xff] %vm1289_vm0, %v10310_v58  ;;  %10418 = vmatprep.subr.bf16.mxu1 %v3638_v12  ;;  %v2351_v42 = vpop.f32.mrb[77].mxu1 }
 0x517   : > { %2598 = vst.msk [vmem:[#allocation3 + $0x60] sm:$0xff] %vm1289_vm0, %v2351_v42  ;;  %v10311_v50 = vpop.f32.mrb[78].mxu1 }
 0x518   : > { %2601 = vst.msk [vmem:[#allocation3 + $0x78] sm:$0xff] %vm1289_vm0, %v10311_v50  ;;  %v2354_v39 = vpop.f32.mrb[79].mxu1  ;;  %v13396_v50 = vld [vmem:[#allocation4 + $0x18] sm:$0xff] }
 0x519   : > { %2599 = vst.msk [vmem:[#allocation3 + $0x68] sm:$0xff] %vm1289_vm0, %v2354_v39  ;;  %10419 = vmatpush3.bf16.msra.mxu1 %v3638_v12  ;;  %v13389_v12 = vld [vmem:[#allocation4 + $0x8] sm:$0xff] }
 0x51a   : > { %10432 = vmatprep.subr.bf16.mxu1 %v13361_v49 }
 0x525   : > { %v10318_v24 = vpop.f32.mrb[64].mxu0 }
 0x526   : > { %2604 = vst.msk [vmem:[#allocation3 + $0x90] sm:$0xff] %vm1289_vm0, %v10318_v24  ;;  %v2406_v13 = vpop.f32.mrb[65].mxu0 }
 0x527   : > { %2602 = vst.msk [vmem:[#allocation3 + $0x80] sm:$0xff] %vm1289_vm0, %v2406_v13  ;;  %v10319_v34 = vpop.f32.mrb[66].mxu0 }
 0x528   : > { %2605 = vst.msk [vmem:[#allocation3 + $0x98] sm:$0xff] %vm1289_vm0, %v10319_v34  ;;  %v2409_v9 = vpop.f32.mrb[67].mxu0 }
 0x529   : > { %2603 = vst.msk [vmem:[#allocation3 + $0x88] sm:$0xff] %vm1289_vm0, %v2409_v9 }
 0x56a   : > { %v10334_v57 = vpop.f32.mrb[68].mxu0 }
 0x56b   : > { %2612 = vst.msk [vmem:[#allocation3 + $0xd0] sm:$0xff] %vm1289_vm0, %v10334_v57  ;;  %v2516_v40 = vpop.f32.mrb[69].mxu0 }
 0x56c   : > { %2610 = vst.msk [vmem:[#allocation3 + $0xc0] sm:$0xff] %vm1289_vm0, %v2516_v40  ;;  %v10335_v10 = vpop.f32.mrb[70].mxu0 }
 0x56d   : > { %2613 = vst.msk [vmem:[#allocation3 + $0xd8] sm:$0xff] %vm1289_vm0, %v10335_v10  ;;  %v2519_v4 = vpop.f32.mrb[71].mxu0 }
 0x56e   : > { %2611 = vst.msk [vmem:[#allocation3 + $0xc8] sm:$0xff] %vm1289_vm0, %v2519_v4  ;;  %v10326_v22 = vpop.f32.mrb[80].mxu1 }
 0x56f   : > { %2608 = vst.msk [vmem:[#allocation3 + $0xb0] sm:$0xff] %vm1289_vm0, %v10326_v22  ;;  %v2461_v27 = vpop.f32.mrb[81].mxu1 }
 0x570   : > { %2606 = vst.msk [vmem:[#allocation3 + $0xa0] sm:$0xff] %vm1289_vm0, %v2461_v27  ;;  %v10327_v26 = vpop.f32.mrb[82].mxu1 }
 0x571   : > { %2609 = vst.msk [vmem:[#allocation3 + $0xb8] sm:$0xff] %vm1289_vm0, %v10327_v26  ;;  %v2464_v11 = vpop.f32.mrb[83].mxu1 }
 0x572   : > { %2607 = vst.msk [vmem:[#allocation3 + $0xa8] sm:$0xff] %vm1289_vm0, %v2464_v11 }
 0x57a   : > { %v10350_v21 = vpop.f32.mrb[72].mxu0 }
 0x57b   : > { %v13380_v56 = vadd.f32 %v13377_v63, %v10350_v21  ;;  %v2676_v55 = vpop.f32.mrb[73].mxu0 }
 0x57c   : > { %v10351_v51 = vpop.f32.mrb[74].mxu0  ;;  %v13385_v29 = vadd.f32 %v13382_v36, %v2676_v55 }
 0x57d   : > { %v2679_v15 = vpop.f32.mrb[75].mxu0  ;;  %v3208_v61 = vsel %vm1289_vm0, %v13380_v56, -inf  ;;  %v13399_v39 = vadd.f32 %v13396_v50, %v10351_v51 }
 0x57e   : > { %v13392_v58 = vadd.f32 %v13389_v12, %v2679_v15  ;;  %3209 = vmax.xlane.f32.xlu0 %v3208_v61  ;;  %v3202_v24 = vsel %vm1289_vm0, %v13385_v29, -inf }
 0x57f   : > { %v3211_v13 = vsel %vm1289_vm0, %v13399_v39, -inf }
 0x580   : > { %v3205_v42 = vsel %vm1289_vm0, %v13392_v58, -inf }
 0x581   : > { %3206 = vmax.xlane.f32.xlu1 %v3205_v42 }
 0x582   : > { %3203 = vmax.xlane.f32.xlu0 %v3202_v24 }
 0x586   : > { %3212 = vmax.xlane.f32.xlu0 %v3211_v13 }
 0x5a7   : > { %v10342_v34 = vpop.f32.mrb[84].mxu1  ;;  %v10366_v9 = vpop.f32.mrb[76].mxu0 }
 0x5a8   : > { %2616 = vst.msk [vmem:[#allocation3 + $0xf0] sm:$0xff] %vm1289_vm0, %v10342_v34  ;;  %v13407_v57 = vadd.f32 %v13377_v63, %v10366_v9  ;;  %v2571_v40 = vpop.f32.mrb[85].mxu1  ;;  %v2822_v10 = vpop.f32.mrb[77].mxu0 }
 0x5a9   : > { %2614 = vst.msk [vmem:[#allocation3 + $0xe0] sm:$0xff] %vm1289_vm0, %v2571_v40  ;;  %v10343_v4 = vpop.f32.mrb[86].mxu1  ;;  %v10367_v22 = vpop.f32.mrb[78].mxu0  ;;  %v13423_v9 = vadd.f32 %v13382_v36, %v2822_v10 }
 0x5aa   : > { %2617 = vst.msk [vmem:[#allocation3 + $0xf8] sm:$0xff] %vm1289_vm0, %v10343_v4  ;;  %v13412_v27 = vadd.f32 %v13396_v50, %v10367_v22  ;;  %v2574_v26 = vpop.f32.mrb[87].mxu1  ;;  %v2825_v11 = vpop.f32.mrb[79].mxu0  ;;  %v3232_v21 = vsel %vm1289_vm0, %v13407_v57, -inf }
 0x5ab   : > { %2615 = vst.msk [vmem:[#allocation3 + $0xe8] sm:$0xff] %vm1289_vm0, %v2574_v26  ;;  %3233 = vmax.xlane.f32.xlu0 %v3232_v21  ;;  %v13431_v21 = vadd.f32 %v13389_v12, %v2825_v11  ;;  %v3226_v10 = vsel %vm1289_vm0, %v13423_v9, -inf }
 0x5ac   : > { %v3235_v55 = vsel %vm1289_vm0, %v13412_v27, -inf }
 0x5ad   : > { %3236 = vmax.xlane.f32.xlu1 %v3235_v55 }
 0x5b7   : > { %v10358_v51 = vpop.f32.mrb[88].mxu1  ;;  %v10382_v15 = vpop.f32.mrb[80].mxu0 }
 0x5b8   : > { %v13420_v61 = vadd.f32 %v13377_v63, %v10358_v51  ;;  %v2749_v42 = vpop.f32.mrb[89].mxu1  ;;  %v2968_v24 = vpop.f32.mrb[81].mxu0  ;;  %v13446_v11 = vadd.f32 %v13377_v63, %v10382_v15 }
 0x5b9   : > { %v10359_v13 = vpop.f32.mrb[90].mxu1  ;;  %v10383_v34 = vpop.f32.mrb[82].mxu0  ;;  %v13436_v51 = vadd.f32 %v13382_v36, %v2749_v42  ;;  %v13463_v14 = vadd.f32 %v13382_v36, %v2968_v24 }
 0x5ba   : > { %v13426_v40 = vadd.f32 %v13396_v50, %v10359_v13  ;;  %v2752_v4 = vpop.f32.mrb[91].mxu1  ;;  %v2971_v22 = vpop.f32.mrb[83].mxu0  ;;  %v3220_v26 = vsel %vm1289_vm0, %v13420_v61, -inf  ;;  %v13451_v42 = vadd.f32 %v13396_v50, %v10383_v34 }
 0x5bb   : > { %3221 = vmax.xlane.f32.xlu0 %v3220_v26  ;;  %v13441_v13 = vadd.f32 %v13389_v12, %v2752_v4  ;;  %v3229_v26 = vsel %vm1289_vm0, %v13431_v21, -inf  ;;  %v3256_v4 = vsel %vm1289_vm0, %v13446_v11, -inf  ;;  %v13471_v5 = vadd.f32 %v13389_v12, %v2971_v22 }
 0x5bc   : > { %v3223_v55 = vsel %vm1289_vm0, %v13426_v40, -inf }
 0x5bd   : > { %3224 = vmax.xlane.f32.xlu1 %v3223_v55  ;;  %v3214_v55 = vsel %vm1289_vm0, %v13436_v51, -inf }
 0x5bf   : > { %3227 = vmax.xlane.f32.xlu0 %v3226_v10  ;;  %v3217_v10 = vsel %vm1289_vm0, %v13441_v13, -inf }
 0x5c1   : > { %3230 = vmax.xlane.f32.xlu1 %v3229_v26 }
 0x5c3   : > { %3215 = vmax.xlane.f32.xlu0 %v3214_v55  ;;  %v3259_v55 = vsel %vm1289_vm0, %v13451_v42, -inf }
 0x5c5   : > { %3218 = vmax.xlane.f32.xlu1 %v3217_v10 }
 0x5c7   : > { %3257 = vmax.xlane.f32.xlu0 %v3256_v4  ;;  %v10374_v7 = vpop.f32.mrb[92].mxu1 }
 0x5c8   : > { %v13458_v26 = vadd.f32 %v13377_v63, %v10374_v7  ;;  %v10398_v15 = vpop.f32.mrb[84].mxu0  ;;  %v2895_v20 = vpop.f32.mrb[93].mxu1 }
 0x5c9   : > { %v3114_v43 = vpop.f32.mrb[85].mxu0  ;;  %3260 = vmax.xlane.f32.xlu1 %v3259_v55  ;;  %v10375_v34 = vpop.f32.mrb[94].mxu1  ;;  %v13476_v24 = vadd.f32 %v13382_v36, %v2895_v20  ;;  %v13486_v22 = vadd.f32 %v13377_v63, %v10398_v15 }
 0x5ca   : > { %v13466_v10 = vadd.f32 %v13396_v50, %v10375_v34  ;;  %v10399_v60 = vpop.f32.mrb[86].mxu0  ;;  %v2898_v4 = vpop.f32.mrb[95].mxu1  ;;  %v3244_v7 = vsel %vm1289_vm0, %v13458_v26, -inf  ;;  %v3250_v34 = vsel %vm1289_vm0, %v13463_v14, -inf }
 0x5cb   : > { %v3117_v19 = vpop.f32.mrb[87].mxu0  ;;  %3245 = vmax.xlane.f32.xlu0 %v3244_v7  ;;  %v13481_v47 = vadd.f32 %v13389_v12, %v2898_v4  ;;  %v3253_v7 = vsel %vm1289_vm0, %v13471_v5, -inf  ;;  %v13491_v20 = vadd.f32 %v13396_v50, %v10399_v60  ;;  %v3280_v4 = vsel %vm1289_vm0, %v13486_v22, -inf }
 0x5cc   : > { %v3247_v55 = vsel %vm1289_vm0, %v13466_v10, -inf  ;;  %v13503_v60 = vadd.f32 %v13382_v36, %v3114_v43 }
 0x5cd   : > { %3248 = vmax.xlane.f32.xlu1 %v3247_v55  ;;  %v3238_v55 = vsel %vm1289_vm0, %v13476_v24, -inf  ;;  %v3283_v33 = vsel %vm1289_vm0, %v13491_v20, -inf }
 0x5ce   : > { %v3274_v43 = vsel %vm1289_vm0, %v13503_v60, -inf }
 0x5cf   : > { %3251 = vmax.xlane.f32.xlu0 %v3250_v34  ;;  %v3241_v34 = vsel %vm1289_vm0, %v13481_v47, -inf }
 0x5d1   : > { %3254 = vmax.xlane.f32.xlu1 %v3253_v7 }
 0x5d3   : > { %3239 = vmax.xlane.f32.xlu0 %v3238_v55 }
 0x5d5   : > { %3242 = vmax.xlane.f32.xlu1 %v3241_v34 }
 0x5d7   : > { %3281 = vmax.xlane.f32.xlu0 %v3280_v4  ;;  %v10390_v48 = vpop.f32.mrb[96].mxu1 }
 0x5d8   : > { %v13498_v7 = vadd.f32 %v13377_v63, %v10390_v48  ;;  %v3041_v15 = vpop.f32.mrb[97].mxu1  ;;  %v13511_v48 = vadd.f32 %v13389_v12, %v3117_v19 }
 0x5d9   : > { %3284 = vmax.xlane.f32.xlu1 %v3283_v33  ;;  %v10391_v55 = vpop.f32.mrb[98].mxu1  ;;  %v13516_v33 = vadd.f32 %v13382_v36, %v3041_v15 }
 0x5da   : > { %v13506_v45 = vadd.f32 %v13396_v50, %v10391_v55  ;;  %v3044_v34 = vpop.f32.mrb[99].mxu1  ;;  %v3268_v4 = vsel %vm1289_vm0, %v13498_v7, -inf }
 0x5db   : > { %3269 = vmax.xlane.f32.xlu0 %v3268_v4  ;;  %v13521_v55 = vadd.f32 %v13389_v12, %v3044_v34  ;;  %v3277_v4 = vsel %vm1289_vm0, %v13511_v48, -inf  ;;  %v3262_v19 = vsel %vm1289_vm0, %v13516_v33, -inf }
 0x5dc   : > { %v3271_v49 = vsel %vm1289_vm0, %v13506_v45, -inf }
 0x5dd   : > { %3272 = vmax.xlane.f32.xlu1 %v3271_v49  ;;  %v3265_v49 = vsel %vm1289_vm0, %v13521_v55, -inf }
 0x5df   : > { %3275 = vmax.xlane.f32.xlu0 %v3274_v43 }
 0x5e1   : > { %3278 = vmax.xlane.f32.xlu1 %v3277_v4 }
 0x5e3   : > { %3263 = vmax.xlane.f32.xlu0 %v3262_v19 }
 0x5e5   : > { %3266 = vmax.xlane.f32.xlu1 %v3265_v49  ;;  %v13545_v49 = vpop.permute.xlu1 %3763 }
 0x5e6   : > { %16803 = vst [vmem:[#allocation41_spill] sm:$0xff] %v13545_v49 }
 0x5e7   : > { %v10406_v15 = vpop.f32.mrb[100].mxu1 }
 0x5e8   : > { %v13530_v41 = vadd.f32 %v13377_v63, %v10406_v15  ;;  %v3187_v43 = vpop.f32.mrb[101].mxu1  ;;  %v13553_v15 = vpop.permute.xlu0 %3950 }
 0x5e9   : > { %v10407_v44 = vpop.f32.mrb[102].mxu1  ;;  %v13533_v34 = vadd.f32 %v13382_v36, %v3187_v43  ;;  %16805 = vst [vmem:[#allocation55_spill] sm:$0xff] %v13553_v15 }
 0x5ea   : > { %v13536_v17 = vadd.f32 %v13396_v50, %v10407_v44  ;;  %v3190_v4 = vpop.f32.mrb[103].mxu1  ;;  %v3292_v19 = vsel %vm1289_vm0, %v13530_v41, -inf  ;;  %v13551_v50 = vpop.permute.xlu1 %3887 }
 0x5eb   : > { %3293 = vmax.xlane.f32.xlu0 %v3292_v19  ;;  %v13541_v1 = vadd.f32 %v13389_v12, %v3190_v4  ;;  %v3286_v36 = vsel %vm1289_vm0, %v13533_v34, -inf  ;;  %16804 = vst [vmem:[#allocation53_spill] sm:$0xff] %v13551_v50 }
 0x5ec   : > { %v3295_v63 = vsel %vm1289_vm0, %v13536_v17, -inf  ;;  %v13557_v43 = vpop.permute.xlu0 %3952 }
 0x5ed   : > { %3296 = vmax.xlane.f32.xlu1 %v3295_v63  ;;  %v3289_v44 = vsel %vm1289_vm0, %v13541_v1, -inf  ;;  %16807 = vst [vmem:[#allocation65_spill] sm:$0xff] %v13557_v43 }
 0x5ee   : > { %v13555_v12 = vpop.permute.xlu1 %3889 }
 0x5ef   : > { %3287 = vmax.xlane.f32.xlu0 %v3286_v36  ;;  %16806 = vst [vmem:[#allocation28_spill] sm:$0xff] %v13555_v12 }
 0x5f0   : > { %v13561_v19 = vpop.permute.xlu0 %4013 }
 0x5f1   : > { %3290 = vmax.xlane.f32.xlu1 %v3289_v44  ;;  %16809 = vst [vmem:[#allocation67_spill] sm:$0xff] %v13561_v19 }
 0x5f2   : > { %v13559_v4 = vpop.permute.xlu1 %4239 }
 0x5f3   : > { %16808 = vst [vmem:[#allocation66_spill] sm:$0xff] %v13559_v4 }
 0x5f4   : > { %v13565_v49 = vpop.permute.xlu0 %4241 }
 0x5f5   : > { %16811 = vst [vmem:[#allocation69_spill] sm:$0xff] %v13565_v49 }
 0x5f6   : > { %v13563_v63 = vpop.permute.xlu1 %4015 }
 0x5f7   : > { %16810 = vst [vmem:[#allocation68_spill] sm:$0xff] %v13563_v63 }
 0x5fa   : > { %v13567_v36 = vpop.permute.xlu1 %4235 }
 0x5fb   : > { %16812 = vst [vmem:[#allocation70_spill] sm:$0xff] %v13567_v36 }
 0x60b   : > { %v3210_v3 = vpop.xlane.xlu0 %3209 }
 0x60c   : > { %v3300_v44 = vsub.f32 %v13380_v56, %v3210_v3 }
 0x60e   : > { %v3334_v50 = vmul.f32 1.442695, %v3300_v44  ;;  %v3207_v62 = vpop.xlane.xlu1 %3206 }
 0x60f   : > { %v3204_v15 = vpop.xlane.xlu0 %3203  ;;  %v3299_v43 = vsub.f32 %v13392_v58, %v3207_v62 }
 0x610   : > { %11178 = vpow2.f32 %v3334_v50  ;;  %v3298_v12 = vsub.f32 %v13385_v29, %v3204_v15 }
 0x611   : > { %v3332_v19 = vmul.f32 1.442695, %v3299_v43 }
 0x612   : > { %v3330_v4 = vmul.f32 1.442695, %v3298_v12 }
 0x613   : > { %v3213_v18 = vpop.xlane.xlu0 %3212 }
 0x614   : > { %11180 = vpow2.f32 %v3330_v4  ;;  %v3301_v63 = vsub.f32 %v13399_v39, %v3213_v18 }
 0x616   : > { %v3336_v49 = vmul.f32 1.442695, %v3301_v63 }
 0x618   : > { %11182 = vpow2.f32 %v3336_v49 }
 0x619   : > { %11184 = vpow2.f32 %v3332_v19 }
 0x61a   : > { %v13573_v36 = vpop.eup %11178 }
 0x61b   : > { %v3400_v3 = vsel %vm1289_vm0, %v13573_v36, 0.0 }
 0x61c   : > { %3401 = vadd.xlane.f32.xlu0 %v3400_v3 }
 0x61e   : > { %v13577_v56 = vpop.eup %11180 }
 0x61f   : > { %v3394_v62 = vsel %vm1289_vm0, %v13577_v56, 0.0 }
 0x620   : > { %3395 = vadd.xlane.f32.xlu0 %v3394_v62 }
 0x622   : > { %v13581_v29 = vpop.eup %11182 }
 0x623   : > { %v3403_v18 = vsel %vm1289_vm0, %v13581_v29, 0.0  ;;  %v13585_v58 = vpop.eup %11184 }
 0x624   : > { %3404 = vadd.xlane.f32.xlu1 %v3403_v18  ;;  %v3397_v39 = vsel %vm1289_vm0, %v13585_v58, 0.0 }
 0x628   : > { %3398 = vadd.xlane.f32.xlu1 %v3397_v39 }
 0x638   : > { %v3234_v49 = vpop.xlane.xlu0 %3233 }
 0x639   : > { %v3308_v50 = vsub.f32 %v13407_v57, %v3234_v49 }
 0x63a   : > { %v3237_v15 = vpop.xlane.xlu1 %3236 }
 0x63b   : > { %v3350_v12 = vmul.f32 1.442695, %v3308_v50  ;;  %v3309_v43 = vsub.f32 %v13412_v27, %v3237_v15 }
 0x63d   : > { %11186 = vpow2.f32 %v3350_v12  ;;  %v3352_v4 = vmul.f32 1.442695, %v3309_v43 }
 0x63f   : > { %11188 = vpow2.f32 %v3352_v4 }
 0x647   : > { %v13591_v19 = vpop.eup %11186 }
 0x648   : > { %16813 = vst [vmem:[#allocation71_spill] sm:$0xff] %v13591_v19  ;;  %v3222_v63 = vpop.xlane.xlu0 %3221  ;;  %v3424_v44 = vsel %vm1289_vm0, %v13591_v19, 0.0 }
 0x649   : > { %v13595_v3 = vpop.eup %11188  ;;  %v3304_v62 = vsub.f32 %v13420_v61, %v3222_v63  ;;  %3425 = vadd.xlane.f32.xlu0 %v3424_v44 }
 0x64a   : > { %v3225_v18 = vpop.xlane.xlu1 %3224  ;;  %v3427_v57 = vsel %vm1289_vm0, %v13595_v3, 0.0 }
 0x64b   : > { %v3342_v39 = vmul.f32 1.442695, %v3304_v62  ;;  %v3305_v27 = vsub.f32 %v13426_v40, %v3225_v18  ;;  %3428 = vadd.xlane.f32.xlu1 %v3427_v57 }
 0x64c   : > { %v3228_v49 = vpop.xlane.xlu0 %3227 }
 0x64d   : > { %11190 = vpow2.f32 %v3342_v39  ;;  %v3344_v50 = vmul.f32 1.442695, %v3305_v27  ;;  %v3306_v15 = vsub.f32 %v13423_v9, %v3228_v49 }
 0x64e   : > { %v3231_v12 = vpop.xlane.xlu1 %3230 }
 0x64f   : > { %11192 = vpow2.f32 %v3344_v50  ;;  %v3346_v43 = vmul.f32 1.442695, %v3306_v15  ;;  %v3307_v4 = vsub.f32 %v13431_v21, %v3231_v12 }
 0x650   : > { %v3216_v61 = vpop.xlane.xlu0 %3215 }
 0x651   : > { %11194 = vpow2.f32 %v3346_v43  ;;  %v3348_v63 = vmul.f32 1.442695, %v3307_v4  ;;  %v3302_v44 = vsub.f32 %v13436_v51, %v3216_v61 }
 0x652   : > { %v3219_v19 = vpop.xlane.xlu1 %3218 }
 0x653   : > { %11196 = vpow2.f32 %v3348_v63  ;;  %v3338_v62 = vmul.f32 1.442695, %v3302_v44  ;;  %v3303_v40 = vsub.f32 %v13441_v13, %v3219_v19 }
 0x654   : > { %v3258_v18 = vpop.xlane.xlu0 %3257 }
 0x655   : > { %11198 = vpow2.f32 %v3338_v62  ;;  %v3340_v57 = vmul.f32 1.442695, %v3303_v40  ;;  %v3316_v9 = vsub.f32 %v13446_v11, %v3258_v18 }
 0x656   : > { %v3261_v39 = vpop.xlane.xlu1 %3260 }
 0x657   : > { %v13606_v27 = vpop.eup %11190  ;;  %11200 = vpow2.f32 %v3340_v57  ;;  %v3366_v21 = vmul.f32 1.442695, %v3316_v9  ;;  %v3317_v62 = vsub.f32 %v13451_v42, %v3261_v39 }
 0x658   : > { %v3246_v49 = vpop.xlane.xlu0 %3245  ;;  %v3412_v50 = vsel %vm1289_vm0, %v13606_v27, 0.0 }
 0x659   : > { %v13610_v51 = vpop.eup %11192  ;;  %11202 = vpow2.f32 %v3366_v21  ;;  %v3312_v15 = vsub.f32 %v13458_v26, %v3246_v49  ;;  %3413 = vadd.xlane.f32.xlu0 %v3412_v50 }
 0x65a   : > { %v3415_v13 = vsel %vm1289_vm0, %v13610_v51, 0.0  ;;  %v3249_v12 = vpop.xlane.xlu1 %3248 }
 0x65b   : > { %v13615_v19 = vpop.eup %11194  ;;  %v3358_v11 = vmul.f32 1.442695, %v3312_v15  ;;  %3416 = vadd.xlane.f32.xlu1 %v3415_v13  ;;  %v3368_v15 = vmul.f32 1.442695, %v3317_v62  ;;  %v3313_v42 = vsub.f32 %v13466_v10, %v3249_v12 }
 0x65c   : > { %v3252_v43 = vpop.xlane.xlu0 %3251  ;;  %v3418_v4 = vsel %vm1289_vm0, %v13615_v19, 0.0 }
 0x65d   : > { %v13619_v61 = vpop.eup %11196  ;;  %11204 = vpow2.f32 %v3358_v11  ;;  %v3314_v63 = vsub.f32 %v13463_v14, %v3252_v43  ;;  %3419 = vadd.xlane.f32.xlu0 %v3418_v4 }
 0x65e   : > { %v3421_v26 = vsel %vm1289_vm0, %v13619_v61, 0.0  ;;  %v3255_v14 = vpop.xlane.xlu1 %3254 }
 0x65f   : > { %v13624_v44 = vpop.eup %11198  ;;  %v3362_v40 = vmul.f32 1.442695, %v3314_v63  ;;  %3422 = vadd.xlane.f32.xlu1 %v3421_v26  ;;  %v3315_v4 = vsub.f32 %v13471_v5, %v3255_v14 }
 0x660   : > { %v3240_v18 = vpop.xlane.xlu0 %3239  ;;  %v3406_v57 = vsel %vm1289_vm0, %v13624_v44, 0.0 }
 0x661   : > { %v13629_v9 = vpop.eup %11200  ;;  %11206 = vpow2.f32 %v3362_v40  ;;  %v3310_v21 = vsub.f32 %v13476_v24, %v3240_v18  ;;  %3407 = vadd.xlane.f32.xlu0 %v3406_v57  ;;  %v3360_v24 = vmul.f32 1.442695, %v3313_v42  ;;  %v3364_v12 = vmul.f32 1.442695, %v3315_v4 }
 0x662   : > { %v3409_v49 = vsel %vm1289_vm0, %v13629_v9, 0.0  ;;  %v3243_v63 = vpop.xlane.xlu1 %3242 }
 0x663   : > { %v13634_v50 = vpop.eup %11202  ;;  %v3354_v39 = vmul.f32 1.442695, %v3310_v21  ;;  %3410 = vadd.xlane.f32.xlu1 %v3409_v49  ;;  %v3311_v40 = vsub.f32 %v13481_v47, %v3243_v63 }
 0x664   : > { %v3282_v13 = vpop.xlane.xlu0 %3281  ;;  %v3448_v11 = vsel %vm1289_vm0, %v13634_v50, 0.0 }
 0x665   : > { %11208 = vpow2.f32 %v3354_v39  ;;  %3449 = vadd.xlane.f32.xlu0 %v3448_v11  ;;  %v3356_v49 = vmul.f32 1.442695, %v3311_v40 }
 0x666   : > { %11210 = vpow2.f32 %v3368_v15  ;;  %v3285_v5 = vpop.xlane.xlu1 %3284  ;;  %v3324_v15 = vsub.f32 %v13486_v22, %v3282_v13 }
 0x667   : > { %v13639_v43 = vpop.eup %11204  ;;  %11212 = vpow2.f32 %v3360_v24 }
 0x668   : > { %v3270_v26 = vpop.xlane.xlu0 %3269  ;;  %v3436_v62 = vsel %vm1289_vm0, %v13639_v43, 0.0  ;;  %11214 = vpow2.f32 %v3364_v12  ;;  %v3325_v12 = vsub.f32 %v13491_v20, %v3285_v5 }
 0x669   : > { %3437 = vadd.xlane.f32.xlu1 %v3436_v62  ;;  %v3320_v4 = vsub.f32 %v13498_v7, %v3270_v26 }
 0x66a   : > { %v3273_v62 = vpop.xlane.xlu1 %3272 }
 0x66b   : > { %v13644_v10 = vpop.eup %11206  ;;  %v3374_v40 = vmul.f32 1.442695, %v3320_v4 }
 0x66c   : > { %v3276_v18 = vpop.xlane.xlu0 %3275  ;;  %v3442_v57 = vsel %vm1289_vm0, %v13644_v10, 0.0 }
 0x66d   : > { %v3322_v21 = vsub.f32 %v13503_v60, %v3276_v18  ;;  %3443 = vadd.xlane.f32.xlu0 %v3442_v57  ;;  %v3382_v60 = vmul.f32 1.442695, %v3324_v15  ;;  %v3384_v57 = vmul.f32 1.442695, %v3325_v12 }
 0x66e   : > { %v3279_v7 = vpop.xlane.xlu1 %3278 }
 0x66f   : > { %v13650_v14 = vpop.eup %11208  ;;  %v3378_v42 = vmul.f32 1.442695, %v3322_v21  ;;  %v3321_v21 = vsub.f32 %v13506_v45, %v3273_v62 }
 0x670   : > { %v3264_v39 = vpop.xlane.xlu0 %3263  ;;  %v3430_v11 = vsel %vm1289_vm0, %v13650_v14, 0.0  ;;  %v13655_v47 = vpop.eup %11210 }
 0x671   : > { %11216 = vpow2.f32 %v3378_v42  ;;  %v3318_v24 = vsub.f32 %v13516_v33, %v3264_v39  ;;  %3431 = vadd.xlane.f32.xlu1 %v3430_v11  ;;  %v3451_v22 = vsel %vm1289_vm0, %v13655_v47, 0.0  ;;  %v13661_v13 = vpop.eup %11212  ;;  %v3376_v42 = vmul.f32 1.442695, %v3321_v21 }
 0x672   : > { %11218 = vpow2.f32 %v3356_v49  ;;  %v3439_v33 = vsel %vm1289_vm0, %v13661_v13, 0.0  ;;  %v13666_v18 = vpop.eup %11214  ;;  %v3323_v39 = vsub.f32 %v13511_v48, %v3279_v7  ;;  %v3267_v11 = vpop.xlane.xlu1 %3266 }
 0x673   : > { %v3370_v63 = vmul.f32 1.442695, %v3318_v24  ;;  %v3445_v49 = vsel %vm1289_vm0, %v13666_v18, 0.0 }
 0x674   : > { %v3380_v4 = vmul.f32 1.442695, %v3323_v39 }
 0x675   : > { %11220 = vpow2.f32 %v3370_v63  ;;  %3452 = vadd.xlane.f32.xlu1 %v3451_v22  ;;  %v3319_v63 = vsub.f32 %v13521_v55, %v3267_v11 }
 0x676   : > { %11222 = vpow2.f32 %v3382_v60 }
 0x677   : > { %11224 = vpow2.f32 %v3374_v40  ;;  %v3372_v48 = vmul.f32 1.442695, %v3319_v63 }
 0x678   : > { %11226 = vpow2.f32 %v3384_v57 }
 0x679   : > { %3440 = vadd.xlane.f32.xlu1 %v3439_v33  ;;  %11228 = vpow2.f32 %v3376_v42 }
 0x67a   : > { %11230 = vpow2.f32 %v3380_v4  ;;  %v3297_v39 = vpop.xlane.xlu1 %3296 }
 0x67b   : > { %v13668_v26 = vpop.eup %11216  ;;  %11232 = vpow2.f32 %v3372_v48  ;;  %v3329_v11 = vsub.f32 %v13536_v17, %v3297_v39 }
 0x67c   : > { %v3466_v20 = vsel %vm1289_vm0, %v13668_v26, 0.0  ;;  %v13675_v5 = vpop.eup %11218 }
 0x67d   : > { %3446 = vadd.xlane.f32.xlu1 %v3445_v49  ;;  %3467 = vadd.xlane.f32.xlu0 %v3466_v20  ;;  %v3433_v45 = vsel %vm1289_vm0, %v13675_v5, 0.0  ;;  %v16814_v20 = vld [vmem:[#allocation30_spill] sm:$0xff]  ;;  %v3392_v4 = vmul.f32 1.442695, %v3329_v11 }
 0x67f   : > { %v13677_v15 = vpop.eup %11220  ;;  %11234 = vpow2.f32 %v3392_v4 }
 0x680   : > { %v3454_v24 = vsel %vm1289_vm0, %v13677_v15, 0.0  ;;  %v13684_v60 = vpop.eup %11222 }
 0x681   : > { %3434 = vadd.xlane.f32.xlu1 %v3433_v45  ;;  %3455 = vadd.xlane.f32.xlu0 %v3454_v24  ;;  %v3472_v62 = vsel %vm1289_vm0, %v13684_v60, 0.0  ;;  %v13689_v22 = vpop.eup %11224  ;;  %v3294_v45 = vpop.xlane.xlu0 %3293 }
 0x682   : > { %v3460_v12 = vsel %vm1289_vm0, %v13689_v22, 0.0  ;;  %v13693_v40 = vpop.eup %11226  ;;  %v3291_v24 = vpop.xlane.xlu1 %3290  ;;  %v3328_v39 = vsub.f32 %v13530_v41, %v3294_v45 }
 0x683   : > { %v3475_v33 = vsel %vm1289_vm0, %v13693_v40, 0.0  ;;  %v13697_v7 = vpop.eup %11228  ;;  %v3327_v63 = vsub.f32 %v13541_v1, %v3291_v24 }
 0x684   : > { %v3463_v55 = vsel %vm1289_vm0, %v13697_v7, 0.0  ;;  %v13701_v57 = vpop.eup %11230  ;;  %v3390_v24 = vmul.f32 1.442695, %v3328_v39 }
 0x685   : > { %3473 = vadd.xlane.f32.xlu1 %v3472_v62  ;;  %v3469_v21 = vsel %vm1289_vm0, %v13701_v57, 0.0  ;;  %v13705_v49 = vpop.eup %11232  ;;  %v3288_v62 = vpop.xlane.xlu0 %3287  ;;  %v3388_v48 = vmul.f32 1.442695, %v3327_v63 }
 0x686   : > { %v3457_v42 = vsel %vm1289_vm0, %v13705_v49, 0.0  ;;  %v3326_v4 = vsub.f32 %v13533_v34, %v3288_v62 }
 0x687   : > { %11236 = vpow2.f32 %v3388_v48 }
 0x689   : > { %3461 = vadd.xlane.f32.xlu1 %v3460_v12 }
 0x68d   : > { %3476 = vadd.xlane.f32.xlu1 %v3475_v33 }
 0x691   : > { %3464 = vadd.xlane.f32.xlu1 %v3463_v55 }
 0x695   : > { %3470 = vadd.xlane.f32.xlu1 %v3469_v21  ;;  %v13715_v21 = vpop.eup %11234 }
 0x696   : > { %v13719_v1 = vpop.eup %11236 }
 0x697   : > { %4308 = vrot.lane.b32.xlu0 %v16814_v20, %s12015_s25  ;;  %v3481_v11 = vsel %vm1289_vm0, %v13719_v1, 0.0 }
 0x699   : > { %3458 = vadd.xlane.f32.xlu1 %v3457_v42  ;;  %v3487_v42 = vsel %vm1289_vm0, %v13715_v21, 0.0 }
 0x6a9   : > { %v3402_v12 = vpop.xlane.xlu0 %3401 }
 0x6aa   : > { %4377 = vrot.lane.b32.xlu1 %v12560_v2, %s12015_s25 }
 0x6ad   : > { %v3396_v33 = vpop.xlane.xlu0 %3395 }
 0x6b1   : > { %v3405_v55 = vpop.xlane.xlu1 %3404 }
 0x6b2   : > { %11238 = vrcp.f32 %v3405_v55  ;;  %v3386_v55 = vmul.f32 1.442695, %v3326_v4 }
 0x6b3   : > { %11240 = vrcp.f32 %v3396_v33 }
 0x6b4   : > { %11242 = vrcp.f32 %v3402_v12 }
 0x6b5   : > { %v3399_v17 = vpop.xlane.xlu1 %3398 }
 0x6b6   : > { %11244 = vrcp.f32 %v3399_v17  ;;  %3488 = vadd.xlane.f32.xlu0 %v3487_v42 }
 0x6b7   : > { %11246 = vpow2.f32 %v3390_v24 }
 0x6b8   : > { %11248 = vpow2.f32 %v3386_v55 }
 0x6ba   : > { %3482 = vadd.xlane.f32.xlu0 %v3481_v11 }
 0x6bc   : > { %v11239_v63 = vpop.eup %11238 }
 0x6bd   : > { %v11241_v48 = vpop.eup %11240  ;;  %v3497_v2 = vmul.f32 %v11239_v63, %v13581_v29 }
 0x6be   : > { %v11243_v12 = vpop.eup %11242  ;;  %v3491_v17 = vmul.f32 %v11241_v48, %v13577_v56 }
 0x6bf   : > { %v3495_v41 = vmul.f32 %v11243_v12, %v13573_v36 }
 0x6c0   : > { %v11245_v33 = vpop.eup %11244 }
 0x6c1   : > { %v3493_v42 = vmul.f32 %v11245_v33, %v13585_v58  ;;  %v3555_v11 = vpack.c.bf16 %v3497_v2, %v3495_v41  ;;  %v13733_v34 = vpop.eup %11246  ;;  %v16816_v41 = vld [vmem:[#allocation59_spill] sm:$0xff] }
 0x6c2   : > { %v3484_v36 = vsel %vm1289_vm0, %v13733_v34, 0.0  ;;  %v13739_v56 = vpop.eup %11248 }
 0x6c3   : > { %v3554_v45 = vpack.c.bf16 %v3493_v42, %v3491_v17  ;;  %v3478_v2 = vsel %vm1289_vm0, %v13739_v56, 0.0  ;;  %v16815_v17 = vld [vmem:[#allocation44_spill] sm:$0xff] }
 0x6c5   : > { %10412 = vmatprep.mubr.msk.bf16.mxu0 %vm1289_vm0, %v3554_v45 }
 0x6c6   : > { %10413 = vmatmul.mubr.msk.bf16.vlgmr.msra.gmra.mrb[88].mxu0 %vm1289_vm0, %v3555_v11 }
 0x6c7   : > { %10425 = vmatpush3.bf16.msra.mxu0 %v13338_v37 }
 0x6c8   : > { %10426 = vmatprep.subr.bf16.mxu0 %v13342_v30 }
 0x6cb   : > { %10427 = vmatpush3.bf16.msra.mxu0 %v13342_v30 }
 0x6cc   : > { %10440 = vmatprep.subr.bf16.mxu0 %v13349_v8 }
 0x6ce   : > { %3485 = vadd.xlane.f32.xlu1 %v3484_v36 }
 0x6d0   : > { %4237 = vrot.lane.b32.xlu0 %v12494_v32, %s12015_s25 }
 0x6d2   : > { %3479 = vadd.xlane.f32.xlu1 %v3478_v2  ;;  %v16817_v2 = vld [vmem:[#allocation71_spill] sm:$0xff] }
 0x6d4   : > { %4379 = vrot.lane.b32.xlu0 %v16778_v6, %s12015_s25 }
 0x6d6   : > { %v3426_v37 = vpop.xlane.xlu0 %3425 }
 0x6d8   : > { %4373 = vrot.lane.b32.xlu0 %v16781_v38, %s12015_s25  ;;  %v3429_v30 = vpop.xlane.xlu1 %3428 }
 0x6d9   : > { %11250 = vrcp.f32 %v3429_v30 }
 0x6dc   : > { %4515 = vrot.lane.b32.xlu0 %v16783_v46, %s12015_s25 }
 0x6e0   : > { %4375 = vrot.lane.b32.xlu0 %v16785_v23, %s12015_s25 }
 0x6e3   : > { %4310 = vrot.lane.b32.xlu1 %v12535_v28, %s12015_s25  ;;  %v11251_v63 = vpop.eup %11250 }
 0x6e4   : > { %4517 = vrot.lane.b32.xlu0 %v16787_v31, %s12015_s25  ;;  %v3513_v55 = vmul.f32 %v11251_v63, %v13595_v3 }
 0x6e6   : > { %v3414_v29 = vpop.xlane.xlu0 %3413 }
 0x6e7   : > { %4304 = vrot.lane.b32.xlu1 %v12514_v0, %s12015_s25 }
 0x6e8   : > { %v3417_v58 = vpop.xlane.xlu1 %3416  ;;  %4511 = vrot.lane.b32.xlu0 %v16789_v53, %s12015_s25 }
 0x6ea   : > { %v3420_v62 = vpop.xlane.xlu0 %3419 }
 0x6eb   : > { %11252 = vrcp.f32 %v3420_v62  ;;  %4446 = vrot.lane.b32.xlu1 %v12604_v16, %s12015_s25 }
 0x6ec   : > { %11254 = vrcp.f32 %v3426_v37  ;;  %v3423_v39 = vpop.xlane.xlu1 %3422  ;;  %4653 = vrot.lane.b32.xlu0 %v16790_v25, %s12015_s25  ;;  %v16837_v25 = vld [vmem:[#allocation36_spill] sm:$0xff] }
 0x6ed   : > { %11256 = vrcp.f32 %v3423_v39  ;;  %v16818_v39 = vld [vmem:[#allocation57_spill] sm:$0xff] }
 0x6ee   : > { %11258 = vrcp.f32 %v3417_v58  ;;  %v3408_v24 = vpop.xlane.xlu0 %3407 }
 0x6ef   : > { %11260 = vrcp.f32 %v3408_v24  ;;  %4306 = vrot.lane.b32.xlu1 %v12539_v35, %s12015_s25 }
 0x6f0   : > { %11262 = vrcp.f32 %v3414_v29  ;;  %v3411_v4 = vpop.xlane.xlu1 %3410  ;;  %4513 = vrot.lane.b32.xlu0 %v16791_v52, %s12015_s25 }
 0x6f1   : > { %11264 = vrcp.f32 %v3411_v4  ;;  %v16819_v4 = vld [vmem:[#allocation31_spill] sm:$0xff] }
 0x6f3   : > { %4448 = vrot.lane.b32.xlu1 %v12628_v59, %s12015_s25 }
 0x6f4   : > { %4655 = vrot.lane.b32.xlu0 %v16792_v54, %s12015_s25 }
 0x6f5   : > { %v11253_v48 = vpop.eup %11252 }
 0x6f6   : > { %v11255_v12 = vpop.eup %11254  ;;  %v3507_v45 = vmul.f32 %v11253_v48, %v13615_v19  ;;  %v3438_v29 = vpop.xlane.xlu1 %3437 }
 0x6f7   : > { %v11257_v33 = vpop.eup %11256  ;;  %4442 = vrot.lane.b32.xlu1 %v16815_v17, %s12015_s25  ;;  %v3511_v37 = vmul.f32 %v11255_v12, %v16817_v2  ;;  %v16820_v12 = vld [vmem:[#allocation39_spill] sm:$0xff] }
 0x6f8   : > { %v11259_v42 = vpop.eup %11258  ;;  %4580 = vrot.lane.b32.xlu0 %v16816_v41, %s12015_s25  ;;  %v3509_v11 = vmul.f32 %v11257_v33, %v13619_v61  ;;  %v16821_v33 = vld [vmem:[#allocation47_spill] sm:$0xff] }
 0x6f9   : > { %v11261_v36 = vpop.eup %11260  ;;  %v3505_v3 = vmul.f32 %v11259_v42, %v13610_v51  ;;  %v3559_v24 = vpack.c.bf16 %v3513_v55, %v3511_v37  ;;  %v16822_v42 = vld [vmem:[#allocation33_spill] sm:$0xff] }
 0x6fa   : > { %v11263_v30 = vpop.eup %11262  ;;  %v3558_v58 = vpack.c.bf16 %v3509_v11, %v3507_v45  ;;  %v3499_v19 = vmul.f32 %v11261_v36, %v13624_v44  ;;  %v16823_v44 = vld [vmem:[#allocation37_spill] sm:$0xff]  ;;  %v16825_v45 = vld [vmem:[#allocation55_spill] sm:$0xff]  ;;  %v16827_v36 = vld [vmem:[#allocation34_spill] sm:$0xff] }
 0x6fb   : > { %v11265_v62 = vpop.eup %11264  ;;  %4584 = vrot.lane.b32.xlu1 %v16818_v39, %s12015_s25  ;;  %v3503_v63 = vmul.f32 %v11263_v30, %v13606_v27  ;;  %v3450_v27 = vpop.xlane.xlu0 %3449  ;;  %v16826_v11 = vld [vmem:[#allocation61_spill] sm:$0xff] }
 0x6fc   : > { %4722 = vrot.lane.b32.xlu0 %v16819_v4, %s12015_s25  ;;  %10428 = vmatprep.mubr.msk.bf16.mxu0 %vm1289_vm0, %v3558_v58  ;;  %v3501_v61 = vmul.f32 %v11265_v62, %v13629_v9  ;;  %v16824_v9 = vld [vmem:[#allocation41_spill] sm:$0xff]  ;;  %v16829_v58 = vld [vmem:[#allocation26_spill] sm:$0xff] }
 0x6fd   : > { %10429 = vmatmul.mubr.msk.bf16.vlgmr.msra.gmra.mrb[92].mxu0 %vm1289_vm0, %v3559_v24  ;;  %v3557_v55 = vpack.c.bf16 %v3505_v3, %v3503_v63  ;;  %v16828_v30 = vld [vmem:[#allocation53_spill] sm:$0xff]  ;;  %v16830_v62 = vld [vmem:[#allocation38_spill] sm:$0xff]  ;;  %v16833_v63 = vld [vmem:[#allocation63_spill] sm:$0xff] }
 0x6fe   : > { %10441 = vmatpush3.bf16.msra.mxu0 %v13349_v8  ;;  %v3432_v51 = vpop.xlane.xlu1 %3431  ;;  %v3556_v48 = vpack.c.bf16 %v3501_v61, %v3499_v19  ;;  %v16831_v24 = vld [vmem:[#allocation29_spill] sm:$0xff] }
 0x6ff   : > { %10442 = vmatprep.subr.bf16.mxu0 %v16820_v12  ;;  %4444 = vrot.lane.b32.xlu1 %v16821_v33, %s12015_s25  ;;  %v3444_v2 = vpop.xlane.xlu0 %3443  ;;  %v16832_v19 = vld [vmem:[#allocation45_spill] sm:$0xff] }
 0x700   : > { %4724 = vrot.lane.b32.xlu0 %v16822_v42, %s12015_s25  ;;  %10420 = vmatprep.mubr.msk.bf16.mxu1 %vm1289_vm0, %v3556_v48  ;;  %v16834_v48 = vld [vmem:[#allocation42_spill] sm:$0xff] }
 0x701   : > { %10421 = vmatmul.mubr.msk.bf16.vlgmr.msra.gmra.mrb[104].mxu1 %vm1289_vm0, %v3557_v55 }
 0x702   : > { %10433 = vmatpush3.bf16.msra.mxu1 %v16823_v44  ;;  %10443 = vmatpush3.bf16.msra.mxu0 %v16820_v12  ;;  %v3453_v8 = vpop.xlane.xlu1 %3452 }
 0x703   : > { %10434 = vmatprep.subr.bf16.mxu1 %v16824_v9  ;;  %10456 = vmatprep.subr.bf16.mxu0 %v16825_v45  ;;  %11266 = vrcp.f32 %v3453_v8  ;;  %v16835_v8 = vld [vmem:[#allocation32_spill] sm:$0xff] }
 0x704   : > { %4586 = vrot.lane.b32.xlu1 %v16826_v11, %s12015_s25  ;;  %4720 = vrot.lane.b32.xlu0 %v16827_v36, %s12015_s25  ;;  %11268 = vrcp.f32 %v3444_v2 }
 0x705   : > { %11270 = vrcp.f32 %v3450_v27 }
 0x706   : > { %10435 = vmatpush3.bf16.msra.mxu1 %v16824_v9  ;;  %v3441_v37 = vpop.xlane.xlu1 %3440  ;;  %v16836_v9 = vld [vmem:[#allocation60_spill] sm:$0xff] }
 0x707   : > { %10448 = vmatprep.subr.bf16.mxu1 %v16828_v30 }
 0x708   : > { %4649 = vrot.lane.b32.xlu1 %v16829_v58, %s12015_s25  ;;  %5155 = vrot.lane.b32.xlu0 %v16830_v62, %s12015_s25 }
 0x70a   : > { %v3447_v3 = vpop.xlane.xlu1 %3446 }
 0x70b   : > { %11272 = vrcp.f32 %v3447_v3 }
 0x70c   : > { %11274 = vrcp.f32 %v3441_v37  ;;  %4651 = vrot.lane.b32.xlu1 %v16831_v24, %s12015_s25  ;;  %5277 = vrot.lane.b32.xlu0 %v16832_v19, %s12015_s25 }
 0x70d   : > { %11276 = vrcp.f32 %v3432_v51  ;;  %v11267_v12 = vpop.eup %11266 }
 0x70e   : > { %11278 = vrcp.f32 %v3438_v29  ;;  %v3435_v61 = vpop.xlane.xlu1 %3434  ;;  %v11269_v27 = vpop.eup %11268  ;;  %v3529_v29 = vmul.f32 %v11267_v12, %v13655_v47 }
 0x70f   : > { %11280 = vrcp.f32 %v3435_v61  ;;  %v11271_v44 = vpop.eup %11270  ;;  %v3523_v3 = vmul.f32 %v11269_v27, %v13644_v10  ;;  %v3468_v27 = vpop.xlane.xlu0 %3467 }
 0x710   : > { %4582 = vrot.lane.b32.xlu1 %v16833_v63, %s12015_s25  ;;  %5216 = vrot.lane.b32.xlu0 %v16834_v48, %s12015_s25  ;;  %v3527_v4 = vmul.f32 %v11271_v44, %v13634_v50  ;;  %v16839_v44 = vld [vmem:[#allocation43_spill] sm:$0xff] }
 0x712   : > { %v3474_v55 = vpop.xlane.xlu1 %3473  ;;  %v3563_v12 = vpack.c.bf16 %v3529_v29, %v3527_v4  ;;  %v16841_v4 = vld [vmem:[#allocation65_spill] sm:$0xff] }
 0x714   : > { %4718 = vrot.lane.b32.xlu1 %v16835_v8, %s12015_s25  ;;  %5521 = vrot.lane.b32.xlu0 %v16836_v9, %s12015_s25  ;;  %v16838_v8 = vld [vmem:[#allocation58_spill] sm:$0xff] }
 0x715   : > { %v11273_v51 = vpop.eup %11272 }
 0x716   : > { %v11275_v2 = vpop.eup %11274  ;;  %v3462_v37 = vpop.xlane.xlu1 %3461  ;;  %v3525_v61 = vmul.f32 %v11273_v51, %v13666_v18 }
 0x717   : > { %v11277_v48 = vpop.eup %11276  ;;  %v3521_v47 = vmul.f32 %v11275_v2, %v13661_v13  ;;  %v16840_v13 = vld [vmem:[#allocation23_spill] sm:$0xff] }
 0x718   : > { %v11279_v58 = vpop.eup %11278  ;;  %5157 = vrot.lane.b32.xlu1 %v16837_v25, %s12015_s25  ;;  %5523 = vrot.lane.b32.xlu0 %v16838_v8, %s12015_s25  ;;  %v3562_v9 = vpack.c.bf16 %v3525_v61, %v3523_v3  ;;  %v3515_v10 = vmul.f32 %v11277_v48, %v13650_v14 }
 0x719   : > { %v11281_v19 = vpop.eup %11280  ;;  %v3519_v50 = vmul.f32 %v11279_v58, %v13639_v43  ;;  %v16842_v43 = vld [vmem:[#allocation52_spill] sm:$0xff] }
 0x71a   : > { %v3477_v41 = vpop.xlane.xlu1 %3476  ;;  %10444 = vmatprep.mubr.msk.bf16.mxu0 %vm1289_vm0, %v3562_v9  ;;  %v3517_v18 = vmul.f32 %v11281_v19, %v13675_v5  ;;  %v16843_v5 = vld [vmem:[#allocation62_spill] sm:$0xff]  ;;  %v16844_v58 = vld [vmem:[#allocation28_spill] sm:$0xff] }
 0x71b   : > { %10445 = vmatmul.mubr.msk.bf16.vlgmr.msra.gmra.mrb[96].mxu0 %vm1289_vm0, %v3563_v12  ;;  %v3561_v14 = vpack.c.bf16 %v3521_v47, %v3519_v50  ;;  %11282 = vrcp.f32 %v3477_v41  ;;  %v16845_v19 = vld [vmem:[#allocation66_spill] sm:$0xff]  ;;  %v16846_v41 = vld [vmem:[#allocation40_spill] sm:$0xff] }
 0x71c   : > { %5279 = vrot.lane.b32.xlu1 %v16839_v44, %s12015_s25  ;;  %10457 = vmatpush3.bf16.msra.mxu0 %v16825_v45  ;;  %v3560_v51 = vpack.c.bf16 %v3517_v18, %v3515_v10  ;;  %11284 = vrcp.f32 %v3468_v27  ;;  %v3456_v45 = vpop.xlane.xlu0 %3455  ;;  %v16849_v47 = vld [vmem:[#allocation48_spill] sm:$0xff] }
 0x71d   : > { %5808 = vrot.lane.b32.xlu0 %v16840_v13, %s12016_s5  ;;  %10458 = vmatprep.subr.bf16.mxu0 %v16841_v4  ;;  %11286 = vrcp.f32 %v3474_v55  ;;  %v16848_v55 = vld [vmem:[#allocation50_spill] sm:$0xff] }
 0x71e   : > { %v3465_v48 = vpop.xlane.xlu1 %3464  ;;  %10436 = vmatprep.mubr.msk.bf16.mxu1 %vm1289_vm0, %v3560_v51 }
 0x71f   : > { %10437 = vmatmul.mubr.msk.bf16.vlgmr.msra.gmra.mrb[108].mxu1 %vm1289_vm0, %v3561_v14 }
 0x720   : > { %5399 = vrot.lane.b32.xlu1 %v16842_v43, %s12015_s25  ;;  %10449 = vmatpush3.bf16.msra.mxu1 %v16828_v30  ;;  %v16847_v30 = vld [vmem:[#allocation67_spill] sm:$0xff] }
 0x721   : > { %10459 = vmatpush3.bf16.msra.mxu0 %v16841_v4  ;;  %5584 = vrot.lane.b32.xlu0 %v16843_v5, %s12015_s25  ;;  %v16850_v4 = vld [vmem:[#allocation46_spill] sm:$0xff] }
 0x722   : > { %10450 = vmatprep.subr.bf16.mxu1 %v16844_v58  ;;  %10824 = vmatprep.subr.msk.bf16.mxu0 %vm1289_vm0, %v16845_v19  ;;  %v3471_v9 = vpop.xlane.xlu1 %3470 }
 0x723   : > { %11288 = vrcp.f32 %v3471_v9  ;;  %v16851_v9 = vld [vmem:[#allocation56_spill] sm:$0xff] }
 0x724   : > { %11290 = vrcp.f32 %v3465_v48  ;;  %5218 = vrot.lane.b32.xlu1 %v16846_v41, %s12015_s25  ;;  %10451 = vmatpush3.bf16.msra.mxu1 %v16844_v58 }
 0x725   : > { %11292 = vrcp.f32 %v3456_v45  ;;  %10464 = vmatprep.subr.bf16.mxu1 %v16847_v30  ;;  %v11283_v2 = vpop.eup %11282 }
 0x726   : > { %11294 = vrcp.f32 %v3462_v37  ;;  %v3459_v29 = vpop.xlane.xlu1 %3458  ;;  %v11285_v3 = vpop.eup %11284  ;;  %v3545_v10 = vmul.f32 %v11283_v2, %v13693_v40  ;;  %v16853_v2 = vld [vmem:[#allocation70_spill] sm:$0xff] }
 0x727   : > { %11296 = vrcp.f32 %v3459_v29  ;;  %v11287_v61 = vpop.eup %11286  ;;  %v3539_v50 = vmul.f32 %v11285_v3, %v13668_v26  ;;  %v16856_v3 = vld [vmem:[#allocation64_spill] sm:$0xff] }
 0x728   : > { %5401 = vrot.lane.b32.xlu1 %v16848_v55, %s12015_s25  ;;  %v3543_v51 = vmul.f32 %v11287_v61, %v13684_v60  ;;  %v4250_v60 = vsel %vm1289_vm0, %v16845_v19, 0  ;;  %v4309_v19 = vpop.permute.xlu0 %4308 }
 0x72a   : > { %v3567_v58 = vpack.c.bf16 %v3545_v10, %v3543_v51 }
 0x72c   : > { %5338 = vrot.lane.b32.xlu1 %v16849_v47, %s12015_s25 }
 0x72d   : > { %v11289_v12 = vpop.eup %11288 }
 0x72e   : > { %v11291_v18 = vpop.eup %11290  ;;  %v3541_v27 = vmul.f32 %v11289_v12, %v13701_v57  ;;  %v4378_v12 = vpop.permute.xlu1 %4377 }
 0x72f   : > { %v11293_v37 = vpop.eup %11292  ;;  %v3537_v45 = vmul.f32 %v11291_v18, %v13697_v7  ;;  %v16852_v7 = vld [vmem:[#allocation69_spill] sm:$0xff] }
 0x730   : > { %v11295_v13 = vpop.eup %11294  ;;  %5340 = vrot.lane.b32.xlu1 %v16850_v4, %s12015_s25  ;;  %v3566_v14 = vpack.c.bf16 %v3541_v27, %v3539_v50  ;;  %v3531_v40 = vmul.f32 %v11293_v37, %v13677_v15  ;;  %v4253_v61 = vsel %vm1289_vm0, %v16852_v7, 0  ;;  %v4388_v50 = vsel %vm1289_vm0, %v4378_v12, 0 }
 0x731   : > { %v11297_v48 = vpop.eup %11296  ;;  %v3535_v57 = vmul.f32 %v11295_v13, %v13689_v22  ;;  %v16854_v22 = vld [vmem:[#allocation54_spill] sm:$0xff] }
 0x732   : > { %10460 = vmatprep.mubr.msk.bf16.mxu0 %vm1289_vm0, %v3566_v14  ;;  %v3533_v26 = vmul.f32 %v11297_v48, %v13705_v49  ;;  %v16855_v49 = vld [vmem:[#allocation68_spill] sm:$0xff] }
 0x733   : > { %10461 = vmatmul.mubr.msk.bf16.vlgmr.msra.gmra.mrb[100].mxu0 %vm1289_vm0, %v3567_v58  ;;  %v3565_v15 = vpack.c.bf16 %v3537_v45, %v3535_v57 }
 0x734   : > { %5460 = vrot.lane.b32.xlu1 %v16851_v9, %s12015_s25  ;;  %10473 = vmatpush3.bf16.xpose.msra.mxu0 %v4250_v60  ;;  %v3564_v29 = vpack.c.bf16 %v3533_v26, %v3531_v40 }
 0x735   : > { %10825 = vmatprep.subr.msk.bf16.mxu0 %vm1289_vm0, %v16852_v7  ;;  %10476 = vmatprep.mubr.msk.bf16.mxu0 %vm1289_vm0, %v16853_v2 }
 0x736   : > { %10452 = vmatprep.mubr.msk.bf16.mxu1 %vm1289_vm0, %v3564_v29 }
 0x737   : > { %10453 = vmatmul.mubr.msk.bf16.vlgmr.msra.gmra.mrb[112].mxu1 %vm1289_vm0, %v3565_v15 }
 0x738   : > { %5462 = vrot.lane.b32.xlu1 %v16854_v22, %s12015_s25  ;;  %10465 = vmatpush3.bf16.msra.mxu1 %v16847_v30 }
 0x739   : > { %10466 = vmatprep.subr.bf16.mxu1 %v16855_v49 }
 0x73c   : > { %5582 = vrot.lane.b32.xlu1 %v16856_v3, %s12015_s25  ;;  %10467 = vmatpush3.bf16.msra.mxu1 %v16855_v49 }
 0x73d   : > { %10475 = vmatpush3.bf16.xpose.msra.mxu0 %v4253_v61  ;;  %10826 = vmatprep.subr.msk.bf16.mxu1 %vm1289_vm0, %v4309_v19 }
 0x73e   : > { %10828 = vmatprep.subr.msk.bf16.mxu0 %vm1289_vm0, %v4378_v12 }
 0x743   : > { %v3489_v10 = vpop.xlane.xlu0 %3488 }
 0x747   : > { %v3483_v18 = vpop.xlane.xlu0 %3482 }
 0x74b   : > { %v4238_v30 = vpop.permute.xlu0 %4237 }
 0x74c   : > { %10477 = vmatmul.mubr.msk.bf16.vlgmr.msra.gmra.mrb[104].mxu0 %vm1289_vm0, %v4238_v30 }
 0x74d   : > { %10489 = vmatpush3.bf16.xpose.msra.mxu0 %v4388_v50 }
 0x74f   : > { %v4380_v27 = vpop.permute.xlu0 %4379 }
 0x750   : > { %10829 = vmatprep.subr.msk.bf16.mxu0 %vm1289_vm0, %v4380_v27  ;;  %v4391_v51 = vsel %vm1289_vm0, %v4380_v27, 0 }
 0x753   : > { %v4374_v37 = vpop.permute.xlu0 %4373 }
 0x754   : > { %10492 = vmatprep.mubr.msk.bf16.mxu0 %vm1289_vm0, %v4374_v37 }
 0x755   : > { %10491 = vmatpush3.bf16.xpose.msra.mxu0 %v4391_v51 }
 0x757   : > { %v4516_v13 = vpop.permute.xlu0 %4515 }
 0x758   : > { %10832 = vmatprep.subr.msk.bf16.mxu0 %vm1289_vm0, %v4516_v13  ;;  %v4526_v45 = vsel %vm1289_vm0, %v4516_v13, 0 }
 0x75b   : > { %v3486_v14 = vpop.xlane.xlu1 %3485  ;;  %v4376_v48 = vpop.permute.xlu0 %4375 }
 0x75c   : > { %10493 = vmatmul.mubr.msk.bf16.vlgmr.msra.gmra.mrb[108].mxu0 %vm1289_vm0, %v4376_v48  ;;  %11298 = vrcp.f32 %v3486_v14 }
 0x75d   : > { %10505 = vmatpush3.bf16.xpose.msra.mxu0 %v4526_v45  ;;  %11300 = vrcp.f32 %v3483_v18 }
 0x75e   : > { %11302 = vrcp.f32 %v3489_v10 }
 0x75f   : > { %v3480_v58 = vpop.xlane.xlu1 %3479  ;;  %v4518_v40 = vpop.permute.xlu0 %4517 }
 0x760   : > { %11304 = vrcp.f32 %v3480_v58  ;;  %10833 = vmatprep.subr.msk.bf16.mxu0 %vm1289_vm0, %v4518_v40  ;;  %v4529_v60 = vsel %vm1289_vm0, %v4518_v40, 0 }
 0x763   : > { %v4311_v26 = vpop.permute.xlu1 %4310  ;;  %v4512_v57 = vpop.permute.xlu0 %4511 }
 0x764   : > { %10508 = vmatprep.mubr.msk.bf16.mxu0 %vm1289_vm0, %v4512_v57  ;;  %v4322_v40 = vsel %vm1289_vm0, %v4311_v26, 0 }
 0x765   : > { %10507 = vmatpush3.bf16.xpose.msra.mxu0 %v4529_v60 }
 0x766   : > { %v11299_v29 = vpop.eup %11298 }
 0x767   : > { %v4305_v7 = vpop.permute.xlu1 %4304  ;;  %v4654_v2 = vpop.permute.xlu0 %4653  ;;  %v3551_v12 = vmul.f32 %v11299_v29, %v13733_v34  ;;  %v4319_v34 = vsel %vm1289_vm0, %v4309_v19, 0 }
 0x768   : > { %v11301_v15 = vpop.eup %11300  ;;  %10836 = vmatprep.subr.msk.bf16.mxu0 %vm1289_vm0, %v4654_v2  ;;  %v4664_v37 = vsel %vm1289_vm0, %v4654_v2, 0 }
 0x769   : > { %v11303_v49 = vpop.eup %11302  ;;  %v3549_v50 = vmul.f32 %v11301_v15, %v13719_v1 }
 0x76a   : > { %v11305_v61 = vpop.eup %11304  ;;  %v3553_v27 = vmul.f32 %v11303_v49, %v13715_v21 }
 0x76b   : > { %v4447_v10 = vpop.permute.xlu1 %4446  ;;  %v4514_v18 = vpop.permute.xlu0 %4513  ;;  %v3547_v30 = vmul.f32 %v11305_v61, %v13739_v56 }
 0x76c   : > { %10509 = vmatmul.mubr.msk.bf16.vlgmr.msra.gmra.mrb[112].mxu0 %vm1289_vm0, %v4514_v18  ;;  %v3569_v13 = vpack.c.bf16 %v3553_v27, %v3551_v12 }
 0x76d   : > { %10521 = vmatpush3.bf16.xpose.msra.mxu0 %v4664_v37  ;;  %v3568_v51 = vpack.c.bf16 %v3549_v50, %v3547_v30 }
 0x76f   : > { %v4307_v14 = vpop.permute.xlu1 %4306  ;;  %10468 = vmatprep.mubr.msk.bf16.mxu1 %vm1289_vm0, %v3568_v51  ;;  %v4656_v48 = vpop.permute.xlu0 %4655 }
 0x770   : > { %10469 = vmatmul.mubr.msk.bf16.vlgmr.msra.gmra.mrb[116].mxu1 %vm1289_vm0, %v3569_v13  ;;  %10837 = vmatprep.subr.msk.bf16.mxu0 %vm1289_vm0, %v4656_v48  ;;  %v4667_v56 = vsel %vm1289_vm0, %v4656_v48, 0 }
 0x771   : > { %10481 = vmatpush3.bf16.xpose.msra.mxu1 %v4319_v34  ;;  %10484 = vmatprep.mubr.msk.bf16.mxu1 %vm1289_vm0, %v4305_v7  ;;  %v4457_v7 = vsel %vm1289_vm0, %v4447_v10, 0 }
 0x772   : > { %10827 = vmatprep.subr.msk.bf16.mxu1 %vm1289_vm0, %v4311_v26 }
 0x773   : > { %v4449_v21 = vpop.permute.xlu1 %4448  ;;  %v4581_v1 = vpop.permute.xlu0 %4580 }
 0x774   : > { %v4460_v49 = vsel %vm1289_vm0, %v4449_v21, 0 }
 0x775   : > { %10523 = vmatpush3.bf16.xpose.msra.mxu0 %v4667_v56 }
 0x777   : > { %v4443_v45 = vpop.permute.xlu1 %4442  ;;  %v4723_v58 = vpop.permute.xlu0 %4722 }
 0x778   : > { %v4733_v34 = vsel %vm1289_vm0, %v4723_v58, 0 }
 0x779   : > { %10483 = vmatpush3.bf16.xpose.msra.mxu1 %v4322_v40 }
 0x77a   : > { %10830 = vmatprep.subr.msk.bf16.mxu1 %vm1289_vm0, %v4447_v10 }
 0x77b   : > { %v4585_v19 = vpop.permute.xlu1 %4584  ;;  %v4725_v57 = vpop.permute.xlu0 %4724 }
 0x77c   : > { %v4595_v10 = vsel %vm1289_vm0, %v4585_v19, 0 }
 0x77f   : > { %v4445_v60 = vpop.permute.xlu1 %4444  ;;  %v4721_v29 = vpop.permute.xlu0 %4720 }
 0x780   : > { %10485 = vmatmul.mubr.msk.bf16.vlgmr.msra.gmra.mrb[120].mxu1 %vm1289_vm0, %v4307_v14 }
 0x781   : > { %10497 = vmatpush3.bf16.xpose.msra.mxu1 %v4457_v7  ;;  %10500 = vmatprep.mubr.msk.bf16.mxu1 %vm1289_vm0, %v4443_v45 }
 0x782   : > { %10831 = vmatprep.subr.msk.bf16.mxu1 %vm1289_vm0, %v4449_v21 }
 0x783   : > { %v4587_v2 = vpop.permute.xlu1 %4586  ;;  %v5156_v15 = vpop.permute.xlu0 %5155 }
 0x784   : > { %10536 = vmatprep.subr.bf16.mxu0 %v5156_v15  ;;  %v4598_v50 = vsel %vm1289_vm0, %v4587_v2, 0 }
 0x787   : > { %v4650_v26 = vpop.permute.xlu1 %4649  ;;  %v13937_v27 = vpop.permute.xlu0 %5277 }
 0x788   : > { %10524 = vmatprep.mubr.msk.bf16.mxu0 %vm1289_vm0, %v4650_v26 }
 0x789   : > { %10499 = vmatpush3.bf16.xpose.msra.mxu1 %v4460_v49 }
 0x78a   : > { %10834 = vmatprep.subr.msk.bf16.mxu1 %vm1289_vm0, %v4585_v19 }
 0x78b   : > { %v4652_v61 = vpop.permute.xlu1 %4651  ;;  %v5217_v56 = vpop.permute.xlu0 %5216 }
 0x78c   : > { %10525 = vmatmul.mubr.msk.bf16.vlgmr.msra.gmra.mrb[116].mxu0 %vm1289_vm0, %v4652_v61 }
 0x78d   : > { %10537 = vmatpush3.bf16.msra.mxu0 %v5156_v15 }
 0x78f   : > { %v4583_v12 = vpop.permute.xlu1 %4582 }
 0x790   : > { %10501 = vmatmul.mubr.msk.bf16.vlgmr.msra.gmra.mrb[124].mxu1 %vm1289_vm0, %v4445_v60 }
 0x791   : > { %10513 = vmatpush3.bf16.xpose.msra.mxu1 %v4595_v10  ;;  %10516 = vmatprep.mubr.msk.bf16.mxu1 %vm1289_vm0, %v4581_v1  ;;  %v4736_v1 = vsel %vm1289_vm0, %v4725_v57, 0 }
 0x792   : > { %10835 = vmatprep.subr.msk.bf16.mxu1 %vm1289_vm0, %v4587_v2 }
 0x793   : > { %v4719_v18 = vpop.permute.xlu1 %4718 }
 0x797   : > { %v5158_v30 = vpop.permute.xlu1 %5157 }
 0x798   : > { %10538 = vmatprep.subr.bf16.mxu0 %v5158_v30 }
 0x799   : > { %10515 = vmatpush3.bf16.xpose.msra.mxu1 %v4598_v50  ;;  %v13939_v37 = vpop.f32.mrb[88].mxu0  ;;  %10539 = vmatpush3.bf16.msra.mxu0 %v5158_v30 }
 0x79a   : > { %16857 = vst [vmem:[#allocation30_spill] sm:$0xff] %v13939_v37  ;;  %10838 = vmatprep.subr.msk.bf16.mxu1 %vm1289_vm0, %v4723_v58  ;;  %v13942_v51 = vpop.f32.mrb[89].mxu0  ;;  %10552 = vmatprep.subr.bf16.mxu0 %v13937_v27 }
 0x79b   : > { %16858 = vst [vmem:[#allocation71_spill] sm:$0xff] %v13942_v51  ;;  %v13945_v13 = vpop.f32.mrb[90].mxu0  ;;  %v13949_v48 = vpop.permute.xlu1 %5279 }
 0x79c   : > { %16859 = vst [vmem:[#allocation39_spill] sm:$0xff] %v13945_v13  ;;  %v13947_v14 = vpop.f32.mrb[91].mxu0 }
 0x79d   : > { %16860 = vst [vmem:[#allocation47_spill] sm:$0xff] %v13947_v14 }
 0x79f   : > { %v13955_v21 = vpop.permute.xlu1 %5399 }
 0x7a0   : > { %10517 = vmatmul.mubr.msk.bf16.vlgmr.msra.gmra.mrb[128].mxu1 %vm1289_vm0, %v4583_v12 }
 0x7a1   : > { %10529 = vmatpush3.bf16.xpose.msra.mxu1 %v4733_v34  ;;  %10532 = vmatprep.mubr.msk.bf16.mxu1 %vm1289_vm0, %v4719_v18 }
 0x7a2   : > { %10839 = vmatprep.subr.msk.bf16.mxu1 %vm1289_vm0, %v4725_v57 }
 0x7a3   : > { %v5219_v45 = vpop.permute.xlu1 %5218 }
 0x7a7   : > { %v13958_v40 = vpop.permute.xlu1 %5401 }
 0x7a8   : > { %16861 = vst [vmem:[#allocation37_spill] sm:$0xff] %v13958_v40 }
 0x7a9   : > { %10531 = vmatpush3.bf16.xpose.msra.mxu1 %v4736_v1 }
 0x7aa   : > { %10544 = vmatprep.subr.bf16.mxu1 %v5217_v56 }
 0x7ab   : > { %v13961_v58 = vpop.permute.xlu1 %5338 }
 0x7ac   : > { %16862 = vst [vmem:[#allocation41_spill] sm:$0xff] %v13961_v58 }
 0x7b0   : > { %10533 = vmatmul.mubr.msk.bf16.vlgmr.msra.gmra.mrb[132].mxu1 %vm1289_vm0, %v4721_v29 }
 0x7b1   : > { %10545 = vmatpush3.bf16.msra.mxu1 %v5217_v56 }
 0x7b2   : > { %10546 = vmatprep.subr.bf16.mxu1 %v5219_v45 }
 0x7b5   : > { %10547 = vmatpush3.bf16.msra.mxu1 %v5219_v45 }
 0x7b6   : > { %10560 = vmatprep.subr.bf16.mxu1 %v13961_v58 }
 0x7d0   : > { %v13964_v19 = vpop.f32.mrb[92].mxu0 }
 0x7d1   : > { %16863 = vst [vmem:[#allocation55_spill] sm:$0xff] %v13964_v19  ;;  %v13966_v60 = vpop.f32.mrb[93].mxu0 }
 0x7d2   : > { %16864 = vst [vmem:[#allocation61_spill] sm:$0xff] %v13966_v60  ;;  %v13968_v57 = vpop.f32.mrb[94].mxu0 }
 0x7d3   : > { %16865 = vst [vmem:[#allocation53_spill] sm:$0xff] %v13968_v57  ;;  %v13970_v7 = vpop.f32.mrb[95].mxu0  ;;  %v14029_v57 = vld [vmem:[#allocation4 + $0x8] sm:$0xff] }
 0x7d4   : > { %16866 = vst [vmem:[#allocation63_spill] sm:$0xff] %v13970_v7  ;;  %v13972_v2 = vpop.f32.mrb[104].mxu1 }
 0x7d5   : > { %16867 = vst [vmem:[#allocation23_spill] sm:$0xff] %v13972_v2  ;;  %v13974_v15 = vpop.f32.mrb[105].mxu1 }
 0x7d6   : > { %16868 = vst [vmem:[#allocation65_spill] sm:$0xff] %v13974_v15  ;;  %v13976_v29 = vpop.f32.mrb[106].mxu1 }
 0x7d7   : > { %16869 = vst [vmem:[#allocation28_spill] sm:$0xff] %v13976_v29  ;;  %v13978_v26 = vpop.f32.mrb[107].mxu1 }
 0x7d8   : > { %16870 = vst [vmem:[#allocation66_spill] sm:$0xff] %v13978_v26 }
 0x7ee   : > { %v13980_v49 = vpop.f32.mrb[96].mxu0 }
 0x7ef   : > { %16871 = vst [vmem:[#allocation67_spill] sm:$0xff] %v13980_v49  ;;  %v13982_v61 = vpop.f32.mrb[97].mxu0 }
 0x7f0   : > { %16872 = vst [vmem:[#allocation69_spill] sm:$0xff] %v13982_v61  ;;  %v13984_v12 = vpop.f32.mrb[98].mxu0 }
 0x7f1   : > { %16873 = vst [vmem:[#allocation70_spill] sm:$0xff] %v13984_v12  ;;  %v13986_v10 = vpop.f32.mrb[99].mxu0 }
 0x7f2   : > { %16874 = vst [vmem:[#allocation68_spill] sm:$0xff] %v13986_v10  ;;  %v13988_v18 = vpop.f32.mrb[108].mxu1 }
 0x7f3   : > { %16875 = vst [vmem:[#allocation72_spill] sm:$0xff] %v13988_v18  ;;  %v13990_v30 = vpop.f32.mrb[109].mxu1 }
 0x7f4   : > { %16876 = vst [vmem:[#allocation73_spill] sm:$0xff] %v13990_v30  ;;  %v13992_v50 = vpop.f32.mrb[110].mxu1 }
 0x7f5   : > { %16877 = vst [vmem:[#allocation74_spill] sm:$0xff] %v13992_v50  ;;  %v13994_v34 = vpop.f32.mrb[111].mxu1  ;;  %v14012_v50 = vld [vmem:[#allocation4 + $0x10] sm:$0xff] }
 0x7f6   : > { %16878 = vst [vmem:[#allocation75_spill] sm:$0xff] %v13994_v34 }
 0x806   : > { %v13996_v1 = vpop.f32.mrb[100].mxu0 }
 0x807   : > { %16879 = vst [vmem:[#allocation76_spill] sm:$0xff] %v13996_v1  ;;  %v13998_v56 = vpop.f32.mrb[101].mxu0 }
 0x808   : > { %16880 = vst [vmem:[#allocation77_spill] sm:$0xff] %v13998_v56  ;;  %v14000_v45 = vpop.f32.mrb[102].mxu0  ;;  %v14017_v56 = vld [vmem:[#allocation4] sm:$0xff] }
 0x809   : > { %16881 = vst [vmem:[#allocation78_spill] sm:$0xff] %v14000_v45  ;;  %v14002_v49 = vpop.f32.mrb[103].mxu0 }
 0x80a   : > { %16882 = vst [vmem:[#allocation79_spill] sm:$0xff] %v14002_v49  ;;  %v14004_v61 = vpop.f32.mrb[112].mxu1 }
 0x80b   : > { %16883 = vst [vmem:[#allocation80_spill] sm:$0xff] %v14004_v61  ;;  %v14006_v12 = vpop.f32.mrb[113].mxu1 }
 0x80c   : > { %16884 = vst [vmem:[#allocation81_spill] sm:$0xff] %v14006_v12  ;;  %v14008_v10 = vpop.f32.mrb[114].mxu1 }
 0x80d   : > { %16885 = vst [vmem:[#allocation82_spill] sm:$0xff] %v14008_v10  ;;  %v14010_v18 = vpop.f32.mrb[115].mxu1  ;;  %v14024_v10 = vld [vmem:[#allocation4 + $0x18] sm:$0xff] }
 0x80e   : > { %16886 = vst [vmem:[#allocation83_spill] sm:$0xff] %v14010_v18 }
 0x81f   : > { %v10478_v30 = vpop.f32.mrb[104].mxu0 }
 0x820   : > { %v14015_v34 = vadd.f32 %v14012_v50, %v10478_v30  ;;  %v4289_v1 = vpop.f32.mrb[105].mxu0 }
 0x821   : > { %v14020_v45 = vadd.f32 %v14017_v56, %v4289_v1  ;;  %v10479_v49 = vpop.f32.mrb[106].mxu0 }
 0x822   : > { %v4292_v61 = vpop.f32.mrb[107].mxu0  ;;  %v4793_v12 = vsel %vm1289_vm0, %v14015_v34, -inf  ;;  %v14027_v18 = vadd.f32 %v14024_v10, %v10479_v49 }
 0x823   : > { %v14032_v30 = vadd.f32 %v14029_v57, %v4292_v61  ;;  %4794 = vmax.xlane.f32.xlu0 %v4793_v12  ;;  %v4787_v1 = vsel %vm1289_vm0, %v14020_v45, -inf }
 0x824   : > { %4788 = vmax.xlane.f32.xlu1 %v4787_v1  ;;  %v4796_v19 = vsel %vm1289_vm0, %v14027_v18, -inf }
 0x825   : > { %v4790_v7 = vsel %vm1289_vm0, %v14032_v30, -inf }
 0x827   : > { %4791 = vmax.xlane.f32.xlu0 %v4790_v7 }
 0x828   : > { %4797 = vmax.xlane.f32.xlu1 %v4796_v19 }
 0x82f   : > { %v10494_v49 = vpop.f32.mrb[108].mxu0 }
 0x830   : > { %v14041_v60 = vadd.f32 %v14012_v50, %v10494_v49  ;;  %v4427_v29 = vpop.f32.mrb[109].mxu0 }
 0x831   : > { %v10495_v61 = vpop.f32.mrb[110].mxu0 }
 0x832   : > { %v14044_v12 = vadd.f32 %v14024_v10, %v10495_v61  ;;  %v4430_v26 = vpop.f32.mrb[111].mxu0  ;;  %v4817_v1 = vsel %vm1289_vm0, %v14041_v60, -inf }
 0x833   : > { %4818 = vmax.xlane.f32.xlu0 %v4817_v1 }
 0x834   : > { %v4820_v7 = vsel %vm1289_vm0, %v14044_v12, -inf }
 0x835   : > { %4821 = vmax.xlane.f32.xlu1 %v4820_v7  ;;  %v14062_v7 = vadd.f32 %v14017_v56, %v4427_v29 }
 0x837   : > { %v4811_v29 = vsel %vm1289_vm0, %v14062_v7, -inf }
 0x83f   : > { %v10510_v2 = vpop.f32.mrb[112].mxu0 }
 0x840   : > { %v4565_v19 = vpop.f32.mrb[113].mxu0 }
 0x841   : > { %v10511_v15 = vpop.f32.mrb[114].mxu0  ;;  %v14102_v55 = vadd.f32 %v14017_v56, %v4565_v19 }
 0x842   : > { %v4568_v13 = vpop.f32.mrb[115].mxu0 }
 0x843   : > { %v14050_v49 = vpop.f32.mrb[116].mxu1  ;;  %v4835_v19 = vsel %vm1289_vm0, %v14102_v55, -inf }
 0x844   : > { %16887 = vst [vmem:[#allocation84_spill] sm:$0xff] %v14050_v49  ;;  %v14052_v37 = vpop.f32.mrb[117].mxu1 }
 0x845   : > { %16888 = vst [vmem:[#allocation85_spill] sm:$0xff] %v14052_v37  ;;  %v14054_v14 = vpop.f32.mrb[118].mxu1 }
 0x846   : > { %16889 = vst [vmem:[#allocation86_spill] sm:$0xff] %v14054_v14  ;;  %v14056_v61 = vpop.f32.mrb[119].mxu1  ;;  %v14070_v14 = vadd.f32 %v14029_v57, %v4430_v26  ;;  %v14085_v26 = vadd.f32 %v14012_v50, %v10510_v2 }
 0x847   : > { %16890 = vst [vmem:[#allocation87_spill] sm:$0xff] %v14056_v61  ;;  %v14090_v61 = vadd.f32 %v14024_v10, %v10511_v15 }
 0x849   : > { %v4844_v15 = vsel %vm1289_vm0, %v14090_v61, -inf }
 0x853   : > { %v10486_v3 = vpop.f32.mrb[120].mxu1 }
 0x854   : > { %v14059_v51 = vadd.f32 %v14012_v50, %v10486_v3  ;;  %v4358_v1 = vpop.f32.mrb[121].mxu1 }
 0x855   : > { %v10487_v5 = vpop.f32.mrb[122].mxu1  ;;  %v14075_v37 = vadd.f32 %v14017_v56, %v4358_v1 }
 0x856   : > { %v14065_v22 = vadd.f32 %v14024_v10, %v10487_v5  ;;  %v4361_v8 = vpop.f32.mrb[123].mxu1  ;;  %v4805_v49 = vsel %vm1289_vm0, %v14059_v51, -inf }
 0x857   : > { %4806 = vmax.xlane.f32.xlu0 %v4805_v49  ;;  %v14080_v5 = vadd.f32 %v14029_v57, %v4361_v8  ;;  %v4814_v49 = vsel %vm1289_vm0, %v14070_v14, -inf }
 0x858   : > { %v4808_v3 = vsel %vm1289_vm0, %v14065_v22, -inf }
 0x859   : > { %4809 = vmax.xlane.f32.xlu1 %v4808_v3  ;;  %v4799_v3 = vsel %vm1289_vm0, %v14075_v37, -inf }
 0x85b   : > { %4812 = vmax.xlane.f32.xlu0 %v4811_v29  ;;  %v4802_v29 = vsel %vm1289_vm0, %v14080_v5, -inf }
 0x85d   : > { %4815 = vmax.xlane.f32.xlu1 %v4814_v49  ;;  %v4841_v49 = vsel %vm1289_vm0, %v14085_v26, -inf }
 0x85f   : > { %4800 = vmax.xlane.f32.xlu0 %v4799_v3  ;;  %v10526_v1 = vpop.f32.mrb[116].mxu0 }
 0x860   : > { %v4703_v8 = vpop.f32.mrb[117].mxu0 }
 0x861   : > { %4803 = vmax.xlane.f32.xlu1 %v4802_v29  ;;  %v10527_v9 = vpop.f32.mrb[118].mxu0 }
 0x862   : > { %v4706_v4 = vpop.f32.mrb[119].mxu0 }
 0x863   : > { %v10502_v2 = vpop.f32.mrb[124].mxu1  ;;  %4842 = vmax.xlane.f32.xlu0 %v4841_v49  ;;  %v14110_v49 = vadd.f32 %v14029_v57, %v4568_v13  ;;  %v14125_v13 = vadd.f32 %v14012_v50, %v10526_v1 }
 0x864   : > { %v14097_v47 = vadd.f32 %v14012_v50, %v10502_v2  ;;  %v4496_v3 = vpop.f32.mrb[125].mxu1 }
 0x865   : > { %v10503_v41 = vpop.f32.mrb[126].mxu1  ;;  %4845 = vmax.xlane.f32.xlu1 %v4844_v15  ;;  %v14115_v15 = vadd.f32 %v14017_v56, %v4496_v3  ;;  %v14130_v3 = vadd.f32 %v14024_v10, %v10527_v9  ;;  %v14142_v9 = vadd.f32 %v14017_v56, %v4703_v8 }
 0x866   : > { %v14105_v29 = vadd.f32 %v14024_v10, %v10503_v41  ;;  %v4499_v58 = vpop.f32.mrb[127].mxu1  ;;  %v4829_v40 = vsel %vm1289_vm0, %v14097_v47, -inf }
 0x867   : > { %4830 = vmax.xlane.f32.xlu0 %v4829_v40  ;;  %v14120_v41 = vadd.f32 %v14029_v57, %v4499_v58  ;;  %v4838_v40 = vsel %vm1289_vm0, %v14110_v49, -inf  ;;  %v4865_v58 = vsel %vm1289_vm0, %v14125_v13, -inf  ;;  %v4868_v44 = vsel %vm1289_vm0, %v14130_v3, -inf }
 0x868   : > { %v4832_v2 = vsel %vm1289_vm0, %v14105_v29, -inf  ;;  %v4859_v8 = vsel %vm1289_vm0, %v14142_v9, -inf }
 0x869   : > { %4833 = vmax.xlane.f32.xlu1 %v4832_v2  ;;  %v4823_v2 = vsel %vm1289_vm0, %v14115_v15, -inf }
 0x86b   : > { %4836 = vmax.xlane.f32.xlu0 %v4835_v19  ;;  %v4826_v19 = vsel %vm1289_vm0, %v14120_v41, -inf }
 0x86d   : > { %4839 = vmax.xlane.f32.xlu1 %v4838_v40 }
 0x86f   : > { %4824 = vmax.xlane.f32.xlu0 %v4823_v2 }
 0x871   : > { %4827 = vmax.xlane.f32.xlu1 %v4826_v19 }
 0x873   : > { %4866 = vmax.xlane.f32.xlu0 %v4865_v58  ;;  %v10518_v43 = vpop.f32.mrb[128].mxu1 }
 0x874   : > { %v14137_v40 = vadd.f32 %v14012_v50, %v10518_v43  ;;  %v4634_v1 = vpop.f32.mrb[129].mxu1  ;;  %v14150_v43 = vadd.f32 %v14029_v57, %v4706_v4 }
 0x875   : > { %4869 = vmax.xlane.f32.xlu1 %v4868_v44  ;;  %v10519_v2 = vpop.f32.mrb[130].mxu1  ;;  %v14155_v44 = vadd.f32 %v14017_v56, %v4634_v1 }
 0x876   : > { %v14145_v25 = vadd.f32 %v14024_v10, %v10519_v2  ;;  %v4637_v19 = vpop.f32.mrb[131].mxu1  ;;  %v4853_v58 = vsel %vm1289_vm0, %v14137_v40, -inf }
 0x877   : > { %4854 = vmax.xlane.f32.xlu0 %v4853_v58  ;;  %v14160_v2 = vadd.f32 %v14029_v57, %v4637_v19  ;;  %v4862_v58 = vsel %vm1289_vm0, %v14150_v43, -inf  ;;  %v4847_v4 = vsel %vm1289_vm0, %v14155_v44, -inf }
 0x878   : > { %v4856_v39 = vsel %vm1289_vm0, %v14145_v25, -inf }
 0x879   : > { %4857 = vmax.xlane.f32.xlu1 %v4856_v39  ;;  %v4850_v39 = vsel %vm1289_vm0, %v14160_v2, -inf }
 0x87b   : > { %4860 = vmax.xlane.f32.xlu0 %v4859_v8 }
 0x87d   : > { %4863 = vmax.xlane.f32.xlu1 %v4862_v58 }
 0x87f   : > { %4848 = vmax.xlane.f32.xlu0 %v4847_v4 }
 0x881   : > { %4851 = vmax.xlane.f32.xlu1 %v4850_v39 }
 0x883   : > { %v10534_v1 = vpop.f32.mrb[132].mxu1 }
 0x884   : > { %v14169_v62 = vadd.f32 %v14012_v50, %v10534_v1  ;;  %v4772_v8 = vpop.f32.mrb[133].mxu1  ;;  %v16893_v1 = vld [vmem:[#allocation27_spill] sm:$0xff] }
 0x885   : > { %v10535_v53 = vpop.f32.mrb[134].mxu1  ;;  %v14172_v19 = vadd.f32 %v14017_v56, %v4772_v8  ;;  %v14190_v56 = vpop.permute.xlu1 %5340 }
 0x886   : > { %v14175_v36 = vadd.f32 %v14024_v10, %v10535_v53  ;;  %v4775_v58 = vpop.f32.mrb[135].mxu1  ;;  %v4877_v4 = vsel %vm1289_vm0, %v14169_v62, -inf  ;;  %v14188_v10 = vpop.permute.xlu0 %5521  ;;  %16892 = vst [vmem:[#allocation89_spill] sm:$0xff] %v14190_v56 }
 0x887   : > { %4878 = vmax.xlane.f32.xlu0 %v4877_v4  ;;  %v14180_v46 = vadd.f32 %v14029_v57, %v4775_v58  ;;  %v4871_v39 = vsel %vm1289_vm0, %v14172_v19, -inf  ;;  %16891 = vst [vmem:[#allocation88_spill] sm:$0xff] %v14188_v10 }
 0x888   : > { %v4880_v50 = vsel %vm1289_vm0, %v14175_v36, -inf }
 0x889   : > { %4881 = vmax.xlane.f32.xlu1 %v4880_v50  ;;  %v4874_v53 = vsel %vm1289_vm0, %v14180_v46, -inf  ;;  %v14196_v8 = vpop.permute.xlu1 %5460 }
 0x88a   : > { %v14194_v57 = vpop.permute.xlu0 %5523  ;;  %16895 = vst [vmem:[#allocation90_spill] sm:$0xff] %v14196_v8 }
 0x88b   : > { %4872 = vmax.xlane.f32.xlu0 %v4871_v39  ;;  %16894 = vst [vmem:[#allocation27_spill] sm:$0xff] %v14194_v57 }
 0x88d   : > { %4875 = vmax.xlane.f32.xlu1 %v4874_v53  ;;  %v14200_v4 = vpop.permute.xlu1 %5462 }
 0x88e   : > { %v14198_v58 = vpop.permute.xlu0 %5808  ;;  %16897 = vst [vmem:[#allocation92_spill] sm:$0xff] %v14200_v4 }
 0x88f   : > { %16896 = vst [vmem:[#allocation91_spill] sm:$0xff] %v14198_v58 }
 0x891   : > { %v14204_v39 = vpop.permute.xlu1 %5582 }
 0x892   : > { %v14202_v50 = vpop.permute.xlu0 %5584  ;;  %16899 = vst [vmem:[#allocation94_spill] sm:$0xff] %v14204_v39 }
 0x893   : > { %16898 = vst [vmem:[#allocation93_spill] sm:$0xff] %v14202_v50 }
 0x89e   : > { %5810 = vrot.lane.b32.xlu1 %v16893_v1, %s12016_s5 }
 0x8b0   : > { %v4795_v53 = vpop.xlane.xlu0 %4794 }
 0x8b1   : > { %v4885_v10 = vsub.f32 %v14015_v34, %v4795_v53  ;;  %v4789_v42 = vpop.xlane.xlu1 %4788 }
 0x8b2   : > { %v4883_v56 = vsub.f32 %v14020_v45, %v4789_v42 }
 0x8b3   : > { %v4919_v17 = vmul.f32 1.442695, %v4885_v10 }
 0x8b4   : > { %v4915_v1 = vmul.f32 1.442695, %v4883_v56  ;;  %v4792_v24 = vpop.xlane.xlu0 %4791 }
 0x8b5   : > { %11306 = vpow2.f32 %v4919_v17  ;;  %v4884_v57 = vsub.f32 %v14032_v30, %v4792_v24  ;;  %v4798_v8 = vpop.xlane.xlu1 %4797 }
 0x8b6   : > { %v4886_v58 = vsub.f32 %v14027_v18, %v4798_v8  ;;  %11308 = vpow2.f32 %v4915_v1 }
 0x8b7   : > { %v4917_v4 = vmul.f32 1.442695, %v4884_v57 }
 0x8b8   : > { %v4921_v50 = vmul.f32 1.442695, %v4886_v58 }
 0x8ba   : > { %11310 = vpow2.f32 %v4921_v50 }
 0x8bb   : > { %11312 = vpow2.f32 %v4917_v4 }
 0x8bf   : > { %v14210_v39 = vpop.eup %11306 }
 0x8c0   : > { %v4819_v34 = vpop.xlane.xlu0 %4818  ;;  %v4985_v42 = vsel %vm1289_vm0, %v14210_v39, 0.0  ;;  %v14214_v45 = vpop.eup %11308 }
 0x8c1   : > { %v4893_v17 = vsub.f32 %v14041_v60, %v4819_v34  ;;  %4986 = vadd.xlane.f32.xlu0 %v4985_v42  ;;  %v4979_v56 = vsel %vm1289_vm0, %v14214_v45, 0.0 }
 0x8c2   : > { %v4822_v24 = vpop.xlane.xlu1 %4821 }
 0x8c3   : > { %v4935_v30 = vmul.f32 1.442695, %v4893_v17  ;;  %v4894_v18 = vsub.f32 %v14044_v12, %v4822_v24 }
 0x8c4   : > { %v14218_v10 = vpop.eup %11310 }
 0x8c5   : > { %11314 = vpow2.f32 %v4935_v30  ;;  %v4937_v57 = vmul.f32 1.442695, %v4894_v18  ;;  %4980 = vadd.xlane.f32.xlu0 %v4979_v56  ;;  %v4988_v8 = vsel %vm1289_vm0, %v14218_v10, 0.0  ;;  %v14224_v58 = vpop.eup %11312 }
 0x8c6   : > { %4989 = vadd.xlane.f32.xlu1 %v4988_v8  ;;  %v4982_v60 = vsel %vm1289_vm0, %v14224_v58, 0.0 }
 0x8c7   : > { %11316 = vpow2.f32 %v4937_v57 }
 0x8ca   : > { %4983 = vadd.xlane.f32.xlu1 %v4982_v60 }
 0x8cf   : > { %v14228_v12 = vpop.eup %11314 }
 0x8d0   : > { %16900 = vst [vmem:[#allocation95_spill] sm:$0xff] %v14228_v12  ;;  %v5009_v4 = vsel %vm1289_vm0, %v14228_v12, 0.0 }
 0x8d1   : > { %v14232_v50 = vpop.eup %11316  ;;  %5010 = vadd.xlane.f32.xlu0 %v5009_v4 }
 0x8d2   : > { %v5012_v53 = vsel %vm1289_vm0, %v14232_v50, 0.0 }
 0x8d3   : > { %5013 = vadd.xlane.f32.xlu1 %v5012_v53 }
 0x8e4   : > { %v4807_v1 = vpop.xlane.xlu0 %4806 }
 0x8e5   : > { %v4889_v34 = vsub.f32 %v14059_v51, %v4807_v1 }
 0x8e6   : > { %v4810_v42 = vpop.xlane.xlu1 %4809 }
 0x8e7   : > { %v4927_v17 = vmul.f32 1.442695, %v4889_v34  ;;  %v4890_v24 = vsub.f32 %v14065_v22, %v4810_v42 }
 0x8e8   : > { %v4813_v30 = vpop.xlane.xlu0 %4812 }
 0x8e9   : > { %11318 = vpow2.f32 %v4927_v17  ;;  %v4929_v18 = vmul.f32 1.442695, %v4890_v24  ;;  %v4891_v56 = vsub.f32 %v14062_v7, %v4813_v30 }
 0x8ea   : > { %v4816_v57 = vpop.xlane.xlu1 %4815 }
 0x8eb   : > { %11320 = vpow2.f32 %v4929_v18  ;;  %v4931_v8 = vmul.f32 1.442695, %v4891_v56  ;;  %v4892_v60 = vsub.f32 %v14070_v14, %v4816_v57 }
 0x8ec   : > { %v4801_v4 = vpop.xlane.xlu0 %4800 }
 0x8ed   : > { %11322 = vpow2.f32 %v4931_v8  ;;  %v4933_v53 = vmul.f32 1.442695, %v4892_v60  ;;  %v4887_v12 = vsub.f32 %v14075_v37, %v4801_v4 }
 0x8ee   : > { %v4804_v51 = vpop.xlane.xlu1 %4803 }
 0x8ef   : > { %11324 = vpow2.f32 %v4933_v53  ;;  %v4923_v1 = vmul.f32 1.442695, %v4887_v12  ;;  %v4888_v22 = vsub.f32 %v14080_v5, %v4804_v51 }
 0x8f0   : > { %v4843_v34 = vpop.xlane.xlu0 %4842 }
 0x8f1   : > { %11326 = vpow2.f32 %v4923_v1  ;;  %v4925_v42 = vmul.f32 1.442695, %v4888_v22  ;;  %v4901_v7 = vsub.f32 %v14085_v26, %v4843_v34 }
 0x8f2   : > { %v4846_v17 = vpop.xlane.xlu1 %4845 }
 0x8f3   : > { %v14243_v24 = vpop.eup %11318  ;;  %11328 = vpow2.f32 %v4925_v42  ;;  %v4951_v14 = vmul.f32 1.442695, %v4901_v7  ;;  %v4902_v22 = vsub.f32 %v14090_v61, %v4846_v17 }
 0x8f4   : > { %v4831_v30 = vpop.xlane.xlu0 %4830  ;;  %v4997_v18 = vsel %vm1289_vm0, %v14243_v24, 0.0 }
 0x8f5   : > { %v14247_v37 = vpop.eup %11320  ;;  %11330 = vpow2.f32 %v4951_v14  ;;  %v4897_v12 = vsub.f32 %v14097_v47, %v4831_v30  ;;  %4998 = vadd.xlane.f32.xlu0 %v4997_v18 }
 0x8f6   : > { %v4834_v5 = vpop.xlane.xlu1 %4833  ;;  %v5000_v56 = vsel %vm1289_vm0, %v14247_v37, 0.0 }
 0x8f7   : > { %v14252_v26 = vpop.eup %11322  ;;  %v4943_v57 = vmul.f32 1.442695, %v4897_v12  ;;  %5001 = vadd.xlane.f32.xlu1 %v5000_v56  ;;  %v4953_v56 = vmul.f32 1.442695, %v4902_v22  ;;  %v4898_v61 = vsub.f32 %v14105_v29, %v4834_v5 }
 0x8f8   : > { %v4837_v8 = vpop.xlane.xlu0 %4836  ;;  %v5003_v60 = vsel %vm1289_vm0, %v14252_v26, 0.0 }
 0x8f9   : > { %v14256_v4 = vpop.eup %11324  ;;  %11332 = vpow2.f32 %v4943_v57  ;;  %v4899_v53 = vsub.f32 %v14102_v55, %v4837_v8  ;;  %5004 = vadd.xlane.f32.xlu0 %v5003_v60 }
 0x8fa   : > { %v4840_v47 = vpop.xlane.xlu1 %4839  ;;  %v5006_v51 = vsel %vm1289_vm0, %v14256_v4, 0.0 }
 0x8fb   : > { %v14261_v1 = vpop.eup %11326  ;;  %v4947_v34 = vmul.f32 1.442695, %v4899_v53  ;;  %5007 = vadd.xlane.f32.xlu1 %v5006_v51  ;;  %v4900_v53 = vsub.f32 %v14110_v49, %v4840_v47 }
 0x8fc   : > { %v4825_v42 = vpop.xlane.xlu0 %4824  ;;  %v4991_v7 = vsel %vm1289_vm0, %v14261_v1, 0.0 }
 0x8fd   : > { %v14266_v14 = vpop.eup %11328  ;;  %11334 = vpow2.f32 %v4947_v34  ;;  %v4895_v55 = vsub.f32 %v14115_v15, %v4825_v42  ;;  %4992 = vadd.xlane.f32.xlu0 %v4991_v7  ;;  %v4945_v15 = vmul.f32 1.442695, %v4898_v61  ;;  %v4949_v42 = vmul.f32 1.442695, %v4900_v53 }
 0x8fe   : > { %v4828_v30 = vpop.xlane.xlu1 %4827  ;;  %v4994_v18 = vsel %vm1289_vm0, %v14266_v14, 0.0 }
 0x8ff   : > { %v14271_v12 = vpop.eup %11330  ;;  %v4939_v17 = vmul.f32 1.442695, %v4895_v55  ;;  %4995 = vadd.xlane.f32.xlu1 %v4994_v18  ;;  %v4896_v29 = vsub.f32 %v14120_v41, %v4828_v30 }
 0x900   : > { %v4867_v57 = vpop.xlane.xlu0 %4866  ;;  %v5033_v8 = vsel %vm1289_vm0, %v14271_v12, 0.0 }
 0x901   : > { %11336 = vpow2.f32 %v4939_v17  ;;  %5034 = vadd.xlane.f32.xlu0 %v5033_v8  ;;  %v4941_v47 = vmul.f32 1.442695, %v4896_v29  ;;  %v4909_v61 = vsub.f32 %v14125_v13, %v4867_v57 }
 0x902   : > { %11338 = vpow2.f32 %v4953_v56  ;;  %v4870_v51 = vpop.xlane.xlu1 %4869 }
 0x903   : > { %v14276_v60 = vpop.eup %11332  ;;  %11340 = vpow2.f32 %v4945_v15  ;;  %v4910_v7 = vsub.f32 %v14130_v3, %v4870_v51  ;;  %v4967_v3 = vmul.f32 1.442695, %v4909_v61 }
 0x904   : > { %v4855_v34 = vpop.xlane.xlu0 %4854  ;;  %v5021_v22 = vsel %vm1289_vm0, %v14276_v60, 0.0  ;;  %11342 = vpow2.f32 %v4949_v42 }
 0x905   : > { %5022 = vadd.xlane.f32.xlu1 %v5021_v22  ;;  %v4969_v41 = vmul.f32 1.442695, %v4910_v7 }
 0x906   : > { %v4858_v15 = vpop.xlane.xlu1 %4857 }
 0x907   : > { %v14282_v5 = vpop.eup %11334 }
 0x908   : > { %v4861_v55 = vpop.xlane.xlu0 %4860  ;;  %v5027_v18 = vsel %vm1289_vm0, %v14282_v5, 0.0 }
 0x909   : > { %v4907_v49 = vsub.f32 %v14142_v9, %v4861_v55  ;;  %5028 = vadd.xlane.f32.xlu0 %v5027_v18  ;;  %v4905_v9 = vsub.f32 %v14137_v40, %v4855_v34  ;;  %v4906_v34 = vsub.f32 %v14145_v25, %v4858_v15 }
 0x90a   : > { %v4864_v7 = vpop.xlane.xlu1 %4863 }
 0x90b   : > { %v14288_v56 = vpop.eup %11336  ;;  %v4963_v30 = vmul.f32 1.442695, %v4907_v49  ;;  %v4959_v57 = vmul.f32 1.442695, %v4905_v9  ;;  %v4961_v61 = vmul.f32 1.442695, %v4906_v34 }
 0x90c   : > { %v5015_v17 = vsel %vm1289_vm0, %v14288_v56, 0.0  ;;  %v14293_v8 = vpop.eup %11338  ;;  %v4849_v53 = vpop.xlane.xlu0 %4848 }
 0x90d   : > { %11344 = vpow2.f32 %v4963_v30  ;;  %5016 = vadd.xlane.f32.xlu1 %v5015_v17  ;;  %v5036_v51 = vsel %vm1289_vm0, %v14293_v8, 0.0  ;;  %v14298_v13 = vpop.eup %11340  ;;  %v4903_v22 = vsub.f32 %v14155_v44, %v4849_v53 }
 0x90e   : > { %11346 = vpow2.f32 %v4941_v47  ;;  %v5024_v29 = vsel %vm1289_vm0, %v14298_v13, 0.0  ;;  %v14303_v42 = vpop.eup %11342  ;;  %v4852_v30 = vpop.xlane.xlu1 %4851 }
 0x90f   : > { %11348 = vpow2.f32 %v4969_v41  ;;  %v4955_v55 = vmul.f32 1.442695, %v4903_v22  ;;  %v5030_v49 = vsel %vm1289_vm0, %v14303_v42, 0.0  ;;  %v4908_v41 = vsub.f32 %v14150_v43, %v4864_v7 }
 0x910   : > { %11350 = vpow2.f32 %v4967_v3  ;;  %v4904_v53 = vsub.f32 %v14160_v2, %v4852_v30 }
 0x911   : > { %5037 = vadd.xlane.f32.xlu1 %v5036_v51  ;;  %11352 = vpow2.f32 %v4959_v57  ;;  %v4965_v15 = vmul.f32 1.442695, %v4908_v41 }
 0x912   : > { %11354 = vpow2.f32 %v4955_v55  ;;  %v4957_v57 = vmul.f32 1.442695, %v4904_v53 }
 0x913   : > { %11356 = vpow2.f32 %v4961_v61 }
 0x914   : > { %v4879_v9 = vpop.xlane.xlu0 %4878  ;;  %11358 = vpow2.f32 %v4965_v15 }
 0x915   : > { %5025 = vadd.xlane.f32.xlu1 %v5024_v29  ;;  %v4913_v22 = vsub.f32 %v14169_v62, %v4879_v9  ;;  %11360 = vpow2.f32 %v4957_v57 }
 0x916   : > { %v4882_v15 = vpop.xlane.xlu1 %4881 }
 0x917   : > { %v14305_v40 = vpop.eup %11344  ;;  %v4975_v55 = vmul.f32 1.442695, %v4913_v22  ;;  %v4914_v57 = vsub.f32 %v14175_v36, %v4882_v15 }
 0x918   : > { %v14308_v18 = vpop.eup %11346  ;;  %v5051_v44 = vsel %vm1289_vm0, %v14305_v40, 0.0  ;;  %v4873_v29 = vpop.xlane.xlu0 %4872 }
 0x919   : > { %v14314_v47 = vpop.eup %11348  ;;  %5031 = vadd.xlane.f32.xlu1 %v5030_v49  ;;  %5052 = vadd.xlane.f32.xlu0 %v5051_v44  ;;  %v5018_v25 = vsel %vm1289_vm0, %v14308_v18, 0.0  ;;  %v4911_v2 = vsub.f32 %v14172_v19, %v4873_v29  ;;  %11362 = vpow2.f32 %v4975_v55  ;;  %v16901_v19 = vld [vmem:[#allocation25_spill] sm:$0xff] }
 0x91a   : > { %v5060_v17 = vsel %vm1289_vm0, %v14314_v47, 0.0  ;;  %v14321_v3 = vpop.eup %11350  ;;  %v4876_v29 = vpop.xlane.xlu1 %4875 }
 0x91b   : > { %v5057_v43 = vsel %vm1289_vm0, %v14321_v3, 0.0  ;;  %v14326_v51 = vpop.eup %11352  ;;  %v4971_v61 = vmul.f32 1.442695, %v4911_v2  ;;  %v4912_v55 = vsub.f32 %v14180_v46, %v4876_v29 }
 0x91c   : > { %v5045_v7 = vsel %vm1289_vm0, %v14326_v51, 0.0  ;;  %v14331_v34 = vpop.eup %11354 }
 0x91d   : > { %5019 = vadd.xlane.f32.xlu1 %v5018_v25  ;;  %5061 = vadd.xlane.f32.xlu0 %v5060_v17  ;;  %v5039_v49 = vsel %vm1289_vm0, %v14331_v34, 0.0  ;;  %v14336_v44 = vpop.eup %11356  ;;  %11364 = vpow2.f32 %v4971_v61  ;;  %v4973_v2 = vmul.f32 1.442695, %v4912_v55 }
 0x91e   : > { %v5048_v62 = vsel %vm1289_vm0, %v14336_v44, 0.0  ;;  %v14340_v41 = vpop.eup %11358 }
 0x91f   : > { %v5054_v30 = vsel %vm1289_vm0, %v14340_v41, 0.0  ;;  %v14344_v25 = vpop.eup %11360 }
 0x920   : > { %v5042_v17 = vsel %vm1289_vm0, %v14344_v25, 0.0 }
 0x921   : > { %5058 = vadd.xlane.f32.xlu1 %v5057_v43 }
 0x923   : > { %v14350_v9 = vpop.eup %11362 }
 0x924   : > { %v5069_v53 = vsel %vm1289_vm0, %v14350_v9, 0.0 }
 0x925   : > { %5046 = vadd.xlane.f32.xlu1 %v5045_v7  ;;  %v4977_v7 = vmul.f32 1.442695, %v4914_v57 }
 0x927   : > { %v14354_v43 = vpop.eup %11364  ;;  %11366 = vpow2.f32 %v4977_v7 }
 0x928   : > { %v5063_v22 = vsel %vm1289_vm0, %v14354_v43, 0.0  ;;  %11368 = vpow2.f32 %v4973_v2 }
 0x929   : > { %5040 = vadd.xlane.f32.xlu1 %v5039_v49 }
 0x92d   : > { %5049 = vadd.xlane.f32.xlu1 %v5048_v62  ;;  %v14364_v62 = vpop.permute.xlu1 %5810 }
 0x931   : > { %5055 = vadd.xlane.f32.xlu1 %v5054_v30  ;;  %v14360_v49 = vpop.eup %11366 }
 0x932   : > { %v5072_v36 = vsel %vm1289_vm0, %v14360_v49, 0.0  ;;  %v14368_v30 = vpop.eup %11368 }
 0x933   : > { %5804 = vrot.lane.b32.xlu0 %v16901_v19, %s12016_s5 }
 0x935   : > { %5043 = vadd.xlane.f32.xlu1 %v5042_v17  ;;  %v5066_v17 = vsel %vm1289_vm0, %v14368_v30, 0.0 }
 0x939   : > { %5070 = vadd.xlane.f32.xlu1 %v5069_v53 }
 0x93d   : > { %5064 = vadd.xlane.f32.xlu1 %v5063_v22 }
 0x94e   : > { %5806 = vrot.lane.b32.xlu1 %v12494_v32, %s12016_s5  ;;  %v4987_v61 = vpop.xlane.xlu0 %4986 }
 0x952   : > { %5073 = vadd.xlane.f32.xlu0 %v5072_v36  ;;  %5879 = vrot.lane.b32.xlu1 %v12535_v28, %s12016_s5  ;;  %v4981_v46 = vpop.xlane.xlu0 %4980 }
 0x953   : > { %v4990_v19 = vpop.xlane.xlu1 %4989 }
 0x954   : > { %11370 = vrcp.f32 %v4990_v19  ;;  %v16913_v19 = vld [vmem:[#allocation45_spill] sm:$0xff] }
 0x955   : > { %11372 = vrcp.f32 %v4981_v46 }
 0x956   : > { %5067 = vadd.xlane.f32.xlu0 %v5066_v17  ;;  %5875 = vrot.lane.b32.xlu1 %v12539_v35, %s12016_s5  ;;  %11374 = vrcp.f32 %v4987_v61  ;;  %v16912_v61 = vld [vmem:[#allocation59_spill] sm:$0xff] }
 0x957   : > { %v4984_v32 = vpop.xlane.xlu1 %4983 }
 0x958   : > { %11376 = vrcp.f32 %v4984_v32 }
 0x95a   : > { %5948 = vrot.lane.b32.xlu1 %v16778_v6, %s12016_s5 }
 0x95e   : > { %5944 = vrot.lane.b32.xlu1 %v16785_v23, %s12016_s5  ;;  %v11371_v28 = vpop.eup %11370  ;;  %v5011_v23 = vpop.xlane.xlu0 %5010 }
 0x95f   : > { %v11373_v15 = vpop.eup %11372  ;;  %v5082_v22 = vmul.f32 %v11371_v28, %v14218_v10  ;;  %v16910_v10 = vld [vmem:[#allocation57_spill] sm:$0xff] }
 0x960   : > { %v11375_v53 = vpop.eup %11374  ;;  %v5076_v35 = vmul.f32 %v11373_v15, %v14214_v45  ;;  %v16914_v15 = vld [vmem:[#allocation24_spill] sm:$0xff] }
 0x961   : > { %v5080_v7 = vmul.f32 %v11375_v53, %v14210_v39 }
 0x962   : > { %v11377_v57 = vpop.eup %11376  ;;  %6017 = vrot.lane.b32.xlu1 %v12628_v59, %s12016_s5  ;;  %v16902_v59 = vld [vmem:[#allocation35_spill] sm:$0xff] }
 0x963   : > { %v5078_v29 = vmul.f32 %v11377_v57, %v14224_v58  ;;  %v5140_v6 = vpack.c.bf16 %v5082_v22, %v5080_v7  ;;  %v16911_v58 = vld [vmem:[#allocation36_spill] sm:$0xff] }
 0x965   : > { %v5139_v55 = vpack.c.bf16 %v5078_v29, %v5076_v35  ;;  %v16915_v35 = vld [vmem:[#allocation95_spill] sm:$0xff] }
 0x966   : > { %6013 = vrot.lane.b32.xlu1 %v16821_v33, %s12016_s5 }
 0x967   : > { %10540 = vmatprep.mubr.msk.bf16.mxu0 %vm1289_vm0, %v5139_v55 }
 0x968   : > { %10541 = vmatmul.mubr.msk.bf16.vlgmr.msra.gmra.mrb[120].mxu0 %vm1289_vm0, %v5140_v6  ;;  %v16916_v6 = vld [vmem:[#allocation43_spill] sm:$0xff] }
 0x969   : > { %10553 = vmatpush3.bf16.msra.mxu0 %v13937_v27  ;;  %v16908_v27 = vld [vmem:[#allocation51_spill] sm:$0xff] }
 0x96a   : > { %6086 = vrot.lane.b32.xlu1 %v16787_v31, %s12016_s5  ;;  %10554 = vmatprep.subr.bf16.mxu0 %v13949_v48  ;;  %v5014_v31 = vpop.xlane.xlu1 %5013 }
 0x96b   : > { %11378 = vrcp.f32 %v5014_v31  ;;  %v16917_v31 = vld [vmem:[#allocation26_spill] sm:$0xff] }
 0x96c   : > { %5877 = vrot.lane.b32.xlu0 %v16814_v20, %s12016_s5  ;;  %v16905_v20 = vld [vmem:[#allocation33_spill] sm:$0xff] }
 0x96d   : > { %10555 = vmatpush3.bf16.msra.mxu0 %v13949_v48  ;;  %v16909_v48 = vld [vmem:[#allocation38_spill] sm:$0xff] }
 0x96e   : > { %6082 = vrot.lane.b32.xlu1 %v16791_v52, %s12016_s5  ;;  %10568 = vmatprep.subr.bf16.mxu0 %v13955_v21  ;;  %v16904_v52 = vld [vmem:[#allocation44_spill] sm:$0xff] }
 0x970   : > { %5873 = vrot.lane.b32.xlu0 %v12514_v0, %s12016_s5  ;;  %v16903_v0 = vld [vmem:[#allocation29_spill] sm:$0xff] }
 0x972   : > { %6155 = vrot.lane.b32.xlu1 %v16826_v11, %s12016_s5 }
 0x974   : > { %5946 = vrot.lane.b32.xlu0 %v16902_v59, %s12016_s5 }
 0x975   : > { %v11379_v2 = vpop.eup %11378 }
 0x976   : > { %6151 = vrot.lane.b32.xlu1 %v16833_v63, %s12016_s5  ;;  %v5098_v32 = vmul.f32 %v11379_v2, %v14232_v50  ;;  %v16928_v2 = vld [vmem:[#allocation40_spill] sm:$0xff] }
 0x978   : > { %5942 = vrot.lane.b32.xlu0 %v16781_v38, %s12016_s5  ;;  %v16906_v38 = vld [vmem:[#allocation49_spill] sm:$0xff] }
 0x97a   : > { %6224 = vrot.lane.b32.xlu1 %v16792_v54, %s12016_s5  ;;  %v16907_v54 = vld [vmem:[#allocation34_spill] sm:$0xff] }
 0x97c   : > { %6015 = vrot.lane.b32.xlu0 %v12604_v16, %s12016_s5 }
 0x97e   : > { %6220 = vrot.lane.b32.xlu1 %v16903_v0, %s12016_s5 }
 0x980   : > { %6011 = vrot.lane.b32.xlu0 %v16904_v52, %s12016_s5 }
 0x982   : > { %6293 = vrot.lane.b32.xlu1 %v16905_v20, %s12016_s5  ;;  %v4999_v33 = vpop.xlane.xlu0 %4998 }
 0x984   : > { %v5002_v11 = vpop.xlane.xlu1 %5001  ;;  %6084 = vrot.lane.b32.xlu0 %v16906_v38, %s12016_s5 }
 0x986   : > { %6289 = vrot.lane.b32.xlu1 %v16907_v54, %s12016_s5  ;;  %v5005_v16 = vpop.xlane.xlu0 %5004  ;;  %v16920_v54 = vld [vmem:[#allocation31_spill] sm:$0xff] }
 0x987   : > { %11380 = vrcp.f32 %v5005_v16  ;;  %v16923_v16 = vld [vmem:[#allocation89_spill] sm:$0xff] }
 0x988   : > { %11382 = vrcp.f32 %v5011_v23  ;;  %v5008_v63 = vpop.xlane.xlu1 %5007  ;;  %6080 = vrot.lane.b32.xlu0 %v16908_v27, %s12016_s5  ;;  %v16925_v27 = vld [vmem:[#allocation32_spill] sm:$0xff] }
 0x989   : > { %11384 = vrcp.f32 %v5008_v63  ;;  %v16924_v63 = vld [vmem:[#allocation88_spill] sm:$0xff] }
 0x98a   : > { %11386 = vrcp.f32 %v5002_v11  ;;  %6724 = vrot.lane.b32.xlu1 %v16909_v48, %s12016_s5  ;;  %v4993_v39 = vpop.xlane.xlu0 %4992  ;;  %v16919_v11 = vld [vmem:[#allocation37_spill] sm:$0xff] }
 0x98b   : > { %11388 = vrcp.f32 %v4993_v39 }
 0x98c   : > { %11390 = vrcp.f32 %v4999_v33  ;;  %v4996_v45 = vpop.xlane.xlu1 %4995  ;;  %6153 = vrot.lane.b32.xlu0 %v16910_v10, %s12016_s5  ;;  %v16918_v33 = vld [vmem:[#allocation52_spill] sm:$0xff]  ;;  %v16927_v10 = vld [vmem:[#allocation42_spill] sm:$0xff] }
 0x98d   : > { %11392 = vrcp.f32 %v4996_v45  ;;  %v16926_v45 = vld [vmem:[#allocation90_spill] sm:$0xff] }
 0x98e   : > { %6726 = vrot.lane.b32.xlu1 %v16911_v58, %s12016_s5 }
 0x990   : > { %6149 = vrot.lane.b32.xlu0 %v16912_v61, %s12016_s5 }
 0x991   : > { %v11381_v36 = vpop.eup %11380 }
 0x992   : > { %v11383_v46 = vpop.eup %11382  ;;  %6846 = vrot.lane.b32.xlu1 %v16913_v19, %s12016_s5  ;;  %v5092_v53 = vmul.f32 %v11381_v36, %v14252_v26  ;;  %v5023_v55 = vpop.xlane.xlu1 %5022  ;;  %v16929_v36 = vld [vmem:[#allocation48_spill] sm:$0xff] }
 0x993   : > { %v11385_v17 = vpop.eup %11384  ;;  %v5096_v29 = vmul.f32 %v11383_v46, %v16915_v35 }
 0x994   : > { %v11387_v28 = vpop.eup %11386  ;;  %6222 = vrot.lane.b32.xlu0 %v16914_v15, %s12016_s5  ;;  %v5094_v57 = vmul.f32 %v11385_v17, %v14256_v4 }
 0x995   : > { %v11389_v22 = vpop.eup %11388  ;;  %v5090_v50 = vmul.f32 %v11387_v28, %v14247_v37  ;;  %v5144_v0 = vpack.c.bf16 %v5098_v32, %v5096_v29  ;;  %v16930_v28 = vld [vmem:[#allocation46_spill] sm:$0xff] }
 0x996   : > { %v11391_v7 = vpop.eup %11390  ;;  %6848 = vrot.lane.b32.xlu1 %v16916_v6, %s12016_s5  ;;  %v5143_v59 = vpack.c.bf16 %v5094_v57, %v5092_v53  ;;  %v5084_v26 = vmul.f32 %v11389_v22, %v14261_v1  ;;  %v16921_v1 = vld [vmem:[#allocation41_spill] sm:$0xff] }
 0x997   : > { %v11393_v23 = vpop.eup %11392  ;;  %v5088_v52 = vmul.f32 %v11391_v7, %v14243_v24  ;;  %v5035_v24 = vpop.xlane.xlu0 %5034 }
 0x998   : > { %6218 = vrot.lane.b32.xlu0 %v16917_v31, %s12016_s5  ;;  %10556 = vmatprep.mubr.msk.bf16.mxu0 %vm1289_vm0, %v5143_v59  ;;  %v5086_v4 = vmul.f32 %v11393_v23, %v14266_v14  ;;  %v16922_v14 = vld [vmem:[#allocation50_spill] sm:$0xff] }
 0x999   : > { %10557 = vmatmul.mubr.msk.bf16.vlgmr.msra.gmra.mrb[124].mxu0 %vm1289_vm0, %v5144_v0  ;;  %v5142_v38 = vpack.c.bf16 %v5090_v50, %v5088_v52 }
 0x99a   : > { %10569 = vmatpush3.bf16.msra.mxu0 %v13955_v21  ;;  %v5017_v20 = vpop.xlane.xlu1 %5016  ;;  %6968 = vrot.lane.b32.xlu1 %v16918_v33, %s12016_s5  ;;  %v5141_v37 = vpack.c.bf16 %v5086_v4, %v5084_v26  ;;  %v16934_v33 = vld [vmem:[#allocation94_spill] sm:$0xff] }
 0x99b   : > { %10570 = vmatprep.subr.bf16.mxu0 %v16919_v11  ;;  %v5029_v48 = vpop.xlane.xlu0 %5028 }
 0x99c   : > { %6291 = vrot.lane.b32.xlu0 %v16920_v54, %s12016_s5  ;;  %10548 = vmatprep.mubr.msk.bf16.mxu1 %vm1289_vm0, %v5141_v37 }
 0x99d   : > { %10549 = vmatmul.mubr.msk.bf16.vlgmr.msra.gmra.mrb[136].mxu1 %vm1289_vm0, %v5142_v38 }
 0x99e   : > { %10561 = vmatpush3.bf16.msra.mxu1 %v16921_v1  ;;  %10571 = vmatpush3.bf16.msra.mxu0 %v16919_v11  ;;  %v5038_v21 = vpop.xlane.xlu1 %5037 }
 0x99f   : > { %6970 = vrot.lane.b32.xlu1 %v16922_v14, %s12016_s5  ;;  %10562 = vmatprep.subr.bf16.mxu1 %v16923_v16  ;;  %11394 = vrcp.f32 %v5038_v21 }
 0x9a0   : > { %10584 = vmatprep.subr.bf16.mxu0 %v16924_v63  ;;  %6287 = vrot.lane.b32.xlu0 %v16925_v27, %s12016_s5  ;;  %11396 = vrcp.f32 %v5029_v48 }
 0x9a1   : > { %11398 = vrcp.f32 %v5035_v24 }
 0x9a2   : > { %10563 = vmatpush3.bf16.msra.mxu1 %v16923_v16  ;;  %v5026_v39 = vpop.xlane.xlu1 %5025 }
 0x9a3   : > { %10576 = vmatprep.subr.bf16.mxu1 %v16926_v45 }
 0x9a4   : > { %6785 = vrot.lane.b32.xlu0 %v16927_v10, %s12016_s5 }
 0x9a6   : > { %v5032_v58 = vpop.xlane.xlu1 %5031  ;;  %v5053_v0 = vpop.xlane.xlu0 %5052 }
 0x9a7   : > { %11400 = vrcp.f32 %v5032_v58 }
 0x9a8   : > { %11402 = vrcp.f32 %v5026_v39  ;;  %6787 = vrot.lane.b32.xlu0 %v16928_v2, %s12016_s5 }
 0x9a9   : > { %11404 = vrcp.f32 %v5017_v20  ;;  %v11395_v46 = vpop.eup %11394 }
 0x9aa   : > { %11406 = vrcp.f32 %v5023_v55  ;;  %v5020_v61 = vpop.xlane.xlu1 %5019  ;;  %v11397_v17 = vpop.eup %11396  ;;  %v5114_v53 = vmul.f32 %v11395_v46, %v14293_v8 }
 0x9ab   : > { %11408 = vrcp.f32 %v5020_v61  ;;  %v11399_v32 = vpop.eup %11398  ;;  %v5108_v35 = vmul.f32 %v11397_v17, %v14282_v5  ;;  %v5062_v20 = vpop.xlane.xlu0 %5061 }
 0x9ac   : > { %6907 = vrot.lane.b32.xlu0 %v16929_v36, %s12016_s5  ;;  %v5112_v55 = vmul.f32 %v11399_v32, %v14271_v12 }
 0x9ae   : > { %v5059_v19 = vpop.xlane.xlu1 %5058  ;;  %v5148_v31 = vpack.c.bf16 %v5114_v53, %v5112_v55 }
 0x9af   : > { %11410 = vrcp.f32 %v5059_v19  ;;  %v5805_v19 = vpop.permute.xlu0 %5804 }
 0x9b0   : > { %6909 = vrot.lane.b32.xlu0 %v16930_v28, %s12016_s5  ;;  %11412 = vrcp.f32 %v5053_v0 }
 0x9b1   : > { %v11401_v15 = vpop.eup %11400  ;;  %11414 = vrcp.f32 %v5062_v20 }
 0x9b2   : > { %v11403_v57 = vpop.eup %11402  ;;  %v5047_v22 = vpop.xlane.xlu1 %5046  ;;  %v5110_v29 = vmul.f32 %v11401_v15, %v14303_v42  ;;  %v16931_v42 = vld [vmem:[#allocation27_spill] sm:$0xff] }
 0x9b3   : > { %v11405_v7 = vpop.eup %11404  ;;  %v5106_v50 = vmul.f32 %v11403_v57, %v14298_v13 }
 0x9b4   : > { %v11407_v6 = vpop.eup %11406  ;;  %v5147_v59 = vpack.c.bf16 %v5110_v29, %v5108_v35  ;;  %v5100_v8 = vmul.f32 %v11405_v7, %v14288_v56  ;;  %v16933_v56 = vld [vmem:[#allocation91_spill] sm:$0xff] }
 0x9b5   : > { %v11409_v23 = vpop.eup %11408  ;;  %v5104_v5 = vmul.f32 %v11407_v6, %v14276_v60  ;;  %v16932_v60 = vld [vmem:[#allocation92_spill] sm:$0xff] }
 0x9b6   : > { %v5041_v26 = vpop.xlane.xlu1 %5040  ;;  %10572 = vmatprep.mubr.msk.bf16.mxu0 %vm1289_vm0, %v5147_v59  ;;  %v5102_v4 = vmul.f32 %v11409_v23, %v14308_v18 }
 0x9b7   : > { %10573 = vmatmul.mubr.msk.bf16.vlgmr.msra.gmra.mrb[128].mxu0 %vm1289_vm0, %v5148_v31  ;;  %v5146_v52 = vpack.c.bf16 %v5106_v50, %v5104_v5 }
 0x9b8   : > { %10585 = vmatpush3.bf16.msra.mxu0 %v16924_v63  ;;  %v5145_v12 = vpack.c.bf16 %v5102_v4, %v5100_v8 }
 0x9b9   : > { %10586 = vmatprep.subr.bf16.mxu0 %v16931_v42  ;;  %v11411_v11 = vpop.eup %11410 }
 0x9ba   : > { %v5050_v13 = vpop.xlane.xlu1 %5049  ;;  %10564 = vmatprep.mubr.msk.bf16.mxu1 %vm1289_vm0, %v5145_v12  ;;  %v11413_v54 = vpop.eup %11412  ;;  %v5128_v21 = vmul.f32 %v11411_v11, %v14321_v3 }
 0x9bb   : > { %10565 = vmatmul.mubr.msk.bf16.vlgmr.msra.gmra.mrb[140].mxu1 %vm1289_vm0, %v5146_v52  ;;  %v11415_v24 = vpop.eup %11414  ;;  %v5124_v63 = vmul.f32 %v11413_v54, %v14305_v40 }
 0x9bc   : > { %10577 = vmatpush3.bf16.msra.mxu1 %v16926_v45  ;;  %10587 = vmatpush3.bf16.msra.mxu0 %v16931_v42  ;;  %v5130_v39 = vmul.f32 %v11415_v24, %v14314_v47  ;;  %v5819_v47 = vsel %vm1289_vm0, %v16933_v56, 0 }
 0x9bd   : > { %10578 = vmatprep.subr.bf16.mxu1 %v16932_v60  ;;  %10840 = vmatprep.subr.msk.bf16.mxu0 %vm1289_vm0, %v16933_v56 }
 0x9be   : > { %v5056_v18 = vpop.xlane.xlu1 %5055  ;;  %v5152_v61 = vpack.c.bf16 %v5130_v39, %v5128_v21 }
 0x9bf   : > { %11416 = vrcp.f32 %v5056_v18 }
 0x9c0   : > { %11418 = vrcp.f32 %v5050_v13  ;;  %10579 = vmatpush3.bf16.msra.mxu1 %v16932_v60 }
 0x9c1   : > { %11420 = vrcp.f32 %v5041_v26  ;;  %10592 = vmatprep.subr.bf16.mxu1 %v16934_v33 }
 0x9c2   : > { %11422 = vrcp.f32 %v5047_v22  ;;  %v5044_v37 = vpop.xlane.xlu1 %5043 }
 0x9c3   : > { %11424 = vrcp.f32 %v5044_v37 }
 0x9c6   : > { %v5071_v38 = vpop.xlane.xlu1 %5070 }
 0x9c9   : > { %v11417_v1 = vpop.eup %11416 }
 0x9ca   : > { %v11419_v14 = vpop.eup %11418  ;;  %v5065_v16 = vpop.xlane.xlu1 %5064  ;;  %v5126_v27 = vmul.f32 %v11417_v1, %v14340_v41 }
 0x9cb   : > { %v11421_v48 = vpop.eup %11420  ;;  %v5122_v2 = vmul.f32 %v11419_v14, %v14336_v44 }
 0x9cc   : > { %v11423_v45 = vpop.eup %11422  ;;  %v5151_v10 = vpack.c.bf16 %v5126_v27, %v5124_v63  ;;  %v5116_v3 = vmul.f32 %v11421_v48, %v14331_v34 }
 0x9cd   : > { %v11425_v58 = vpop.eup %11424  ;;  %v5120_v40 = vmul.f32 %v11423_v45, %v14326_v51  ;;  %v16935_v51 = vld [vmem:[#allocation93_spill] sm:$0xff] }
 0x9ce   : > { %v5807_v36 = vpop.permute.xlu1 %5806  ;;  %10588 = vmatprep.mubr.msk.bf16.mxu0 %vm1289_vm0, %v5151_v10  ;;  %v5118_v46 = vmul.f32 %v11425_v58, %v14344_v25  ;;  %v5822_v25 = vsel %vm1289_vm0, %v14364_v62, 0 }
 0x9cf   : > { %10589 = vmatmul.mubr.msk.bf16.vlgmr.msra.gmra.mrb[132].mxu0 %vm1289_vm0, %v5152_v61  ;;  %v5150_v41 = vpack.c.bf16 %v5122_v2, %v5120_v40 }
 0x9d0   : > { %10601 = vmatpush3.bf16.xpose.msra.mxu0 %v5819_v47  ;;  %10604 = vmatprep.mubr.msk.bf16.mxu0 %vm1289_vm0, %v5805_v19  ;;  %v5149_v44 = vpack.c.bf16 %v5118_v46, %v5116_v3 }
 0x9d1   : > { %10841 = vmatprep.subr.msk.bf16.mxu0 %vm1289_vm0, %v14364_v62 }
 0x9d2   : > { %v5880_v17 = vpop.permute.xlu1 %5879  ;;  %10580 = vmatprep.mubr.msk.bf16.mxu1 %vm1289_vm0, %v5149_v44 }
 0x9d3   : > { %10581 = vmatmul.mubr.msk.bf16.vlgmr.msra.gmra.mrb[144].mxu1 %vm1289_vm0, %v5150_v41  ;;  %v5891_v20 = vsel %vm1289_vm0, %v5880_v17, 0 }
 0x9d4   : > { %10593 = vmatpush3.bf16.msra.mxu1 %v16934_v33 }
 0x9d5   : > { %10594 = vmatprep.subr.bf16.mxu1 %v16935_v51 }
 0x9d6   : > { %v5876_v34 = vpop.permute.xlu1 %5875 }
 0x9d8   : > { %10595 = vmatpush3.bf16.msra.mxu1 %v16935_v51  ;;  %10603 = vmatpush3.bf16.xpose.msra.mxu0 %v5822_v25 }
 0x9da   : > { %v5949_v32 = vpop.permute.xlu1 %5948 }
 0x9db   : > { %v5960_v42 = vsel %vm1289_vm0, %v5949_v32, 0 }
 0x9de   : > { %v5945_v28 = vpop.permute.xlu1 %5944 }
 0x9df   : > { %10605 = vmatmul.mubr.msk.bf16.vlgmr.msra.gmra.mrb[136].mxu0 %vm1289_vm0, %v5807_v36  ;;  %v5074_v15 = vpop.xlane.xlu0 %5073 }
 0x9e0   : > { %11426 = vrcp.f32 %v5074_v15 }
 0x9e1   : > { %11428 = vrcp.f32 %v5065_v16 }
 0x9e2   : > { %v6018_v53 = vpop.permute.xlu1 %6017  ;;  %11430 = vrcp.f32 %v5071_v38 }
 0x9e3   : > { %v5068_v57 = vpop.xlane.xlu0 %5067  ;;  %v6029_v1 = vsel %vm1289_vm0, %v6018_v53, 0 }
 0x9e4   : > { %11432 = vrcp.f32 %v5068_v57 }
 0x9e6   : > { %v14522_v22 = vpop.permute.xlu1 %6013 }
 0x9e7   : > { %v5878_v35 = vpop.permute.xlu0 %5877 }
 0x9e8   : > { %10842 = vmatprep.subr.msk.bf16.mxu1 %vm1289_vm0, %v5878_v35 }
 0x9ea   : > { %v6087_v62 = vpop.permute.xlu1 %6086  ;;  %v11427_v29 = vpop.eup %11426 }
 0x9eb   : > { %v5874_v7 = vpop.permute.xlu0 %5873  ;;  %v11429_v55 = vpop.eup %11428  ;;  %v5138_v23 = vmul.f32 %v11427_v29, %v14360_v49  ;;  %v6098_v54 = vsel %vm1289_vm0, %v6087_v62, 0 }
 0x9ec   : > { %v11431_v6 = vpop.eup %11430  ;;  %v5132_v31 = vmul.f32 %v11429_v55, %v14354_v43  ;;  %v5888_v43 = vsel %vm1289_vm0, %v5878_v35, 0 }
 0x9ed   : > { %v5136_v8 = vmul.f32 %v11431_v6, %v14350_v9 }
 0x9ee   : > { %v11433_v59 = vpop.eup %11432  ;;  %v6083_v50 = vpop.permute.xlu1 %6082 }
 0x9ef   : > { %v5947_v0 = vpop.permute.xlu0 %5946  ;;  %v5134_v26 = vmul.f32 %v11433_v59, %v14368_v30  ;;  %v5154_v12 = vpack.c.bf16 %v5138_v23, %v5136_v8 }
 0x9f0   : > { %10844 = vmatprep.subr.msk.bf16.mxu0 %vm1289_vm0, %v5947_v0  ;;  %v5957_v4 = vsel %vm1289_vm0, %v5947_v0, 0 }
 0x9f1   : > { %10617 = vmatpush3.bf16.xpose.msra.mxu0 %v5957_v4  ;;  %v5153_v5 = vpack.c.bf16 %v5134_v26, %v5132_v31 }
 0x9f2   : > { %10845 = vmatprep.subr.msk.bf16.mxu0 %vm1289_vm0, %v5949_v32  ;;  %v6156_v30 = vpop.permute.xlu1 %6155 }
 0x9f3   : > { %10596 = vmatprep.mubr.msk.bf16.mxu1 %vm1289_vm0, %v5153_v5  ;;  %v5943_v49 = vpop.permute.xlu0 %5942  ;;  %v6167_v10 = vsel %vm1289_vm0, %v6156_v30, 0 }
 0x9f4   : > { %10597 = vmatmul.mubr.msk.bf16.vlgmr.msra.gmra.mrb[148].mxu1 %vm1289_vm0, %v5154_v12  ;;  %10620 = vmatprep.mubr.msk.bf16.mxu0 %vm1289_vm0, %v5943_v49 }
 0x9f5   : > { %10609 = vmatpush3.bf16.xpose.msra.mxu1 %v5888_v43  ;;  %10612 = vmatprep.mubr.msk.bf16.mxu1 %vm1289_vm0, %v5874_v7  ;;  %v14635_v43 = vld [vmem:[#allocation4 + $0x10] sm:$0xff] }
 0x9f6   : > { %10843 = vmatprep.subr.msk.bf16.mxu1 %vm1289_vm0, %v5880_v17  ;;  %v6152_v52 = vpop.permute.xlu1 %6151 }
 0x9f7   : > { %v6016_v9 = vpop.permute.xlu0 %6015 }
 0x9f8   : > { %v6026_v37 = vsel %vm1289_vm0, %v6016_v9, 0 }
 0x9f9   : > { %10619 = vmatpush3.bf16.xpose.msra.mxu0 %v5960_v42 }
 0x9fa   : > { %v6225_v18 = vpop.permute.xlu1 %6224 }
 0x9fb   : > { %v6012_v13 = vpop.permute.xlu0 %6011  ;;  %v6236_v39 = vsel %vm1289_vm0, %v6225_v18, 0 }
 0x9fd   : > { %10611 = vmatpush3.bf16.xpose.msra.mxu1 %v5891_v20 }
 0x9fe   : > { %10846 = vmatprep.subr.msk.bf16.mxu1 %vm1289_vm0, %v6016_v9  ;;  %v6221_v11 = vpop.permute.xlu1 %6220 }
 0x9ff   : > { %v6085_v60 = vpop.permute.xlu0 %6084 }
 0xa00   : > { %10621 = vmatmul.mubr.msk.bf16.vlgmr.msra.gmra.mrb[140].mxu0 %vm1289_vm0, %v5945_v28  ;;  %10848 = vmatprep.subr.msk.bf16.mxu0 %vm1289_vm0, %v6085_v60  ;;  %v6095_v56 = vsel %vm1289_vm0, %v6085_v60, 0 }
 0xa01   : > { %10633 = vmatpush3.bf16.xpose.msra.mxu0 %v6095_v56  ;;  %v14647_v56 = vld [vmem:[#allocation4 + $0x8] sm:$0xff] }
 0xa02   : > { %10849 = vmatprep.subr.msk.bf16.mxu0 %vm1289_vm0, %v6087_v62  ;;  %v6294_v21 = vpop.permute.xlu1 %6293 }
 0xa03   : > { %v6081_v33 = vpop.permute.xlu0 %6080  ;;  %v6305_v46 = vsel %vm1289_vm0, %v6294_v21, 0 }
 0xa04   : > { %10613 = vmatmul.mubr.msk.bf16.vlgmr.msra.gmra.mrb[152].mxu1 %vm1289_vm0, %v5876_v34  ;;  %10636 = vmatprep.mubr.msk.bf16.mxu0 %vm1289_vm0, %v6081_v33 }
 0xa05   : > { %10625 = vmatpush3.bf16.xpose.msra.mxu1 %v6026_v37  ;;  %10628 = vmatprep.mubr.msk.bf16.mxu1 %vm1289_vm0, %v6012_v13  ;;  %v14654_v37 = vld [vmem:[#allocation4 + $0x18] sm:$0xff] }
 0xa06   : > { %10847 = vmatprep.subr.msk.bf16.mxu1 %vm1289_vm0, %v6018_v53  ;;  %v6290_v63 = vpop.permute.xlu1 %6289 }
 0xa07   : > { %v6154_v38 = vpop.permute.xlu0 %6153 }
 0xa08   : > { %v6164_v48 = vsel %vm1289_vm0, %v6154_v38, 0 }
 0xa09   : > { %10635 = vmatpush3.bf16.xpose.msra.mxu0 %v6098_v54 }
 0xa0a   : > { %v6725_v45 = vpop.permute.xlu1 %6724 }
 0xa0b   : > { %v6150_v24 = vpop.permute.xlu0 %6149 }
 0xa0d   : > { %10627 = vmatpush3.bf16.xpose.msra.mxu1 %v6029_v1 }
 0xa0e   : > { %10850 = vmatprep.subr.msk.bf16.mxu1 %vm1289_vm0, %v6154_v38  ;;  %v6727_v2 = vpop.permute.xlu1 %6726 }
 0xa0f   : > { %v6223_v14 = vpop.permute.xlu0 %6222 }
 0xa10   : > { %10637 = vmatmul.mubr.msk.bf16.vlgmr.msra.gmra.mrb[144].mxu0 %vm1289_vm0, %v6083_v50  ;;  %10852 = vmatprep.subr.msk.bf16.mxu0 %vm1289_vm0, %v6223_v14  ;;  %v6233_v16 = vsel %vm1289_vm0, %v6223_v14, 0 }
 0xa11   : > { %10649 = vmatpush3.bf16.xpose.msra.mxu0 %v6233_v16 }
 0xa12   : > { %10853 = vmatprep.subr.msk.bf16.mxu0 %vm1289_vm0, %v6225_v18  ;;  %v14570_v3 = vpop.permute.xlu1 %6846 }
 0xa13   : > { %v6219_v27 = vpop.permute.xlu0 %6218 }
 0xa14   : > { %10629 = vmatmul.mubr.msk.bf16.vlgmr.msra.gmra.mrb[156].mxu1 %vm1289_vm0, %v14522_v22  ;;  %10652 = vmatprep.mubr.msk.bf16.mxu0 %vm1289_vm0, %v6219_v27 }
 0xa15   : > { %10641 = vmatpush3.bf16.xpose.msra.mxu1 %v6164_v48  ;;  %10644 = vmatprep.mubr.msk.bf16.mxu1 %vm1289_vm0, %v6150_v24 }
 0xa16   : > { %10851 = vmatprep.subr.msk.bf16.mxu1 %vm1289_vm0, %v6156_v30 }
 0xa17   : > { %v6292_v58 = vpop.permute.xlu0 %6291 }
 0xa18   : > { %v6302_v36 = vsel %vm1289_vm0, %v6292_v58, 0 }
 0xa19   : > { %10651 = vmatpush3.bf16.xpose.msra.mxu0 %v6236_v39 }
 0xa1a   : > { %10664 = vmatprep.subr.bf16.mxu0 %v6725_v45 }
 0xa1b   : > { %v6288_v61 = vpop.permute.xlu0 %6287 }
 0xa1d   : > { %10643 = vmatpush3.bf16.xpose.msra.mxu1 %v6167_v10 }
 0xa1e   : > { %10854 = vmatprep.subr.msk.bf16.mxu1 %vm1289_vm0, %v6292_v58 }
 0xa1f   : > { %v6786_v19 = vpop.permute.xlu0 %6785 }
 0xa20   : > { %10653 = vmatmul.mubr.msk.bf16.vlgmr.msra.gmra.mrb[148].mxu0 %vm1289_vm0, %v6221_v11 }
 0xa21   : > { %10665 = vmatpush3.bf16.msra.mxu0 %v6725_v45 }
 0xa22   : > { %10666 = vmatprep.subr.bf16.mxu0 %v6727_v2 }
 0xa23   : > { %v6788_v40 = vpop.permute.xlu0 %6787 }
 0xa24   : > { %10645 = vmatmul.mubr.msk.bf16.vlgmr.msra.gmra.mrb[160].mxu1 %vm1289_vm0, %v6152_v52  ;;  %v14640_v52 = vld [vmem:[#allocation4] sm:$0xff] }
 0xa25   : > { %10657 = vmatpush3.bf16.xpose.msra.mxu1 %v6302_v36  ;;  %10660 = vmatprep.mubr.msk.bf16.mxu1 %vm1289_vm0, %v6288_v61 }
 0xa26   : > { %10855 = vmatprep.subr.msk.bf16.mxu1 %vm1289_vm0, %v6294_v21  ;;  %10667 = vmatpush3.bf16.msra.mxu0 %v6727_v2 }
 0xa27   : > { %10680 = vmatprep.subr.bf16.mxu0 %v14570_v3  ;;  %v14576_v47 = vpop.permute.xlu0 %6907 }
 0xa2d   : > { %10659 = vmatpush3.bf16.xpose.msra.mxu1 %v6305_v46 }
 0xa2e   : > { %10672 = vmatprep.subr.bf16.mxu1 %v6786_v19 }
 0xa34   : > { %10661 = vmatmul.mubr.msk.bf16.vlgmr.msra.gmra.mrb[164].mxu1 %vm1289_vm0, %v6290_v63 }
 0xa35   : > { %10673 = vmatpush3.bf16.msra.mxu1 %v6786_v19 }
 0xa36   : > { %10674 = vmatprep.subr.bf16.mxu1 %v6788_v40 }
 0xa39   : > { %10675 = vmatpush3.bf16.msra.mxu1 %v6788_v40 }
 0xa3a   : > { %10688 = vmatprep.subr.bf16.mxu1 %v14576_v47 }
 0xa3b   : > { %v14579_v44 = vpop.f32.mrb[120].mxu0 }
 0xa3c   : > { %v14581_v41 = vpop.f32.mrb[121].mxu0 }
 0xa3d   : > { %v14583_v17 = vpop.f32.mrb[122].mxu0 }
 0xa3e   : > { %v14585_v51 = vpop.f32.mrb[123].mxu0 }
 0xa6c   : > { %v14587_v34 = vpop.f32.mrb[124].mxu0 }
 0xa6d   : > { %v14589_v25 = vpop.f32.mrb[125].mxu0 }
 0xa6e   : > { %v14591_v32 = vpop.f32.mrb[126].mxu0 }
 0xa6f   : > { %16936 = vst [vmem:[#allocation25_spill] sm:$0xff] %v14591_v32  ;;  %v14593_v28 = vpop.f32.mrb[127].mxu0 }
 0xa70   : > { %v14595_v15 = vpop.f32.mrb[136].mxu1 }
 0xa71   : > { %v14597_v53 = vpop.f32.mrb[137].mxu1 }
 0xa72   : > { %v14599_v57 = vpop.f32.mrb[138].mxu1 }
 0xa73   : > { %v14601_v22 = vpop.f32.mrb[139].mxu1 }
 0xa8a   : > { %v14603_v35 = vpop.f32.mrb[128].mxu0 }
 0xa8b   : > { %16937 = vst [vmem:[#allocation35_spill] sm:$0xff] %v14603_v35  ;;  %v14605_v62 = vpop.f32.mrb[129].mxu0 }
 0xa8c   : > { %16938 = vst [vmem:[#allocation29_spill] sm:$0xff] %v14605_v62  ;;  %v14607_v29 = vpop.f32.mrb[130].mxu0 }
 0xa8d   : > { %16939 = vst [vmem:[#allocation44_spill] sm:$0xff] %v14607_v29  ;;  %v14609_v7 = vpop.f32.mrb[131].mxu0 }
 0xa8e   : > { %16940 = vst [vmem:[#allocation33_spill] sm:$0xff] %v14609_v7  ;;  %v14611_v55 = vpop.f32.mrb[140].mxu1 }
 0xa8f   : > { %16941 = vst [vmem:[#allocation49_spill] sm:$0xff] %v14611_v55  ;;  %v14613_v6 = vpop.f32.mrb[141].mxu1 }
 0xa90   : > { %16942 = vst [vmem:[#allocation34_spill] sm:$0xff] %v14613_v6  ;;  %v14615_v59 = vpop.f32.mrb[142].mxu1 }
 0xa91   : > { %16943 = vst [vmem:[#allocation51_spill] sm:$0xff] %v14615_v59  ;;  %v14617_v23 = vpop.f32.mrb[143].mxu1 }
 0xa92   : > { %16944 = vst [vmem:[#allocation38_spill] sm:$0xff] %v14617_v23 }
 0xaa2   : > { %v14619_v50 = vpop.f32.mrb[132].mxu0 }
 0xaa3   : > { %16945 = vst [vmem:[#allocation57_spill] sm:$0xff] %v14619_v50  ;;  %v14621_v0 = vpop.f32.mrb[133].mxu0 }
 0xaa4   : > { %16946 = vst [vmem:[#allocation36_spill] sm:$0xff] %v14621_v0  ;;  %v14623_v31 = vpop.f32.mrb[134].mxu0 }
 0xaa5   : > { %16947 = vst [vmem:[#allocation59_spill] sm:$0xff] %v14623_v31  ;;  %v14625_v26 = vpop.f32.mrb[135].mxu0 }
 0xaa6   : > { %16948 = vst [vmem:[#allocation45_spill] sm:$0xff] %v14625_v26  ;;  %v14627_v8 = vpop.f32.mrb[144].mxu1 }
 0xaa7   : > { %16949 = vst [vmem:[#allocation24_spill] sm:$0xff] %v14627_v8  ;;  %v14629_v4 = vpop.f32.mrb[145].mxu1 }
 0xaa8   : > { %16950 = vst [vmem:[#allocation95_spill] sm:$0xff] %v14629_v4  ;;  %v14631_v5 = vpop.f32.mrb[146].mxu1 }
 0xaa9   : > { %16951 = vst [vmem:[#allocation43_spill] sm:$0xff] %v14631_v5  ;;  %v14633_v12 = vpop.f32.mrb[147].mxu1 }
 0xaaa   : > { %16952 = vst [vmem:[#allocation26_spill] sm:$0xff] %v14633_v12 }
 0xab2   : > { %v10606_v49 = vpop.f32.mrb[136].mxu0 }
 0xab3   : > { %v14638_v30 = vadd.f32 %v14635_v43, %v10606_v49  ;;  %v5858_v9 = vpop.f32.mrb[137].mxu0 }
 0xab4   : > { %v10607_v42 = vpop.f32.mrb[138].mxu0  ;;  %v14643_v13 = vadd.f32 %v14640_v52, %v5858_v9 }
 0xab5   : > { %v5861_v20 = vpop.f32.mrb[139].mxu0  ;;  %v6362_v60 = vsel %vm1289_vm0, %v14638_v30, -inf  ;;  %v14657_v11 = vadd.f32 %v14654_v37, %v10607_v42 }
 0xab6   : > { %v14650_v18 = vadd.f32 %v14647_v56, %v5861_v20  ;;  %6363 = vmax.xlane.f32.xlu0 %v6362_v60  ;;  %v6356_v38 = vsel %vm1289_vm0, %v14643_v13, -inf }
 0xab7   : > { %v6365_v54 = vsel %vm1289_vm0, %v14657_v11, -inf }
 0xab8   : > { %v6359_v33 = vsel %vm1289_vm0, %v14650_v18, -inf }
 0xab9   : > { %6360 = vmax.xlane.f32.xlu1 %v6359_v33 }
 0xaba   : > { %6357 = vmax.xlane.f32.xlu0 %v6356_v38 }
 0xabe   : > { %6366 = vmax.xlane.f32.xlu0 %v6365_v54 }
 0xac7   : > { %v14663_v24 = vpop.f32.mrb[148].mxu1 }
 0xac8   : > { %16953 = vst [vmem:[#allocation52_spill] sm:$0xff] %v14663_v24  ;;  %v14665_v1 = vpop.f32.mrb[149].mxu1 }
 0xac9   : > { %16954 = vst [vmem:[#allocation37_spill] sm:$0xff] %v14665_v1  ;;  %v14667_v21 = vpop.f32.mrb[150].mxu1 }
 0xaca   : > { %16955 = vst [vmem:[#allocation31_spill] sm:$0xff] %v14667_v21  ;;  %v14669_v14 = vpop.f32.mrb[151].mxu1 }
 0xacb   : > { %16956 = vst [vmem:[#allocation41_spill] sm:$0xff] %v14669_v14 }
 0xad3   : > { %v10622_v16 = vpop.f32.mrb[140].mxu0 }
 0xad4   : > { %v5996_v63 = vpop.f32.mrb[141].mxu0  ;;  %v14675_v2 = vadd.f32 %v14635_v43, %v10622_v16 }
 0xad5   : > { %v10623_v27 = vpop.f32.mrb[142].mxu0  ;;  %v14698_v60 = vadd.f32 %v14640_v52, %v5996_v63 }
 0xad6   : > { %v5999_v48 = vpop.f32.mrb[143].mxu0  ;;  %v14683_v19 = vadd.f32 %v14654_v37, %v10623_v27  ;;  %v6386_v9 = vsel %vm1289_vm0, %v14675_v2, -inf }
 0xad7   : > { %v10614_v39 = vpop.f32.mrb[152].mxu1  ;;  %v14703_v54 = vadd.f32 %v14647_v56, %v5999_v48 }
 0xad8   : > { %v14672_v45 = vadd.f32 %v14635_v43, %v10614_v39  ;;  %v5927_v10 = vpop.f32.mrb[153].mxu1  ;;  %v6389_v20 = vsel %vm1289_vm0, %v14683_v19, -inf }
 0xad9   : > { %v10615_v58 = vpop.f32.mrb[154].mxu1  ;;  %v14688_v49 = vadd.f32 %v14640_v52, %v5927_v10  ;;  %v6380_v10 = vsel %vm1289_vm0, %v14698_v60, -inf  ;;  %v6383_v48 = vsel %vm1289_vm0, %v14703_v54, -inf }
 0xada   : > { %v14678_v61 = vadd.f32 %v14654_v37, %v10615_v58  ;;  %v5930_v36 = vpop.f32.mrb[155].mxu1  ;;  %v6374_v46 = vsel %vm1289_vm0, %v14672_v45, -inf }
 0xadb   : > { %6375 = vmax.xlane.f32.xlu1 %v6374_v46  ;;  %v14693_v42 = vadd.f32 %v14647_v56, %v5930_v36  ;;  %v6368_v33 = vsel %vm1289_vm0, %v14688_v49, -inf }
 0xadc   : > { %v6377_v40 = vsel %vm1289_vm0, %v14678_v61, -inf }
 0xadd   : > { %6378 = vmax.xlane.f32.xlu0 %v6377_v40  ;;  %v6371_v16 = vsel %vm1289_vm0, %v14693_v42, -inf }
 0xadf   : > { %6387 = vmax.xlane.f32.xlu1 %v6386_v9 }
 0xae1   : > { %6390 = vmax.xlane.f32.xlu0 %v6389_v20 }
 0xae3   : > { %6369 = vmax.xlane.f32.xlu1 %v6368_v33  ;;  %v10638_v38 = vpop.f32.mrb[144].mxu0 }
 0xae4   : > { %v6134_v27 = vpop.f32.mrb[145].mxu0  ;;  %v14715_v9 = vadd.f32 %v14635_v43, %v10638_v38 }
 0xae5   : > { %6372 = vmax.xlane.f32.xlu0 %v6371_v16  ;;  %v10639_v39 = vpop.f32.mrb[146].mxu0 }
 0xae6   : > { %v6137_v58 = vpop.f32.mrb[147].mxu0  ;;  %v6410_v38 = vsel %vm1289_vm0, %v14715_v9, -inf }
 0xae7   : > { %6381 = vmax.xlane.f32.xlu1 %v6380_v10  ;;  %v10630_v63 = vpop.f32.mrb[156].mxu1  ;;  %v14723_v10 = vadd.f32 %v14654_v37, %v10639_v39  ;;  %v14738_v39 = vadd.f32 %v14640_v52, %v6134_v27  ;;  %v14743_v21 = vadd.f32 %v14647_v56, %v6137_v58 }
 0xae8   : > { %v14710_v36 = vadd.f32 %v14635_v43, %v10630_v63  ;;  %v6065_v46 = vpop.f32.mrb[157].mxu1 }
 0xae9   : > { %6384 = vmax.xlane.f32.xlu0 %v6383_v48  ;;  %v10631_v40 = vpop.f32.mrb[158].mxu1  ;;  %v14728_v48 = vadd.f32 %v14640_v52, %v6065_v46  ;;  %v6407_v58 = vsel %vm1289_vm0, %v14743_v21, -inf }
 0xaea   : > { %v14718_v20 = vadd.f32 %v14654_v37, %v10631_v40  ;;  %v6068_v33 = vpop.f32.mrb[159].mxu1  ;;  %v6398_v16 = vsel %vm1289_vm0, %v14710_v36, -inf }
 0xaeb   : > { %6399 = vmax.xlane.f32.xlu1 %v6398_v16  ;;  %v14733_v40 = vadd.f32 %v14647_v56, %v6068_v33  ;;  %v6413_v16 = vsel %vm1289_vm0, %v14723_v10, -inf }
 0xaec   : > { %v6401_v63 = vsel %vm1289_vm0, %v14718_v20, -inf }
 0xaed   : > { %6402 = vmax.xlane.f32.xlu0 %v6401_v63  ;;  %v6392_v63 = vsel %vm1289_vm0, %v14728_v48, -inf }
 0xaef   : > { %6411 = vmax.xlane.f32.xlu1 %v6410_v38  ;;  %v6395_v38 = vsel %vm1289_vm0, %v14733_v40, -inf }
 0xaf1   : > { %6414 = vmax.xlane.f32.xlu0 %v6413_v16  ;;  %v6404_v16 = vsel %vm1289_vm0, %v14738_v39, -inf }
 0xaf3   : > { %6393 = vmax.xlane.f32.xlu1 %v6392_v63  ;;  %v10654_v46 = vpop.f32.mrb[148].mxu0 }
 0xaf4   : > { %v6272_v33 = vpop.f32.mrb[149].mxu0  ;;  %v14755_v50 = vadd.f32 %v14635_v43, %v10654_v46 }
 0xaf5   : > { %6396 = vmax.xlane.f32.xlu0 %v6395_v38  ;;  %v10655_v24 = vpop.f32.mrb[150].mxu0 }
 0xaf6   : > { %v6275_v14 = vpop.f32.mrb[151].mxu0  ;;  %v6434_v46 = vsel %vm1289_vm0, %v14755_v50, -inf }
 0xaf7   : > { %6405 = vmax.xlane.f32.xlu1 %v6404_v16  ;;  %v10646_v27 = vpop.f32.mrb[160].mxu1 }
 0xaf8   : > { %v14750_v1 = vadd.f32 %v14635_v43, %v10646_v27  ;;  %v6203_v63 = vpop.f32.mrb[161].mxu1  ;;  %v14763_v27 = vadd.f32 %v14654_v37, %v10655_v24  ;;  %v14778_v24 = vadd.f32 %v14640_v52, %v6272_v33 }
 0xaf9   : > { %6408 = vmax.xlane.f32.xlu0 %v6407_v58  ;;  %v10647_v31 = vpop.f32.mrb[162].mxu1  ;;  %v14768_v58 = vadd.f32 %v14640_v52, %v6203_v63  ;;  %v14783_v63 = vadd.f32 %v14647_v56, %v6275_v14 }
 0xafa   : > { %v14758_v38 = vadd.f32 %v14654_v37, %v10647_v31  ;;  %v6206_v26 = vpop.f32.mrb[163].mxu1  ;;  %v6422_v16 = vsel %vm1289_vm0, %v14750_v1, -inf }
 0xafb   : > { %6423 = vmax.xlane.f32.xlu1 %v6422_v16  ;;  %v14773_v31 = vadd.f32 %v14647_v56, %v6206_v26  ;;  %v6437_v16 = vsel %vm1289_vm0, %v14763_v27, -inf  ;;  %v6428_v26 = vsel %vm1289_vm0, %v14778_v24, -inf  ;;  %v6431_v5 = vsel %vm1289_vm0, %v14783_v63, -inf }
 0xafc   : > { %v6425_v0 = vsel %vm1289_vm0, %v14758_v38, -inf }
 0xafd   : > { %6426 = vmax.xlane.f32.xlu0 %v6425_v0  ;;  %v6416_v0 = vsel %vm1289_vm0, %v14768_v58, -inf }
 0xaff   : > { %6435 = vmax.xlane.f32.xlu1 %v6434_v46  ;;  %v6419_v46 = vsel %vm1289_vm0, %v14773_v31, -inf }
 0xb01   : > { %6438 = vmax.xlane.f32.xlu0 %v6437_v16 }
 0xb03   : > { %6417 = vmax.xlane.f32.xlu1 %v6416_v0 }
 0xb05   : > { %6420 = vmax.xlane.f32.xlu0 %v6419_v46 }
 0xb07   : > { %6429 = vmax.xlane.f32.xlu1 %v6428_v26  ;;  %v10662_v8 = vpop.f32.mrb[164].mxu1 }
 0xb08   : > { %v14790_v16 = vadd.f32 %v14635_v43, %v10662_v8  ;;  %v6341_v33 = vpop.f32.mrb[165].mxu1 }
 0xb09   : > { %6432 = vmax.xlane.f32.xlu0 %v6431_v5  ;;  %v10663_v0 = vpop.f32.mrb[166].mxu1  ;;  %v14795_v12 = vadd.f32 %v14640_v52, %v6341_v33  ;;  %v14811_v33 = vpop.permute.xlu1 %6848 }
 0xb0a   : > { %v6344_v14 = vpop.f32.mrb[167].mxu1  ;;  %v6446_v46 = vsel %vm1289_vm0, %v14790_v16, -inf  ;;  %v14800_v26 = vadd.f32 %v14654_v37, %v10663_v0  ;;  %v14815_v37 = vpop.permute.xlu0 %6909 }
 0xb0b   : > { %v6440_v8 = vsel %vm1289_vm0, %v14795_v12, -inf  ;;  %v14805_v43 = vadd.f32 %v14647_v56, %v6344_v14 }
 0xb0c   : > { %v6449_v5 = vsel %vm1289_vm0, %v14800_v26, -inf }
 0xb0d   : > { %6447 = vmax.xlane.f32.xlu0 %v6446_v46  ;;  %v6443_v52 = vsel %vm1289_vm0, %v14805_v43, -inf  ;;  %v14813_v46 = vpop.permute.xlu1 %6968 }
 0xb11   : > { %6441 = vmax.xlane.f32.xlu0 %v6440_v8  ;;  %v14817_v0 = vpop.permute.xlu1 %6970 }
 0xb15   : > { %6450 = vmax.xlane.f32.xlu0 %v6449_v5 }
 0xb19   : > { %6444 = vmax.xlane.f32.xlu0 %v6443_v52 }
 0xb43   : > { %v6364_v8 = vpop.xlane.xlu0 %6363 }
 0xb44   : > { %v6454_v56 = vsub.f32 %v14638_v30, %v6364_v8 }
 0xb46   : > { %v6488_v14 = vmul.f32 1.442695, %v6454_v56  ;;  %v6361_v4 = vpop.xlane.xlu1 %6360 }
 0xb47   : > { %v6358_v35 = vpop.xlane.xlu0 %6357  ;;  %v6453_v29 = vsub.f32 %v14650_v18, %v6361_v4 }
 0xb48   : > { %11434 = vpow2.f32 %v6488_v14  ;;  %v6452_v5 = vsub.f32 %v14643_v13, %v6358_v35 }
 0xb49   : > { %v6486_v59 = vmul.f32 1.442695, %v6453_v29 }
 0xb4a   : > { %v6484_v52 = vmul.f32 1.442695, %v6452_v5 }
 0xb4b   : > { %v6367_v7 = vpop.xlane.xlu0 %6366 }
 0xb4c   : > { %11436 = vpow2.f32 %v6484_v52  ;;  %v6455_v62 = vsub.f32 %v14657_v11, %v6367_v7 }
 0xb4e   : > { %v6490_v23 = vmul.f32 1.442695, %v6455_v62 }
 0xb50   : > { %11438 = vpow2.f32 %v6490_v23 }
 0xb51   : > { %11440 = vpow2.f32 %v6486_v59 }
 0xb52   : > { %v14823_v55 = vpop.eup %11434 }
 0xb53   : > { %v6554_v30 = vsel %vm1289_vm0, %v14823_v55, 0.0 }
 0xb54   : > { %6555 = vadd.xlane.f32.xlu1 %v6554_v30 }
 0xb56   : > { %v14827_v8 = vpop.eup %11436 }
 0xb57   : > { %v6548_v35 = vsel %vm1289_vm0, %v14827_v8, 0.0 }
 0xb58   : > { %6549 = vadd.xlane.f32.xlu1 %v6548_v35 }
 0xb5a   : > { %v14831_v4 = vpop.eup %11438 }
 0xb5b   : > { %v6557_v29 = vsel %vm1289_vm0, %v14831_v4, 0.0  ;;  %v14835_v62 = vpop.eup %11440 }
 0xb5c   : > { %6558 = vadd.xlane.f32.xlu0 %v6557_v29  ;;  %v6551_v7 = vsel %vm1289_vm0, %v14835_v62, 0.0 }
 0xb60   : > { %6552 = vadd.xlane.f32.xlu0 %v6551_v7 }
 0xb68   : > { %v6376_v59 = vpop.xlane.xlu1 %6375 }
 0xb69   : > { %v6458_v23 = vsub.f32 %v14672_v45, %v6376_v59 }
 0xb6a   : > { %v6379_v13 = vpop.xlane.xlu0 %6378 }
 0xb6b   : > { %v6496_v18 = vmul.f32 1.442695, %v6458_v23  ;;  %v6459_v35 = vsub.f32 %v14678_v61, %v6379_v13 }
 0xb6c   : > { %v6388_v11 = vpop.xlane.xlu1 %6387 }
 0xb6d   : > { %11442 = vpow2.f32 %v6496_v18  ;;  %v6462_v56 = vsub.f32 %v14675_v2, %v6388_v11  ;;  %v6498_v59 = vmul.f32 1.442695, %v6459_v35 }
 0xb6e   : > { %v6391_v14 = vpop.xlane.xlu0 %6390 }
 0xb6f   : > { %v6504_v5 = vmul.f32 1.442695, %v6462_v56  ;;  %v6463_v23 = vsub.f32 %v14683_v19, %v6391_v14 }
 0xb70   : > { %v6370_v52 = vpop.xlane.xlu1 %6369 }
 0xb71   : > { %11444 = vpow2.f32 %v6504_v5  ;;  %v6456_v30 = vsub.f32 %v14688_v49, %v6370_v52 }
 0xb72   : > { %v6373_v29 = vpop.xlane.xlu0 %6372 }
 0xb73   : > { %v6492_v6 = vmul.f32 1.442695, %v6456_v30  ;;  %v6457_v19 = vsub.f32 %v14693_v42, %v6373_v29 }
 0xb74   : > { %v6382_v7 = vpop.xlane.xlu1 %6381 }
 0xb75   : > { %11446 = vpow2.f32 %v6492_v6  ;;  %v6460_v45 = vsub.f32 %v14698_v60, %v6382_v7  ;;  %v6506_v6 = vmul.f32 1.442695, %v6463_v23 }
 0xb76   : > { %v6385_v18 = vpop.xlane.xlu0 %6384 }
 0xb77   : > { %v14845_v32 = vpop.eup %11442  ;;  %v6500_v2 = vmul.f32 1.442695, %v6460_v45  ;;  %v6461_v11 = vsub.f32 %v14703_v54, %v6385_v18  ;;  %v6494_v45 = vmul.f32 1.442695, %v6457_v19 }
 0xb78   : > { %v6400_v56 = vpop.xlane.xlu1 %6399  ;;  %v6566_v49 = vsel %vm1289_vm0, %v14845_v32, 0.0 }
 0xb79   : > { %11448 = vpow2.f32 %v6500_v2  ;;  %v6502_v61 = vmul.f32 1.442695, %v6461_v11  ;;  %v6466_v13 = vsub.f32 %v14710_v36, %v6400_v56  ;;  %6567 = vadd.xlane.f32.xlu1 %v6566_v49 }
 0xb7a   : > { %11450 = vpow2.f32 %v6498_v59  ;;  %v6403_v60 = vpop.xlane.xlu0 %6402 }
 0xb7b   : > { %v14851_v5 = vpop.eup %11444  ;;  %11452 = vpow2.f32 %v6502_v61  ;;  %v6512_v14 = vmul.f32 1.442695, %v6466_v13  ;;  %v6467_v54 = vsub.f32 %v14718_v20, %v6403_v60 }
 0xb7c   : > { %v14855_v52 = vpop.xlane.xlu1 %6411  ;;  %v6578_v30 = vsel %vm1289_vm0, %v14851_v5, 0.0 }
 0xb7d   : > { %11454 = vpow2.f32 %v6512_v14  ;;  %v6514_v35 = vmul.f32 1.442695, %v6467_v54  ;;  %6579 = vadd.xlane.f32.xlu0 %v6578_v30 }
 0xb7e   : > { %v14859_v36 = vpop.xlane.xlu0 %6414  ;;  %11456 = vpow2.f32 %v6506_v6 }
 0xb7f   : > { %v14861_v7 = vpop.eup %11446  ;;  %11458 = vpow2.f32 %v6514_v35 }
 0xb80   : > { %v6394_v59 = vpop.xlane.xlu1 %6393  ;;  %v6560_v42 = vsel %vm1289_vm0, %v14861_v7, 0.0  ;;  %11460 = vpow2.f32 %v6494_v45 }
 0xb81   : > { %6561 = vadd.xlane.f32.xlu1 %v6560_v42 }
 0xb82   : > { %v6397_v20 = vpop.xlane.xlu0 %6396 }
 0xb83   : > { %v14865_v29 = vpop.eup %11448  ;;  %v6465_v23 = vsub.f32 %v14733_v40, %v6397_v20 }
 0xb84   : > { %v14868_v18 = vpop.eup %11450  ;;  %v6406_v2 = vpop.xlane.xlu1 %6405  ;;  %v6572_v11 = vsel %vm1289_vm0, %v14865_v29, 0.0 }
 0xb85   : > { %v14872_v56 = vpop.eup %11452  ;;  %v6510_v49 = vmul.f32 1.442695, %v6465_v23  ;;  %6573 = vadd.xlane.f32.xlu0 %v6572_v11  ;;  %v6569_v19 = vsel %vm1289_vm0, %v14868_v18, 0.0 }
 0xb86   : > { %v6409_v61 = vpop.xlane.xlu0 %6408  ;;  %v6575_v13 = vsel %vm1289_vm0, %v14872_v56, 0.0 }
 0xb87   : > { %v14876_v6 = vpop.eup %11454  ;;  %11462 = vpow2.f32 %v6510_v49  ;;  %v6469_v60 = vsub.f32 %v14743_v21, %v6409_v61  ;;  %6576 = vadd.xlane.f32.xlu1 %v6575_v13 }
 0xb88   : > { %v6424_v40 = vpop.xlane.xlu1 %6423  ;;  %v14881_v14 = vpop.eup %11456  ;;  %v6590_v45 = vsel %vm1289_vm0, %v14876_v6, 0.0 }
 0xb89   : > { %v6518_v54 = vmul.f32 1.442695, %v6469_v60  ;;  %v6474_v30 = vsub.f32 %v14750_v1, %v6424_v40  ;;  %6570 = vadd.xlane.f32.xlu0 %v6569_v19  ;;  %v14886_v42 = vpop.eup %11458  ;;  %v6581_v23 = vsel %vm1289_vm0, %v14881_v14, 0.0 }
 0xb8a   : > { %v6427_v35 = vpop.xlane.xlu0 %6426  ;;  %v14891_v11 = vpop.eup %11460  ;;  %v6593_v1 = vsel %vm1289_vm0, %v14886_v42, 0.0 }
 0xb8b   : > { %11464 = vpow2.f32 %v6518_v54  ;;  %v6528_v20 = vmul.f32 1.442695, %v6474_v30  ;;  %v6475_v21 = vsub.f32 %v14758_v38, %v6427_v35  ;;  %6591 = vadd.xlane.f32.xlu1 %v6590_v45  ;;  %v6563_v61 = vsel %vm1289_vm0, %v14891_v11, 0.0  ;;  %v16958_v45 = vld [vmem:[#allocation56_spill] sm:$0xff] }
 0xb8d   : > { %11466 = vpow2.f32 %v6528_v20  ;;  %v6530_v49 = vmul.f32 1.442695, %v6475_v21  ;;  %6582 = vadd.xlane.f32.xlu0 %v6581_v23  ;;  %v6470_v20 = vsub.f32 %v14715_v9, %v14855_v52  ;;  %v16959_v21 = vld [vmem:[#allocation60_spill] sm:$0xff] }
 0xb8f   : > { %6594 = vadd.xlane.f32.xlu1 %v6593_v1  ;;  %11468 = vpow2.f32 %v6530_v49  ;;  %v6520_v23 = vmul.f32 1.442695, %v6470_v20  ;;  %v6464_v49 = vsub.f32 %v14728_v48, %v6394_v59  ;;  %v6439_v1 = vpop.xlane.xlu0 %6438 }
 0xb91   : > { %v14897_v13 = vpop.eup %11462  ;;  %6564 = vadd.xlane.f32.xlu0 %v6563_v61  ;;  %11470 = vpow2.f32 %v6520_v23  ;;  %v6508_v61 = vmul.f32 1.442695, %v6464_v49 }
 0xb92   : > { %v6587_v38 = vsel %vm1289_vm0, %v14897_v13, 0.0 }
 0xb93   : > { %6588 = vadd.xlane.f32.xlu1 %v6587_v38  ;;  %v6468_v38 = vsub.f32 %v14738_v39, %v6406_v2  ;;  %11472 = vpow2.f32 %v6508_v61 }
 0xb95   : > { %v14901_v60 = vpop.eup %11464 }
 0xb96   : > { %v6599_v40 = vsel %vm1289_vm0, %v14901_v60, 0.0 }
 0xb97   : > { %v14905_v19 = vpop.eup %11466  ;;  %6600 = vadd.xlane.f32.xlu1 %v6599_v40  ;;  %v6436_v40 = vpop.xlane.xlu1 %6435 }
 0xb98   : > { %16957 = vst [vmem:[#allocation50_spill] sm:$0xff] %v14905_v19  ;;  %v6614_v54 = vsel %vm1289_vm0, %v14905_v19, 0.0  ;;  %v6478_v20 = vsub.f32 %v14755_v50, %v6436_v40 }
 0xb99   : > { %v14909_v30 = vpop.eup %11468 }
 0xb9a   : > { %v6617_v35 = vsel %vm1289_vm0, %v14909_v30, 0.0 }
 0xb9b   : > { %6615 = vadd.xlane.f32.xlu1 %v6614_v54  ;;  %v6421_v54 = vpop.xlane.xlu0 %6420  ;;  %v6418_v52 = vpop.xlane.xlu1 %6417 }
 0xb9c   : > { %v6473_v9 = vsub.f32 %v14773_v31, %v6421_v54  ;;  %v14925_v48 = vpop.eup %11470  ;;  %v6472_v39 = vsub.f32 %v14768_v58, %v6418_v52  ;;  %v6479_v58 = vsub.f32 %v14763_v27, %v6439_v1 }
 0xb9e   : > { %v6526_v59 = vmul.f32 1.442695, %v6473_v9  ;;  %v6524_v31 = vmul.f32 1.442695, %v6472_v39 }
 0xb9f   : > { %6618 = vadd.xlane.f32.xlu1 %v6617_v35  ;;  %v6471_v35 = vsub.f32 %v14723_v10, %v14859_v36  ;;  %v6430_v2 = vpop.xlane.xlu1 %6429  ;;  %v6602_v10 = vsel %vm1289_vm0, %v14925_v48, 0.0  ;;  %v14930_v36 = vpop.eup %11472 }
 0xba0   : > { %v6476_v23 = vsub.f32 %v14778_v24, %v6430_v2  ;;  %v6584_v50 = vsel %vm1289_vm0, %v14930_v36, 0.0  ;;  %v6433_v61 = vpop.xlane.xlu0 %6432  ;;  %v6538_v24 = vmul.f32 1.442695, %v6479_v58  ;;  %v16962_v58 = vld [vmem:[#allocation58_spill] sm:$0xff] }
 0xba1   : > { %v6522_v19 = vmul.f32 1.442695, %v6471_v35 }
 0xba4   : > { %v6448_v27 = vpop.xlane.xlu0 %6447 }
 0xba7   : > { %7029 = vrot.lane.b32.xlu0 %v16958_v45, %s12016_s5  ;;  %v6516_v45 = vmul.f32 1.442695, %v6468_v38 }
 0xba9   : > { %11474 = vpow2.f32 %v6516_v45 }
 0xbaa   : > { %11476 = vpow2.f32 %v6522_v19  ;;  %v6532_v19 = vmul.f32 1.442695, %v6476_v23 }
 0xbab   : > { %11478 = vpow2.f32 %v6526_v59 }
 0xbb0   : > { %7090 = vrot.lane.b32.xlu1 %v16959_v21, %s12016_s5  ;;  %v6536_v21 = vmul.f32 1.442695, %v6478_v20  ;;  %v6442_v20 = vpop.xlane.xlu0 %6441 }
 0xbb2   : > { %11480 = vpow2.f32 %v6536_v21 }
 0xbb3   : > { %v14935_v49 = vpop.eup %11474  ;;  %11482 = vpow2.f32 %v6524_v31 }
 0xbb4   : > { %v6596_v38 = vsel %vm1289_vm0, %v14935_v49, 0.0  ;;  %v14940_v40 = vpop.eup %11476  ;;  %11484 = vpow2.f32 %v6532_v19 }
 0xbb5   : > { %v14942_v54 = vpop.eup %11478  ;;  %v6605_v35 = vsel %vm1289_vm0, %v14940_v40, 0.0  ;;  %11486 = vpow2.f32 %v6538_v24 }
 0xbb6   : > { %v6611_v1 = vsel %vm1289_vm0, %v14942_v54, 0.0 }
 0xbbc   : > { %v14946_v45 = vpop.eup %11480 }
 0xbbd   : > { %16960 = vst [vmem:[#allocation89_spill] sm:$0xff] %v14946_v45  ;;  %v6626_v9 = vsel %vm1289_vm0, %v14946_v45, 0.0  ;;  %v14952_v52 = vpop.eup %11482 }
 0xbbe   : > { %v6608_v59 = vsel %vm1289_vm0, %v14952_v52, 0.0  ;;  %v14956_v21 = vpop.eup %11484 }
 0xbbf   : > { %16961 = vst [vmem:[#allocation88_spill] sm:$0xff] %v14956_v21  ;;  %v6620_v39 = vsel %vm1289_vm0, %v14956_v21, 0.0  ;;  %v14960_v2 = vpop.eup %11486 }
 0xbc0   : > { %v6629_v31 = vsel %vm1289_vm0, %v14960_v2, 0.0 }
 0xbc6   : > { %6603 = vadd.xlane.f32.xlu0 %v6602_v10  ;;  %v6451_v10 = vpop.xlane.xlu0 %6450 }
 0xbca   : > { %6585 = vadd.xlane.f32.xlu0 %v6584_v50  ;;  %v6445_v50 = vpop.xlane.xlu0 %6444 }
 0xbce   : > { %6597 = vadd.xlane.f32.xlu0 %v6596_v38 }
 0xbd2   : > { %6606 = vadd.xlane.f32.xlu0 %v6605_v35  ;;  %v6477_v35 = vsub.f32 %v14783_v63, %v6433_v61  ;;  %v6483_v61 = vsub.f32 %v14800_v26, %v6451_v10 }
 0xbd4   : > { %6612 = vadd.xlane.f32.xlu1 %v6611_v1 }
 0xbd6   : > { %6627 = vadd.xlane.f32.xlu0 %v6626_v9 }
 0xbda   : > { %6609 = vadd.xlane.f32.xlu0 %v6608_v59 }
 0xbde   : > { %6621 = vadd.xlane.f32.xlu0 %v6620_v39  ;;  %v6534_v39 = vmul.f32 1.442695, %v6477_v35 }
 0xbe1   : > { %v6556_v23 = vpop.xlane.xlu1 %6555 }
 0xbe2   : > { %6630 = vadd.xlane.f32.xlu0 %v6629_v31  ;;  %v6482_v31 = vsub.f32 %v14790_v16, %v6448_v27  ;;  %v6546_v16 = vmul.f32 1.442695, %v6483_v61 }
 0xbe4   : > { %v6544_v63 = vmul.f32 1.442695, %v6482_v31 }
 0xbe5   : > { %7092 = vrot.lane.b32.xlu1 %v16962_v58, %s12016_s5  ;;  %v6550_v19 = vpop.xlane.xlu1 %6549  ;;  %v16963_v58 = vld [vmem:[#allocation54_spill] sm:$0xff] }
 0xbe9   : > { %v6559_v38 = vpop.xlane.xlu0 %6558 }
 0xbea   : > { %11488 = vrcp.f32 %v6559_v38 }
 0xbeb   : > { %11490 = vrcp.f32 %v6550_v19 }
 0xbec   : > { %11492 = vrcp.f32 %v6556_v23 }
 0xbed   : > { %v6553_v24 = vpop.xlane.xlu0 %6552 }
 0xbee   : > { %11494 = vrcp.f32 %v6553_v24 }
 0xbef   : > { %11496 = vpow2.f32 %v6534_v39 }
 0xbf0   : > { %11498 = vpow2.f32 %v6544_v63 }
 0xbf1   : > { %11500 = vpow2.f32 %v6546_v16 }
 0xbf4   : > { %v11489_v1 = vpop.eup %11488 }
 0xbf5   : > { %v11491_v9 = vpop.eup %11490  ;;  %v6651_v21 = vmul.f32 %v11489_v1, %v14831_v4  ;;  %v6481_v4 = vsub.f32 %v14805_v43, %v6445_v50 }
 0xbf6   : > { %v11493_v59 = vpop.eup %11492  ;;  %v6645_v38 = vmul.f32 %v11491_v9, %v14827_v8 }
 0xbf7   : > { %v6649_v19 = vmul.f32 %v11493_v59, %v14823_v55  ;;  %v6480_v55 = vsub.f32 %v14795_v12, %v6442_v20  ;;  %v6542_v8 = vmul.f32 1.442695, %v6481_v4 }
 0xbf8   : > { %v11495_v45 = vpop.eup %11494  ;;  %7031 = vrot.lane.b32.xlu0 %v16963_v58, %s12016_s5 }
 0xbf9   : > { %v6647_v23 = vmul.f32 %v11495_v45, %v14835_v62  ;;  %v6709_v35 = vpack.c.bf16 %v6651_v21, %v6649_v19  ;;  %v14983_v26 = vpop.eup %11496  ;;  %v6540_v62 = vmul.f32 1.442695, %v6480_v55  ;;  %11502 = vpow2.f32 %v6542_v8 }
 0xbfa   : > { %v6623_v45 = vsel %vm1289_vm0, %v14983_v26, 0.0  ;;  %v14987_v43 = vpop.eup %11498 }
 0xbfb   : > { %v6708_v24 = vpack.c.bf16 %v6647_v23, %v6645_v38  ;;  %11504 = vpow2.f32 %v6540_v62  ;;  %v6638_v12 = vsel %vm1289_vm0, %v14987_v43, 0.0  ;;  %v14991_v27 = vpop.eup %11500 }
 0xbfc   : > { %v6641_v21 = vsel %vm1289_vm0, %v14991_v27, 0.0 }
 0xbfd   : > { %10668 = vmatprep.mubr.msk.bf16.mxu0 %vm1289_vm0, %v6708_v24 }
 0xbfe   : > { %10669 = vmatmul.mubr.msk.bf16.vlgmr.msra.gmra.mrb[152].mxu0 %vm1289_vm0, %v6709_v35 }
 0xbff   : > { %10681 = vmatpush3.bf16.msra.mxu0 %v14570_v3 }
 0xc00   : > { %10682 = vmatprep.subr.bf16.mxu0 %v14811_v33 }
 0xc03   : > { %10683 = vmatpush3.bf16.msra.mxu0 %v14811_v33  ;;  %v14995_v10 = vpop.eup %11502 }
 0xc04   : > { %10696 = vmatprep.subr.bf16.mxu0 %v14813_v46  ;;  %v6635_v59 = vsel %vm1289_vm0, %v14995_v10, 0.0 }
 0xc05   : > { %v14997_v1 = vpop.eup %11504 }
 0xc06   : > { %v6568_v3 = vpop.xlane.xlu1 %6567  ;;  %v6632_v31 = vsel %vm1289_vm0, %v14997_v1, 0.0 }
 0xc09   : > { %6624 = vadd.xlane.f32.xlu1 %v6623_v45 }
 0xc0a   : > { %v6580_v33 = vpop.xlane.xlu0 %6579 }
 0xc0d   : > { %6639 = vadd.xlane.f32.xlu1 %v6638_v12 }
 0xc0e   : > { %v6562_v20 = vpop.xlane.xlu1 %6561 }
 0xc11   : > { %6642 = vadd.xlane.f32.xlu1 %v6641_v21 }
 0xc12   : > { %v6574_v50 = vpop.xlane.xlu0 %6573 }
 0xc13   : > { %11506 = vrcp.f32 %v6574_v50 }
 0xc14   : > { %v6577_v9 = vpop.xlane.xlu1 %6576 }
 0xc15   : > { %11508 = vrcp.f32 %v6577_v9  ;;  %6636 = vadd.xlane.f32.xlu1 %v6635_v59  ;;  %v16965_v59 = vld [vmem:[#allocation71_spill] sm:$0xff] }
 0xc16   : > { %v6571_v39 = vpop.xlane.xlu0 %6570  ;;  %11510 = vrcp.f32 %v6580_v33 }
 0xc17   : > { %6633 = vadd.xlane.f32.xlu0 %v6632_v31 }
 0xc18   : > { %v15003_v58 = vpop.xlane.xlu1 %6591 }
 0xc1a   : > { %v6583_v38 = vpop.xlane.xlu0 %6582 }
 0xc1b   : > { %11512 = vrcp.f32 %v6583_v38 }
 0xc1c   : > { %11514 = vrcp.f32 %v6571_v39  ;;  %v15005_v23 = vpop.xlane.xlu1 %6594 }
 0xc1d   : > { %v11507_v19 = vpop.eup %11506  ;;  %11516 = vrcp.f32 %v6562_v20 }
 0xc1e   : > { %11518 = vrcp.f32 %v6568_v3  ;;  %v6565_v63 = vpop.xlane.xlu0 %6564  ;;  %v6661_v35 = vmul.f32 %v11507_v19, %v14865_v29  ;;  %v16964_v3 = vld [vmem:[#allocation62_spill] sm:$0xff] }
 0xc1f   : > { %v11509_v61 = vpop.eup %11508  ;;  %11520 = vrcp.f32 %v6565_v63  ;;  %v16967_v63 = vld [vmem:[#allocation47_spill] sm:$0xff] }
 0xc20   : > { %v6589_v24 = vpop.xlane.xlu1 %6588  ;;  %v6663_v16 = vmul.f32 %v11509_v61, %v14872_v56  ;;  %v11511_v55 = vpop.eup %11510  ;;  %11522 = vrcp.f32 %v15005_v23  ;;  %v16979_v23 = vld [vmem:[#allocation72_spill] sm:$0xff] }
 0xc21   : > { %v6665_v12 = vmul.f32 %v11511_v55, %v14851_v5  ;;  %11524 = vrcp.f32 %v6589_v24  ;;  %v16982_v55 = vld [vmem:[#allocation75_spill] sm:$0xff] }
 0xc22   : > { %v6712_v4 = vpack.c.bf16 %v6663_v16, %v6661_v35  ;;  %11526 = vrcp.f32 %v15003_v58  ;;  %v16981_v16 = vld [vmem:[#allocation34_spill] sm:$0xff] }
 0xc24   : > { %v6601_v8 = vpop.xlane.xlu1 %6600  ;;  %10684 = vmatprep.mubr.msk.bf16.mxu0 %vm1289_vm0, %v6712_v4 }
 0xc25   : > { %v11513_v62 = vpop.eup %11512 }
 0xc26   : > { %v11515_v45 = vpop.eup %11514  ;;  %v6667_v33 = vmul.f32 %v11513_v62, %v14881_v14  ;;  %7153 = vrot.lane.b32.xlu1 %v16964_v3, %s12016_s5 }
 0xc27   : > { %v11517_v20 = vpop.eup %11516  ;;  %v6659_v9 = vmul.f32 %v11515_v45, %v14868_v18  ;;  %v16966_v18 = vld [vmem:[#allocation64_spill] sm:$0xff] }
 0xc28   : > { %v11519_v21 = vpop.eup %11518  ;;  %v15014_v50 = vpop.xlane.xlu1 %6615  ;;  %v6713_v29 = vpack.c.bf16 %v6667_v33, %v6665_v12  ;;  %v6653_v5 = vmul.f32 %v11517_v20, %v14861_v7  ;;  %v16983_v20 = vld [vmem:[#allocation49_spill] sm:$0xff] }
 0xc29   : > { %v11521_v56 = vpop.eup %11520  ;;  %v6657_v39 = vmul.f32 %v11519_v21, %v14845_v32  ;;  %v15043_v7 = vpop.permute.xlu0 %7029 }
 0xc2a   : > { %4106 = vrot.lane.b32.xlu1 %v16965_v59, %s12016_s5  ;;  %10685 = vmatmul.mubr.msk.bf16.vlgmr.msra.gmra.mrb[156].mxu0 %vm1289_vm0, %v6713_v29  ;;  %v6655_v14 = vmul.f32 %v11521_v56, %v14891_v11  ;;  %v11523_v61 = vpop.eup %11522  ;;  %v16985_v59 = vld [vmem:[#allocation69_spill] sm:$0xff] }
 0xc2b   : > { %10697 = vmatpush3.bf16.msra.mxu0 %v14813_v46  ;;  %v6711_v19 = vpack.c.bf16 %v6659_v9, %v6657_v39  ;;  %v16968_v46 = vld [vmem:[#allocation30_spill] sm:$0xff]  ;;  %v11525_v24 = vpop.eup %11524 }
 0xc2c   : > { %10698 = vmatprep.subr.bf16.mxu0 %v14817_v0  ;;  %v15025_v31 = vpop.xlane.xlu1 %6618  ;;  %v6710_v38 = vpack.c.bf16 %v6655_v14, %v6653_v5  ;;  %v11527_v35 = vpop.eup %11526  ;;  %v6671_v12 = vmul.f32 %v11525_v24, %v14897_v13  ;;  %v16991_v24 = vld [vmem:[#allocation89_spill] sm:$0xff] }
 0xc2d   : > { %7151 = vrot.lane.b32.xlu0 %v16966_v18, %s12016_s5  ;;  %v6673_v3 = vmul.f32 %v11527_v35, %v14876_v6 }
 0xc2e   : > { %4108 = vrot.lane.b32.xlu1 %v16967_v63, %s12016_s5  ;;  %10676 = vmatprep.mubr.msk.bf16.mxu1 %vm1289_vm0, %v6710_v38  ;;  %v16987_v38 = vld [vmem:[#allocation51_spill] sm:$0xff] }
 0xc2f   : > { %10699 = vmatpush3.bf16.msra.mxu0 %v14817_v0  ;;  %10677 = vmatmul.mubr.msk.bf16.vlgmr.msra.gmra.mrb[168].mxu1 %vm1289_vm0, %v6711_v19  ;;  %v16970_v0 = vld [vmem:[#allocation65_spill] sm:$0xff] }
 0xc30   : > { %10689 = vmatpush3.bf16.msra.mxu1 %v14576_v47  ;;  %v15035_v32 = vpop.permute.xlu1 %7090  ;;  %v16969_v47 = vld [vmem:[#allocation39_spill] sm:$0xff] }
 0xc31   : > { %10690 = vmatprep.subr.bf16.mxu1 %v14815_v37  ;;  %5675 = vrot.lane.b32.xlu0 %v14581_v41, %s12015_s25  ;;  %v16971_v41 = vld [vmem:[#allocation23_spill] sm:$0xff] }
 0xc32   : > { %10712 = vmatprep.subr.bf16.mxu0 %v15035_v32  ;;  %4110 = vrot.lane.b32.xlu1 %v16968_v46, %s12016_s5 }
 0xc34   : > { %10691 = vmatpush3.bf16.msra.mxu1 %v14815_v37  ;;  %v16973_v37 = vld [vmem:[#allocation28_spill] sm:$0xff] }
 0xc35   : > { %10704 = vmatprep.subr.bf16.mxu1 %v15043_v7  ;;  %5679 = vrot.lane.b32.xlu0 %v14579_v44, %s12015_s25  ;;  %v16972_v44 = vld [vmem:[#allocation66_spill] sm:$0xff] }
 0xc36   : > { %4112 = vrot.lane.b32.xlu1 %v16969_v47, %s12016_s5  ;;  %v16988_v47 = vld [vmem:[#allocation68_spill] sm:$0xff] }
 0xc39   : > { %4114 = vrot.lane.b32.xlu0 %v16970_v0, %s12016_s5 }
 0xc3a   : > { %5677 = vrot.lane.b32.xlu1 %v14585_v51, %s12015_s25  ;;  %v16974_v51 = vld [vmem:[#allocation61_spill] sm:$0xff] }
 0xc3d   : > { %4118 = vrot.lane.b32.xlu0 %v16971_v41, %s12016_s5 }
 0xc3e   : > { %5681 = vrot.lane.b32.xlu1 %v14583_v17, %s12015_s25  ;;  %v16975_v17 = vld [vmem:[#allocation55_spill] sm:$0xff] }
 0xc41   : > { %5683 = vrot.lane.b32.xlu0 %v14597_v53, %s12015_s25 }
 0xc42   : > { %4116 = vrot.lane.b32.xlu1 %v16972_v44, %s12016_s5 }
 0xc45   : > { %5687 = vrot.lane.b32.xlu0 %v14595_v15, %s12015_s25  ;;  %v16976_v15 = vld [vmem:[#allocation63_spill] sm:$0xff] }
 0xc46   : > { %4120 = vrot.lane.b32.xlu1 %v16973_v37, %s12016_s5  ;;  %v16989_v37 = vld [vmem:[#allocation50_spill] sm:$0xff] }
 0xc49   : > { %4122 = vrot.lane.b32.xlu0 %v16974_v51, %s12016_s5 }
 0xc4a   : > { %5685 = vrot.lane.b32.xlu1 %v14601_v22, %s12015_s25  ;;  %v16977_v22 = vld [vmem:[#allocation53_spill] sm:$0xff] }
 0xc4d   : > { %4126 = vrot.lane.b32.xlu0 %v16975_v17, %s12016_s5 }
 0xc4e   : > { %5689 = vrot.lane.b32.xlu1 %v14599_v57, %s12015_s25  ;;  %v16978_v57 = vld [vmem:[#allocation73_spill] sm:$0xff] }
 0xc51   : > { %5691 = vrot.lane.b32.xlu0 %v14589_v25, %s12015_s25 }
 0xc52   : > { %4124 = vrot.lane.b32.xlu1 %v16976_v15, %s12016_s5 }
 0xc53   : > { %v6604_v53 = vpop.xlane.xlu0 %6603 }
 0xc55   : > { %5695 = vrot.lane.b32.xlu0 %v14587_v34, %s12015_s25  ;;  %v16980_v34 = vld [vmem:[#allocation25_spill] sm:$0xff] }
 0xc56   : > { %4128 = vrot.lane.b32.xlu1 %v16977_v22, %s12016_s5 }
 0xc57   : > { %v6586_v11 = vpop.xlane.xlu0 %6585 }
 0xc58   : > { %11528 = vrcp.f32 %v6586_v11 }
 0xc59   : > { %4130 = vrot.lane.b32.xlu0 %v16978_v57, %s12016_s5  ;;  %11530 = vrcp.f32 %v6601_v8 }
 0xc5a   : > { %5693 = vrot.lane.b32.xlu1 %v14593_v28, %s12015_s25  ;;  %v6675_v28 = vmul.f32 %v11523_v61, %v14886_v42  ;;  %v16984_v42 = vld [vmem:[#allocation74_spill] sm:$0xff] }
 0xc5b   : > { %v6598_v25 = vpop.xlane.xlu0 %6597 }
 0xc5c   : > { %11532 = vrcp.f32 %v6598_v25  ;;  %v6715_v56 = vpack.c.bf16 %v6675_v28, %v6673_v3  ;;  %v11002_v25 = vld [vmem:[%s12378_s22] sm:$0xff]  }
 0xc5d   : > { %4134 = vrot.lane.b32.xlu0 %v16979_v23, %s12016_s5  ;;  %11534 = vrcp.f32 %v6604_v53 }
 0xc5e   : > { %5697 = vrot.lane.b32.xlu1 %v16980_v34, %s12015_s25  ;;  %v16990_v34 = vld [vmem:[#allocation88_spill] sm:$0xff] }
 0xc5f   : > { %v6607_v58 = vpop.xlane.xlu0 %6606 }
 0xc60   : > { %11536 = vrcp.f32 %v6607_v58 }
 0xc61   : > { %5699 = vrot.lane.b32.xlu0 %v16981_v16, %s12015_s25  ;;  %v6613_v8 = vpop.xlane.xlu1 %6612  ;;  %11538 = vrcp.f32 %v15025_v31 }
 0xc62   : > { %v11529_v4 = vpop.eup %11528  ;;  %4132 = vrot.lane.b32.xlu1 %v16982_v55, %s12016_s5  ;;  %11540 = vrcp.f32 %v6613_v8  ;;  %v11003_v55 = vld [vmem:[%s12378_s22 + $0x8] sm:$0xff]  }
 0xc63   : > { %v6628_v62 = vpop.xlane.xlu0 %6627  ;;  %v6669_v45 = vmul.f32 %v11529_v4, %v14930_v36  ;;  %v11531_v33 = vpop.eup %11530  ;;  %11542 = vrcp.f32 %v15014_v50  ;;  %v16986_v50 = vld [vmem:[#allocation38_spill] sm:$0xff] }
 0xc64   : > { %v6679_v6 = vmul.f32 %v11531_v33, %v14901_v60 }
 0xc65   : > { %5703 = vrot.lane.b32.xlu0 %v16983_v20, %s12015_s25  ;;  %v6714_v21 = vpack.c.bf16 %v6671_v12, %v6669_v45  ;;  %v7093_v46 = vpop.permute.xlu1 %7092 }
 0xc66   : > { %v11533_v29 = vpop.eup %11532  ;;  %4136 = vrot.lane.b32.xlu1 %v16984_v42, %s12016_s5 }
 0xc67   : > { %10692 = vmatprep.mubr.msk.bf16.mxu1 %vm1289_vm0, %v6714_v21  ;;  %v6610_v13 = vpop.xlane.xlu0 %6609  ;;  %v6677_v36 = vmul.f32 %v11533_v29, %v14935_v49  ;;  %v11535_v9 = vpop.eup %11534 }
 0xc68   : > { %11544 = vrcp.f32 %v6610_v13  ;;  %10693 = vmatmul.mubr.msk.bf16.vlgmr.msra.gmra.mrb[172].mxu1 %vm1289_vm0, %v6715_v56  ;;  %v6681_v39 = vmul.f32 %v11535_v9, %v14925_v48 }
 0xc69   : > { %10705 = vmatpush3.bf16.msra.mxu1 %v15043_v7  ;;  %4138 = vrot.lane.b32.xlu0 %v16985_v59, %s12016_s5  ;;  %v6716_v5 = vpack.c.bf16 %v6679_v6, %v6677_v36  ;;  %v16992_v59 = vmov 0  }
 0xc6a   : > { %v11537_v14 = vpop.eup %11536  ;;  %5701 = vrot.lane.b32.xlu1 %v16986_v50, %s12015_s25 }
 0xc6b   : > { %v6683_v49 = vmul.f32 %v11537_v14, %v14940_v40  ;;  %10700 = vmatprep.mubr.msk.bf16.mxu0 %vm1289_vm0, %v6716_v5  ;;  %v6622_v60 = vpop.xlane.xlu0 %6621  ;;  %v11539_v18 = vpop.eup %11538  ;;  %v11004_v14 = vld [vmem:[%s12378_s22 + $0x10] sm:$0xff]  }
 0xc6c   : > { %v11541_v63 = vpop.eup %11540  ;;  %v6691_v40 = vmul.f32 %v11539_v18, %v14909_v30 }
 0xc6d   : > { %v6717_v31 = vpack.c.bf16 %v6683_v49, %v6681_v39  ;;  %v11543_v7 = vpop.eup %11542  ;;  %v6687_v44 = vmul.f32 %v11541_v63, %v14942_v54  ;;  %v11005_v49 = vld [vmem:[%s12378_s22 + $0x18] sm:$0xff]   ;;  %v11007_v63 = vld [vmem:[%s12378_s22 + $0x28] sm:$0xff]  }
 0xc6e   : > { %5705 = vrot.lane.b32.xlu1 %v16987_v38, %s12015_s25  ;;  %v6689_v51 = vmul.f32 %v11543_v7, %v16989_v37  ;;  %v11006_v38 = vld [vmem:[%s12378_s22 + $0x20] sm:$0xff]  }
 0xc6f   : > { %10701 = vmatmul.mubr.msk.bf16.vlgmr.msra.gmra.mrb[160].mxu0 %vm1289_vm0, %v6717_v31  ;;  %v6631_v19 = vpop.xlane.xlu0 %6630 }
 0xc70   : > { %10713 = vmatpush3.bf16.msra.mxu0 %v15035_v32  ;;  %v6719_v32 = vpack.c.bf16 %v6691_v40, %v6689_v51  ;;  %11546 = vrcp.f32 %v6631_v19 }
 0xc71   : > { %10714 = vmatprep.subr.bf16.mxu0 %v7093_v46  ;;  %11548 = vrcp.f32 %v6622_v60 }
 0xc72   : > { %v11545_v48 = vpop.eup %11544  ;;  %4140 = vrot.lane.b32.xlu1 %v16988_v47, %s12016_s5  ;;  %11550 = vrcp.f32 %v6628_v62 }
 0xc73   : > { %v7032_v0 = vpop.permute.xlu0 %7031  ;;  %v6685_v41 = vmul.f32 %v11545_v48, %v14952_v52  ;;  %v11008_v48 = vld [vmem:[%s12378_s22 + $0x30] sm:$0xff]  }
 0xc74   : > { %10715 = vmatpush3.bf16.msra.mxu0 %v7093_v46  ;;  %10706 = vmatprep.subr.bf16.mxu1 %v7032_v0 }
 0xc75   : > { %10707 = vmatpush3.bf16.msra.mxu1 %v7032_v0  ;;  %v6718_v17 = vpack.c.bf16 %v6687_v44, %v6685_v41  ;;  %10728 = vmatprep.subr.bf16.mxu0 %v11002_v25  ;;  %v11009_v41 = vld [vmem:[%s12378_s22 + $0x38] sm:$0xff]  }
 0xc77   : > { %10708 = vmatprep.mubr.msk.bf16.mxu1 %vm1289_vm0, %v6718_v17 }
 0xc78   : > { %10709 = vmatmul.mubr.msk.bf16.vlgmr.msra.gmra.mrb[176].mxu1 %vm1289_vm0, %v6719_v32 }
 0xc7a   : > { %v11547_v15 = vpop.eup %11546 }
 0xc7b   : > { %v11549_v53 = vpop.eup %11548  ;;  %v6699_v57 = vmul.f32 %v11547_v15, %v14960_v2 }
 0xc7c   : > { %v11551_v22 = vpop.eup %11550  ;;  %v6693_v61 = vmul.f32 %v11549_v53, %v16990_v34  ;;  %v16994_v53 = vld [vmem:[#allocation70_spill] sm:$0xff] }
 0xc7d   : > { %v6697_v35 = vmul.f32 %v11551_v22, %v16991_v24 }
 0xc7f   : > { %v6721_v28 = vpack.c.bf16 %v6699_v57, %v6697_v35 }
 0xc96   : > { %v6625_v30 = vpop.xlane.xlu1 %6624 }
 0xc97   : > { %11552 = vrcp.f32 %v6625_v30 }
 0xc9a   : > { %v6640_v52 = vpop.xlane.xlu1 %6639 }
 0xc9e   : > { %v6643_v54 = vpop.xlane.xlu1 %6642 }
 0xc9f   : > { %11554 = vrcp.f32 %v6643_v54  ;;  %v16993_v54 = vld [vmem:[#allocation67_spill] sm:$0xff] }
 0xca1   : > { %v11553_v11 = vpop.eup %11552 }
 0xca2   : > { %v6637_v23 = vpop.xlane.xlu1 %6636  ;;  %v6695_v58 = vmul.f32 %v11553_v11, %v14983_v26 }
 0xca3   : > { %11556 = vrcp.f32 %v6637_v23 }
 0xca4   : > { %11558 = vrcp.f32 %v6640_v52  ;;  %v6634_v16 = vpop.xlane.xlu0 %6633  ;;  %v6720_v4 = vpack.c.bf16 %v6695_v58, %v6693_v61 }
 0xca5   : > { %11560 = vrcp.f32 %v6634_v16 }
 0xca6   : > { %v7154_v8 = vpop.permute.xlu1 %7153  ;;  %10716 = vmatprep.mubr.msk.bf16.mxu0 %vm1289_vm0, %v6720_v4 }
 0xca7   : > { %10717 = vmatmul.mubr.msk.bf16.vlgmr.msra.gmra.mrb[164].mxu0 %vm1289_vm0, %v6721_v28 }
 0xca8   : > { %v7152_v2 = vpop.permute.xlu0 %7151  ;;  %10729 = vmatpush3.bf16.msra.mxu0 %v11002_v25 }
 0xca9   : > { %10720 = vmatprep.subr.bf16.mxu1 %v7152_v2  ;;  %10730 = vmatprep.subr.bf16.mxu0 %v11003_v55  ;;  %v11555_v62 = vpop.eup %11554 }
 0xcaa   : > { %v4107_v26 = vpop.permute.xlu1 %4106  ;;  %10721 = vmatpush3.bf16.msra.mxu1 %v7152_v2  ;;  %v6707_v21 = vmul.f32 %v11555_v62, %v14991_v27  ;;  %v16995_v62 = vld [vmem:[#allocation29_spill] sm:$0xff] }
 0xcab   : > { %4203 = vst.msk [vmem:[#allocation3] sm:$0xff] %vm4202_vm1, %v4107_v26  ;;  %10722 = vmatprep.subr.bf16.mxu1 %v7154_v8 }
 0xcac   : > { %v5676_v45 = vpop.permute.xlu0 %5675  ;;  %10731 = vmatpush3.bf16.msra.mxu0 %v11003_v55 }
 0xcad   : > { %v11557_v12 = vpop.eup %11556  ;;  %5772 = vst.msk [vmem:[#allocation3] sm:$0xff] %vm5771_vm2, %v5676_v45  ;;  %10732 = vmatprep.subr.bf16.mxu0 %v11004_v14  ;;  %v16996_v45 = vld [vmem:[#allocation33_spill] sm:$0xff] }
 0xcae   : > { %v11559_v33 = vpop.eup %11558  ;;  %v4109_v3 = vpop.permute.xlu1 %4108  ;;  %10723 = vmatpush3.bf16.msra.mxu1 %v7154_v8  ;;  %v6703_v56 = vmul.f32 %v11557_v12, %v14995_v10  ;;  %v16997_v12 = vld [vmem:[#allocation44_spill] sm:$0xff] }
 0xcaf   : > { %v11561_v20 = vpop.eup %11560  ;;  %4204 = vst.msk [vmem:[#allocation3 + $0x8] sm:$0xff] %vm4202_vm1, %v4109_v3  ;;  %v6705_v13 = vmul.f32 %v11559_v33, %v14987_v43  ;;  %v16998_v33 = vld [vmem:[#allocation35_spill] sm:$0xff] }
 0xcb0   : > { %v5680_v29 = vpop.permute.xlu0 %5679  ;;  %v6701_v42 = vmul.f32 %v11561_v20, %v14997_v1  ;;  %10733 = vmatpush3.bf16.msra.mxu0 %v11004_v14  ;;  %v16999_v3 = vld [vmem:[#allocation83_spill] sm:$0xff]  ;;  %v17000_v20 = vld [vmem:[#allocation81_spill] sm:$0xff] }
 0xcb1   : > { %v6723_v9 = vpack.c.bf16 %v6707_v21, %v6705_v13  ;;  %10734 = vmatprep.subr.bf16.mxu0 %v11005_v49  ;;  %v17001_v21 = vld [vmem:[#allocation80_spill] sm:$0xff] }
 0xcb2   : > { %v4111_v36 = vpop.permute.xlu1 %4110  ;;  %v6722_v6 = vpack.c.bf16 %v6703_v56, %v6701_v42 }
 0xcb3   : > { %4205 = vst.msk [vmem:[#allocation3 + $0x10] sm:$0xff] %vm4202_vm1, %v4111_v36 }
 0xcb4   : > { %5774 = vst.msk [vmem:[#allocation3 + $0x10] sm:$0xff] %vm5771_vm2, %v5680_v29  ;;  %10724 = vmatprep.mubr.msk.bf16.mxu1 %vm1289_vm0, %v6722_v6  ;;  %v4115_v27 = vpop.permute.xlu0 %4114  ;;  %10735 = vmatpush3.bf16.msra.mxu0 %v11005_v49  ;;  %v17002_v29 = vld [vmem:[#allocation82_spill] sm:$0xff] }
 0xcb5   : > { %4207 = vst.msk [vmem:[#allocation3 + $0x20] sm:$0xff] %vm4202_vm1, %v4115_v27  ;;  %10725 = vmatmul.mubr.msk.bf16.vlgmr.msra.gmra.mrb[180].mxu1 %vm1289_vm0, %v6723_v9  ;;  %10736 = vmatprep.subr.bf16.mxu0 %v11006_v38 }
 0xcb6   : > { %v4113_v1 = vpop.permute.xlu1 %4112  ;;  %8263 = vmatprep.mubr.bf16.mxu1 %v16992_v59 }
 0xcb7   : > { %4206 = vst.msk [vmem:[#allocation3 + $0x18] sm:$0xff] %vm4202_vm1, %v4113_v1 }
 0xcb8   : > { %v4119_v43 = vpop.permute.xlu0 %4118  ;;  %10737 = vmatpush3.bf16.msra.mxu0 %v11006_v38 }
 0xcb9   : > { %4209 = vst.msk [vmem:[#allocation3 + $0x30] sm:$0xff] %vm4202_vm1, %v4119_v43  ;;  %10738 = vmatprep.subr.bf16.mxu0 %v11007_v63 }
 0xcba   : > { %v5678_v10 = vpop.permute.xlu1 %5677 }
 0xcbb   : > { %5773 = vst.msk [vmem:[#allocation3 + $0x8] sm:$0xff] %vm5771_vm2, %v5678_v10 }
 0xcbc   : > { %v5684_v5 = vpop.permute.xlu0 %5683  ;;  %10739 = vmatpush3.bf16.msra.mxu0 %v11007_v63  ;;  %v17005_v63 = vld [vmem:[#allocation43_spill] sm:$0xff] }
 0xcbd   : > { %5776 = vst.msk [vmem:[#allocation3 + $0x20] sm:$0xff] %vm5771_vm2, %v5684_v5  ;;  %10740 = vmatprep.subr.bf16.mxu0 %v11008_v48 }
 0xcbe   : > { %v5682_v50 = vpop.permute.xlu1 %5681 }
 0xcbf   : > { %5775 = vst.msk [vmem:[#allocation3 + $0x18] sm:$0xff] %vm5771_vm2, %v5682_v50  ;;  %v17003_v50 = vld [vmem:[#allocation95_spill] sm:$0xff] }
 0xcc0   : > { %v5688_v39 = vpop.permute.xlu0 %5687  ;;  %10741 = vmatpush3.bf16.msra.mxu0 %v11008_v48 }
 0xcc1   : > { %5778 = vst.msk [vmem:[#allocation3 + $0x30] sm:$0xff] %vm5771_vm2, %v5688_v39  ;;  %10742 = vmatprep.subr.bf16.mxu0 %v11009_v41 }
 0xcc2   : > { %v4117_v60 = vpop.permute.xlu1 %4116 }
 0xcc3   : > { %4208 = vst.msk [vmem:[#allocation3 + $0x28] sm:$0xff] %vm4202_vm1, %v4117_v60 }
 0xcc4   : > { %v4123_v31 = vpop.permute.xlu0 %4122  ;;  %10743 = vmatpush3.bf16.msra.mxu0 %v11009_v41 }
 0xcc5   : > { %4211 = vst.msk [vmem:[#allocation3 + $0x40] sm:$0xff] %vm4202_vm1, %v4123_v31  ;;  %v17004_v31 = vld [vmem:[#allocation26_spill] sm:$0xff] }
 0xcc6   : > { %v4121_v18 = vpop.permute.xlu1 %4120 }
 0xcc7   : > { %4210 = vst.msk [vmem:[#allocation3 + $0x38] sm:$0xff] %vm4202_vm1, %v4121_v18 }
 0xcc8   : > { %v4127_v19 = vpop.permute.xlu0 %4126 }
 0xcc9   : > { %4213 = vst.msk [vmem:[#allocation3 + $0x50] sm:$0xff] %vm4202_vm1, %v4127_v19 }
 0xcca   : > { %v5686_v46 = vpop.permute.xlu1 %5685 }
 0xccb   : > { %5777 = vst.msk [vmem:[#allocation3 + $0x28] sm:$0xff] %vm5771_vm2, %v5686_v46 }
 0xccc   : > { %v5692_v7 = vpop.permute.xlu0 %5691 }
 0xccd   : > { %5780 = vst.msk [vmem:[#allocation3 + $0x40] sm:$0xff] %vm5771_vm2, %v5692_v7 }
 0xcce   : > { %v5690_v40 = vpop.permute.xlu1 %5689 }
 0xccf   : > { %5779 = vst.msk [vmem:[#allocation3 + $0x38] sm:$0xff] %vm5771_vm2, %v5690_v40  ;;  %v17006_v40 = vld [vmem:[#allocation24_spill] sm:$0xff] }
 0xcd0   : > { %v5696_v47 = vpop.permute.xlu0 %5695 }
 0xcd1   : > { %5782 = vst.msk [vmem:[#allocation3 + $0x50] sm:$0xff] %vm5771_vm2, %v5696_v47  ;;  %v10670_v0 = vpop.f32.mrb[152].mxu0 }
 0xcd2   : > { %v4125_v44 = vpop.permute.xlu1 %4124  ;;  %7248 = vrot.lane.b32.xlu0 %v10670_v0, %s12014_s18  ;;  %v6770_v37 = vpop.f32.mrb[153].mxu0 }
 0xcd3   : > { %4212 = vst.msk [vmem:[#allocation3 + $0x48] sm:$0xff] %vm4202_vm1, %v4125_v44  ;;  %v10671_v51 = vpop.f32.mrb[154].mxu0  ;;  %v17007_v44 = vld [vmem:[#allocation79_spill] sm:$0xff] }
 0xcd4   : > { %7250 = vrot.lane.b32.xlu1 %v10671_v51, %s12014_s18  ;;  %v6773_v17 = vpop.f32.mrb[155].mxu0  ;;  %v4131_v32 = vpop.permute.xlu0 %4130  ;;  %v17009_v51 = vld [vmem:[#allocation76_spill] sm:$0xff] }
 0xcd5   : > { %4215 = vst.msk [vmem:[#allocation3 + $0x60] sm:$0xff] %vm4202_vm1, %v4131_v32  ;;  %v17011_v32 = vld [vmem:[#allocation36_spill] sm:$0xff] }
 0xcd6   : > { %v4129_v30 = vpop.permute.xlu1 %4128  ;;  %7244 = vrot.lane.b32.xlu0 %v6770_v37, %s12014_s18  ;;  %v17008_v37 = vld [vmem:[#allocation77_spill] sm:$0xff] }
 0xcd7   : > { %4214 = vst.msk [vmem:[#allocation3 + $0x58] sm:$0xff] %vm4202_vm1, %v4129_v30  ;;  %v17012_v30 = vld [vmem:[#allocation45_spill] sm:$0xff] }
 0xcd8   : > { %7246 = vrot.lane.b32.xlu1 %v6773_v17, %s12014_s18  ;;  %v4135_v52 = vpop.permute.xlu0 %4134  ;;  %v17010_v17 = vld [vmem:[#allocation78_spill] sm:$0xff] }
 0xcd9   : > { %4217 = vst.msk [vmem:[#allocation3 + $0x70] sm:$0xff] %vm4202_vm1, %v4135_v52  ;;  %v17013_v52 = vld [vmem:[#allocation57_spill] sm:$0xff] }
 0xcda   : > { %v5694_v15 = vpop.permute.xlu1 %5693  ;;  %4142 = vrot.lane.b32.xlu0 %v16993_v54, %s12016_s5 }
 0xcdb   : > { %5781 = vst.msk [vmem:[#allocation3 + $0x48] sm:$0xff] %vm5771_vm2, %v5694_v15  ;;  %v17014_v15 = vld [vmem:[#allocation59_spill] sm:$0xff] }
 0xcdc   : > { %4144 = vrot.lane.b32.xlu1 %v16994_v53, %s12016_s5  ;;  %v5700_v22 = vpop.permute.xlu0 %5699 }
 0xcdd   : > { %5784 = vst.msk [vmem:[#allocation3 + $0x60] sm:$0xff] %vm5771_vm2, %v5700_v22 }
 0xcde   : > { %v5698_v11 = vpop.permute.xlu1 %5697 }
 0xcdf   : > { %5783 = vst.msk [vmem:[#allocation3 + $0x58] sm:$0xff] %vm5771_vm2, %v5698_v11 }
 0xce0   : > { %v5704_v57 = vpop.permute.xlu0 %5703 }
 0xce1   : > { %5786 = vst.msk [vmem:[#allocation3 + $0x70] sm:$0xff] %vm5771_vm2, %v5704_v57 }
 0xce2   : > { %v4133_v25 = vpop.permute.xlu1 %4132 }
 0xce3   : > { %4216 = vst.msk [vmem:[#allocation3 + $0x68] sm:$0xff] %vm4202_vm1, %v4133_v25 }
 0xce4   : > { %v4139_v23 = vpop.permute.xlu0 %4138 }
 0xce5   : > { %4219 = vst.msk [vmem:[#allocation3 + $0x80] sm:$0xff] %vm4202_vm1, %v4139_v23 }
 0xce6   : > { %v4137_v34 = vpop.permute.xlu1 %4136 }
 0xce7   : > { %4218 = vst.msk [vmem:[#allocation3 + $0x78] sm:$0xff] %vm4202_vm1, %v4137_v34 }
 0xcea   : > { %v5702_v61 = vpop.permute.xlu1 %5701 }
 0xceb   : > { %5785 = vst.msk [vmem:[#allocation3 + $0x68] sm:$0xff] %vm5771_vm2, %v5702_v61 }
 0xcee   : > { %v5706_v58 = vpop.permute.xlu1 %5705 }
 0xcef   : > { %5787 = vst.msk [vmem:[#allocation3 + $0x78] sm:$0xff] %vm5771_vm2, %v5706_v58 }
 0xcf2   : > { %v4141_v24 = vpop.permute.xlu1 %4140 }
 0xcf3   : > { %4220 = vst.msk [vmem:[#allocation3 + $0x88] sm:$0xff] %vm4202_vm1, %v4141_v24  ;;  %v17015_v24 = vld [vmem:[#allocation87_spill] sm:$0xff] }
 0xcfd   : > { %v10686_v35 = vpop.f32.mrb[156].mxu0 }
 0xcfe   : > { %v6892_v16 = vpop.f32.mrb[157].mxu0 }
 0xcff   : > { %v10687_v4 = vpop.f32.mrb[158].mxu0 }
 0xd00   : > { %v6895_v28 = vpop.f32.mrb[159].mxu0 }
 0xd02   : > { %v10678_v55 = vpop.f32.mrb[168].mxu1 }
 0xd03   : > { %7256 = vrot.lane.b32.xlu0 %v10678_v55, %s12014_s18  ;;  %v6831_v8 = vpop.f32.mrb[169].mxu1 }
 0xd04   : > { %v10679_v2 = vpop.f32.mrb[170].mxu1 }
 0xd05   : > { %7258 = vrot.lane.b32.xlu1 %v10679_v2, %s12014_s18  ;;  %v6834_v26 = vpop.f32.mrb[171].mxu1 }
 0xd07   : > { %7264 = vrot.lane.b32.xlu0 %v10686_v35, %s12014_s18 }
 0xd09   : > { %7266 = vrot.lane.b32.xlu1 %v10687_v4, %s12014_s18  ;;  %v17016_v4 = vld [vmem:[#allocation85_spill] sm:$0xff] }
 0xd0b   : > { %7252 = vrot.lane.b32.xlu0 %v6831_v8, %s12014_s18 }
 0xd0d   : > { %7254 = vrot.lane.b32.xlu1 %v6834_v26, %s12014_s18 }
 0xd0f   : > { %5707 = vrot.lane.b32.xlu0 %v16995_v62, %s12015_s25  ;;  %v17017_v62 = vld [vmem:[#allocation84_spill] sm:$0xff] }
 0xd11   : > { %5709 = vrot.lane.b32.xlu1 %v16996_v45, %s12015_s25 }
 0xd13   : > { %7260 = vrot.lane.b32.xlu0 %v6892_v16, %s12014_s18 }
 0xd15   : > { %5713 = vrot.lane.b32.xlu1 %v16997_v12, %s12015_s25 }
 0xd17   : > { %5711 = vrot.lane.b32.xlu0 %v16998_v33, %s12015_s25 }
 0xd19   : > { %4148 = vrot.lane.b32.xlu1 %v16999_v3, %s12016_s5  ;;  %v17018_v3 = vld [vmem:[#allocation86_spill] sm:$0xff] }
 0xd1b   : > { %4146 = vrot.lane.b32.xlu0 %v17000_v20, %s12016_s5 }
 0xd1d   : > { %7262 = vrot.lane.b32.xlu1 %v6895_v28, %s12014_s18 }
 0xd1f   : > { %4150 = vrot.lane.b32.xlu0 %v17001_v21, %s12016_s5 }
 0xd21   : > { %4152 = vrot.lane.b32.xlu1 %v17002_v29, %s12016_s5 }
 0xd3b   : > { %v10694_v42 = vpop.f32.mrb[172].mxu1 }
 0xd3c   : > { %7272 = vrot.lane.b32.xlu0 %v10694_v42, %s12014_s18  ;;  %v6953_v56 = vpop.f32.mrb[173].mxu1 }
 0xd3d   : > { %v10695_v13 = vpop.f32.mrb[174].mxu1 }
 0xd3e   : > { %7274 = vrot.lane.b32.xlu1 %v10695_v13, %s12014_s18  ;;  %v6956_v36 = vpop.f32.mrb[175].mxu1 }
 0xd42   : > { %v10702_v6 = vpop.f32.mrb[160].mxu0 }
 0xd43   : > { %7280 = vrot.lane.b32.xlu0 %v10702_v6, %s12014_s18  ;;  %v7014_v9 = vpop.f32.mrb[161].mxu0  ;;  %v17020_v6 = vld [vmem:[#allocation41_spill] sm:$0xff] }
 0xd44   : > { %v10703_v27 = vpop.f32.mrb[162].mxu0  ;;  %v7249_v1 = vpop.permute.xlu0 %7248 }
 0xd45   : > { %7343 = vst.msk [vmem:[#allocation3 + $0x10] sm:$0xff] %vm7340_vm3, %v7249_v1  ;;  %7282 = vrot.lane.b32.xlu1 %v10703_v27, %s12014_s18  ;;  %v7017_v43 = vpop.f32.mrb[163].mxu0  ;;  %v17021_v1 = vld [vmem:[#allocation52_spill] sm:$0xff] }
 0xd46   : > { %v7251_v10 = vpop.permute.xlu1 %7250 }
 0xd47   : > { %7344 = vst.msk [vmem:[#allocation3 + $0x18] sm:$0xff] %vm7340_vm3, %v7251_v10  ;;  %7268 = vrot.lane.b32.xlu0 %v6953_v56, %s12014_s18 }
 0xd48   : > { %v7245_v5 = vpop.permute.xlu0 %7244 }
 0xd49   : > { %7341 = vst.msk [vmem:[#allocation3] sm:$0xff] %vm7340_vm3, %v7245_v5  ;;  %7270 = vrot.lane.b32.xlu1 %v6956_v36, %s12014_s18  ;;  %v17019_v36 = vld [vmem:[#allocation37_spill] sm:$0xff] }
 0xd4a   : > { %v7247_v14 = vpop.permute.xlu1 %7246 }
 0xd4b   : > { %7342 = vst.msk [vmem:[#allocation3 + $0x8] sm:$0xff] %vm7340_vm3, %v7247_v14  ;;  %5715 = vrot.lane.b32.xlu0 %v17003_v50, %s12015_s25  ;;  %v10710_v39 = vpop.f32.mrb[176].mxu1 }
 0xd4c   : > { %v7075_v49 = vpop.f32.mrb[177].mxu1  ;;  %v4143_v60 = vpop.permute.xlu0 %4142  ;;  %v7375_v0 = vld [vmem:[#allocation3 + $0x10] sm:$0xff] }
 0xd4d   : > { %4221 = vst.msk [vmem:[#allocation3 + $0x90] sm:$0xff] %vm4202_vm1, %v4143_v60  ;;  %5717 = vrot.lane.b32.xlu1 %v17004_v31, %s12015_s25  ;;  %v10711_v38 = vpop.f32.mrb[178].mxu1 }
 0xd4e   : > { %v4145_v18 = vpop.permute.xlu1 %4144  ;;  %v7078_v19 = vpop.f32.mrb[179].mxu1  ;;  %v7376_v46 = vld [vmem:[#allocation3 + $0x18] sm:$0xff] }
 0xd4f   : > { %4222 = vst.msk [vmem:[#allocation3 + $0x98] sm:$0xff] %vm4202_vm1, %v4145_v18  ;;  %7276 = vrot.lane.b32.xlu0 %v7014_v9, %s12014_s18  ;;  %v7406_v41 = vpack.c.bf16 %v7376_v46, %v7375_v0 }
 0xd50   : > { %v7373_v7 = vld [vmem:[#allocation3] sm:$0xff] }
 0xd51   : > { %5721 = vrot.lane.b32.xlu1 %v17005_v63, %s12015_s25 }
 0xd52   : > { %v7374_v48 = vld [vmem:[#allocation3 + $0x8] sm:$0xff] }
 0xd53   : > { %5719 = vrot.lane.b32.xlu0 %v17006_v40, %s12015_s25  ;;  %v7405_v47 = vpack.c.bf16 %v7374_v48, %v7373_v7 }
 0xd55   : > { %4156 = vrot.lane.b32.xlu1 %v17007_v44, %s12016_s5  ;;  %10744 = vmatprep.mubr.bf16.mxu0 %v7405_v47 }
 0xd56   : > { %10745 = vmatmul.mubr.bf16.vlgmr.msra.gmra.mrb[168].mxu0 %v7406_v41 }
 0xd57   : > { %4154 = vrot.lane.b32.xlu0 %v17008_v37, %s12016_s5 }
 0xd59   : > { %7278 = vrot.lane.b32.xlu1 %v7017_v43, %s12014_s18  ;;  %v17022_v43 = vld [vmem:[#allocation31_spill] sm:$0xff] }
 0xd5b   : > { %4158 = vrot.lane.b32.xlu0 %v17009_v51, %s12016_s5 }
 0xd5d   : > { %4160 = vrot.lane.b32.xlu1 %v17010_v17, %s12016_s5 }
 0xd5f   : > { %5723 = vrot.lane.b32.xlu0 %v17011_v32, %s12015_s25 }
 0xd61   : > { %5725 = vrot.lane.b32.xlu1 %v17012_v30, %s12015_s25 }
 0xd63   : > { %7288 = vrot.lane.b32.xlu0 %v10710_v39, %s12014_s18 }
 0xd65   : > { %7290 = vrot.lane.b32.xlu1 %v10711_v38, %s12014_s18 }
 0xd67   : > { %7284 = vrot.lane.b32.xlu0 %v7075_v49, %s12014_s18 }
 0xd69   : > { %7286 = vrot.lane.b32.xlu1 %v7078_v19, %s12014_s18 }
 0xd6b   : > { %5727 = vrot.lane.b32.xlu0 %v17013_v52, %s12015_s25 }
 0xd6d   : > { %5729 = vrot.lane.b32.xlu1 %v17014_v15, %s12015_s25 }
 0xd75   : > { %v7257_v54 = vpop.permute.xlu0 %7256 }
 0xd76   : > { %7347 = vst.msk [vmem:[#allocation3 + $0x30] sm:$0xff] %vm7340_vm3, %v7257_v54 }
 0xd77   : > { %v7259_v53 = vpop.permute.xlu1 %7258 }
 0xd78   : > { %7348 = vst.msk [vmem:[#allocation3 + $0x38] sm:$0xff] %vm7340_vm3, %v7259_v53 }
 0xd79   : > { %v7265_v22 = vpop.permute.xlu0 %7264 }
 0xd7a   : > { %7351 = vst.msk [vmem:[#allocation3 + $0x50] sm:$0xff] %vm7340_vm3, %v7265_v22  ;;  %v10718_v11 = vpop.f32.mrb[164].mxu0 }
 0xd7b   : > { %v7267_v57 = vpop.permute.xlu1 %7266  ;;  %v7136_v25 = vpop.f32.mrb[165].mxu0 }
 0xd7c   : > { %7352 = vst.msk [vmem:[#allocation3 + $0x58] sm:$0xff] %vm7340_vm3, %v7267_v57  ;;  %v10719_v23 = vpop.f32.mrb[166].mxu0  ;;  %7292 = vrot.lane.b32.xlu0 %v7136_v25, %s12014_s18 }
 0xd7d   : > { %v7139_v34 = vpop.f32.mrb[167].mxu0  ;;  %7298 = vrot.lane.b32.xlu1 %v10719_v23, %s12014_s18  ;;  %v7253_v61 = vpop.permute.xlu0 %7252  ;;  %v7379_v33 = vld [vmem:[#allocation3 + $0x30] sm:$0xff] }
 0xd7e   : > { %7345 = vst.msk [vmem:[#allocation3 + $0x20] sm:$0xff] %vm7340_vm3, %v7253_v61 }
 0xd7f   : > { %v7255_v58 = vpop.permute.xlu1 %7254  ;;  %v7380_v55 = vld [vmem:[#allocation3 + $0x38] sm:$0xff] }
 0xd80   : > { %7346 = vst.msk [vmem:[#allocation3 + $0x28] sm:$0xff] %vm7340_vm3, %v7255_v58  ;;  %7296 = vrot.lane.b32.xlu0 %v10718_v11, %s12014_s18  ;;  %v7408_v29 = vpack.c.bf16 %v7380_v55, %v7379_v33 }
 0xd81   : > { %4164 = vrot.lane.b32.xlu1 %v17015_v24, %s12016_s5  ;;  %v5708_v35 = vpop.permute.xlu0 %5707  ;;  %v7383_v60 = vld [vmem:[#allocation3 + $0x50] sm:$0xff] }
 0xd82   : > { %5788 = vst.msk [vmem:[#allocation3 + $0x80] sm:$0xff] %vm5771_vm2, %v5708_v35 }
 0xd83   : > { %v5710_v16 = vpop.permute.xlu1 %5709  ;;  %v7384_v14 = vld [vmem:[#allocation3 + $0x58] sm:$0xff] }
 0xd84   : > { %5789 = vst.msk [vmem:[#allocation3 + $0x88] sm:$0xff] %vm5771_vm2, %v5710_v16  ;;  %4162 = vrot.lane.b32.xlu0 %v17016_v4, %s12016_s5  ;;  %v7410_v31 = vpack.c.bf16 %v7384_v14, %v7383_v60 }
 0xd85   : > { %7294 = vrot.lane.b32.xlu1 %v7139_v34, %s12014_s18  ;;  %v7261_v28 = vpop.permute.xlu0 %7260  ;;  %v7377_v2 = vld [vmem:[#allocation3 + $0x20] sm:$0xff] }
 0xd86   : > { %7349 = vst.msk [vmem:[#allocation3 + $0x40] sm:$0xff] %vm7340_vm3, %v7261_v28 }
 0xd87   : > { %v5714_v8 = vpop.permute.xlu1 %5713  ;;  %v7378_v26 = vld [vmem:[#allocation3 + $0x28] sm:$0xff] }
 0xd88   : > { %5791 = vst.msk [vmem:[#allocation3 + $0x98] sm:$0xff] %vm5771_vm2, %v5714_v8  ;;  %4166 = vrot.lane.b32.xlu0 %v17017_v62, %s12016_s5  ;;  %v10726_v45 = vpop.f32.mrb[180].mxu1  ;;  %v7407_v12 = vpack.c.bf16 %v7378_v26, %v7377_v2 }
 0xd89   : > { %4168 = vrot.lane.b32.xlu1 %v17018_v3, %s12016_s5  ;;  %v7197_v20 = vpop.f32.mrb[181].mxu1  ;;  %v5712_v21 = vpop.permute.xlu0 %5711 }
 0xd8a   : > { %5790 = vst.msk [vmem:[#allocation3 + $0x90] sm:$0xff] %vm5771_vm2, %v5712_v21  ;;  %v10727_v42 = vpop.f32.mrb[182].mxu1  ;;  %10748 = vmatprep.mubr.bf16.mxu0 %v7407_v12 }
 0xd8b   : > { %v4149_v56 = vpop.permute.xlu1 %4148  ;;  %v7200_v13 = vpop.f32.mrb[183].mxu1  ;;  %10749 = vmatmul.mubr.bf16.gmra.mrb[172].mxu0 %v7408_v29 }
 0xd8c   : > { %4224 = vst.msk [vmem:[#allocation3 + $0xa8] sm:$0xff] %vm4202_vm1, %v4149_v56  ;;  %5731 = vrot.lane.b32.xlu0 %v17019_v36, %s12015_s25 }
 0xd8d   : > { %5733 = vrot.lane.b32.xlu1 %v17020_v6, %s12015_s25  ;;  %v4147_v9 = vpop.permute.xlu0 %4146  ;;  %v7381_v50 = vld [vmem:[#allocation3 + $0x40] sm:$0xff] }
 0xd8e   : > { %4223 = vst.msk [vmem:[#allocation3 + $0xa0] sm:$0xff] %vm4202_vm1, %v4147_v9 }
 0xd8f   : > { %v7263_v27 = vpop.permute.xlu1 %7262 }
 0xd90   : > { %7350 = vst.msk [vmem:[#allocation3 + $0x48] sm:$0xff] %vm7340_vm3, %v7263_v27  ;;  %5735 = vrot.lane.b32.xlu0 %v17021_v1, %s12015_s25 }
 0xd91   : > { %5737 = vrot.lane.b32.xlu1 %v17022_v43, %s12015_s25  ;;  %v4151_v10 = vpop.permute.xlu0 %4150 }
 0xd92   : > { %4225 = vst.msk [vmem:[#allocation3 + $0xb0] sm:$0xff] %vm4202_vm1, %v4151_v10 }
 0xd93   : > { %v4153_v5 = vpop.permute.xlu1 %4152 }
 0xd94   : > { %4226 = vst.msk [vmem:[#allocation3 + $0xb8] sm:$0xff] %vm4202_vm1, %v4153_v5  ;;  %7300 = vrot.lane.b32.xlu0 %v7197_v20, %s12014_s18 }
 0xd95   : > { %7302 = vrot.lane.b32.xlu1 %v7200_v13, %s12014_s18 }
 0xd97   : > { %v7382_v39 = vld [vmem:[#allocation3 + $0x48] sm:$0xff] }
 0xd98   : > { %7304 = vrot.lane.b32.xlu0 %v10726_v45, %s12014_s18  ;;  %v7409_v49 = vpack.c.bf16 %v7382_v39, %v7381_v50 }
 0xd99   : > { %7306 = vrot.lane.b32.xlu1 %v10727_v42, %s12014_s18 }
 0xd9a   : > { %10752 = vmatprep.mubr.bf16.mxu0 %v7409_v49 }
 0xd9b   : > { %10753 = vmatmul.mubr.bf16.gmra.mrb[176].mxu0 %v7410_v31 }
 0xdae   : > { %v7273_v38 = vpop.permute.xlu0 %7272 }
 0xdaf   : > { %7355 = vst.msk [vmem:[#allocation3 + $0x70] sm:$0xff] %vm7340_vm3, %v7273_v38 }
 0xdb0   : > { %v7275_v18 = vpop.permute.xlu1 %7274 }
 0xdb1   : > { %7356 = vst.msk [vmem:[#allocation3 + $0x78] sm:$0xff] %vm7340_vm3, %v7275_v18 }
 0xdb5   : > { %v7281_v19 = vpop.permute.xlu0 %7280 }
 0xdb6   : > { %7359 = vst.msk [vmem:[#allocation3 + $0x90] sm:$0xff] %vm7340_vm3, %v7281_v19  ;;  %v7387_v17 = vld [vmem:[#allocation3 + $0x70] sm:$0xff] }
 0xdb7   : > { %v7283_v63 = vpop.permute.xlu1 %7282 }
 0xdb8   : > { %7360 = vst.msk [vmem:[#allocation3 + $0x98] sm:$0xff] %vm7340_vm3, %v7283_v63  ;;  %v7388_v0 = vld [vmem:[#allocation3 + $0x78] sm:$0xff] }
 0xdb9   : > { %v7269_v46 = vpop.permute.xlu0 %7268  ;;  %v7412_v30 = vpack.c.bf16 %v7388_v0, %v7387_v17 }
 0xdba   : > { %7353 = vst.msk [vmem:[#allocation3 + $0x60] sm:$0xff] %vm7340_vm3, %v7269_v46 }
 0xdbb   : > { %v7271_v7 = vpop.permute.xlu1 %7270 }
 0xdbc   : > { %7354 = vst.msk [vmem:[#allocation3 + $0x68] sm:$0xff] %vm7340_vm3, %v7271_v7 }
 0xdbd   : > { %v5716_v48 = vpop.permute.xlu0 %5715  ;;  %v7391_v58 = vld [vmem:[#allocation3 + $0x90] sm:$0xff] }
 0xdbe   : > { %5792 = vst.msk [vmem:[#allocation3 + $0xa0] sm:$0xff] %vm5771_vm2, %v5716_v48 }
 0xdbf   : > { %v5718_v40 = vpop.permute.xlu1 %5717  ;;  %v7392_v57 = vld [vmem:[#allocation3 + $0x98] sm:$0xff] }
 0xdc0   : > { %5793 = vst.msk [vmem:[#allocation3 + $0xa8] sm:$0xff] %vm5771_vm2, %v5718_v40  ;;  %v7414_v35 = vpack.c.bf16 %v7392_v57, %v7391_v58  ;;  %v15341_v40 = vld [vmem:[%s12376_s4] sm:$0xff] }
 0xdc1   : > { %v7277_v47 = vpop.permute.xlu0 %7276  ;;  %v7385_v44 = vld [vmem:[#allocation3 + $0x60] sm:$0xff] }
 0xdc2   : > { %7357 = vst.msk [vmem:[#allocation3 + $0x80] sm:$0xff] %vm7340_vm3, %v7277_v47  ;;  %v17023_v47 = vld [vmem:[#allocation21_spill] sm:$0xff] }
 0xdc3   : > { %v5722_v41 = vpop.permute.xlu1 %5721  ;;  %v7386_v37 = vld [vmem:[#allocation3 + $0x68] sm:$0xff]  ;;  %v15345_v0 = vrot.slane %v15341_v40, %v17023_v47 }
 0xdc4   : > { %5795 = vst.msk [vmem:[#allocation3 + $0xb8] sm:$0xff] %vm5771_vm2, %v5722_v41  ;;  %v7411_v51 = vpack.c.bf16 %v7386_v37, %v7385_v44 }
 0xdc5   : > { %v5720_v32 = vpop.permute.xlu0 %5719 }
 0xdc6   : > { %5794 = vst.msk [vmem:[#allocation3 + $0xb0] sm:$0xff] %vm5771_vm2, %v5720_v32  ;;  %10756 = vmatprep.mubr.bf16.mxu0 %v7411_v51 }
 0xdc7   : > { %v4157_v52 = vpop.permute.xlu1 %4156  ;;  %10757 = vmatmul.mubr.bf16.gmra.mrb[180].mxu0 %v7412_v30  ;;  %v11702_v30 = vld [vmem:[#allocation2] sm:$0xff] }
 0xdc8   : > { %4228 = vst.msk [vmem:[#allocation3 + $0xc8] sm:$0xff] %vm4202_vm1, %v4157_v52 }
 0xdc9   : > { %v4155_v15 = vpop.permute.xlu0 %4154  ;;  %v7389_v23 = vld [vmem:[#allocation3 + $0x80] sm:$0xff] }
 0xdca   : > { %4227 = vst.msk [vmem:[#allocation3 + $0xc0] sm:$0xff] %vm4202_vm1, %v4155_v15 }
 0xdcb   : > { %v7279_v54 = vpop.permute.xlu1 %7278 }
 0xdcc   : > { %7358 = vst.msk [vmem:[#allocation3 + $0x88] sm:$0xff] %vm7340_vm3, %v7279_v54  ;;  %v11703_v54 = vld [vmem:[#allocation2 + $0x8] sm:$0xff] }
 0xdcd   : > { %v4159_v53 = vpop.permute.xlu0 %4158 }
 0xdce   : > { %4229 = vst.msk [vmem:[#allocation3 + $0xd0] sm:$0xff] %vm4202_vm1, %v4159_v53 }
 0xdcf   : > { %v4161_v22 = vpop.permute.xlu1 %4160 }
 0xdd0   : > { %4230 = vst.msk [vmem:[#allocation3 + $0xd8] sm:$0xff] %vm4202_vm1, %v4161_v22  ;;  %v11704_v22 = vld [vmem:[#allocation2 + $0x10] sm:$0xff] }
 0xdd1   : > { %v5724_v11 = vpop.permute.xlu0 %5723 }
 0xdd2   : > { %5796 = vst.msk [vmem:[#allocation3 + $0xc0] sm:$0xff] %vm5771_vm2, %v5724_v11 }
 0xdd3   : > { %v5726_v25 = vpop.permute.xlu1 %5725  ;;  %v7390_v34 = vld [vmem:[#allocation3 + $0x88] sm:$0xff] }
 0xdd4   : > { %5797 = vst.msk [vmem:[#allocation3 + $0xc8] sm:$0xff] %vm5771_vm2, %v5726_v25  ;;  %v7413_v61 = vpack.c.bf16 %v7390_v34, %v7389_v23  ;;  %v11705_v25 = vld [vmem:[#allocation2 + $0x18] sm:$0xff] }
 0xdd5   : > { %v7289_v24 = vpop.permute.xlu0 %7288 }
 0xdd6   : > { %7363 = vst.msk [vmem:[#allocation3 + $0xb0] sm:$0xff] %vm7340_vm3, %v7289_v24  ;;  %10760 = vmatprep.mubr.bf16.mxu0 %v7413_v61 }
 0xdd7   : > { %v7291_v16 = vpop.permute.xlu1 %7290  ;;  %10761 = vmatmul.mubr.bf16.gmra.mrb[184].mxu0 %v7414_v35 }
 0xdd8   : > { %7364 = vst.msk [vmem:[#allocation3 + $0xb8] sm:$0xff] %vm7340_vm3, %v7291_v16 }
 0xdd9   : > { %v7285_v4 = vpop.permute.xlu0 %7284 }
 0xdda   : > { %7361 = vst.msk [vmem:[#allocation3 + $0xa0] sm:$0xff] %vm7340_vm3, %v7285_v4  ;;  %v11706_v4 = vld [vmem:[#allocation2 + $0x20] sm:$0xff] }
 0xddb   : > { %v7287_v28 = vpop.permute.xlu1 %7286 }
 0xddc   : > { %7362 = vst.msk [vmem:[#allocation3 + $0xa8] sm:$0xff] %vm7340_vm3, %v7287_v28 }
 0xddd   : > { %v5728_v55 = vpop.permute.xlu0 %5727  ;;  %v7395_v12 = vld [vmem:[#allocation3 + $0xb0] sm:$0xff] }
 0xdde   : > { %5798 = vst.msk [vmem:[#allocation3 + $0xd0] sm:$0xff] %vm5771_vm2, %v5728_v55 }
 0xddf   : > { %v5730_v8 = vpop.permute.xlu1 %5729  ;;  %v7396_v2 = vld [vmem:[#allocation3 + $0xb8] sm:$0xff] }
 0xde0   : > { %5799 = vst.msk [vmem:[#allocation3 + $0xd8] sm:$0xff] %vm5771_vm2, %v5730_v8  ;;  %v7416_v33 = vpack.c.bf16 %v7396_v2, %v7395_v12  ;;  %v11707_v2 = vld [vmem:[#allocation2 + $0x28] sm:$0xff]  ;;  %v11709_v12 = vld [vmem:[#allocation2 + $0x38] sm:$0xff] }
 0xde1   : > { %v7393_v26 = vld [vmem:[#allocation3 + $0xa0] sm:$0xff] }
 0xde3   : > { %v7394_v62 = vld [vmem:[#allocation3 + $0xa8] sm:$0xff] }
 0xde4   : > { %v7415_v45 = vpack.c.bf16 %v7394_v62, %v7393_v26  ;;  %v11708_v62 = vld [vmem:[#allocation2 + $0x30] sm:$0xff] }
 0xde6   : > { %10764 = vmatprep.mubr.bf16.mxu0 %v7415_v45 }
 0xde7   : > { %10765 = vmatmul.mubr.bf16.gmra.mrb[188].mxu0 %v7416_v33 }
 0xdee   : > { %v7293_v3 = vpop.permute.xlu0 %7292 }
 0xdef   : > { %7365 = vst.msk [vmem:[#allocation3 + $0xc0] sm:$0xff] %vm7340_vm3, %v7293_v3  ;;  %v7299_v20 = vpop.permute.xlu1 %7298 }
 0xdf0   : > { %7368 = vst.msk [vmem:[#allocation3 + $0xd8] sm:$0xff] %vm7340_vm3, %v7299_v20 }
 0xdf2   : > { %v7297_v21 = vpop.permute.xlu0 %7296 }
 0xdf3   : > { %7367 = vst.msk [vmem:[#allocation3 + $0xd0] sm:$0xff] %vm7340_vm3, %v7297_v21  ;;  %v4165_v29 = vpop.permute.xlu1 %4164 }
 0xdf4   : > { %4232 = vst.msk [vmem:[#allocation3 + $0xe8] sm:$0xff] %vm4202_vm1, %v4165_v29 }
 0xdf6   : > { %v4163_v42 = vpop.permute.xlu0 %4162  ;;  %v7397_v1 = vld [vmem:[#allocation3 + $0xc0] sm:$0xff] }
 0xdf7   : > { %4231 = vst.msk [vmem:[#allocation3 + $0xe0] sm:$0xff] %vm4202_vm1, %v4163_v42  ;;  %v7295_v56 = vpop.permute.xlu1 %7294  ;;  %v7400_v5 = vld [vmem:[#allocation3 + $0xd8] sm:$0xff] }
 0xdf8   : > { %7366 = vst.msk [vmem:[#allocation3 + $0xc8] sm:$0xff] %vm7340_vm3, %v7295_v56 }
 0xdfa   : > { %v4167_v13 = vpop.permute.xlu0 %4166  ;;  %v7399_v9 = vld [vmem:[#allocation3 + $0xd0] sm:$0xff] }
 0xdfb   : > { %4233 = vst.msk [vmem:[#allocation3 + $0xf0] sm:$0xff] %vm4202_vm1, %v4167_v13  ;;  %v4169_v36 = vpop.permute.xlu1 %4168  ;;  %v7418_v14 = vpack.c.bf16 %v7400_v5, %v7399_v9  ;;  %v11710_v13 = vld [vmem:[#allocation2 + $0x40] sm:$0xff]  ;;  %v11713_v5 = vld [vmem:[#allocation2 + $0x58] sm:$0xff] }
 0xdfc   : > { %4234 = vst.msk [vmem:[#allocation3 + $0xf8] sm:$0xff] %vm4202_vm1, %v4169_v36 }
 0xdfe   : > { %v5732_v6 = vpop.permute.xlu0 %5731 }
 0xdff   : > { %5800 = vst.msk [vmem:[#allocation3 + $0xe0] sm:$0xff] %vm5771_vm2, %v5732_v6  ;;  %v5734_v27 = vpop.permute.xlu1 %5733  ;;  %v7398_v43 = vld [vmem:[#allocation3 + $0xc8] sm:$0xff] }
 0xe00   : > { %5801 = vst.msk [vmem:[#allocation3 + $0xe8] sm:$0xff] %vm5771_vm2, %v5734_v27  ;;  %v7417_v10 = vpack.c.bf16 %v7398_v43, %v7397_v1  ;;  %v11711_v27 = vld [vmem:[#allocation2 + $0x48] sm:$0xff]  ;;  %v11712_v43 = vld [vmem:[#allocation2 + $0x50] sm:$0xff] }
 0xe02   : > { %10768 = vmatprep.mubr.bf16.mxu0 %v7417_v10  ;;  %v5736_v50 = vpop.permute.xlu0 %5735 }
 0xe03   : > { %5802 = vst.msk [vmem:[#allocation3 + $0xf0] sm:$0xff] %vm5771_vm2, %v5736_v50  ;;  %v5738_v39 = vpop.permute.xlu1 %5737  ;;  %10769 = vmatmul.mubr.bf16.gmra.mrb[192].mxu0 %v7418_v14 }
 0xe04   : > { %5803 = vst.msk [vmem:[#allocation3 + $0xf8] sm:$0xff] %vm5771_vm2, %v5738_v39 }
 0xe06   : > { %v7301_v49 = vpop.permute.xlu0 %7300 }
 0xe07   : > { %7369 = vst.msk [vmem:[#allocation3 + $0xe0] sm:$0xff] %vm7340_vm3, %v7301_v49  ;;  %v7303_v60 = vpop.permute.xlu1 %7302 }
 0xe08   : > { %7370 = vst.msk [vmem:[#allocation3 + $0xe8] sm:$0xff] %vm7340_vm3, %v7303_v60 }
 0xe0a   : > { %v7305_v31 = vpop.permute.xlu0 %7304 }
 0xe0b   : > { %7371 = vst.msk [vmem:[#allocation3 + $0xf0] sm:$0xff] %vm7340_vm3, %v7305_v31  ;;  %v7307_v38 = vpop.permute.xlu1 %7306 }
 0xe0c   : > { %7372 = vst.msk [vmem:[#allocation3 + $0xf8] sm:$0xff] %vm7340_vm3, %v7307_v38 }
 0xe0e   : > { %v7401_v18 = vld [vmem:[#allocation3 + $0xe0] sm:$0xff] }
 0xe0f   : > { %v7402_v19 = vld [vmem:[#allocation3 + $0xe8] sm:$0xff] }
 0xe10   : > { %v7419_v63 = vpack.c.bf16 %v7402_v19, %v7401_v18  ;;  %v11714_v18 = vld [vmem:[#allocation2 + $0x60] sm:$0xff] }
 0xe12   : > { %10772 = vmatprep.mubr.bf16.mxu0 %v7419_v63  ;;  %v7403_v46 = vld [vmem:[#allocation3 + $0xf0] sm:$0xff] }
 0xe13   : > { %v7404_v7 = vld [vmem:[#allocation3 + $0xf8] sm:$0xff] }
 0xe14   : > { %v7420_v48 = vpack.c.bf16 %v7404_v7, %v7403_v46  ;;  %v11715_v7 = vld [vmem:[#allocation2 + $0x68] sm:$0xff] }
 0xe16   : > { %10773 = vmatmul.mubr.bf16.gmra.mrb[196].mxu0 %v7420_v48 }
 0xe29   : > { %v10746_v41 = vpop.f32.mrb[168].mxu0 }
 0xe2a   : > { %v7523_v44 = vpop.f32.mrb[169].mxu0  ;;  %v7532_v32 = vadd.f32 %v10746_v41, %v15345_v0  ;;  %v11716_v41 = vld [vmem:[#allocation2 + $0x70] sm:$0xff] }
 0xe2b   : > { %v7524_v37 = vadd.f32 %v7523_v44, %v15345_v0  ;;  %v10747_v51 = vpop.f32.mrb[170].mxu0 }
 0xe2c   : > { %v7526_v17 = vpop.f32.mrb[171].mxu0  ;;  %v15355_v11 = vadd.f32 %v11704_v22, %v7532_v32  ;;  %v7535_v57 = vadd.f32 %v10747_v51, %v15345_v0 }
 0xe2d   : > { %v15349_v52 = vadd.f32 %v11702_v30, %v7524_v37  ;;  %v7527_v15 = vadd.f32 %v7526_v17, %v15345_v0  ;;  %v11717_v37 = vld [vmem:[#allocation2 + $0x78] sm:$0xff] }
 0xe2e   : > { %v15360_v23 = vadd.f32 %v11705_v25, %v7535_v57  ;;  %v11718_v57 = vld [vmem:[#allocation2 + $0x80] sm:$0xff] }
 0xe2f   : > { %v15352_v53 = vadd.f32 %v11703_v54, %v7527_v15  ;;  %7682 = vadd.xlane.f32.xlu0 %v15349_v52 }
 0xe31   : > { %7684 = vadd.xlane.f32.xlu1 %v15352_v53 }
 0xe33   : > { %7686 = vadd.xlane.f32.xlu0 %v15355_v11 }
 0xe37   : > { %7688 = vadd.xlane.f32.xlu0 %v15360_v23 }
 0xe5e   : > { %v10750_v34 = vpop.f32.mrb[172].mxu0 }
 0xe5f   : > { %v7539_v61 = vpop.f32.mrb[173].mxu0  ;;  %v7548_v16 = vadd.f32 %v10750_v34, %v15345_v0 }
 0xe60   : > { %v7540_v58 = vadd.f32 %v7539_v61, %v15345_v0  ;;  %v10751_v24 = vpop.f32.mrb[174].mxu0 }
 0xe61   : > { %v7542_v35 = vpop.f32.mrb[175].mxu0  ;;  %v7551_v8 = vadd.f32 %v10751_v24, %v15345_v0  ;;  %v15372_v45 = vadd.f32 %v11708_v62, %v7548_v16 }
 0xe62   : > { %v15365_v28 = vadd.f32 %v11706_v4, %v7540_v58  ;;  %v7543_v55 = vadd.f32 %v7542_v35, %v15345_v0  ;;  %v11719_v58 = vld [vmem:[#allocation2 + $0x88] sm:$0xff]  ;;  %v11720_v35 = vld [vmem:[#allocation2 + $0x90] sm:$0xff]  ;;  %v11721_v4 = vld [vmem:[#allocation2 + $0x98] sm:$0xff] }
 0xe63   : > { %v15375_v33 = vadd.f32 %v11709_v12, %v7551_v8 }
 0xe64   : > { %v15369_v26 = vadd.f32 %v11707_v2, %v7543_v55  ;;  %7690 = vadd.xlane.f32.xlu1 %v15365_v28 }
 0xe66   : > { %7692 = vadd.xlane.f32.xlu0 %v15369_v26 }
 0xe68   : > { %7694 = vadd.xlane.f32.xlu1 %v15372_v45 }
 0xe6a   : > { %7696 = vadd.xlane.f32.xlu0 %v15375_v33 }
 0xe6e   : > { %v10754_v3 = vpop.f32.mrb[176].mxu0 }
 0xe6f   : > { %v7555_v20 = vpop.f32.mrb[177].mxu0  ;;  %v7564_v56 = vadd.f32 %v10754_v3, %v15345_v0 }
 0xe70   : > { %v7556_v21 = vadd.f32 %v7555_v20, %v15345_v0  ;;  %v10755_v29 = vpop.f32.mrb[178].mxu0 }
 0xe71   : > { %v7558_v42 = vpop.f32.mrb[179].mxu0  ;;  %v7567_v9 = vadd.f32 %v10755_v29, %v15345_v0  ;;  %v15388_v10 = vadd.f32 %v11712_v43, %v7564_v56 }
 0xe72   : > { %v15381_v36 = vadd.f32 %v11710_v13, %v7556_v21  ;;  %v7559_v6 = vadd.f32 %v7558_v42, %v15345_v0 }
 0xe73   : > { %v15391_v14 = vadd.f32 %v11713_v5, %v7567_v9 }
 0xe74   : > { %v15385_v1 = vadd.f32 %v11711_v27, %v7559_v6  ;;  %7698 = vadd.xlane.f32.xlu1 %v15381_v36 }
 0xe76   : > { %7700 = vadd.xlane.f32.xlu0 %v15385_v1 }
 0xe78   : > { %7702 = vadd.xlane.f32.xlu1 %v15388_v10 }
 0xe7a   : > { %7704 = vadd.xlane.f32.xlu0 %v15391_v14 }
 0xe9a   : > { %v10758_v50 = vpop.f32.mrb[180].mxu0 }
 0xe9b   : > { %v7571_v39 = vpop.f32.mrb[181].mxu0  ;;  %v7580_v38 = vadd.f32 %v10758_v50, %v15345_v0  ;;  %v11722_v50 = vld [vmem:[#allocation2 + $0xa0] sm:$0xff] }
 0xe9c   : > { %v7572_v49 = vadd.f32 %v7571_v39, %v15345_v0  ;;  %v10759_v60 = vpop.f32.mrb[182].mxu0 }
 0xe9d   : > { %v7574_v31 = vpop.f32.mrb[183].mxu0  ;;  %v7583_v46 = vadd.f32 %v10759_v60, %v15345_v0  ;;  %v15404_v44 = vadd.f32 %v11716_v41, %v7580_v38  ;;  %v11723_v60 = vld [vmem:[#allocation2 + $0xa8] sm:$0xff] }
 0xe9e   : > { %v15397_v19 = vadd.f32 %v11714_v18, %v7572_v49  ;;  %v7575_v63 = vadd.f32 %v7574_v31, %v15345_v0  ;;  %v11010_v18 = vld [vmem:[%s12380_s0] ss:$8 sps:$4 sm:$0xff]  }
 0xe9f   : > { %v15407_v51 = vadd.f32 %v11717_v37, %v7583_v46  ;;  %v11013_v37 = vld [vmem:[%s12380_s0 + $0x10] ss:$8 sps:$4 sm:$0xff]  }
 0xea0   : > { %v15401_v48 = vadd.f32 %v11715_v7, %v7575_v63  ;;  %7706 = vadd.xlane.f32.xlu1 %v15397_v19  ;;  %v11012_v63 = vld [vmem:[%s12380_s0 + $0x4] ss:$8 sps:$4 sm:$0xff]   ;;  %v11015_v7 = vld [vmem:[%s12380_s0 + $0x14] ss:$8 sps:$4 sm:$0xff]  }
 0xea1   : > { %8231 = vmatprep.subr.bf16.mxu1 %v11012_v63 }
 0xea2   : > { %7708 = vadd.xlane.f32.xlu0 %v15401_v48  ;;  %8232 = vmatpush1.bf16.msra.mxu1 %v11010_v18 }
 0xea3   : > { %8233 = vmatprep.subr.bf16.mxu1 %v11015_v7 }
 0xea4   : > { %7710 = vadd.xlane.f32.xlu1 %v15404_v44 }
 0xea6   : > { %7712 = vadd.xlane.f32.xlu0 %v15407_v51  ;;  %8234 = vmatpush1.bf16.msra.mxu1 %v11013_v37  ;;  %v11726_v37 = vld [vmem:[#allocation2 + $0xc0] sm:$0xff] }
 0xeaa   : > { %v10762_v17 = vpop.f32.mrb[184].mxu0 }
 0xeab   : > { %v7587_v32 = vpop.f32.mrb[185].mxu0  ;;  %v7596_v22 = vadd.f32 %v10762_v17, %v15345_v0  ;;  %v11724_v17 = vld [vmem:[#allocation2 + $0xb0] sm:$0xff] }
 0xeac   : > { %v7588_v30 = vadd.f32 %v7587_v32, %v15345_v0  ;;  %v10763_v15 = vpop.f32.mrb[186].mxu0 }
 0xead   : > { %v7590_v54 = vpop.f32.mrb[187].mxu0  ;;  %v7599_v61 = vadd.f32 %v10763_v15, %v15345_v0  ;;  %v15420_v16 = vadd.f32 %v11720_v35, %v7596_v22  ;;  %v11016_v22 = vld [vmem:[%s12380_s0 + $0x20] ss:$8 sps:$4 sm:$0xff]  }
 0xeae   : > { %v15413_v25 = vadd.f32 %v11718_v57, %v7588_v30  ;;  %v7591_v34 = vadd.f32 %v7590_v54, %v15345_v0  ;;  %v11725_v30 = vld [vmem:[#allocation2 + $0xb8] sm:$0xff]  ;;  %v11018_v54 = vld [vmem:[%s12380_s0 + $0x24] ss:$8 sps:$4 sm:$0xff]  }
 0xeaf   : > { %v15423_v55 = vadd.f32 %v11721_v4, %v7599_v61  ;;  %8235 = vmatprep.subr.bf16.mxu1 %v11018_v54  ;;  %v11021_v57 = vld [vmem:[%s12380_s0 + $0x34] ss:$8 sps:$4 sm:$0xff]   ;;  %v11019_v61 = vld [vmem:[%s12380_s0 + $0x30] ss:$8 sps:$4 sm:$0xff]  }
 0xeb0   : > { %v15417_v24 = vadd.f32 %v11719_v58, %v7591_v34  ;;  %7714 = vadd.xlane.f32.xlu1 %v15413_v25  ;;  %8236 = vmatpush1.bf16.msra.mxu1 %v11016_v22 }
 0xeb1   : > { %8237 = vmatprep.subr.bf16.mxu1 %v11021_v57 }
 0xeb2   : > { %7716 = vadd.xlane.f32.xlu0 %v15417_v24 }
 0xeb4   : > { %7718 = vadd.xlane.f32.xlu1 %v15420_v16  ;;  %8238 = vmatpush1.bf16.msra.mxu1 %v11019_v61 }
 0xeb6   : > { %7720 = vadd.xlane.f32.xlu0 %v15423_v55 }
 0xeba   : > { %v10766_v8 = vpop.f32.mrb[188].mxu0 }
 0xebb   : > { %v7603_v2 = vpop.f32.mrb[189].mxu0  ;;  %v7612_v46 = vadd.f32 %v10766_v8, %v15345_v0  ;;  %v11024_v8 = vld [vmem:[%s12380_s0 + $0x44] ss:$8 sps:$4 sm:$0xff]  }
 0xebc   : > { %v10767_v62 = vpop.f32.mrb[190].mxu0  ;;  %v7683_v12 = vpop.xlane.xlu0 %7682  ;;  %v7604_v13 = vadd.f32 %v7603_v2, %v15345_v0  ;;  %v11022_v2 = vld [vmem:[%s12380_s0 + $0x40] ss:$8 sps:$4 sm:$0xff]   ;;  %8239 = vmatprep.subr.bf16.mxu1 %v11024_v8  ;;  %v11728_v8 = vld [vmem:[#allocation2 + $0xd0] sm:$0xff] }
 0xebd   : > { %v7747_v3 = vmul.f32 0.0078125, %v7683_v12  ;;  %v7606_v20 = vpop.f32.mrb[191].mxu0  ;;  %v7615_v41 = vadd.f32 %v10767_v62, %v15345_v0  ;;  %v15461_v32 = vadd.f32 %v11724_v17, %v7612_v46  ;;  %8240 = vmatpush1.bf16.msra.mxu1 %v11022_v2  ;;  %v11027_v62 = vld [vmem:[%s12380_s0 + $0x54] ss:$8 sps:$4 sm:$0xff]   ;;  %v11025_v12 = vld [vmem:[%s12380_s0 + $0x50] ss:$8 sps:$4 sm:$0xff]  }
 0xebe   : > { %v7685_v21 = vpop.xlane.xlu1 %7684  ;;  %v7607_v43 = vadd.f32 %v7606_v20, %v15345_v0  ;;  %v15439_v39 = vadd.f32 %v11722_v50, %v7604_v13  ;;  %8241 = vmatprep.subr.bf16.mxu1 %v11027_v62  ;;  %v11030_v20 = vld [vmem:[%s12380_s0 + $0x64] ss:$8 sps:$4 sm:$0xff]  }
 0xebf   : > { %v15428_v29 = vsub.f32 %v15349_v52, %v7747_v3  ;;  %v7748_v42 = vmul.f32 0.0078125, %v7685_v21  ;;  %v15463_v15 = vadd.f32 %v11725_v30, %v7615_v41  ;;  %v11028_v3 = vld [vmem:[%s12380_s0 + $0x60] ss:$8 sps:$4 sm:$0xff]   ;;  %v11031_v21 = vld [vmem:[%s12380_s0 + $0x70] ss:$8 sps:$4 sm:$0xff]  }
 0xec0   : > { %v7687_v56 = vpop.xlane.xlu0 %7686  ;;  %v15444_v31 = vadd.f32 %v11723_v60, %v7607_v43 }
 0xec1   : > { %v15432_v6 = vsub.f32 %v15352_v53, %v7748_v42  ;;  %v7749_v9 = vmul.f32 0.0078125, %v7687_v56  ;;  %v7811_v27 = vmul.f32 %v15428_v29, %v15428_v29  ;;  %8242 = vmatpush1.bf16.msra.mxu1 %v11025_v12  ;;  %v11033_v42 = vld [vmem:[%s12380_s0 + $0x74] ss:$8 sps:$4 sm:$0xff]  }
 0xec2   : > { %8243 = vmatprep.subr.bf16.mxu1 %v11030_v20  ;;  %v11729_v12 = vld [vmem:[#allocation2 + $0xd8] sm:$0xff] }
 0xec3   : > { %7843 = vadd.xlane.f32.xlu1 %v7811_v27  ;;  %v7812_v52 = vmul.f32 %v15432_v6, %v15432_v6  ;;  %v15442_v53 = vsub.f32 %v15355_v11, %v7749_v9 }
 0xec4   : > { %v7689_v5 = vpop.xlane.xlu0 %7688 }
 0xec5   : > { %v7750_v49 = vmul.f32 0.0078125, %v7689_v5  ;;  %7845 = vadd.xlane.f32.xlu0 %v7812_v52  ;;  %v7813_v11 = vmul.f32 %v15442_v53, %v15442_v53  ;;  %8244 = vmatpush1.bf16.msra.mxu1 %v11028_v3 }
 0xec6   : > { %8245 = vmatprep.subr.bf16.mxu1 %v11033_v42 }
 0xec7   : > { %v15447_v38 = vsub.f32 %v15360_v23, %v7750_v49  ;;  %7722 = vadd.xlane.f32.xlu1 %v15439_v39 }
 0xec9   : > { %7724 = vadd.xlane.f32.xlu0 %v15444_v31  ;;  %v7814_v23 = vmul.f32 %v15447_v38, %v15447_v38  ;;  %8246 = vmatpush1.bf16.msra.mxu1 %v11031_v21 }
 0xecb   : > { %7847 = vadd.xlane.f32.xlu1 %v7813_v11 }
 0xecd   : > { %7849 = vadd.xlane.f32.xlu0 %v7814_v23 }
 0xecf   : > { %7726 = vadd.xlane.f32.xlu1 %v15461_v32 }
 0xed1   : > { %7728 = vadd.xlane.f32.xlu0 %v15463_v15 }
 0xed6   : > { %v10770_v34 = vpop.f32.mrb[192].mxu0 }
 0xed7   : > { %v7619_v58 = vpop.f32.mrb[193].mxu0  ;;  %v7628_v57 = vadd.f32 %v10770_v34, %v15345_v0 }
 0xed8   : > { %v10771_v35 = vpop.f32.mrb[194].mxu0  ;;  %v7620_v18 = vadd.f32 %v7619_v58, %v15345_v0 }
 0xed9   : > { %v7622_v4 = vpop.f32.mrb[195].mxu0  ;;  %v7631_v58 = vadd.f32 %v10771_v35, %v15345_v0  ;;  %v15513_v2 = vadd.f32 %v11728_v8, %v7628_v57 }
 0xeda   : > { %v7623_v41 = vadd.f32 %v7622_v4, %v15345_v0  ;;  %v15495_v17 = vadd.f32 %v11726_v37, %v7620_v18  ;;  %v11730_v18 = vld [vmem:[#allocation2 + $0xe0] sm:$0xff]  ;;  %v11733_v37 = vld [vmem:[#allocation2 + $0xf8] sm:$0xff] }
 0xedb   : > { %v15515_v34 = vadd.f32 %v11729_v12, %v7631_v58 }
 0xee9   : > { %v15479_v56 = vpop.f32.mrb[196].mxu0 }
 0xeea   : > { %v7635_v13 = vpop.f32.mrb[197].mxu0 }
 0xeeb   : > { %v15481_v9 = vpop.f32.mrb[198].mxu0  ;;  %v7636_v21 = vadd.f32 %v7635_v13, %v15345_v0  ;;  %v11731_v13 = vld [vmem:[#allocation2 + $0xe8] sm:$0xff] }
 0xeec   : > { %v7638_v27 = vpop.f32.mrb[199].mxu0 }
 0xef1   : > { %v7691_v43 = vpop.xlane.xlu1 %7690 }
 0xef2   : > { %v7751_v52 = vmul.f32 0.0078125, %v7691_v43 }
 0xef3   : > { %v7693_v5 = vpop.xlane.xlu0 %7692 }
 0xef4   : > { %v15484_v50 = vsub.f32 %v15365_v28, %v7751_v52  ;;  %v7752_v49 = vmul.f32 0.0078125, %v7693_v5 }
 0xef5   : > { %v7695_v60 = vpop.xlane.xlu1 %7694 }
 0xef6   : > { %v15488_v63 = vsub.f32 %v15369_v26, %v7752_v49  ;;  %v7753_v46 = vmul.f32 0.0078125, %v7695_v60  ;;  %v7815_v11 = vmul.f32 %v15484_v50, %v15484_v50  ;;  %v11727_v26 = vld [vmem:[#allocation2 + $0xc8] sm:$0xff]  ;;  %v7639_v49 = vadd.f32 %v7638_v27, %v15345_v0 }
 0xef7   : > { %v7697_v7 = vpop.xlane.xlu0 %7696  ;;  %v15500_v54 = vadd.f32 %v11727_v26, %v7623_v41  ;;  %v7644_v27 = vadd.f32 %v15479_v56, %v15345_v0 }
 0xef8   : > { %v7754_v23 = vmul.f32 0.0078125, %v7697_v7  ;;  %7851 = vadd.xlane.f32.xlu1 %v7815_v11  ;;  %v7816_v28 = vmul.f32 %v15488_v63, %v15488_v63  ;;  %v15498_v30 = vsub.f32 %v15372_v45, %v7753_v46  ;;  %v15531_v46 = vadd.f32 %v11730_v18, %v7636_v21 }
 0xef9   : > { %v15536_v11 = vadd.f32 %v11731_v13, %v7639_v49 }
 0xefa   : > { %7853 = vadd.xlane.f32.xlu0 %v7816_v28  ;;  %v15503_v22 = vsub.f32 %v15375_v33, %v7754_v23  ;;  %v7817_v61 = vmul.f32 %v15498_v30, %v15498_v30  ;;  %v11732_v28 = vld [vmem:[#allocation2 + $0xf0] sm:$0xff] }
 0xefc   : > { %7730 = vadd.xlane.f32.xlu1 %v15495_v17  ;;  %v7818_v45 = vmul.f32 %v15503_v22, %v15503_v22 }
 0xefe   : > { %7732 = vadd.xlane.f32.xlu0 %v15500_v54 }
 0xf00   : > { %7855 = vadd.xlane.f32.xlu1 %v7817_v61 }
 0xf01   : > { %v7699_v4 = vpop.xlane.xlu1 %7698 }
 0xf02   : > { %v7755_v33 = vmul.f32 0.0078125, %v7699_v4  ;;  %7857 = vadd.xlane.f32.xlu0 %v7818_v45 }
 0xf03   : > { %v7701_v62 = vpop.xlane.xlu0 %7700 }
 0xf04   : > { %v15518_v3 = vsub.f32 %v15381_v36, %v7755_v33  ;;  %v7756_v20 = vmul.f32 0.0078125, %v7701_v62  ;;  %7734 = vadd.xlane.f32.xlu1 %v15513_v2 }
 0xf05   : > { %v7703_v35 = vpop.xlane.xlu1 %7702 }
 0xf06   : > { %v15523_v42 = vsub.f32 %v15385_v1, %v7756_v20  ;;  %v7757_v43 = vmul.f32 0.0078125, %v7703_v35  ;;  %7736 = vadd.xlane.f32.xlu0 %v15515_v34  ;;  %v7819_v52 = vmul.f32 %v15518_v3, %v15518_v3 }
 0xf07   : > { %v7705_v5 = vpop.xlane.xlu0 %7704 }
 0xf08   : > { %v7758_v36 = vmul.f32 0.0078125, %v7705_v5  ;;  %7859 = vadd.xlane.f32.xlu1 %v7819_v52  ;;  %v7820_v60 = vmul.f32 %v15523_v42, %v15523_v42  ;;  %v15534_v1 = vsub.f32 %v15388_v10, %v7757_v43  ;;  %v7647_v10 = vadd.f32 %v15481_v9, %v15345_v0 }
 0xf0a   : > { %7861 = vadd.xlane.f32.xlu0 %v7820_v60  ;;  %v15539_v7 = vsub.f32 %v15391_v14, %v7758_v36  ;;  %v7821_v41 = vmul.f32 %v15534_v1, %v15534_v1  ;;  %v15551_v14 = vadd.f32 %v11732_v28, %v7644_v27  ;;  %v15553_v26 = vadd.f32 %v11733_v37, %v7647_v10 }
 0xf0c   : > { %7738 = vadd.xlane.f32.xlu1 %v15531_v46  ;;  %v7822_v23 = vmul.f32 %v15539_v7, %v15539_v7 }
 0xf0e   : > { %7740 = vadd.xlane.f32.xlu0 %v15536_v11 }
 0xf10   : > { %7863 = vadd.xlane.f32.xlu1 %v7821_v41 }
 0xf12   : > { %7865 = vadd.xlane.f32.xlu0 %v7822_v23 }
 0xf14   : > { %7742 = vadd.xlane.f32.xlu1 %v15551_v14 }
 0xf16   : > { %7744 = vadd.xlane.f32.xlu0 %v15553_v26 }
 0xf2d   : > { %v7707_v56 = vpop.xlane.xlu1 %7706 }
 0xf2e   : > { %v7759_v57 = vmul.f32 0.0078125, %v7707_v56 }
 0xf2f   : > { %v7709_v61 = vpop.xlane.xlu0 %7708 }
 0xf30   : > { %v15558_v0 = vsub.f32 %v15397_v19, %v7759_v57  ;;  %v7760_v9 = vmul.f32 0.0078125, %v7709_v61 }
 0xf31   : > { %v7711_v58 = vpop.xlane.xlu1 %7710 }
 0xf32   : > { %v15561_v45 = vsub.f32 %v15401_v48, %v7760_v9  ;;  %v7761_v4 = vmul.f32 0.0078125, %v7711_v58  ;;  %v7823_v8 = vmul.f32 %v15558_v0, %v15558_v0 }
 0xf33   : > { %v7713_v33 = vpop.xlane.xlu0 %7712 }
 0xf34   : > { %v15566_v62 = vsub.f32 %v15404_v44, %v7761_v4  ;;  %v7762_v12 = vmul.f32 0.0078125, %v7713_v33  ;;  %7867 = vadd.xlane.f32.xlu1 %v7823_v8  ;;  %v7824_v20 = vmul.f32 %v15561_v45, %v15561_v45 }
 0xf36   : > { %v15571_v19 = vsub.f32 %v15407_v51, %v7762_v12  ;;  %7869 = vadd.xlane.f32.xlu0 %v7824_v20  ;;  %v7825_v48 = vmul.f32 %v15566_v62, %v15566_v62 }
 0xf38   : > { %7871 = vadd.xlane.f32.xlu1 %v7825_v48  ;;  %v7826_v35 = vmul.f32 %v15571_v19, %v15571_v19 }
 0xf3a   : > { %7873 = vadd.xlane.f32.xlu0 %v7826_v35 }
 0xf3d   : > { %v7715_v21 = vpop.xlane.xlu1 %7714 }
 0xf3e   : > { %v7763_v44 = vmul.f32 0.0078125, %v7715_v21 }
 0xf3f   : > { %v7717_v43 = vpop.xlane.xlu0 %7716 }
 0xf40   : > { %v15578_v52 = vsub.f32 %v15413_v25, %v7763_v44  ;;  %v7764_v5 = vmul.f32 0.0078125, %v7717_v43 }
 0xf41   : > { %v7719_v49 = vpop.xlane.xlu1 %7718 }
 0xf42   : > { %v15581_v51 = vsub.f32 %v15417_v24, %v7764_v5  ;;  %v7765_v36 = vmul.f32 0.0078125, %v7719_v49  ;;  %v7827_v60 = vmul.f32 %v15578_v52, %v15578_v52 }
 0xf43   : > { %v7721_v18 = vpop.xlane.xlu0 %7720 }
 0xf44   : > { %v15586_v13 = vsub.f32 %v15420_v16, %v7765_v36  ;;  %v7766_v27 = vmul.f32 0.0078125, %v7721_v18  ;;  %7875 = vadd.xlane.f32.xlu1 %v7827_v60  ;;  %v7828_v41 = vmul.f32 %v15581_v51, %v15581_v51  ;;  %v17024_v36 = vld [vmem:[#allocation20_spill] sm:$0xff] }
 0xf45   : > { %v8073_v18 = vsub.s32 3, %v17024_v36 }
 0xf46   : > { %v15591_v25 = vsub.f32 %v15423_v55, %v7766_v27  ;;  %7877 = vadd.xlane.f32.xlu0 %v7828_v41  ;;  %v7829_v24 = vmul.f32 %v15586_v13, %v15586_v13 }
 0xf48   : > { %7879 = vadd.xlane.f32.xlu1 %v7829_v24  ;;  %v7830_v10 = vmul.f32 %v15591_v25, %v15591_v25 }
 0xf4a   : > { %7881 = vadd.xlane.f32.xlu0 %v7830_v10 }
 0xf50   : > { %v7844_v23 = vpop.xlane.xlu1 %7843 }
 0xf51   : > { %v7907_v16 = vmul.f32 0.0078125, %v7844_v23 }
 0xf52   : > { %v7846_v28 = vpop.xlane.xlu0 %7845 }
 0xf53   : > { %v7939_v37 = vadd.f32 1e-05, %v7907_v16  ;;  %v7908_v56 = vmul.f32 0.0078125, %v7846_v28 }
 0xf54   : > { %v7723_v57 = vpop.xlane.xlu1 %7722 }
 0xf55   : > { %11562 = vrsqrt.f32 %v7939_v37  ;;  %v7940_v61 = vadd.f32 1e-05, %v7908_v56  ;;  %v7767_v9 = vmul.f32 0.0078125, %v7723_v57  ;;  %v15625_v57 = vrot.slane %v15341_v40, %v8073_v18 }
 0xf56   : > { %v7725_v55 = vpop.xlane.xlu0 %7724 }
 0xf57   : > { %11564 = vrsqrt.f32 %v7940_v61  ;;  %v15598_v58 = vsub.f32 %v15439_v39, %v7767_v9  ;;  %v7768_v4 = vmul.f32 0.0078125, %v7725_v55 }
 0xf58   : > { %v7848_v8 = vpop.xlane.xlu1 %7847 }
 0xf59   : > { %v15601_v33 = vsub.f32 %v15444_v31, %v7768_v4  ;;  %v7909_v12 = vmul.f32 0.0078125, %v7848_v8  ;;  %v7831_v20 = vmul.f32 %v15598_v58, %v15598_v58  ;;  %v17025_v31 = vsub.s32 2, %v17024_v36 }
 0xf5a   : > { %v7850_v48 = vpop.xlane.xlu0 %7849 }
 0xf5b   : > { %v7941_v35 = vadd.f32 1e-05, %v7909_v12  ;;  %v7910_v21 = vmul.f32 0.0078125, %v7850_v48  ;;  %7883 = vadd.xlane.f32.xlu1 %v7831_v20  ;;  %v7832_v44 = vmul.f32 %v15601_v33, %v15601_v33  ;;  %v15610_v60 = vrot.slane %v15341_v40, %v17025_v31 }
 0xf5c   : > { %v7727_v43 = vpop.xlane.xlu1 %7726 }
 0xf5d   : > { %11566 = vrsqrt.f32 %v7941_v35  ;;  %v7942_v39 = vadd.f32 1e-05, %v7910_v21  ;;  %v7769_v5 = vmul.f32 0.0078125, %v7727_v43  ;;  %7885 = vadd.xlane.f32.xlu0 %v7832_v44 }
 0xf5e   : > { %v7729_v49 = vpop.xlane.xlu0 %7728 }
 0xf5f   : > { %v11563_v27 = vpop.eup %11562  ;;  %11568 = vrsqrt.f32 %v7942_v39  ;;  %v15614_v41 = vsub.f32 %v15461_v32, %v7769_v5  ;;  %v7770_v24 = vmul.f32 0.0078125, %v7729_v49 }
 0xf60   : > { %v8003_v10 = vmul.f32 %v11563_v27, %v15428_v29 }
 0xf61   : > { %v11565_v23 = vpop.eup %11564  ;;  %v15618_v16 = vsub.f32 %v15463_v15, %v7770_v24  ;;  %v7833_v28 = vmul.f32 %v15614_v41, %v15614_v41 }
 0xf62   : > { %v8004_v37 = vmul.f32 %v11565_v23, %v15432_v6  ;;  %v8039_v56 = vmul.f32 %v15610_v60, %v8003_v10 }
 0xf63   : > { %7887 = vadd.xlane.f32.xlu1 %v7833_v28  ;;  %v7834_v32 = vmul.f32 %v15618_v16, %v15618_v16 }
 0xf64   : > { %v8040_v29 = vmul.f32 %v15610_v60, %v8004_v37  ;;  %v15631_v15 = vadd.f32 %v15625_v57, %v8039_v56 }
 0xf65   : > { %7889 = vadd.xlane.f32.xlu0 %v7834_v32 }
 0xf66   : > { %v15634_v61 = vadd.f32 %v15625_v57, %v8040_v29 }
 0xf67   : > { %v11567_v9 = vpop.eup %11566 }
 0xf68   : > { %v8107_v6 = vpack.c.bf16 %v15634_v61, %v15631_v15  ;;  %v8005_v40 = vmul.f32 %v11567_v9, %v15442_v53 }
 0xf69   : > { %v11569_v55 = vpop.eup %11568 }
 0xf6a   : > { %8264 = vmatmul.mubr.bf16.vlgmr.msra.gmra.mrb[184].mxu1 %v8107_v6  ;;  %v8006_v4 = vmul.f32 %v11569_v55, %v15447_v38  ;;  %v8041_v8 = vmul.f32 %v15610_v60, %v8005_v40 }
 0xf6b   : > { %8273 = vmatprep.mubr.bf16.mxu1 %v16992_v59 }
 0xf6c   : > { %v8042_v12 = vmul.f32 %v15610_v60, %v8006_v4  ;;  %v15644_v20 = vadd.f32 %v15625_v57, %v8041_v8 }
 0xf6e   : > { %v15647_v48 = vadd.f32 %v15625_v57, %v8042_v12 }
 0xf70   : > { %v8108_v35 = vpack.c.bf16 %v15647_v48, %v15644_v20 }
 0xf72   : > { %8274 = vmatmul.mubr.bf16.gmra.mrb[188].mxu1 %v8108_v35 }
 0xf73   : > { %8283 = vmatprep.mubr.bf16.mxu1 %v16992_v59 }
 0xf85   : > { %v7852_v53 = vpop.xlane.xlu1 %7851 }
 0xf86   : > { %v7911_v38 = vmul.f32 0.0078125, %v7852_v53 }
 0xf87   : > { %v7854_v21 = vpop.xlane.xlu0 %7853 }
 0xf88   : > { %v7943_v44 = vadd.f32 1e-05, %v7911_v38  ;;  %v7912_v43 = vmul.f32 0.0078125, %v7854_v21 }
 0xf89   : > { %v7731_v39 = vpop.xlane.xlu1 %7730 }
 0xf8a   : > { %11570 = vrsqrt.f32 %v7943_v44  ;;  %v7944_v5 = vadd.f32 1e-05, %v7912_v43  ;;  %v7771_v49 = vmul.f32 0.0078125, %v7731_v39 }
 0xf8b   : > { %v7733_v31 = vpop.xlane.xlu0 %7732 }
 0xf8c   : > { %11572 = vrsqrt.f32 %v7944_v5  ;;  %v15653_v18 = vsub.f32 %v15495_v17, %v7771_v49  ;;  %v7772_v27 = vmul.f32 0.0078125, %v7733_v31 }
 0xf8d   : > { %v7856_v24 = vpop.xlane.xlu1 %7855 }
 0xf8e   : > { %v15656_v10 = vsub.f32 %v15500_v54, %v7772_v27  ;;  %v7913_v23 = vmul.f32 0.0078125, %v7856_v24  ;;  %v7835_v28 = vmul.f32 %v15653_v18, %v15653_v18 }
 0xf8f   : > { %v7858_v37 = vpop.xlane.xlu0 %7857 }
 0xf90   : > { %v7945_v56 = vadd.f32 1e-05, %v7913_v23  ;;  %v7914_v32 = vmul.f32 0.0078125, %v7858_v37  ;;  %7891 = vadd.xlane.f32.xlu1 %v7835_v28  ;;  %v7836_v29 = vmul.f32 %v15656_v10, %v15656_v10 }
 0xf91   : > { %v7735_v9 = vpop.xlane.xlu1 %7734 }
 0xf92   : > { %11574 = vrsqrt.f32 %v7945_v56  ;;  %v7946_v17 = vadd.f32 1e-05, %v7914_v32  ;;  %v7773_v6 = vmul.f32 0.0078125, %v7735_v9  ;;  %7893 = vadd.xlane.f32.xlu0 %v7836_v29 }
 0xf93   : > { %v7737_v40 = vpop.xlane.xlu0 %7736 }
 0xf94   : > { %v11571_v55 = vpop.eup %11570  ;;  %11576 = vrsqrt.f32 %v7946_v17  ;;  %v15663_v54 = vsub.f32 %v15513_v2, %v7773_v6  ;;  %v7774_v4 = vmul.f32 0.0078125, %v7737_v40 }
 0xf95   : > { %v7860_v8 = vpop.xlane.xlu1 %7859  ;;  %v8007_v12 = vmul.f32 %v11571_v55, %v15484_v50 }
 0xf96   : > { %v11573_v35 = vpop.eup %11572  ;;  %v15667_v53 = vsub.f32 %v15515_v34, %v7774_v4  ;;  %v7915_v38 = vmul.f32 0.0078125, %v7860_v8  ;;  %v7837_v21 = vmul.f32 %v15663_v54, %v15663_v54 }
 0xf97   : > { %v7862_v44 = vpop.xlane.xlu0 %7861  ;;  %v8008_v43 = vmul.f32 %v11573_v35, %v15488_v63  ;;  %v8043_v39 = vmul.f32 %v15610_v60, %v8007_v12 }
 0xf98   : > { %v7947_v5 = vadd.f32 1e-05, %v7915_v38  ;;  %v7916_v2 = vmul.f32 0.0078125, %v7862_v44  ;;  %7895 = vadd.xlane.f32.xlu1 %v7837_v21  ;;  %v7838_v49 = vmul.f32 %v15667_v53, %v15667_v53 }
 0xf99   : > { %v7739_v50 = vpop.xlane.xlu1 %7738  ;;  %v8044_v31 = vmul.f32 %v15610_v60, %v8008_v43  ;;  %v15677_v23 = vadd.f32 %v15625_v57, %v8043_v39 }
 0xf9a   : > { %11578 = vrsqrt.f32 %v7947_v5  ;;  %v7948_v34 = vadd.f32 1e-05, %v7916_v2  ;;  %v7775_v27 = vmul.f32 0.0078125, %v7739_v50  ;;  %7897 = vadd.xlane.f32.xlu0 %v7838_v49 }
 0xf9b   : > { %v7741_v24 = vpop.xlane.xlu0 %7740  ;;  %v15680_v63 = vadd.f32 %v15625_v57, %v8044_v31 }
 0xf9c   : > { %v11575_v28 = vpop.eup %11574  ;;  %11580 = vrsqrt.f32 %v7948_v34  ;;  %v15683_v37 = vsub.f32 %v15531_v46, %v7775_v27  ;;  %v7776_v56 = vmul.f32 0.0078125, %v7741_v24 }
 0xf9d   : > { %v7864_v32 = vpop.xlane.xlu1 %7863  ;;  %v8109_v29 = vpack.c.bf16 %v15680_v63, %v15677_v23  ;;  %v8009_v9 = vmul.f32 %v11575_v28, %v15498_v30 }
 0xf9e   : > { %v11577_v17 = vpop.eup %11576  ;;  %v15689_v6 = vsub.f32 %v15536_v11, %v7776_v56  ;;  %v7917_v40 = vmul.f32 0.0078125, %v7864_v32  ;;  %v7839_v55 = vmul.f32 %v15683_v37, %v15683_v37  ;;  %v11034_v56 = vld [vmem:[%s12382_s8 + $0x40] sm:$0xff]  }
 0xf9f   : > { %8284 = vmatmul.mubr.bf16.gmra.mrb[192].mxu1 %v8109_v29  ;;  %v7866_v4 = vpop.xlane.xlu0 %7865  ;;  %v8010_v46 = vmul.f32 %v11577_v17, %v15503_v22  ;;  %v8045_v8 = vmul.f32 %v15610_v60, %v8009_v9  ;;  %10056 = vmatprep.subr.bf16.mxu0 %v11034_v56  ;;  %v11036_v9 = vld [vmem:[%s12382_s8 + $0x48] sm:$0xff]   ;;  %v11048_v56 = vld [vmem:[%s12382_s8 + $0x78] sm:$0xff]  }
 0xfa0   : > { %v7949_v12 = vadd.f32 1e-05, %v7917_v40  ;;  %v7918_v35 = vmul.f32 0.0078125, %v7866_v4  ;;  %7899 = vadd.xlane.f32.xlu1 %v7839_v55  ;;  %v7840_v30 = vmul.f32 %v15689_v6, %v15689_v6  ;;  %8293 = vmatprep.mubr.bf16.mxu1 %v16992_v59  ;;  %v11037_v40 = vld [vmem:[%s12382_s8 + $0x8] sm:$0xff]  }
 0xfa1   : > { %v7743_v11 = vpop.xlane.xlu1 %7742  ;;  %v8046_v38 = vmul.f32 %v15610_v60, %v8010_v46  ;;  %v15700_v22 = vadd.f32 %v15625_v57, %v8045_v8 }
 0xfa2   : > { %11582 = vrsqrt.f32 %v7949_v12  ;;  %v7950_v21 = vadd.f32 1e-05, %v7918_v35  ;;  %v7777_v44 = vmul.f32 0.0078125, %v7743_v11  ;;  %7901 = vadd.xlane.f32.xlu0 %v7840_v30  ;;  %v11038_v35 = vld [vmem:[%s12382_s8 + $0x50] sm:$0xff]  }
 0xfa3   : > { %v7745_v43 = vpop.xlane.xlu0 %7744  ;;  %v15703_v39 = vadd.f32 %v15625_v57, %v8046_v38  ;;  %v11039_v30 = vld [vmem:[%s12382_s8 + $0x10] sm:$0xff]  }
 0xfa4   : > { %v11579_v5 = vpop.eup %11578  ;;  %11584 = vrsqrt.f32 %v7950_v21  ;;  %v15706_v2 = vsub.f32 %v15551_v14, %v7777_v44  ;;  %v7778_v49 = vmul.f32 0.0078125, %v7745_v43  ;;  %v11041_v21 = vld [vmem:[%s12382_s8 + $0x18] sm:$0xff]   ;;  %v11042_v43 = vld [vmem:[%s12382_s8 + $0x60] sm:$0xff]  }
 0xfa5   : > { %v8110_v50 = vpack.c.bf16 %v15703_v39, %v15700_v22  ;;  %v8011_v31 = vmul.f32 %v11579_v5, %v15518_v3  ;;  %v11035_v3 = vld [vmem:[%s12382_s8] sm:$0xff]  }
 0xfa6   : > { %v11581_v34 = vpop.eup %11580  ;;  %v15712_v27 = vsub.f32 %v15553_v26, %v7778_v49  ;;  %v7841_v24 = vmul.f32 %v15706_v2, %v15706_v2  ;;  %10057 = vmatpush3.bf16.msra.mxu0 %v11035_v3  ;;  %v11043_v5 = vld [vmem:[%s12382_s8 + $0x20] sm:$0xff]   ;;  %v11044_v49 = vld [vmem:[%s12382_s8 + $0x68] sm:$0xff]  }
 0xfa7   : > { %8294 = vmatmul.mubr.bf16.gmra.mrb[196].mxu1 %v8110_v50  ;;  %v8012_v28 = vmul.f32 %v11581_v34, %v15523_v42  ;;  %v8047_v14 = vmul.f32 %v15610_v60, %v8011_v31  ;;  %10058 = vmatprep.subr.bf16.mxu0 %v11036_v9  ;;  %v11045_v50 = vld [vmem:[%s12382_s8 + $0x28] sm:$0xff]   ;;  %v11046_v31 = vld [vmem:[%s12382_s8 + $0x70] sm:$0xff]  }
 0xfa8   : > { %7903 = vadd.xlane.f32.xlu1 %v7841_v24  ;;  %v7842_v32 = vmul.f32 %v15712_v27, %v15712_v27  ;;  %8303 = vmatprep.mubr.bf16.mxu1 %v16992_v59  ;;  %v11047_v34 = vld [vmem:[%s12382_s8 + $0x30] sm:$0xff]  }
 0xfa9   : > { %v8048_v26 = vmul.f32 %v15610_v60, %v8012_v28  ;;  %v15725_v29 = vadd.f32 %v15625_v57, %v8047_v14 }
 0xfaa   : > { %7905 = vadd.xlane.f32.xlu0 %v7842_v32  ;;  %10059 = vmatpush3.bf16.msra.mxu0 %v11037_v40 }
 0xfab   : > { %v15728_v42 = vadd.f32 %v15625_v57, %v8048_v26  ;;  %10060 = vmatprep.subr.bf16.mxu0 %v11038_v35  ;;  %v11049_v26 = vld [vmem:[%s12382_s8 + $0x38] sm:$0xff]  }
 0xfac   : > { %v11583_v17 = vpop.eup %11582 }
 0xfad   : > { %v8111_v55 = vpack.c.bf16 %v15728_v42, %v15725_v29  ;;  %v8013_v4 = vmul.f32 %v11583_v17, %v15534_v1 }
 0xfae   : > { %v11585_v46 = vpop.eup %11584  ;;  %10061 = vmatpush3.bf16.msra.mxu0 %v11039_v30 }
 0xfaf   : > { %8304 = vmatmul.mubr.bf16.gmra.mrb[200].mxu1 %v8111_v55  ;;  %v8014_v8 = vmul.f32 %v11585_v46, %v15539_v7  ;;  %v8049_v12 = vmul.f32 %v15610_v60, %v8013_v4  ;;  %v11040_v7 = vld [vmem:[%s12382_s8 + $0x58] sm:$0xff]  }
 0xfb0   : > { %8313 = vmatprep.mubr.bf16.mxu1 %v16992_v59  ;;  %10062 = vmatprep.subr.bf16.mxu0 %v11040_v7 }
 0xfb1   : > { %v8050_v11 = vmul.f32 %v15610_v60, %v8014_v8  ;;  %v15742_v1 = vadd.f32 %v15625_v57, %v8049_v12 }
 0xfb2   : > { %10063 = vmatpush3.bf16.msra.mxu0 %v11041_v21 }
 0xfb3   : > { %v15745_v38 = vadd.f32 %v15625_v57, %v8050_v11  ;;  %10064 = vmatprep.subr.bf16.mxu0 %v11042_v43 }
 0xfb5   : > { %v8112_v44 = vpack.c.bf16 %v15745_v38, %v15742_v1 }
 0xfb6   : > { %10065 = vmatpush3.bf16.msra.mxu0 %v11043_v5 }
 0xfb7   : > { %8314 = vmatmul.mubr.bf16.gmra.mrb[204].mxu1 %v8112_v44  ;;  %10066 = vmatprep.subr.bf16.mxu0 %v11044_v49 }
 0xfb8   : > { %8323 = vmatprep.mubr.bf16.mxu1 %v16992_v59 }
 0xfba   : > { %10067 = vmatpush3.bf16.msra.mxu0 %v11045_v50 }
 0xfbb   : > { %10068 = vmatprep.subr.bf16.mxu0 %v11046_v31 }
 0xfbe   : > { %10069 = vmatpush3.bf16.msra.mxu0 %v11047_v34 }
 0xfbf   : > { %10070 = vmatprep.subr.bf16.mxu0 %v11048_v56 }
 0xfc1   : > { %v7868_v24 = vpop.xlane.xlu1 %7867 }
 0xfc2   : > { %v7919_v28 = vmul.f32 0.0078125, %v7868_v24  ;;  %10071 = vmatpush3.bf16.msra.mxu0 %v11049_v26 }
 0xfc3   : > { %v7870_v14 = vpop.xlane.xlu0 %7869 }
 0xfc4   : > { %v7951_v32 = vadd.f32 1e-05, %v7919_v28  ;;  %v7920_v3 = vmul.f32 0.0078125, %v7870_v14 }
 0xfc5   : > { %v7872_v9 = vpop.xlane.xlu1 %7871 }
 0xfc6   : > { %11586 = vrsqrt.f32 %v7951_v32  ;;  %v7952_v17 = vadd.f32 1e-05, %v7920_v3  ;;  %v7921_v40 = vmul.f32 0.0078125, %v7872_v9 }
 0xfc7   : > { %v7874_v55 = vpop.xlane.xlu0 %7873 }
 0xfc8   : > { %11588 = vrsqrt.f32 %v7952_v17  ;;  %v7953_v4 = vadd.f32 1e-05, %v7921_v40  ;;  %v7922_v46 = vmul.f32 0.0078125, %v7874_v55 }
 0xfca   : > { %11590 = vrsqrt.f32 %v7953_v4  ;;  %v7954_v8 = vadd.f32 1e-05, %v7922_v46 }
 0xfcc   : > { %11592 = vrsqrt.f32 %v7954_v8 }
 0xfd0   : > { %v11587_v12 = vpop.eup %11586 }
 0xfd1   : > { %v7876_v35 = vpop.xlane.xlu1 %7875  ;;  %v8015_v30 = vmul.f32 %v11587_v12, %v15558_v0 }
 0xfd2   : > { %v11589_v11 = vpop.eup %11588  ;;  %v7923_v7 = vmul.f32 0.0078125, %v7876_v35 }
 0xfd3   : > { %v7878_v21 = vpop.xlane.xlu0 %7877  ;;  %v8016_v44 = vmul.f32 %v11589_v11, %v15561_v45  ;;  %v8051_v43 = vmul.f32 %v15610_v60, %v8015_v30 }
 0xfd4   : > { %v11591_v5 = vpop.eup %11590  ;;  %v7955_v49 = vadd.f32 1e-05, %v7923_v7  ;;  %v7924_v50 = vmul.f32 0.0078125, %v7878_v21 }
 0xfd5   : > { %v7880_v31 = vpop.xlane.xlu1 %7879  ;;  %v8052_v34 = vmul.f32 %v15610_v60, %v8016_v44  ;;  %v15765_v0 = vadd.f32 %v15625_v57, %v8051_v43  ;;  %v8017_v45 = vmul.f32 %v11591_v5, %v15566_v62 }
 0xfd6   : > { %v11593_v24 = vpop.eup %11592  ;;  %11594 = vrsqrt.f32 %v7955_v49  ;;  %v7956_v28 = vadd.f32 1e-05, %v7924_v50  ;;  %v7925_v14 = vmul.f32 0.0078125, %v7880_v31 }
 0xfd7   : > { %v7882_v56 = vpop.xlane.xlu0 %7881  ;;  %v15768_v32 = vadd.f32 %v15625_v57, %v8052_v34  ;;  %v8018_v3 = vmul.f32 %v11593_v24, %v15571_v19  ;;  %v8053_v4 = vmul.f32 %v15610_v60, %v8017_v45 }
 0xfd8   : > { %11596 = vrsqrt.f32 %v7956_v28  ;;  %v7957_v26 = vadd.f32 1e-05, %v7925_v14  ;;  %v7926_v9 = vmul.f32 0.0078125, %v7882_v56 }
 0xfd9   : > { %v8113_v17 = vpack.c.bf16 %v15768_v32, %v15765_v0  ;;  %v8054_v40 = vmul.f32 %v15610_v60, %v8018_v3  ;;  %v15781_v19 = vadd.f32 %v15625_v57, %v8053_v4 }
 0xfda   : > { %11598 = vrsqrt.f32 %v7957_v26  ;;  %v7958_v55 = vadd.f32 1e-05, %v7926_v9 }
 0xfdb   : > { %8324 = vmatmul.mubr.bf16.gmra.mrb[208].mxu1 %v8113_v17  ;;  %v15778_v62 = vadd.f32 %v15625_v57, %v8054_v40 }
 0xfdc   : > { %11600 = vrsqrt.f32 %v7958_v55  ;;  %8333 = vmatprep.mubr.bf16.mxu1 %v16992_v59 }
 0xfdd   : > { %v8114_v8 = vpack.c.bf16 %v15778_v62, %v15781_v19 }
 0xfe0   : > { %v11595_v46 = vpop.eup %11594 }
 0xfe1   : > { %v8019_v12 = vmul.f32 %v11595_v46, %v15578_v52 }
 0xfe2   : > { %v11597_v35 = vpop.eup %11596 }
 0xfe3   : > { %8334 = vmatmul.mubr.bf16.gmra.mrb[212].mxu1 %v8114_v8  ;;  %v8020_v30 = vmul.f32 %v11597_v35, %v15581_v51  ;;  %v8055_v11 = vmul.f32 %v15610_v60, %v8019_v12 }
 0xfe4   : > { %v11599_v7 = vpop.eup %11598  ;;  %8343 = vmatprep.mubr.bf16.mxu1 %v16992_v59 }
 0xfe5   : > { %v8056_v21 = vmul.f32 %v15610_v60, %v8020_v30  ;;  %v15791_v43 = vadd.f32 %v15625_v57, %v8055_v11  ;;  %v8021_v52 = vmul.f32 %v11599_v7, %v15586_v13 }
 0xfe6   : > { %v11601_v44 = vpop.eup %11600 }
 0xfe7   : > { %v15794_v5 = vadd.f32 %v15625_v57, %v8056_v21  ;;  %v8022_v49 = vmul.f32 %v11601_v44, %v15591_v25  ;;  %v8057_v56 = vmul.f32 %v15610_v60, %v8021_v52 }
 0xfe8   : > { %v7884_v50 = vpop.xlane.xlu1 %7883 }
 0xfe9   : > { %v7927_v51 = vmul.f32 0.0078125, %v7884_v50  ;;  %v8115_v31 = vpack.c.bf16 %v15794_v5, %v15791_v43  ;;  %v8058_v34 = vmul.f32 %v15610_v60, %v8022_v49  ;;  %v15807_v25 = vadd.f32 %v15625_v57, %v8057_v56 }
 0xfea   : > { %v7886_v24 = vpop.xlane.xlu0 %7885 }
 0xfeb   : > { %v7959_v28 = vadd.f32 1e-05, %v7927_v51  ;;  %v7928_v14 = vmul.f32 0.0078125, %v7886_v24  ;;  %8344 = vmatmul.mubr.bf16.gmra.mrb[216].mxu1 %v8115_v31  ;;  %v15804_v13 = vadd.f32 %v15625_v57, %v8058_v34 }
 0xfec   : > { %8353 = vmatprep.mubr.bf16.mxu1 %v16992_v59 }
 0xfed   : > { %11602 = vrsqrt.f32 %v7959_v28  ;;  %v7960_v45 = vadd.f32 1e-05, %v7928_v14  ;;  %v8116_v9 = vpack.c.bf16 %v15804_v13, %v15807_v25 }
 0xfef   : > { %11604 = vrsqrt.f32 %v7960_v45 }
 0xff0   : > { %v7888_v3 = vpop.xlane.xlu1 %7887 }
 0xff1   : > { %v7929_v26 = vmul.f32 0.0078125, %v7888_v3 }
 0xff2   : > { %v7890_v17 = vpop.xlane.xlu0 %7889 }
 0xff3   : > { %v7961_v40 = vadd.f32 1e-05, %v7929_v26  ;;  %v7930_v55 = vmul.f32 0.0078125, %v7890_v17  ;;  %8354 = vmatmul.mubr.bf16.gmra.mrb[220].mxu1 %v8116_v9 }
 0xff4   : > { %8363 = vmatprep.mubr.bf16.mxu1 %v16992_v59 }
 0xff5   : > { %11606 = vrsqrt.f32 %v7961_v40  ;;  %v7962_v4 = vadd.f32 1e-05, %v7930_v55 }
 0xff7   : > { %v11603_v46 = vpop.eup %11602  ;;  %11608 = vrsqrt.f32 %v7962_v4 }
 0xff8   : > { %v8023_v8 = vmul.f32 %v11603_v46, %v15598_v58 }
 0xff9   : > { %v11605_v12 = vpop.eup %11604 }
 0xffa   : > { %v8024_v35 = vmul.f32 %v11605_v12, %v15601_v33  ;;  %v8059_v30 = vmul.f32 %v15610_v60, %v8023_v8 }
 0xffc   : > { %v8060_v11 = vmul.f32 %v15610_v60, %v8024_v35  ;;  %v15817_v7 = vadd.f32 %v15625_v57, %v8059_v30 }
 0xffe   : > { %v15820_v21 = vadd.f32 %v15625_v57, %v8060_v11 }
 0xfff   : > { %v11607_v44 = vpop.eup %11606 }
0x1000   : > { %v8117_v52 = vpack.c.bf16 %v15820_v21, %v15817_v7  ;;  %v8025_v49 = vmul.f32 %v11607_v44, %v15614_v41 }
0x1001   : > { %v11609_v58 = vpop.eup %11608 }
0x1002   : > { %8364 = vmatmul.mubr.bf16.gmra.mrb[224].mxu1 %v8117_v52  ;;  %v8026_v33 = vmul.f32 %v11609_v58, %v15618_v16  ;;  %v8061_v50 = vmul.f32 %v15610_v60, %v8025_v49 }
0x1003   : > { %8373 = vmatprep.mubr.bf16.mxu1 %v16992_v59 }
0x1004   : > { %v8062_v51 = vmul.f32 %v15610_v60, %v8026_v33  ;;  %v15830_v31 = vadd.f32 %v15625_v57, %v8061_v50 }
0x1006   : > { %v15833_v34 = vadd.f32 %v15625_v57, %v8062_v51 }
0x1008   : > { %v8118_v24 = vpack.c.bf16 %v15833_v34, %v15830_v31 }
0x100a   : > { %8374 = vmatmul.mubr.bf16.gmra.mrb[228].mxu1 %v8118_v24 }
0x100b   : > { %8383 = vmatprep.mubr.bf16.mxu1 %v16992_v59 }
0x101d   : > { %v7892_v41 = vpop.xlane.xlu1 %7891 }
0x101e   : > { %v7931_v16 = vmul.f32 0.0078125, %v7892_v41 }
0x101f   : > { %v7894_v28 = vpop.xlane.xlu0 %7893 }
0x1020   : > { %v7963_v14 = vadd.f32 1e-05, %v7931_v16  ;;  %v7932_v56 = vmul.f32 0.0078125, %v7894_v28 }
0x1022   : > { %11610 = vrsqrt.f32 %v7963_v14  ;;  %v7964_v45 = vadd.f32 1e-05, %v7932_v56  ;;  %v8139_v56 = vld [vmem:[%s12366_s27] sm:$0x3] }
0x1024   : > { %11612 = vrsqrt.f32 %v7964_v45 }
0x1025   : > { %v7896_v3 = vpop.xlane.xlu1 %7895 }
0x1026   : > { %v7933_v26 = vmul.f32 0.0078125, %v7896_v3 }
0x1027   : > { %v7898_v9 = vpop.xlane.xlu0 %7897 }
0x1028   : > { %v7965_v17 = vadd.f32 1e-05, %v7933_v26  ;;  %v7934_v40 = vmul.f32 0.0078125, %v7898_v9 }
0x102a   : > { %11614 = vrsqrt.f32 %v7965_v17  ;;  %v7966_v55 = vadd.f32 1e-05, %v7934_v40 }
0x102c   : > { %v11611_v4 = vpop.eup %11610  ;;  %11616 = vrsqrt.f32 %v7966_v55  ;;  %v15857_v55 = vrot.slane %v8139_v56, %v17023_v47 }
0x102d   : > { %v7900_v46 = vpop.xlane.xlu1 %7899  ;;  %v8027_v8 = vmul.f32 %v11611_v4, %v15653_v18 }
0x102e   : > { %v11613_v12 = vpop.eup %11612  ;;  %v7935_v35 = vmul.f32 0.0078125, %v7900_v46 }
0x102f   : > { %v7902_v30 = vpop.xlane.xlu0 %7901  ;;  %v8028_v11 = vmul.f32 %v11613_v12, %v15656_v10  ;;  %v8063_v44 = vmul.f32 %v15610_v60, %v8027_v8 }
0x1030   : > { %v7967_v52 = vadd.f32 1e-05, %v7935_v35  ;;  %v7936_v49 = vmul.f32 0.0078125, %v7902_v30 }
0x1031   : > { %v8064_v58 = vmul.f32 %v15610_v60, %v8028_v11  ;;  %v15843_v50 = vadd.f32 %v15625_v57, %v8063_v44 }
0x1032   : > { %11618 = vrsqrt.f32 %v7967_v52  ;;  %v7968_v33 = vadd.f32 1e-05, %v7936_v49 }
0x1033   : > { %v15846_v51 = vadd.f32 %v15625_v57, %v8064_v58 }
0x1034   : > { %v11615_v18 = vpop.eup %11614  ;;  %11620 = vrsqrt.f32 %v7968_v33 }
0x1035   : > { %v7904_v24 = vpop.xlane.xlu1 %7903  ;;  %v8119_v10 = vpack.c.bf16 %v15846_v51, %v15843_v50  ;;  %v8029_v41 = vmul.f32 %v11615_v18, %v15663_v54  ;;  %v17026_v54 = vld [vmem:[#allocation22_spill] sm:$0xff] }
0x1036   : > { %v11617_v16 = vpop.eup %11616  ;;  %v7937_v28 = vmul.f32 0.0078125, %v7904_v24  ;;  %v15860_v4 = vrot.slane %v8139_v56, %v17026_v54 }
0x1037   : > { %8384 = vmatmul.mubr.bf16.gmra.mrb[232].mxu1 %v8119_v10  ;;  %v7906_v14 = vpop.xlane.xlu0 %7905  ;;  %v8030_v45 = vmul.f32 %v11617_v16, %v15667_v53  ;;  %v8065_v3 = vmul.f32 %v15610_v60, %v8029_v41 }
0x1038   : > { %v7969_v26 = vadd.f32 1e-05, %v7937_v28  ;;  %v7938_v9 = vmul.f32 0.0078125, %v7906_v14  ;;  %8393 = vmatprep.mubr.bf16.mxu1 %v16992_v59 }
0x1039   : > { %v8066_v17 = vmul.f32 %v15610_v60, %v8030_v45  ;;  %v15863_v46 = vadd.f32 %v15625_v57, %v8065_v3 }
0x103a   : > { %11622 = vrsqrt.f32 %v7969_v26  ;;  %v7970_v40 = vadd.f32 1e-05, %v7938_v9 }
0x103b   : > { %v15866_v53 = vadd.f32 %v15625_v57, %v8066_v17 }
0x103c   : > { %v11619_v8 = vpop.eup %11618  ;;  %11624 = vrsqrt.f32 %v7970_v40 }
0x103d   : > { %v8265_v12 = vpop.f32.mrb[184].mxu1  ;;  %v8120_v35 = vpack.c.bf16 %v15866_v53, %v15863_v46  ;;  %v8031_v30 = vmul.f32 %v11619_v8, %v15683_v37 }
0x103e   : > { %v11621_v11 = vpop.eup %11620  ;;  %v8266_v47 = vadd.f32 %v8265_v12, %v15857_v55  ;;  %v8267_v44 = vpop.f32.mrb[185].mxu1 }
0x103f   : > { %v8268_v52 = vadd.f32 %v8267_v44, %v15860_v4  ;;  %v8269_v49 = vpop.f32.mrb[186].mxu1  ;;  %8394 = vmatmul.mubr.bf16.gmra.mrb[236].mxu1 %v8120_v35  ;;  %v8032_v58 = vmul.f32 %v11621_v11, %v15689_v6  ;;  %v8067_v33 = vmul.f32 %v15610_v60, %v8031_v30 }
0x1040   : > { %v8270_v18 = vadd.f32 %v8269_v49, %v15857_v55  ;;  %v8271_v24 = vpop.f32.mrb[187].mxu1  ;;  %8403 = vmatprep.mubr.bf16.mxu1 %v16992_v59  ;;  %v8424_v41 = vmax.f32 %v8266_v47, 0.0 }
0x1041   : > { %v8272_v10 = vadd.f32 %v8271_v24, %v15860_v4  ;;  %v8068_v37 = vmul.f32 %v15610_v60, %v8032_v58  ;;  %v8425_v28 = vmax.f32 %v8268_v52, 0.0  ;;  %v15880_v56 = vadd.f32 %v15625_v57, %v8067_v33 }
0x1042   : > { %v8426_v16 = vmax.f32 %v8270_v18, 0.0 }
0x1043   : > { %v8427_v14 = vmax.f32 %v8272_v10, 0.0  ;;  %v15883_v6 = vadd.f32 %v15625_v57, %v8068_v37 }
0x1044   : > { %v11623_v45 = vpop.eup %11622  ;;  %v8488_v3 = vpack.c.bf16 %v8426_v16, %v8424_v41 }
0x1045   : > { %v8489_v26 = vpack.c.bf16 %v8427_v14, %v8425_v28  ;;  %v8275_v9 = vpop.f32.mrb[188].mxu1  ;;  %v8121_v17 = vpack.c.bf16 %v15883_v6, %v15880_v56  ;;  %v8033_v40 = vmul.f32 %v11623_v45, %v15706_v2 }
0x1046   : > { %v11625_v8 = vpop.eup %11624  ;;  %v8276_v12 = vadd.f32 %v8275_v9, %v15857_v55  ;;  %v8277_v35 = vpop.f32.mrb[189].mxu1 }
0x1047   : > { %v8278_v30 = vadd.f32 %v8277_v35, %v15860_v4  ;;  %v8279_v11 = vpop.f32.mrb[190].mxu1  ;;  %8404 = vmatmul.mubr.bf16.gmra.mrb[240].mxu1 %v8121_v17  ;;  %8684 = vmatprep.mubr.bf16.mxu0 %v8489_v26  ;;  %v8034_v47 = vmul.f32 %v11625_v8, %v15712_v27  ;;  %v8069_v44 = vmul.f32 %v15610_v60, %v8033_v40 }
0x1048   : > { %v8280_v52 = vadd.f32 %v8279_v11, %v15857_v55  ;;  %v8281_v49 = vpop.f32.mrb[191].mxu1  ;;  %8685 = vmatmul.mubr.bf16.vlgmr.msra.gmra.mrb[200].mxu0 %v8488_v3  ;;  %8413 = vmatprep.mubr.bf16.mxu1 %v16992_v59  ;;  %v8428_v33 = vmax.f32 %v8276_v12, 0.0 }
0x1049   : > { %v8282_v2 = vadd.f32 %v8281_v49, %v15860_v4  ;;  %v8070_v58 = vmul.f32 %v15610_v60, %v8034_v47  ;;  %v8429_v24 = vmax.f32 %v8278_v30, 0.0  ;;  %v15897_v37 = vadd.f32 %v15625_v57, %v8069_v44 }
0x104a   : > { %v8430_v18 = vmax.f32 %v8280_v52, 0.0 }
0x104b   : > { %v8431_v10 = vmax.f32 %v8282_v2, 0.0  ;;  %v15900_v27 = vadd.f32 %v15625_v57, %v8070_v58 }
0x104c   : > { %v8490_v41 = vpack.c.bf16 %v8430_v18, %v8428_v33 }
0x104d   : > { %v8491_v16 = vpack.c.bf16 %v8431_v10, %v8429_v24  ;;  %v8122_v28 = vpack.c.bf16 %v15900_v27, %v15897_v37 }
0x104f   : > { %8414 = vmatmul.mubr.bf16.gmra.mrb[244].mxu1 %v8122_v28  ;;  %8692 = vmatprep.mubr.bf16.mxu0 %v8491_v16 }
0x1050   : > { %8693 = vmatmul.mubr.bf16.gmra.mrb[204].mxu0 %v8490_v41 }
0x1072   : > { %v8285_v59 = vpop.f32.mrb[192].mxu1 }
0x1073   : > { %v8286_v60 = vadd.f32 %v8285_v59, %v15857_v55  ;;  %v8287_v14 = vpop.f32.mrb[193].mxu1 }
0x1074   : > { %v8288_v45 = vadd.f32 %v8287_v14, %v15860_v4  ;;  %v8289_v3 = vpop.f32.mrb[194].mxu1 }
0x1075   : > { %v8290_v26 = vadd.f32 %v8289_v3, %v15857_v55  ;;  %v8291_v9 = vpop.f32.mrb[195].mxu1  ;;  %v8432_v17 = vmax.f32 %v8286_v60, 0.0 }
0x1076   : > { %v8292_v57 = vadd.f32 %v8291_v9, %v15860_v4  ;;  %v8433_v8 = vmax.f32 %v8288_v45, 0.0 }
0x1077   : > { %v8434_v40 = vmax.f32 %v8290_v26, 0.0 }
0x1078   : > { %v8435_v12 = vmax.f32 %v8292_v57, 0.0 }
0x1079   : > { %v8492_v35 = vpack.c.bf16 %v8434_v40, %v8432_v17 }
0x107a   : > { %v8493_v30 = vpack.c.bf16 %v8435_v12, %v8433_v8  ;;  %v8295_v11 = vpop.f32.mrb[196].mxu1 }
0x107b   : > { %v8296_v47 = vadd.f32 %v8295_v11, %v15857_v55  ;;  %v8297_v44 = vpop.f32.mrb[197].mxu1 }
0x107c   : > { %v8298_v52 = vadd.f32 %v8297_v44, %v15860_v4  ;;  %v8299_v49 = vpop.f32.mrb[198].mxu1  ;;  %8700 = vmatprep.mubr.bf16.mxu0 %v8493_v30 }
0x107d   : > { %v8300_v2 = vadd.f32 %v8299_v49, %v15857_v55  ;;  %v8301_v58 = vpop.f32.mrb[199].mxu1  ;;  %8701 = vmatmul.mubr.bf16.gmra.mrb[208].mxu0 %v8492_v35  ;;  %v8436_v18 = vmax.f32 %v8296_v47, 0.0 }
0x107e   : > { %v8302_v33 = vadd.f32 %v8301_v58, %v15860_v4  ;;  %v8437_v10 = vmax.f32 %v8298_v52, 0.0 }
0x107f   : > { %v8438_v24 = vmax.f32 %v8300_v2, 0.0 }
0x1080   : > { %v8439_v41 = vmax.f32 %v8302_v33, 0.0 }
0x1081   : > { %v8494_v16 = vpack.c.bf16 %v8438_v24, %v8436_v18 }
0x1082   : > { %v8495_v28 = vpack.c.bf16 %v8439_v41, %v8437_v10  ;;  %v8305_v59 = vpop.f32.mrb[200].mxu1 }
0x1083   : > { %v8306_v60 = vadd.f32 %v8305_v59, %v15857_v55  ;;  %v8307_v14 = vpop.f32.mrb[201].mxu1 }
0x1084   : > { %v8308_v45 = vadd.f32 %v8307_v14, %v15860_v4  ;;  %v8309_v3 = vpop.f32.mrb[202].mxu1  ;;  %8708 = vmatprep.mubr.bf16.mxu0 %v8495_v28 }
0x1085   : > { %v8310_v26 = vadd.f32 %v8309_v3, %v15857_v55  ;;  %v8311_v9 = vpop.f32.mrb[203].mxu1  ;;  %8709 = vmatmul.mubr.bf16.gmra.mrb[212].mxu0 %v8494_v16  ;;  %v8440_v17 = vmax.f32 %v8306_v60, 0.0 }
0x1086   : > { %v8312_v57 = vadd.f32 %v8311_v9, %v15860_v4  ;;  %v8441_v8 = vmax.f32 %v8308_v45, 0.0 }
0x1087   : > { %v8442_v40 = vmax.f32 %v8310_v26, 0.0 }
0x1088   : > { %v8443_v12 = vmax.f32 %v8312_v57, 0.0 }
0x1089   : > { %v8496_v35 = vpack.c.bf16 %v8442_v40, %v8440_v17 }
0x108a   : > { %v8497_v30 = vpack.c.bf16 %v8443_v12, %v8441_v8  ;;  %v8315_v11 = vpop.f32.mrb[204].mxu1 }
0x108b   : > { %v8316_v47 = vadd.f32 %v8315_v11, %v15857_v55  ;;  %v8317_v44 = vpop.f32.mrb[205].mxu1 }
0x108c   : > { %v8318_v52 = vadd.f32 %v8317_v44, %v15860_v4  ;;  %v8319_v49 = vpop.f32.mrb[206].mxu1  ;;  %8716 = vmatprep.mubr.bf16.mxu0 %v8497_v30 }
0x108d   : > { %v8320_v2 = vadd.f32 %v8319_v49, %v15857_v55  ;;  %v8321_v58 = vpop.f32.mrb[207].mxu1  ;;  %8717 = vmatmul.mubr.bf16.gmra.mrb[216].mxu0 %v8496_v35  ;;  %v8444_v18 = vmax.f32 %v8316_v47, 0.0 }
0x108e   : > { %v8322_v33 = vadd.f32 %v8321_v58, %v15860_v4  ;;  %v8445_v10 = vmax.f32 %v8318_v52, 0.0 }
0x108f   : > { %v8446_v24 = vmax.f32 %v8320_v2, 0.0 }
0x1090   : > { %v8447_v41 = vmax.f32 %v8322_v33, 0.0 }
0x1091   : > { %v8498_v16 = vpack.c.bf16 %v8446_v24, %v8444_v18 }
0x1092   : > { %v8499_v28 = vpack.c.bf16 %v8447_v41, %v8445_v10 }
0x1094   : > { %8724 = vmatprep.mubr.bf16.mxu0 %v8499_v28 }
0x1095   : > { %8725 = vmatmul.mubr.bf16.gmra.mrb[220].mxu0 %v8498_v16 }
0x10ae   : > { %v8325_v59 = vpop.f32.mrb[208].mxu1 }
0x10af   : > { %v8326_v60 = vadd.f32 %v8325_v59, %v15857_v55  ;;  %v8327_v14 = vpop.f32.mrb[209].mxu1 }
0x10b0   : > { %v8328_v45 = vadd.f32 %v8327_v14, %v15860_v4  ;;  %v8329_v3 = vpop.f32.mrb[210].mxu1 }
0x10b1   : > { %v8330_v26 = vadd.f32 %v8329_v3, %v15857_v55  ;;  %v8331_v9 = vpop.f32.mrb[211].mxu1  ;;  %v8448_v17 = vmax.f32 %v8326_v60, 0.0 }
0x10b2   : > { %v8332_v57 = vadd.f32 %v8331_v9, %v15860_v4  ;;  %v8449_v8 = vmax.f32 %v8328_v45, 0.0 }
0x10b3   : > { %v8450_v40 = vmax.f32 %v8330_v26, 0.0 }
0x10b4   : > { %v8451_v12 = vmax.f32 %v8332_v57, 0.0 }
0x10b5   : > { %v8500_v35 = vpack.c.bf16 %v8450_v40, %v8448_v17 }
0x10b6   : > { %v8501_v30 = vpack.c.bf16 %v8451_v12, %v8449_v8  ;;  %v8335_v11 = vpop.f32.mrb[212].mxu1 }
0x10b7   : > { %v8336_v47 = vadd.f32 %v8335_v11, %v15857_v55  ;;  %v8337_v44 = vpop.f32.mrb[213].mxu1 }
0x10b8   : > { %v8338_v52 = vadd.f32 %v8337_v44, %v15860_v4  ;;  %v8339_v49 = vpop.f32.mrb[214].mxu1  ;;  %8732 = vmatprep.mubr.bf16.mxu0 %v8501_v30 }
0x10b9   : > { %v8340_v2 = vadd.f32 %v8339_v49, %v15857_v55  ;;  %v8341_v58 = vpop.f32.mrb[215].mxu1  ;;  %8733 = vmatmul.mubr.bf16.gmra.mrb[224].mxu0 %v8500_v35  ;;  %v8452_v18 = vmax.f32 %v8336_v47, 0.0 }
0x10ba   : > { %v8342_v33 = vadd.f32 %v8341_v58, %v15860_v4  ;;  %v8453_v10 = vmax.f32 %v8338_v52, 0.0 }
0x10bb   : > { %v8454_v24 = vmax.f32 %v8340_v2, 0.0 }
0x10bc   : > { %v8455_v41 = vmax.f32 %v8342_v33, 0.0 }
0x10bd   : > { %v8502_v16 = vpack.c.bf16 %v8454_v24, %v8452_v18 }
0x10be   : > { %v8503_v28 = vpack.c.bf16 %v8455_v41, %v8453_v10  ;;  %v8345_v59 = vpop.f32.mrb[216].mxu1 }
0x10bf   : > { %v8346_v60 = vadd.f32 %v8345_v59, %v15857_v55  ;;  %v8347_v14 = vpop.f32.mrb[217].mxu1 }
0x10c0   : > { %v8348_v45 = vadd.f32 %v8347_v14, %v15860_v4  ;;  %v8349_v3 = vpop.f32.mrb[218].mxu1  ;;  %8740 = vmatprep.mubr.bf16.mxu0 %v8503_v28 }
0x10c1   : > { %v8350_v26 = vadd.f32 %v8349_v3, %v15857_v55  ;;  %v8351_v9 = vpop.f32.mrb[219].mxu1  ;;  %8741 = vmatmul.mubr.bf16.gmra.mrb[228].mxu0 %v8502_v16  ;;  %v8456_v17 = vmax.f32 %v8346_v60, 0.0 }
0x10c2   : > { %v8352_v57 = vadd.f32 %v8351_v9, %v15860_v4  ;;  %v8457_v8 = vmax.f32 %v8348_v45, 0.0 }
0x10c3   : > { %v8458_v40 = vmax.f32 %v8350_v26, 0.0 }
0x10c4   : > { %v8459_v12 = vmax.f32 %v8352_v57, 0.0 }
0x10c5   : > { %v8504_v35 = vpack.c.bf16 %v8458_v40, %v8456_v17 }
0x10c6   : > { %v8505_v30 = vpack.c.bf16 %v8459_v12, %v8457_v8  ;;  %v8355_v11 = vpop.f32.mrb[220].mxu1 }
0x10c7   : > { %v8356_v47 = vadd.f32 %v8355_v11, %v15857_v55  ;;  %v8357_v44 = vpop.f32.mrb[221].mxu1 }
0x10c8   : > { %v8358_v52 = vadd.f32 %v8357_v44, %v15860_v4  ;;  %v8359_v49 = vpop.f32.mrb[222].mxu1  ;;  %8748 = vmatprep.mubr.bf16.mxu0 %v8505_v30 }
0x10c9   : > { %v8360_v2 = vadd.f32 %v8359_v49, %v15857_v55  ;;  %v8361_v58 = vpop.f32.mrb[223].mxu1  ;;  %8749 = vmatmul.mubr.bf16.gmra.mrb[232].mxu0 %v8504_v35  ;;  %v8460_v18 = vmax.f32 %v8356_v47, 0.0 }
0x10ca   : > { %v8362_v33 = vadd.f32 %v8361_v58, %v15860_v4  ;;  %v8461_v10 = vmax.f32 %v8358_v52, 0.0 }
0x10cb   : > { %v8462_v24 = vmax.f32 %v8360_v2, 0.0 }
0x10cc   : > { %v8463_v41 = vmax.f32 %v8362_v33, 0.0 }
0x10cd   : > { %v8506_v16 = vpack.c.bf16 %v8462_v24, %v8460_v18 }
0x10ce   : > { %v8507_v28 = vpack.c.bf16 %v8463_v41, %v8461_v10 }
0x10d0   : > { %8756 = vmatprep.mubr.bf16.mxu0 %v8507_v28 }
0x10d1   : > { %8757 = vmatmul.mubr.bf16.gmra.mrb[236].mxu0 %v8506_v16 }
0x10d5   : > { %v8365_v59 = vpop.f32.mrb[224].mxu1 }
0x10d6   : > { %v8366_v60 = vadd.f32 %v8365_v59, %v15857_v55  ;;  %v8367_v14 = vpop.f32.mrb[225].mxu1 }
0x10d7   : > { %v8368_v45 = vadd.f32 %v8367_v14, %v15860_v4  ;;  %v8369_v3 = vpop.f32.mrb[226].mxu1 }
0x10d8   : > { %v8370_v26 = vadd.f32 %v8369_v3, %v15857_v55  ;;  %v8371_v9 = vpop.f32.mrb[227].mxu1  ;;  %v8464_v17 = vmax.f32 %v8366_v60, 0.0 }
0x10d9   : > { %v8372_v57 = vadd.f32 %v8371_v9, %v15860_v4  ;;  %v8465_v8 = vmax.f32 %v8368_v45, 0.0 }
0x10da   : > { %v8466_v40 = vmax.f32 %v8370_v26, 0.0 }
0x10db   : > { %v8467_v12 = vmax.f32 %v8372_v57, 0.0 }
0x10dc   : > { %v8508_v35 = vpack.c.bf16 %v8466_v40, %v8464_v17 }
0x10dd   : > { %v8509_v30 = vpack.c.bf16 %v8467_v12, %v8465_v8  ;;  %v8375_v11 = vpop.f32.mrb[228].mxu1 }
0x10de   : > { %v8376_v47 = vadd.f32 %v8375_v11, %v15857_v55  ;;  %v8377_v44 = vpop.f32.mrb[229].mxu1 }
0x10df   : > { %v8378_v52 = vadd.f32 %v8377_v44, %v15860_v4  ;;  %v8379_v49 = vpop.f32.mrb[230].mxu1  ;;  %8764 = vmatprep.mubr.bf16.mxu0 %v8509_v30 }
0x10e0   : > { %v8380_v2 = vadd.f32 %v8379_v49, %v15857_v55  ;;  %v8381_v58 = vpop.f32.mrb[231].mxu1  ;;  %8765 = vmatmul.mubr.bf16.gmra.mrb[240].mxu0 %v8508_v35  ;;  %v8468_v18 = vmax.f32 %v8376_v47, 0.0 }
0x10e1   : > { %v8382_v33 = vadd.f32 %v8381_v58, %v15860_v4  ;;  %v8469_v10 = vmax.f32 %v8378_v52, 0.0 }
0x10e2   : > { %v8470_v24 = vmax.f32 %v8380_v2, 0.0 }
0x10e3   : > { %v8471_v41 = vmax.f32 %v8382_v33, 0.0 }
0x10e4   : > { %v8510_v16 = vpack.c.bf16 %v8470_v24, %v8468_v18 }
0x10e5   : > { %v8511_v28 = vpack.c.bf16 %v8471_v41, %v8469_v10 }
0x10e7   : > { %8772 = vmatprep.mubr.bf16.mxu0 %v8511_v28 }
0x10e8   : > { %8773 = vmatmul.mubr.bf16.gmra.mrb[244].mxu0 %v8510_v16 }
0x110a   : > { %v8385_v59 = vpop.f32.mrb[232].mxu1 }
0x110b   : > { %v8386_v60 = vadd.f32 %v8385_v59, %v15857_v55  ;;  %v8387_v14 = vpop.f32.mrb[233].mxu1 }
0x110c   : > { %v8388_v45 = vadd.f32 %v8387_v14, %v15860_v4  ;;  %v8389_v3 = vpop.f32.mrb[234].mxu1 }
0x110d   : > { %v8390_v26 = vadd.f32 %v8389_v3, %v15857_v55  ;;  %v8391_v9 = vpop.f32.mrb[235].mxu1  ;;  %v8472_v17 = vmax.f32 %v8386_v60, 0.0  ;;  %v15954_v3 = vld [vmem:[%s12376_s4] sm:$0xff] }
0x110e   : > { %v8392_v57 = vadd.f32 %v8391_v9, %v15860_v4  ;;  %v8473_v8 = vmax.f32 %v8388_v45, 0.0 }
0x110f   : > { %v8474_v40 = vmax.f32 %v8390_v26, 0.0  ;;  %v15958_v26 = vrot.slane %v15954_v3, %v17026_v54 }
0x1110   : > { %v8475_v12 = vmax.f32 %v8392_v57, 0.0 }
0x1111   : > { %v8512_v35 = vpack.c.bf16 %v8474_v40, %v8472_v17 }
0x1112   : > { %v8513_v30 = vpack.c.bf16 %v8475_v12, %v8473_v8  ;;  %v8395_v11 = vpop.f32.mrb[236].mxu1 }
0x1113   : > { %v8396_v47 = vadd.f32 %v8395_v11, %v15857_v55  ;;  %v8397_v44 = vpop.f32.mrb[237].mxu1 }
0x1114   : > { %v8398_v52 = vadd.f32 %v8397_v44, %v15860_v4  ;;  %v8399_v49 = vpop.f32.mrb[238].mxu1  ;;  %8780 = vmatprep.mubr.bf16.mxu0 %v8513_v30 }
0x1115   : > { %v8400_v2 = vadd.f32 %v8399_v49, %v15857_v55  ;;  %v8401_v58 = vpop.f32.mrb[239].mxu1  ;;  %8781 = vmatmul.mubr.bf16.gmra.mrb[248].mxu0 %v8512_v35  ;;  %v8476_v18 = vmax.f32 %v8396_v47, 0.0 }
0x1116   : > { %v8402_v33 = vadd.f32 %v8401_v58, %v15860_v4  ;;  %v8477_v10 = vmax.f32 %v8398_v52, 0.0 }
0x1117   : > { %v8478_v24 = vmax.f32 %v8400_v2, 0.0 }
0x1118   : > { %v8479_v41 = vmax.f32 %v8402_v33, 0.0 }
0x1119   : > { %v8514_v16 = vpack.c.bf16 %v8478_v24, %v8476_v18 }
0x111a   : > { %v8515_v28 = vpack.c.bf16 %v8479_v41, %v8477_v10  ;;  %v8405_v59 = vpop.f32.mrb[240].mxu1 }
0x111b   : > { %v8406_v60 = vadd.f32 %v8405_v59, %v15857_v55  ;;  %v8407_v14 = vpop.f32.mrb[241].mxu1  ;;  %v10072_v45 = vpop.f32.mrb[200].mxu0 }
0x111c   : > { %v8408_v9 = vadd.f32 %v8407_v14, %v15860_v4  ;;  %v8409_v57 = vpop.f32.mrb[242].mxu1  ;;  %v10073_v17 = vpop.f32.mrb[201].mxu0  ;;  %8788 = vmatprep.mubr.bf16.mxu0 %v8515_v28 }
0x111d   : > { %v8410_v40 = vadd.f32 %v8409_v57, %v15857_v55  ;;  %v10074_v8 = vadd.f32 %v10073_v17, %v10072_v45  ;;  %v8411_v12 = vpop.f32.mrb[243].mxu1  ;;  %v10075_v35 = vpop.f32.mrb[202].mxu0  ;;  %8789 = vmatmul.mubr.bf16.gmra.mrb[252].mxu0 %v8514_v16  ;;  %v8480_v47 = vmax.f32 %v8406_v60, 0.0 }
0x111e   : > { %v8412_v30 = vadd.f32 %v8411_v12, %v15860_v4  ;;  %v10076_v11 = vpop.f32.mrb[203].mxu0  ;;  %v8481_v49 = vmax.f32 %v8408_v9, 0.0 }
0x111f   : > { %v8482_v44 = vmax.f32 %v8410_v40, 0.0  ;;  %v8687_v52 = vadd.f32 %v10074_v8, %v15958_v26  ;;  %v10077_v54 = vadd.f32 %v10076_v11, %v10075_v35 }
0x1120   : > { %v8483_v2 = vmax.f32 %v8412_v30, 0.0 }
0x1121   : > { %v8516_v58 = vpack.c.bf16 %v8482_v44, %v8480_v47  ;;  %v8690_v33 = vadd.f32 %v10077_v54, %v15958_v26  ;;  %v15966_v18 = vadd.f32 %v8687_v52, %v15631_v15 }
0x1122   : > { %v8517_v24 = vpack.c.bf16 %v8483_v2, %v8481_v49  ;;  %v8415_v10 = vpop.f32.mrb[244].mxu1 }
0x1123   : > { %v8416_v41 = vadd.f32 %v8415_v10, %v15857_v55  ;;  %8845 = vadd.xlane.f32.xlu1 %v15966_v18  ;;  %v8417_v16 = vpop.f32.mrb[245].mxu1  ;;  %v10078_v28 = vpop.f32.mrb[204].mxu0  ;;  %v15971_v59 = vadd.f32 %v8690_v33, %v15634_v61 }
0x1124   : > { %v8418_v60 = vadd.f32 %v8417_v16, %v15860_v4  ;;  %v8419_v14 = vpop.f32.mrb[246].mxu1  ;;  %v10079_v45 = vpop.f32.mrb[205].mxu0  ;;  %8796 = vmatprep.mubr.bf16.mxu0 %v8517_v24 }
0x1125   : > { %v8420_v9 = vadd.f32 %v8419_v14, %v15857_v55  ;;  %v10080_v15 = vadd.f32 %v10079_v45, %v10078_v28  ;;  %v10081_v57 = vpop.f32.mrb[206].mxu0  ;;  %8847 = vadd.xlane.f32.xlu0 %v15971_v59  ;;  %v8421_v17 = vpop.f32.mrb[247].mxu1  ;;  %8797 = vmatmul.mubr.bf16.gmra.mrb[0].mxu0 %v8516_v58  ;;  %v8484_v12 = vmax.f32 %v8416_v41, 0.0 }
0x1126   : > { %v8422_v40 = vadd.f32 %v8421_v17, %v15860_v4  ;;  %v10082_v8 = vpop.f32.mrb[207].mxu0  ;;  %v8485_v11 = vmax.f32 %v8418_v60, 0.0 }
0x1127   : > { %v8486_v35 = vmax.f32 %v8420_v9, 0.0  ;;  %v8695_v61 = vadd.f32 %v10080_v15, %v15958_v26  ;;  %v10083_v30 = vadd.f32 %v10082_v8, %v10081_v57 }
0x1128   : > { %v8487_v47 = vmax.f32 %v8422_v40, 0.0 }
0x1129   : > { %v8518_v44 = vpack.c.bf16 %v8486_v35, %v8484_v12  ;;  %v8698_v52 = vadd.f32 %v10083_v30, %v15958_v26  ;;  %v15980_v55 = vadd.f32 %v8695_v61, %v15644_v20 }
0x112a   : > { %v8519_v54 = vpack.c.bf16 %v8487_v47, %v8485_v11 }
0x112b   : > { %8849 = vadd.xlane.f32.xlu1 %v15980_v55  ;;  %v15984_v49 = vadd.f32 %v8698_v52, %v15647_v48 }
0x112c   : > { %8804 = vmatprep.mubr.bf16.mxu0 %v8519_v54 }
0x112d   : > { %8851 = vadd.xlane.f32.xlu0 %v15984_v49  ;;  %8805 = vmatmul.mubr.bf16.gmra.mrb[4].mxu0 %v8518_v44 }
0x1150   : > { %v10084_v4 = vpop.f32.mrb[208].mxu0 }
0x1151   : > { %v10085_v2 = vpop.f32.mrb[209].mxu0 }
0x1152   : > { %v10086_v58 = vadd.f32 %v10085_v2, %v10084_v4  ;;  %v10087_v33 = vpop.f32.mrb[210].mxu0 }
0x1153   : > { %v10088_v24 = vpop.f32.mrb[211].mxu0 }
0x1154   : > { %v8703_v10 = vadd.f32 %v10086_v58, %v15958_v26  ;;  %v10089_v41 = vadd.f32 %v10088_v24, %v10087_v33 }
0x1156   : > { %v8706_v20 = vadd.f32 %v10089_v41, %v15958_v26  ;;  %v15990_v16 = vadd.f32 %v8703_v10, %v15677_v23 }
0x1158   : > { %8853 = vadd.xlane.f32.xlu1 %v15990_v16  ;;  %v10090_v48 = vpop.f32.mrb[212].mxu0  ;;  %v15994_v28 = vadd.f32 %v8706_v20, %v15680_v63 }
0x1159   : > { %v10091_v60 = vpop.f32.mrb[213].mxu0 }
0x115a   : > { %v10092_v14 = vadd.f32 %v10091_v60, %v10090_v48  ;;  %v10093_v45 = vpop.f32.mrb[214].mxu0  ;;  %8855 = vadd.xlane.f32.xlu0 %v15994_v28 }
0x115b   : > { %v10094_v9 = vpop.f32.mrb[215].mxu0 }
0x115c   : > { %v8711_v15 = vadd.f32 %v10092_v14, %v15958_v26  ;;  %v10095_v57 = vadd.f32 %v10094_v9, %v10093_v45 }
0x115e   : > { %v8714_v17 = vadd.f32 %v10095_v57, %v15958_v26  ;;  %v16000_v23 = vadd.f32 %v8711_v15, %v15700_v22 }
0x1160   : > { %8857 = vadd.xlane.f32.xlu1 %v16000_v23  ;;  %v10096_v40 = vpop.f32.mrb[216].mxu0  ;;  %v16004_v63 = vadd.f32 %v8714_v17, %v15703_v39 }
0x1161   : > { %v10097_v8 = vpop.f32.mrb[217].mxu0 }
0x1162   : > { %v10098_v12 = vadd.f32 %v10097_v8, %v10096_v40  ;;  %v10099_v35 = vpop.f32.mrb[218].mxu0  ;;  %8859 = vadd.xlane.f32.xlu0 %v16004_v63 }
0x1163   : > { %v10100_v61 = vpop.f32.mrb[219].mxu0 }
0x1164   : > { %v8719_v30 = vadd.f32 %v10098_v12, %v15958_v26  ;;  %v10101_v11 = vadd.f32 %v10100_v61, %v10099_v35 }
0x1166   : > { %v8722_v47 = vadd.f32 %v10101_v11, %v15958_v26  ;;  %v16010_v22 = vadd.f32 %v8719_v30, %v15725_v29 }
0x1168   : > { %8861 = vadd.xlane.f32.xlu1 %v16010_v22  ;;  %v10102_v44 = vpop.f32.mrb[220].mxu0  ;;  %v16014_v39 = vadd.f32 %v8722_v47, %v15728_v42 }
0x1169   : > { %v10103_v52 = vpop.f32.mrb[221].mxu0 }
0x116a   : > { %v10104_v54 = vadd.f32 %v10103_v52, %v10102_v44  ;;  %v10105_v4 = vpop.f32.mrb[222].mxu0  ;;  %8863 = vadd.xlane.f32.xlu0 %v16014_v39 }
0x116b   : > { %v10106_v2 = vpop.f32.mrb[223].mxu0 }
0x116c   : > { %v8727_v58 = vadd.f32 %v10104_v54, %v15958_v26  ;;  %v10107_v33 = vadd.f32 %v10106_v2, %v10105_v4 }
0x116e   : > { %v8730_v24 = vadd.f32 %v10107_v33, %v15958_v26  ;;  %v16020_v29 = vadd.f32 %v8727_v58, %v15742_v1 }
0x1170   : > { %8865 = vadd.xlane.f32.xlu1 %v16020_v29  ;;  %v16024_v10 = vadd.f32 %v8730_v24, %v15745_v38 }
0x1172   : > { %8867 = vadd.xlane.f32.xlu0 %v16024_v10 }
0x118c   : > { %v10108_v42 = vpop.f32.mrb[224].mxu0 }
0x118d   : > { %v10109_v41 = vpop.f32.mrb[225].mxu0 }
0x118e   : > { %v10110_v20 = vadd.f32 %v10109_v41, %v10108_v42  ;;  %v10111_v48 = vpop.f32.mrb[226].mxu0 }
0x118f   : > { %v10112_v60 = vpop.f32.mrb[227].mxu0 }
0x1190   : > { %v8735_v14 = vadd.f32 %v10110_v20, %v15958_v26  ;;  %v10113_v45 = vadd.f32 %v10112_v60, %v10111_v48 }
0x1192   : > { %v8738_v9 = vadd.f32 %v10113_v45, %v15958_v26  ;;  %v16030_v1 = vadd.f32 %v8735_v14, %v15765_v0 }
0x1194   : > { %8869 = vadd.xlane.f32.xlu1 %v16030_v1  ;;  %v10114_v15 = vpop.f32.mrb[228].mxu0  ;;  %v16034_v38 = vadd.f32 %v8738_v9, %v15768_v32 }
0x1195   : > { %v10115_v57 = vpop.f32.mrb[229].mxu0 }
0x1196   : > { %v10116_v17 = vadd.f32 %v10115_v57, %v10114_v15  ;;  %8871 = vadd.xlane.f32.xlu0 %v16034_v38  ;;  %v10117_v40 = vpop.f32.mrb[230].mxu0 }
0x1197   : > { %v10118_v8 = vpop.f32.mrb[231].mxu0 }
0x1198   : > { %v8743_v12 = vadd.f32 %v10116_v17, %v15958_v26  ;;  %v10119_v35 = vadd.f32 %v10118_v8, %v10117_v40 }
0x119a   : > { %v8746_v61 = vadd.f32 %v10119_v35, %v15958_v26  ;;  %v16040_v0 = vadd.f32 %v8743_v12, %v15781_v19 }
0x119c   : > { %8873 = vadd.xlane.f32.xlu1 %v16040_v0  ;;  %v10120_v30 = vpop.f32.mrb[232].mxu0  ;;  %v16044_v32 = vadd.f32 %v8746_v61, %v15778_v62 }
0x119d   : > { %v10121_v11 = vpop.f32.mrb[233].mxu0 }
0x119e   : > { %v10122_v47 = vadd.f32 %v10121_v11, %v10120_v30  ;;  %8875 = vadd.xlane.f32.xlu0 %v16044_v32  ;;  %v10123_v44 = vpop.f32.mrb[234].mxu0 }
0x119f   : > { %v10124_v52 = vpop.f32.mrb[235].mxu0 }
0x11a0   : > { %v8751_v54 = vadd.f32 %v10122_v47, %v15958_v26  ;;  %v10125_v4 = vadd.f32 %v10124_v52, %v10123_v44 }
0x11a2   : > { %v8754_v2 = vadd.f32 %v10125_v4, %v15958_v26  ;;  %v16050_v19 = vadd.f32 %v8751_v54, %v15791_v43 }
0x11a4   : > { %8877 = vadd.xlane.f32.xlu1 %v16050_v19  ;;  %v10126_v58 = vpop.f32.mrb[236].mxu0  ;;  %v16054_v62 = vadd.f32 %v8754_v2, %v15794_v5 }
0x11a5   : > { %v10127_v33 = vpop.f32.mrb[237].mxu0 }
0x11a6   : > { %v10128_v24 = vadd.f32 %v10127_v33, %v10126_v58  ;;  %8879 = vadd.xlane.f32.xlu0 %v16054_v62  ;;  %v10129_v42 = vpop.f32.mrb[238].mxu0 }
0x11a7   : > { %v10130_v41 = vpop.f32.mrb[239].mxu0 }
0x11a8   : > { %v8759_v20 = vadd.f32 %v10128_v24, %v15958_v26  ;;  %v10131_v48 = vadd.f32 %v10130_v41, %v10129_v42 }
0x11aa   : > { %v8762_v60 = vadd.f32 %v10131_v48, %v15958_v26  ;;  %v16060_v43 = vadd.f32 %v8759_v20, %v15807_v25 }
0x11ac   : > { %8881 = vadd.xlane.f32.xlu1 %v16060_v43  ;;  %v16064_v14 = vadd.f32 %v8762_v60, %v15804_v13 }
0x11ae   : > { %8883 = vadd.xlane.f32.xlu0 %v16064_v14 }
0x11b3   : > { %v10132_v5 = vpop.f32.mrb[240].mxu0 }
0x11b4   : > { %v10133_v45 = vpop.f32.mrb[241].mxu0 }
0x11b5   : > { %v10134_v9 = vadd.f32 %v10133_v45, %v10132_v5  ;;  %v10135_v15 = vpop.f32.mrb[242].mxu0 }
0x11b6   : > { %v10136_v57 = vpop.f32.mrb[243].mxu0 }
0x11b7   : > { %v8767_v17 = vadd.f32 %v10134_v9, %v15958_v26  ;;  %v10137_v40 = vadd.f32 %v10136_v57, %v10135_v15 }
0x11b9   : > { %v8770_v8 = vadd.f32 %v10137_v40, %v15958_v26  ;;  %v16070_v25 = vadd.f32 %v8767_v17, %v15817_v7 }
0x11bb   : > { %8885 = vadd.xlane.f32.xlu1 %v16070_v25  ;;  %v10138_v12 = vpop.f32.mrb[244].mxu0  ;;  %v16074_v13 = vadd.f32 %v8770_v8, %v15820_v21 }
0x11bc   : > { %v10139_v35 = vpop.f32.mrb[245].mxu0 }
0x11bd   : > { %v10140_v61 = vadd.f32 %v10139_v35, %v10138_v12  ;;  %8887 = vadd.xlane.f32.xlu0 %v16074_v13  ;;  %v10141_v30 = vpop.f32.mrb[246].mxu0 }
0x11be   : > { %v10142_v11 = vpop.f32.mrb[247].mxu0 }
0x11bf   : > { %v8775_v47 = vadd.f32 %v10140_v61, %v15958_v26  ;;  %v10143_v44 = vadd.f32 %v10142_v11, %v10141_v30 }
0x11c1   : > { %v8778_v52 = vadd.f32 %v10143_v44, %v15958_v26  ;;  %v16080_v7 = vadd.f32 %v8775_v47, %v15830_v31  ;;  %v8846_v47 = vpop.xlane.xlu1 %8845 }
0x11c3   : > { %8889 = vadd.xlane.f32.xlu1 %v16080_v7  ;;  %v16084_v54 = vadd.f32 %v8778_v52, %v15833_v34  ;;  %v8848_v52 = vpop.xlane.xlu0 %8847 }
0x11c5   : > { %8891 = vadd.xlane.f32.xlu0 %v16084_v54 }
0x11e8   : > { %v10144_v21 = vpop.f32.mrb[248].mxu0 }
0x11e9   : > { %v10145_v4 = vpop.f32.mrb[249].mxu0 }
0x11ea   : > { %v10146_v2 = vadd.f32 %v10145_v4, %v10144_v21  ;;  %v10147_v58 = vpop.f32.mrb[250].mxu0  ;;  %v8909_v4 = vmul.f32 0.0078125, %v8846_v47 }
0x11eb   : > { %v10148_v33 = vpop.f32.mrb[251].mxu0 }
0x11ec   : > { %v8783_v24 = vadd.f32 %v10146_v2, %v15958_v26  ;;  %v10149_v42 = vadd.f32 %v10148_v33, %v10147_v58  ;;  %v8850_v33 = vpop.xlane.xlu1 %8849 }
0x11ee   : > { %v8786_v41 = vadd.f32 %v10149_v42, %v15958_v26  ;;  %v16090_v31 = vadd.f32 %v8783_v24, %v15843_v50  ;;  %v8910_v42 = vmul.f32 0.0078125, %v8848_v52 }
0x11f0   : > { %8893 = vadd.xlane.f32.xlu1 %v16090_v31  ;;  %v10150_v20 = vpop.f32.mrb[252].mxu0  ;;  %v16094_v34 = vadd.f32 %v8786_v41, %v15846_v51 }
0x11f1   : > { %v10151_v48 = vpop.f32.mrb[253].mxu0 }
0x11f2   : > { %v10152_v60 = vadd.f32 %v10151_v48, %v10150_v20  ;;  %8895 = vadd.xlane.f32.xlu0 %v16094_v34  ;;  %v10153_v5 = vpop.f32.mrb[254].mxu0  ;;  %v8852_v20 = vpop.xlane.xlu0 %8851  ;;  %v16119_v48 = vsub.f32 %v15966_v18, %v8909_v4 }
0x11f3   : > { %v10154_v45 = vpop.f32.mrb[255].mxu0 }
0x11f4   : > { %v8791_v9 = vadd.f32 %v10152_v60, %v15958_v26  ;;  %v10155_v15 = vadd.f32 %v10154_v45, %v10153_v5  ;;  %v8911_v60 = vmul.f32 0.0078125, %v8850_v33  ;;  %v8854_v45 = vpop.xlane.xlu1 %8853 }
0x11f6   : > { %v8794_v57 = vadd.f32 %v10155_v15, %v15958_v26  ;;  %v16100_v50 = vadd.f32 %v8791_v9, %v15863_v46  ;;  %v16126_v9 = vsub.f32 %v15971_v59, %v8910_v42  ;;  %v8912_v15 = vmul.f32 0.0078125, %v8852_v20 }
0x11f7   : > { %v16133_v18 = vsub.f32 %v15980_v55, %v8911_v60 }
0x11f8   : > { %8897 = vadd.xlane.f32.xlu1 %v16100_v50  ;;  %v10156_v17 = vpop.f32.mrb[0].mxu0  ;;  %v16104_v51 = vadd.f32 %v8794_v57, %v15866_v53  ;;  %v16139_v59 = vsub.f32 %v15984_v49, %v8912_v15 }
0x11f9   : > { %v10157_v40 = vpop.f32.mrb[1].mxu0 }
0x11fa   : > { %v10158_v8 = vadd.f32 %v10157_v40, %v10156_v17  ;;  %8899 = vadd.xlane.f32.xlu0 %v16104_v51  ;;  %v10159_v12 = vpop.f32.mrb[2].mxu0  ;;  %v8856_v17 = vpop.xlane.xlu0 %8855  ;;  %v8913_v40 = vmul.f32 0.0078125, %v8854_v45  ;;  %v8976_v47 = vmul.f32 %v16139_v59, %v16139_v59 }
0x11fb   : > { %v10160_v35 = vpop.f32.mrb[3].mxu0 }
0x11fc   : > { %v8799_v61 = vadd.f32 %v10158_v8, %v15958_v26  ;;  %v10161_v30 = vadd.f32 %v10160_v35, %v10159_v12  ;;  %v8914_v8 = vmul.f32 0.0078125, %v8856_v17  ;;  %v16144_v35 = vsub.f32 %v15990_v16, %v8913_v40 }
0x11fe   : > { %v8802_v11 = vadd.f32 %v10161_v30, %v15958_v26  ;;  %v16110_v46 = vadd.f32 %v8799_v61, %v15880_v56  ;;  %v8860_v12 = vpop.xlane.xlu0 %8859  ;;  %v8975_v61 = vmul.f32 %v16133_v18, %v16133_v18 }
0x11ff   : > { %v8916_v49 = vmul.f32 0.0078125, %v8860_v12 }
0x1200   : > { %8901 = vadd.xlane.f32.xlu1 %v16110_v46  ;;  %v10162_v44 = vpop.f32.mrb[4].mxu0  ;;  %v16114_v53 = vadd.f32 %v8802_v11, %v15883_v6  ;;  %v16149_v11 = vsub.f32 %v15994_v28, %v8914_v8 }
0x1201   : > { %v10163_v21 = vpop.f32.mrb[5].mxu0 }
0x1202   : > { %v10164_v2 = vadd.f32 %v10163_v21, %v10162_v44  ;;  %8903 = vadd.xlane.f32.xlu0 %v16114_v53  ;;  %v10165_v58 = vpop.f32.mrb[6].mxu0  ;;  %v8864_v44 = vpop.xlane.xlu0 %8863  ;;  %v8977_v21 = vmul.f32 %v16144_v35, %v16144_v35 }
0x1203   : > { %v10166_v24 = vpop.f32.mrb[7].mxu0  ;;  %v8918_v28 = vmul.f32 0.0078125, %v8864_v44 }
0x1204   : > { %v8807_v56 = vadd.f32 %v10164_v2, %v15958_v26  ;;  %v10167_v41 = vadd.f32 %v10166_v24, %v10165_v58  ;;  %v16159_v2 = vsub.f32 %v16004_v63, %v8916_v49  ;;  %v8978_v58 = vmul.f32 %v16149_v11, %v16149_v11 }
0x1206   : > { %v8810_v6 = vadd.f32 %v10167_v41, %v15958_v26  ;;  %v16123_v5 = vadd.f32 %v8807_v56, %v15897_v37  ;;  %v8973_v37 = vmul.f32 %v16119_v48, %v16119_v48  ;;  %v8858_v26 = vpop.xlane.xlu1 %8857  ;;  %v8868_v33 = vpop.xlane.xlu0 %8867  ;;  %v16169_v56 = vsub.f32 %v16014_v39, %v8918_v28 }
0x1207   : > { %v8915_v55 = vmul.f32 0.0078125, %v8858_v26  ;;  %v8920_v41 = vmul.f32 0.0078125, %v8868_v33  ;;  %v8980_v63 = vmul.f32 %v16159_v2, %v16159_v2 }
0x1208   : > { %8905 = vadd.xlane.f32.xlu1 %v16123_v5  ;;  %v16130_v57 = vadd.f32 %v8810_v6, %v15900_v27  ;;  %v8974_v27 = vmul.f32 %v16126_v9, %v16126_v9  ;;  %v8982_v39 = vmul.f32 %v16169_v56, %v16169_v56 }
0x1209   : > { %v16154_v52 = vsub.f32 %v16000_v23, %v8915_v55  ;;  %v16179_v60 = vsub.f32 %v16024_v10, %v8920_v41 }
0x120a   : > { %8907 = vadd.xlane.f32.xlu0 %v16130_v57  ;;  %v8862_v30 = vpop.xlane.xlu1 %8861 }
0x120b   : > { %v8917_v16 = vmul.f32 0.0078125, %v8862_v30  ;;  %v8979_v42 = vmul.f32 %v16154_v52, %v16154_v52 }
0x120c   : > { %9005 = vadd.xlane.f32.xlu1 %v8973_v37 }
0x120d   : > { %v16164_v24 = vsub.f32 %v16010_v22, %v8917_v16 }
0x120e   : > { %9007 = vadd.xlane.f32.xlu0 %v8974_v27  ;;  %v8866_v4 = vpop.xlane.xlu1 %8865 }
0x120f   : > { %v8919_v23 = vmul.f32 0.0078125, %v8866_v4  ;;  %v8981_v22 = vmul.f32 %v16164_v24, %v16164_v24 }
0x1210   : > { %9009 = vadd.xlane.f32.xlu1 %v8975_v61 }
0x1211   : > { %v16174_v20 = vsub.f32 %v16020_v29, %v8919_v23  ;;  %v8984_v29 = vmul.f32 %v16179_v60, %v16179_v60 }
0x1212   : > { %9011 = vadd.xlane.f32.xlu0 %v8976_v47 }
0x1213   : > { %v8983_v6 = vmul.f32 %v16174_v20, %v16174_v20 }
0x1214   : > { %9013 = vadd.xlane.f32.xlu1 %v8977_v21 }
0x1216   : > { %9015 = vadd.xlane.f32.xlu0 %v8978_v58 }
0x1218   : > { %9017 = vadd.xlane.f32.xlu1 %v8979_v42 }
0x121a   : > { %9019 = vadd.xlane.f32.xlu0 %v8980_v63 }
0x121c   : > { %9021 = vadd.xlane.f32.xlu1 %v8981_v22 }
0x121e   : > { %9023 = vadd.xlane.f32.xlu0 %v8982_v39 }
0x1220   : > { %9025 = vadd.xlane.f32.xlu1 %v8983_v6 }
0x1221   : > { %v8870_v45 = vpop.xlane.xlu1 %8869 }
0x1222   : > { %v8921_v15 = vmul.f32 0.0078125, %v8870_v45  ;;  %9027 = vadd.xlane.f32.xlu0 %v8984_v29 }
0x1223   : > { %v8872_v17 = vpop.xlane.xlu0 %8871 }
0x1224   : > { %v16188_v40 = vsub.f32 %v16030_v1, %v8921_v15  ;;  %v8922_v10 = vmul.f32 0.0078125, %v8872_v17 }
0x1226   : > { %v16191_v37 = vsub.f32 %v16034_v38, %v8922_v10  ;;  %v8985_v26 = vmul.f32 %v16188_v40, %v16188_v40 }
0x1228   : > { %9029 = vadd.xlane.f32.xlu1 %v8985_v26  ;;  %v8986_v8 = vmul.f32 %v16191_v37, %v16191_v37 }
0x1229   : > { %v8874_v27 = vpop.xlane.xlu1 %8873 }
0x122a   : > { %v8923_v12 = vmul.f32 0.0078125, %v8874_v27  ;;  %9031 = vadd.xlane.f32.xlu0 %v8986_v8 }
0x122b   : > { %v8876_v55 = vpop.xlane.xlu0 %8875 }
0x122c   : > { %v16198_v61 = vsub.f32 %v16040_v0, %v8923_v12  ;;  %v8924_v1 = vmul.f32 0.0078125, %v8876_v55 }
0x122e   : > { %v16201_v30 = vsub.f32 %v16044_v32, %v8924_v1  ;;  %v8987_v38 = vmul.f32 %v16198_v61, %v16198_v61 }
0x1230   : > { %9033 = vadd.xlane.f32.xlu1 %v8987_v38  ;;  %v8988_v49 = vmul.f32 %v16201_v30, %v16201_v30 }
0x1231   : > { %v8878_v47 = vpop.xlane.xlu1 %8877 }
0x1232   : > { %v8925_v44 = vmul.f32 0.0078125, %v8878_v47  ;;  %9035 = vadd.xlane.f32.xlu0 %v8988_v49 }
0x1233   : > { %v8880_v16 = vpop.xlane.xlu0 %8879 }
0x1234   : > { %v16208_v21 = vsub.f32 %v16050_v19, %v8925_v44  ;;  %v8926_v0 = vmul.f32 0.0078125, %v8880_v16 }
0x1236   : > { %v16211_v4 = vsub.f32 %v16054_v62, %v8926_v0  ;;  %v8989_v32 = vmul.f32 %v16208_v21, %v16208_v21 }
0x1238   : > { %9037 = vadd.xlane.f32.xlu1 %v8989_v32  ;;  %v8990_v28 = vmul.f32 %v16211_v4, %v16211_v4 }
0x1239   : > { %v8882_v58 = vpop.xlane.xlu1 %8881 }
0x123a   : > { %v8927_v33 = vmul.f32 0.0078125, %v8882_v58  ;;  %9039 = vadd.xlane.f32.xlu0 %v8990_v28 }
0x123b   : > { %v8884_v23 = vpop.xlane.xlu0 %8883 }
0x123c   : > { %v16218_v42 = vsub.f32 %v16060_v43, %v8927_v33  ;;  %v8928_v19 = vmul.f32 0.0078125, %v8884_v23 }
0x123e   : > { %v16221_v41 = vsub.f32 %v16064_v14, %v8928_v19  ;;  %v8991_v62 = vmul.f32 %v16218_v42, %v16218_v42 }
0x1240   : > { %9041 = vadd.xlane.f32.xlu1 %v8991_v62  ;;  %v8992_v63 = vmul.f32 %v16221_v41, %v16221_v41 }
0x1242   : > { %9043 = vadd.xlane.f32.xlu0 %v8992_v63 }
0x1248   : > { %v8886_v22 = vpop.xlane.xlu1 %8885 }
0x1249   : > { %v8929_v39 = vmul.f32 0.0078125, %v8886_v22 }
0x124a   : > { %v8888_v6 = vpop.xlane.xlu0 %8887 }
0x124b   : > { %v16228_v29 = vsub.f32 %v16070_v25, %v8929_v39  ;;  %v8930_v43 = vmul.f32 0.0078125, %v8888_v6 }
0x124d   : > { %v16231_v45 = vsub.f32 %v16074_v13, %v8930_v43  ;;  %v8993_v14 = vmul.f32 %v16228_v29, %v16228_v29 }
0x124f   : > { %9045 = vadd.xlane.f32.xlu1 %v8993_v14  ;;  %v8994_v15 = vmul.f32 %v16231_v45, %v16231_v45 }
0x1250   : > { %v8890_v17 = vpop.xlane.xlu1 %8889 }
0x1251   : > { %v8931_v10 = vmul.f32 0.0078125, %v8890_v17  ;;  %9047 = vadd.xlane.f32.xlu0 %v8994_v15 }
0x1252   : > { %v8892_v26 = vpop.xlane.xlu0 %8891 }
0x1253   : > { %v16238_v8 = vsub.f32 %v16080_v7, %v8931_v10  ;;  %v8932_v25 = vmul.f32 0.0078125, %v8892_v26 }
0x1255   : > { %v16241_v27 = vsub.f32 %v16084_v54, %v8932_v25  ;;  %v8995_v13 = vmul.f32 %v16238_v8, %v16238_v8 }
0x1257   : > { %9049 = vadd.xlane.f32.xlu1 %v8995_v13  ;;  %v8996_v12 = vmul.f32 %v16241_v27, %v16241_v27 }
0x1259   : > { %9051 = vadd.xlane.f32.xlu0 %v8996_v12 }
0x127d   : > { %v8894_v55 = vpop.xlane.xlu1 %8893 }
0x127e   : > { %v8933_v1 = vmul.f32 0.0078125, %v8894_v55 }
0x127f   : > { %v8896_v38 = vpop.xlane.xlu0 %8895 }
0x1280   : > { %v16248_v49 = vsub.f32 %v16090_v31, %v8933_v1  ;;  %v8934_v7 = vmul.f32 0.0078125, %v8896_v38 }
0x1282   : > { %v16251_v47 = vsub.f32 %v16094_v34, %v8934_v7  ;;  %v8997_v54 = vmul.f32 %v16248_v49, %v16248_v49 }
0x1284   : > { %9053 = vadd.xlane.f32.xlu1 %v8997_v54  ;;  %v8998_v44 = vmul.f32 %v16251_v47, %v16251_v47 }
0x1285   : > { %v8898_v16 = vpop.xlane.xlu1 %8897 }
0x1286   : > { %v8935_v0 = vmul.f32 0.0078125, %v8898_v16  ;;  %9055 = vadd.xlane.f32.xlu0 %v8998_v44 }
0x1287   : > { %v8900_v32 = vpop.xlane.xlu0 %8899 }
0x1288   : > { %v16258_v28 = vsub.f32 %v16100_v50, %v8935_v0  ;;  %v8936_v31 = vmul.f32 0.0078125, %v8900_v32  ;;  %v9199_v32 = vsub.s32 4, %v17024_v36 }
0x128a   : > { %v16261_v58 = vsub.f32 %v16104_v51, %v8936_v31  ;;  %v8999_v34 = vmul.f32 %v16258_v28, %v16258_v28 }
0x128c   : > { %9057 = vadd.xlane.f32.xlu1 %v8999_v34  ;;  %v9000_v33 = vmul.f32 %v16261_v58, %v16261_v58 }
0x128d   : > { %v8902_v23 = vpop.xlane.xlu1 %8901 }
0x128e   : > { %v8937_v19 = vmul.f32 0.0078125, %v8902_v23  ;;  %9059 = vadd.xlane.f32.xlu0 %v9000_v33  ;;  %v9235_v23 = vsub.s32 5, %v17024_v36 }
0x128f   : > { %v8904_v62 = vpop.xlane.xlu0 %8903 }
0x1290   : > { %v16268_v63 = vsub.f32 %v16110_v46, %v8937_v19  ;;  %v8938_v50 = vmul.f32 0.0078125, %v8904_v62 }
0x1292   : > { %v16271_v22 = vsub.f32 %v16114_v53, %v8938_v50  ;;  %v9001_v51 = vmul.f32 %v16268_v63, %v16268_v63 }
0x1294   : > { %9061 = vadd.xlane.f32.xlu1 %v9001_v51  ;;  %v9002_v39 = vmul.f32 %v16271_v22, %v16271_v22  ;;  %v16290_v51 = vrot.slane %v15954_v3, %v9199_v32 }
0x1295   : > { %v8906_v6 = vpop.xlane.xlu1 %8905 }
0x1296   : > { %v8939_v43 = vmul.f32 0.0078125, %v8906_v6  ;;  %9063 = vadd.xlane.f32.xlu0 %v9002_v39 }
0x1297   : > { %v8908_v14 = vpop.xlane.xlu0 %8907 }
0x1298   : > { %v16278_v15 = vsub.f32 %v16123_v5, %v8939_v43  ;;  %v8940_v46 = vmul.f32 0.0078125, %v8908_v14 }
0x1299   : > { %v9006_v17 = vpop.xlane.xlu1 %9005 }
0x129a   : > { %v16281_v10 = vsub.f32 %v16130_v57, %v8940_v46  ;;  %v9069_v53 = vmul.f32 0.0078125, %v9006_v17  ;;  %v9003_v26 = vmul.f32 %v16278_v15, %v16278_v15  ;;  %v16293_v46 = vrot.slane %v15954_v3, %v9235_v23 }
0x129b   : > { %v9008_v25 = vpop.xlane.xlu0 %9007 }
0x129c   : > { %v9101_v13 = vadd.f32 1e-05, %v9069_v53  ;;  %v9070_v12 = vmul.f32 0.0078125, %v9008_v25  ;;  %9065 = vadd.xlane.f32.xlu1 %v9003_v26  ;;  %v9004_v55 = vmul.f32 %v16281_v10, %v16281_v10 }
0x129d   : > { %v9010_v1 = vpop.xlane.xlu1 %9009 }
0x129e   : > { %11626 = vrsqrt.f32 %v9101_v13  ;;  %v9102_v5 = vadd.f32 1e-05, %v9070_v12  ;;  %v9071_v38 = vmul.f32 0.0078125, %v9010_v1  ;;  %9067 = vadd.xlane.f32.xlu0 %v9004_v55 }
0x129f   : > { %v9012_v7 = vpop.xlane.xlu0 %9011 }
0x12a0   : > { %11628 = vrsqrt.f32 %v9102_v5  ;;  %v9103_v57 = vadd.f32 1e-05, %v9071_v38  ;;  %v9072_v54 = vmul.f32 0.0078125, %v9012_v7 }
0x12a1   : > { %v9014_v44 = vpop.xlane.xlu1 %9013 }
0x12a2   : > { %11630 = vrsqrt.f32 %v9103_v57  ;;  %v9104_v16 = vadd.f32 1e-05, %v9072_v54  ;;  %v9073_v0 = vmul.f32 0.0078125, %v9014_v44 }
0x12a3   : > { %v9016_v31 = vpop.xlane.xlu0 %9015 }
0x12a4   : > { %11632 = vrsqrt.f32 %v9104_v16  ;;  %v9105_v34 = vadd.f32 1e-05, %v9073_v0  ;;  %v9074_v33 = vmul.f32 0.0078125, %v9016_v31 }
0x12a5   : > { %v9018_v19 = vpop.xlane.xlu1 %9017 }
0x12a6   : > { %11634 = vrsqrt.f32 %v9105_v34  ;;  %v9106_v62 = vadd.f32 1e-05, %v9074_v33  ;;  %v9075_v50 = vmul.f32 0.0078125, %v9018_v19 }
0x12a7   : > { %v9020_v39 = vpop.xlane.xlu0 %9019 }
0x12a8   : > { %v11627_v6 = vpop.eup %11626  ;;  %11636 = vrsqrt.f32 %v9106_v62  ;;  %v9107_v43 = vadd.f32 1e-05, %v9075_v50  ;;  %v9076_v14 = vmul.f32 0.0078125, %v9020_v39 }
0x12a9   : > { %v9165_v17 = vmul.f32 %v11627_v6, %v16119_v48  ;;  %v9022_v53 = vpop.xlane.xlu1 %9021 }
0x12aa   : > { %v11629_v26 = vpop.eup %11628  ;;  %11638 = vrsqrt.f32 %v9107_v43  ;;  %v9108_v36 = vadd.f32 1e-05, %v9076_v14  ;;  %v9077_v25 = vmul.f32 0.0078125, %v9022_v53 }
0x12ab   : > { %v9201_v13 = vmul.f32 %v16290_v51, %v9165_v17  ;;  %v9166_v12 = vmul.f32 %v11629_v26, %v16126_v9  ;;  %v9024_v55 = vpop.xlane.xlu0 %9023 }
0x12ac   : > { %v11631_v1 = vpop.eup %11630  ;;  %11640 = vrsqrt.f32 %v9108_v36  ;;  %v9109_v5 = vadd.f32 1e-05, %v9077_v25  ;;  %v9078_v38 = vmul.f32 0.0078125, %v9024_v55 }
0x12ad   : > { %v16299_v7 = vadd.f32 %v16293_v46, %v9201_v13  ;;  %v9202_v3 = vmul.f32 %v16290_v51, %v9166_v12  ;;  %v9167_v48 = vmul.f32 %v11631_v1, %v16133_v18  ;;  %v9026_v57 = vpop.xlane.xlu1 %9025 }
0x12ae   : > { %v11633_v54 = vpop.eup %11632  ;;  %11642 = vrsqrt.f32 %v9109_v5  ;;  %v9110_v44 = vadd.f32 1e-05, %v9078_v38  ;;  %v9079_v16 = vmul.f32 0.0078125, %v9026_v57 }
0x12af   : > { %9269 = vst [vmem:[#allocation2] sm:$0xff] %v16299_v7  ;;  %v16305_v9 = vadd.f32 %v16293_v46, %v9202_v3  ;;  %v9203_v0 = vmul.f32 %v16290_v51, %v9167_v48  ;;  %v9168_v32 = vmul.f32 %v11633_v54, %v16139_v59  ;;  %v9028_v31 = vpop.xlane.xlu0 %9027  ;;  %9305 = vst [vmem:[#allocation13] sm:$0xff] (!%p9744_p8), %v16299_v7 }
0x12b0   : > { %v11635_v34 = vpop.eup %11634  ;;  %11644 = vrsqrt.f32 %v9110_v44  ;;  %v9111_v33 = vadd.f32 1e-05, %v9079_v16  ;;  %v9080_v23 = vmul.f32 0.0078125, %v9028_v31 }
0x12b1   : > { %9270 = vst [vmem:[#allocation2 + $0x8] sm:$0xff] %v16305_v9  ;;  %v16311_v18 = vadd.f32 %v16293_v46, %v9203_v0  ;;  %v9204_v19 = vmul.f32 %v16290_v51, %v9168_v32  ;;  %v9169_v62 = vmul.f32 %v11635_v34, %v16144_v35  ;;  %9306 = vst [vmem:[#allocation13 + $0x8] sm:$0xff] (!%p9744_p8), %v16305_v9 }
0x12b2   : > { %v11637_v50 = vpop.eup %11636  ;;  %11646 = vrsqrt.f32 %v9111_v33  ;;  %v9112_v39 = vadd.f32 1e-05, %v9080_v23 }
0x12b3   : > { %9271 = vst [vmem:[#allocation2 + $0x10] sm:$0xff] %v16311_v18  ;;  %v16317_v59 = vadd.f32 %v16293_v46, %v9204_v19  ;;  %v9205_v6 = vmul.f32 %v16290_v51, %v9169_v62  ;;  %v9170_v43 = vmul.f32 %v11637_v50, %v16149_v11  ;;  %9307 = vst [vmem:[#allocation13 + $0x10] sm:$0xff] (!%p9744_p8), %v16311_v18 }
0x12b4   : > { %v11639_v14 = vpop.eup %11638  ;;  %11648 = vrsqrt.f32 %v9112_v39 }
0x12b5   : > { %9272 = vst [vmem:[#allocation2 + $0x18] sm:$0xff] %v16317_v59  ;;  %v16323_v17 = vadd.f32 %v16293_v46, %v9205_v6  ;;  %v9206_v35 = vmul.f32 %v16290_v51, %v9170_v43  ;;  %v9171_v53 = vmul.f32 %v11639_v14, %v16154_v52  ;;  %v9030_v26 = vpop.xlane.xlu1 %9029  ;;  %9308 = vst [vmem:[#allocation13 + $0x18] sm:$0xff] (!%p9744_p8), %v16317_v59 }
0x12b6   : > { %v11641_v36 = vpop.eup %11640  ;;  %v9081_v25 = vmul.f32 0.0078125, %v9030_v26 }
0x12b7   : > { %9273 = vst [vmem:[#allocation2 + $0x20] sm:$0xff] %v16323_v17  ;;  %v16329_v13 = vadd.f32 %v16293_v46, %v9206_v35  ;;  %v9207_v11 = vmul.f32 %v16290_v51, %v9171_v53  ;;  %v9172_v12 = vmul.f32 %v11641_v36, %v16159_v2  ;;  %v9032_v55 = vpop.xlane.xlu0 %9031  ;;  %9309 = vst [vmem:[#allocation13 + $0x20] sm:$0xff] (!%p9744_p8), %v16323_v17 }
0x12b8   : > { %v11643_v1 = vpop.eup %11642  ;;  %v9113_v5 = vadd.f32 1e-05, %v9081_v25  ;;  %v9082_v38 = vmul.f32 0.0078125, %v9032_v55 }
0x12b9   : > { %9274 = vst [vmem:[#allocation2 + $0x28] sm:$0xff] %v16329_v13  ;;  %v16335_v52 = vadd.f32 %v16293_v46, %v9207_v11  ;;  %v9208_v3 = vmul.f32 %v16290_v51, %v9172_v12  ;;  %v9173_v48 = vmul.f32 %v11643_v1, %v16164_v24  ;;  %9310 = vst [vmem:[#allocation13 + $0x28] sm:$0xff] (!%p9744_p8), %v16329_v13 }
0x12ba   : > { %v11645_v57 = vpop.eup %11644  ;;  %11650 = vrsqrt.f32 %v9113_v5  ;;  %v9114_v54 = vadd.f32 1e-05, %v9082_v38 }
0x12bb   : > { %9275 = vst [vmem:[#allocation2 + $0x30] sm:$0xff] %v16335_v52  ;;  %v16341_v2 = vadd.f32 %v16293_v46, %v9208_v3  ;;  %v9209_v44 = vmul.f32 %v16290_v51, %v9173_v48  ;;  %v9174_v16 = vmul.f32 %v11645_v57, %v16169_v56  ;;  %9311 = vst [vmem:[#allocation13 + $0x30] sm:$0xff] (!%p9744_p8), %v16335_v52 }
0x12bc   : > { %v11647_v0 = vpop.eup %11646  ;;  %11652 = vrsqrt.f32 %v9114_v54 }
0x12bd   : > { %9276 = vst [vmem:[#allocation2 + $0x38] sm:$0xff] %v16341_v2  ;;  %v16347_v32 = vadd.f32 %v16293_v46, %v9209_v44  ;;  %v9210_v24 = vmul.f32 %v16290_v51, %v9174_v16  ;;  %v9175_v31 = vmul.f32 %v11647_v0, %v16174_v20  ;;  %v9034_v34 = vpop.xlane.xlu1 %9033  ;;  %9312 = vst [vmem:[#allocation13 + $0x38] sm:$0xff] (!%p9744_p8), %v16341_v2 }
0x12be   : > { %v11649_v33 = vpop.eup %11648  ;;  %v9083_v23 = vmul.f32 0.0078125, %v9034_v34 }
0x12bf   : > { %9277 = vst [vmem:[#allocation2 + $0x40] sm:$0xff] %v16347_v32  ;;  %v16353_v19 = vadd.f32 %v16293_v46, %v9210_v24  ;;  %v9211_v56 = vmul.f32 %v16290_v51, %v9175_v31  ;;  %v9176_v62 = vmul.f32 %v11649_v33, %v16179_v60  ;;  %v9036_v50 = vpop.xlane.xlu0 %9035  ;;  %9313 = vst [vmem:[#allocation13 + $0x40] sm:$0xff] (!%p9744_p8), %v16347_v32 }
0x12c0   : > { %v9115_v39 = vadd.f32 1e-05, %v9083_v23  ;;  %v9084_v6 = vmul.f32 0.0078125, %v9036_v50 }
0x12c1   : > { %9278 = vst [vmem:[#allocation2 + $0x48] sm:$0xff] %v16353_v19  ;;  %v16359_v43 = vadd.f32 %v16293_v46, %v9211_v56  ;;  %v9212_v20 = vmul.f32 %v16290_v51, %v9176_v62  ;;  %9314 = vst [vmem:[#allocation13 + $0x48] sm:$0xff] (!%p9744_p8), %v16353_v19 }
0x12c2   : > { %11654 = vrsqrt.f32 %v9115_v39  ;;  %v9116_v14 = vadd.f32 1e-05, %v9084_v6 }
0x12c3   : > { %9279 = vst [vmem:[#allocation2 + $0x50] sm:$0xff] %v16359_v43  ;;  %v16364_v35 = vadd.f32 %v16293_v46, %v9212_v20  ;;  %9315 = vst [vmem:[#allocation13 + $0x50] sm:$0xff] (!%p9744_p8), %v16359_v43 }
0x12c4   : > { %v11651_v53 = vpop.eup %11650  ;;  %11656 = vrsqrt.f32 %v9116_v14 }
0x12c5   : > { %9280 = vst [vmem:[#allocation2 + $0x58] sm:$0xff] %v16364_v35  ;;  %v9177_v60 = vmul.f32 %v11651_v53, %v16188_v40  ;;  %v9038_v26 = vpop.xlane.xlu1 %9037  ;;  %9316 = vst [vmem:[#allocation13 + $0x58] sm:$0xff] (!%p9744_p8), %v16364_v35 }
0x12c6   : > { %v11653_v36 = vpop.eup %11652  ;;  %v9085_v25 = vmul.f32 0.0078125, %v9038_v26 }
0x12c7   : > { %v9213_v11 = vmul.f32 %v16290_v51, %v9177_v60  ;;  %v9178_v12 = vmul.f32 %v11653_v36, %v16191_v37  ;;  %v9040_v55 = vpop.xlane.xlu0 %9039 }
0x12c8   : > { %v9117_v1 = vadd.f32 1e-05, %v9085_v25  ;;  %v9086_v5 = vmul.f32 0.0078125, %v9040_v55 }
0x12c9   : > { %v16371_v38 = vadd.f32 %v16293_v46, %v9213_v11  ;;  %v9214_v3 = vmul.f32 %v16290_v51, %v9178_v12 }
0x12ca   : > { %11658 = vrsqrt.f32 %v9117_v1  ;;  %v9118_v48 = vadd.f32 1e-05, %v9086_v5 }
0x12cb   : > { %9281 = vst [vmem:[#allocation2 + $0x60] sm:$0xff] %v16371_v38  ;;  %v16376_v40 = vadd.f32 %v16293_v46, %v9214_v3  ;;  %9317 = vst [vmem:[#allocation13 + $0x60] sm:$0xff] (!%p9744_p8), %v16371_v38 }
0x12cc   : > { %v11655_v57 = vpop.eup %11654  ;;  %11660 = vrsqrt.f32 %v9118_v48 }
0x12cd   : > { %9282 = vst [vmem:[#allocation2 + $0x68] sm:$0xff] %v16376_v40  ;;  %v9179_v37 = vmul.f32 %v11655_v57, %v16198_v61  ;;  %v9042_v54 = vpop.xlane.xlu1 %9041  ;;  %9318 = vst [vmem:[#allocation13 + $0x68] sm:$0xff] (!%p9744_p8), %v16376_v40 }
0x12ce   : > { %v11657_v44 = vpop.eup %11656  ;;  %v9087_v16 = vmul.f32 0.0078125, %v9042_v54 }
0x12cf   : > { %v9215_v0 = vmul.f32 %v16290_v51, %v9179_v37  ;;  %v9180_v24 = vmul.f32 %v11657_v44, %v16201_v30  ;;  %v9044_v31 = vpop.xlane.xlu0 %9043 }
0x12d0   : > { %v9119_v34 = vadd.f32 1e-05, %v9087_v16  ;;  %v9088_v33 = vmul.f32 0.0078125, %v9044_v31 }
0x12d1   : > { %v16383_v23 = vadd.f32 %v16293_v46, %v9215_v0  ;;  %v9216_v56 = vmul.f32 %v16290_v51, %v9180_v24 }
0x12d2   : > { %11662 = vrsqrt.f32 %v9119_v34  ;;  %v9120_v62 = vadd.f32 1e-05, %v9088_v33 }
0x12d3   : > { %9283 = vst [vmem:[#allocation2 + $0x70] sm:$0xff] %v16383_v23  ;;  %v16388_v61 = vadd.f32 %v16293_v46, %v9216_v56  ;;  %9319 = vst [vmem:[#allocation13 + $0x70] sm:$0xff] (!%p9744_p8), %v16383_v23 }
0x12d4   : > { %v11659_v50 = vpop.eup %11658  ;;  %11664 = vrsqrt.f32 %v9120_v62 }
0x12d5   : > { %9284 = vst [vmem:[#allocation2 + $0x78] sm:$0xff] %v16388_v61  ;;  %v9181_v30 = vmul.f32 %v11659_v50, %v16208_v21  ;;  %9320 = vst [vmem:[#allocation13 + $0x78] sm:$0xff] (!%p9744_p8), %v16388_v61 }
0x12d6   : > { %v11661_v39 = vpop.eup %11660 }
0x12d7   : > { %v9217_v6 = vmul.f32 %v16290_v51, %v9181_v30  ;;  %v9182_v20 = vmul.f32 %v11661_v39, %v16211_v4 }
0x12d9   : > { %v16395_v14 = vadd.f32 %v16293_v46, %v9217_v6  ;;  %v9218_v53 = vmul.f32 %v16290_v51, %v9182_v20 }
0x12db   : > { %9285 = vst [vmem:[#allocation2 + $0x80] sm:$0xff] %v16395_v14  ;;  %v16400_v60 = vadd.f32 %v16293_v46, %v9218_v53  ;;  %9321 = vst [vmem:[#allocation13 + $0x80] sm:$0xff] (!%p9744_p8), %v16395_v14 }
0x12dc   : > { %v11663_v26 = vpop.eup %11662  ;;  %v9046_v36 = vpop.xlane.xlu1 %9045 }
0x12dd   : > { %9286 = vst [vmem:[#allocation2 + $0x88] sm:$0xff] %v16400_v60  ;;  %v9183_v21 = vmul.f32 %v11663_v26, %v16218_v42  ;;  %v9089_v25 = vmul.f32 0.0078125, %v9046_v36  ;;  %9322 = vst [vmem:[#allocation13 + $0x88] sm:$0xff] (!%p9744_p8), %v16400_v60 }
0x12de   : > { %v11665_v11 = vpop.eup %11664  ;;  %v9048_v12 = vpop.xlane.xlu0 %9047 }
0x12df   : > { %v9219_v4 = vmul.f32 %v16290_v51, %v9183_v21  ;;  %v9184_v55 = vmul.f32 %v11665_v11, %v16221_v41  ;;  %v9121_v1 = vadd.f32 1e-05, %v9089_v25  ;;  %v9090_v5 = vmul.f32 0.0078125, %v9048_v12 }
0x12e1   : > { %v16407_v3 = vadd.f32 %v16293_v46, %v9219_v4  ;;  %v9220_v48 = vmul.f32 %v16290_v51, %v9184_v55  ;;  %11666 = vrsqrt.f32 %v9121_v1  ;;  %v9122_v57 = vadd.f32 1e-05, %v9090_v5 }
0x12e3   : > { %9287 = vst [vmem:[#allocation2 + $0x90] sm:$0xff] %v16407_v3  ;;  %v16412_v42 = vadd.f32 %v16293_v46, %v9220_v48  ;;  %11668 = vrsqrt.f32 %v9122_v57  ;;  %9323 = vst [vmem:[#allocation13 + $0x90] sm:$0xff] (!%p9744_p8), %v16407_v3 }
0x12e4   : > { %v9050_v37 = vpop.xlane.xlu1 %9049 }
0x12e5   : > { %9288 = vst [vmem:[#allocation2 + $0x98] sm:$0xff] %v16412_v42  ;;  %v9091_v54 = vmul.f32 0.0078125, %v9050_v37  ;;  %9324 = vst [vmem:[#allocation13 + $0x98] sm:$0xff] (!%p9744_p8), %v16412_v42 }
0x12e6   : > { %v9052_v41 = vpop.xlane.xlu0 %9051 }
0x12e7   : > { %v9123_v44 = vadd.f32 1e-05, %v9091_v54  ;;  %v9092_v16 = vmul.f32 0.0078125, %v9052_v41 }
0x12e9   : > { %11670 = vrsqrt.f32 %v9123_v44  ;;  %v9124_v0 = vadd.f32 1e-05, %v9092_v16 }
0x12eb   : > { %v11667_v24 = vpop.eup %11666  ;;  %11672 = vrsqrt.f32 %v9124_v0 }
0x12ec   : > { %v9185_v31 = vmul.f32 %v11667_v24, %v16228_v29 }
0x12ed   : > { %v11669_v34 = vpop.eup %11668 }
0x12ee   : > { %v9221_v33 = vmul.f32 %v16290_v51, %v9185_v31  ;;  %v9186_v56 = vmul.f32 %v11669_v34, %v16231_v45 }
0x12f0   : > { %v16419_v62 = vadd.f32 %v16293_v46, %v9221_v33  ;;  %v9222_v50 = vmul.f32 %v16290_v51, %v9186_v56 }
0x12f2   : > { %9289 = vst [vmem:[#allocation2 + $0xa0] sm:$0xff] %v16419_v62  ;;  %v16424_v30 = vadd.f32 %v16293_v46, %v9222_v50  ;;  %9325 = vst [vmem:[#allocation13 + $0xa0] sm:$0xff] (!%p9744_p8), %v16419_v62 }
0x12f3   : > { %v11671_v39 = vpop.eup %11670 }
0x12f4   : > { %9290 = vst [vmem:[#allocation2 + $0xa8] sm:$0xff] %v16424_v30  ;;  %v9187_v29 = vmul.f32 %v11671_v39, %v16238_v8  ;;  %9326 = vst [vmem:[#allocation13 + $0xa8] sm:$0xff] (!%p9744_p8), %v16424_v30 }
0x12f5   : > { %v11673_v6 = vpop.eup %11672 }
0x12f6   : > { %v9223_v20 = vmul.f32 %v16290_v51, %v9187_v29  ;;  %v9188_v45 = vmul.f32 %v11673_v6, %v16241_v27 }
0x12f8   : > { %v16431_v53 = vadd.f32 %v16293_v46, %v9223_v20  ;;  %v9224_v26 = vmul.f32 %v16290_v51, %v9188_v45 }
0x12fa   : > { %9291 = vst [vmem:[#allocation2 + $0xb0] sm:$0xff] %v16431_v53  ;;  %v16436_v36 = vadd.f32 %v16293_v46, %v9224_v26  ;;  %9327 = vst [vmem:[#allocation13 + $0xb0] sm:$0xff] (!%p9744_p8), %v16431_v53 }
0x12fc   : > { %9292 = vst [vmem:[#allocation2 + $0xb8] sm:$0xff] %v16436_v36  ;;  %9328 = vst [vmem:[#allocation13 + $0xb8] sm:$0xff] (!%p9744_p8), %v16436_v36 }
0x1311   : > { %v9054_v21 = vpop.xlane.xlu1 %9053 }
0x1312   : > { %v9093_v25 = vmul.f32 0.0078125, %v9054_v21 }
0x1313   : > { %v9056_v8 = vpop.xlane.xlu0 %9055 }
0x1314   : > { %v9125_v11 = vadd.f32 1e-05, %v9093_v25  ;;  %v9094_v12 = vmul.f32 0.0078125, %v9056_v8 }
0x1316   : > { %11674 = vrsqrt.f32 %v9125_v11  ;;  %v9126_v4 = vadd.f32 1e-05, %v9094_v12 }
0x1318   : > { %11676 = vrsqrt.f32 %v9126_v4 }
0x1319   : > { %v9058_v27 = vpop.xlane.xlu1 %9057 }
0x131a   : > { %v9095_v55 = vmul.f32 0.0078125, %v9058_v27 }
0x131b   : > { %v9060_v1 = vpop.xlane.xlu0 %9059 }
0x131c   : > { %v9127_v5 = vadd.f32 1e-05, %v9095_v55  ;;  %v9096_v48 = vmul.f32 0.0078125, %v9060_v1 }
0x131e   : > { %11678 = vrsqrt.f32 %v9127_v5  ;;  %v9128_v57 = vadd.f32 1e-05, %v9096_v48 }
0x1320   : > { %v11675_v37 = vpop.eup %11674  ;;  %11680 = vrsqrt.f32 %v9128_v57 }
0x1321   : > { %v9189_v54 = vmul.f32 %v11675_v37, %v16248_v49  ;;  %v9062_v41 = vpop.xlane.xlu1 %9061 }
0x1322   : > { %v11677_v44 = vpop.eup %11676  ;;  %v9097_v16 = vmul.f32 0.0078125, %v9062_v41 }
0x1323   : > { %v9225_v0 = vmul.f32 %v16290_v51, %v9189_v54  ;;  %v9190_v24 = vmul.f32 %v11677_v44, %v16251_v47  ;;  %v9064_v31 = vpop.xlane.xlu0 %9063 }
0x1324   : > { %v9129_v34 = vadd.f32 1e-05, %v9097_v16  ;;  %v9098_v33 = vmul.f32 0.0078125, %v9064_v31 }
0x1325   : > { %v16443_v56 = vadd.f32 %v16293_v46, %v9225_v0  ;;  %v9226_v50 = vmul.f32 %v16290_v51, %v9190_v24 }
0x1326   : > { %11682 = vrsqrt.f32 %v9129_v34  ;;  %v9130_v39 = vadd.f32 1e-05, %v9098_v33 }
0x1327   : > { %9293 = vst [vmem:[#allocation2 + $0xc0] sm:$0xff] %v16443_v56  ;;  %v16448_v49 = vadd.f32 %v16293_v46, %v9226_v50  ;;  %9329 = vst [vmem:[#allocation13 + $0xc0] sm:$0xff] (!%p9744_p8), %v16443_v56 }
0x1328   : > { %v11679_v29 = vpop.eup %11678  ;;  %11684 = vrsqrt.f32 %v9130_v39 }
0x1329   : > { %9294 = vst [vmem:[#allocation2 + $0xc8] sm:$0xff] %v16448_v49  ;;  %v9191_v47 = vmul.f32 %v11679_v29, %v16258_v28  ;;  %v9066_v6 = vpop.xlane.xlu1 %9065  ;;  %9330 = vst [vmem:[#allocation13 + $0xc8] sm:$0xff] (!%p9744_p8), %v16448_v49 }
0x132a   : > { %v11681_v20 = vpop.eup %11680  ;;  %v9099_v45 = vmul.f32 0.0078125, %v9066_v6 }
0x132b   : > { %v9227_v26 = vmul.f32 %v16290_v51, %v9191_v47  ;;  %v9192_v21 = vmul.f32 %v11681_v20, %v16261_v58  ;;  %v9068_v25 = vpop.xlane.xlu0 %9067 }
0x132c   : > { %v9131_v8 = vadd.f32 1e-05, %v9099_v45  ;;  %v9100_v11 = vmul.f32 0.0078125, %v9068_v25 }
0x132d   : > { %v9263_v12 = vadd.f32 %v16293_v46, %v9227_v26  ;;  %v9228_v4 = vmul.f32 %v16290_v51, %v9192_v21 }
0x132e   : > { %11686 = vrsqrt.f32 %v9131_v8  ;;  %v9132_v27 = vadd.f32 1e-05, %v9100_v11 }
0x132f   : > { %9295 = vst [vmem:[#allocation2 + $0xd0] sm:$0xff] %v9263_v12  ;;  %v9264_v55 = vadd.f32 %v16293_v46, %v9228_v4  ;;  %9331 = vst [vmem:[#allocation13 + $0xd0] sm:$0xff] (!%p9744_p8), %v9263_v12 }
0x1330   : > { %v11683_v28 = vpop.eup %11682  ;;  %11688 = vrsqrt.f32 %v9132_v27 }
0x1331   : > { %9296 = vst [vmem:[#allocation2 + $0xd8] sm:$0xff] %v9264_v55  ;;  %v9193_v1 = vmul.f32 %v11683_v28, %v16268_v63  ;;  %9332 = vst [vmem:[#allocation13 + $0xd8] sm:$0xff] (!%p9744_p8), %v9264_v55 }
0x1332   : > { %v11685_v5 = vpop.eup %11684 }
0x1333   : > { %v9229_v58 = vmul.f32 %v16290_v51, %v9193_v1  ;;  %v9194_v48 = vmul.f32 %v11685_v5, %v16271_v22 }
0x1335   : > { %v9265_v57 = vadd.f32 %v16293_v46, %v9229_v58  ;;  %v9230_v37 = vmul.f32 %v16290_v51, %v9194_v48 }
0x1337   : > { %9297 = vst [vmem:[#allocation2 + $0xe0] sm:$0xff] %v9265_v57  ;;  %v9266_v54 = vadd.f32 %v16293_v46, %v9230_v37  ;;  %9333 = vst [vmem:[#allocation13 + $0xe0] sm:$0xff] (!%p9744_p8), %v9265_v57 }
0x1338   : > { %v11687_v41 = vpop.eup %11686 }
0x1339   : > { %9298 = vst [vmem:[#allocation2 + $0xe8] sm:$0xff] %v9266_v54  ;;  %v9195_v44 = vmul.f32 %v11687_v41, %v16278_v15  ;;  %9334 = vst [vmem:[#allocation13 + $0xe8] sm:$0xff] (!%p9744_p8), %v9266_v54 }
0x133a   : > { %v11689_v16 = vpop.eup %11688 }
0x133b   : > { %v9231_v0 = vmul.f32 %v16290_v51, %v9195_v44  ;;  %v9196_v63 = vmul.f32 %v11689_v16, %v16281_v10  ;;  %9304 = sbr.rel (%p9744_p8) target bundleno = 4930 (0x1342), region = 88 }
0x133d   : > { %v9267_v24 = vadd.f32 %v16293_v46, %v9231_v0  ;;  %v9232_v22 = vmul.f32 %v16290_v51, %v9196_v63 }
0x133f   : > { %9299 = vst [vmem:[#allocation2 + $0xf0] sm:$0xff] %v9267_v24  ;;  %v9268_v31 = vadd.f32 %v16293_v46, %v9232_v22  ;;  %9335 = vst [vmem:[#allocation13 + $0xf0] sm:$0xff] (!%p9744_p8), %v9267_v24 }
0x1341   : > { %9300 = vst [vmem:[#allocation2 + $0xf8] sm:$0xff] %v9268_v31  ;;  %9336 = vst [vmem:[#allocation13 + $0xf8] sm:$0xff] (!%p9744_p8), %v9268_v31 }
0x1342 PF: > { %p10905_p3 = scmp.eq.s32.totalorder %s12099_s15, 1  ;;  %s12017_s12 = smov [#allocation13]  }
0x1343   : > { %s9347_s23 = sshll.u32 %s12017_s12, 4  ;;  %s9348_s23 = int_to_ptr.vmem [resolvable:$true] %s9347_s23 }
0x1344   : > { %s11911_s24 = scalar_lea.vmem %s9348_s23, 4096  ;;  %p11918_p5 = scmp.lt.s32.totalorder %s9348_s23, %s9348_s23 }
0x1345   : > { %p11912_p12 = scmp.ne.s32.totalorder %s9348_s23, %s11911_s24  ;;  %p11919_p13 = scmp.lt.s32.totalorder %s11911_s24, %s11911_s24 }
0x1347   : > { %p11913_p4 = pnand %p11912_p12, %p10905_p3  ;;  %p11920_p0 = por %p11919_p13, %p11918_p5 }
0x1349   : > { %p11914_p11 = pneg %p11913_p4 }
0x134b   : > { %p11921_p1 = pnand %p11920_p0, %p11914_p11 }
0x134d   : > { %11924 = shalt.err (!%p11921_p1)
}
0x134e   : > { %s17027_s21 = sld [smem:[#allocation102_spill]] }
0x1354   : > { %s11925_s28 = scalar_lea.hbm %s17027_s21, 4096 }
0x1355   : > { %p11926_p7 = scmp.ne.s32.totalorder %s17027_s21, %s11925_s28  ;;  %p11931_p10 = scmp.lt.u32.totalorder %s11925_s28, %s17027_s21 }
0x1357   : > { %p11927_p9 = pnand %p11926_p7, %p10905_p3 }
0x1359   : > { %p11928_p2 = pneg %p11927_p9 }
0x135b   : > { %p11933_p6 = pnand %p11931_p10, %p11928_p2 }
0x135d   : > { %11936 = shalt.err (!%p11933_p6)
}
0x135e   : > { %s12018_s16 = smov 128   ;;  %s12019_s20 = smov 8  }
0x135f   : > { %10877 = dma.vmem_to_hbm [thread:$0]  (%p10905_p3), %s9348_s23, 4096, %s17027_s21, [#allocation6], %s12018_s16, %s12018_s16, %s12019_s20  }
0x1360   : > { %11974 = dma.done.wait (%p10905_p3), [#allocation6], 4096  }
0x1361   : > { %11976 = vsyncadd (%p10905_p3), [#allocation6], 4294963200 }
0x1362 PF: > { %s22_s14 = sadd.s32 1, %s11999_s14   ;;  %s17028_s26 = sld [smem:[#allocation19_spill]] }
0x1363   : > { %p19_p8 = scmp.ge.s32.totalorder %s22_s14, 4   ;;  %s17029_s4 = sld [smem:[#allocation18_spill]] }
0x1364   : > { %s17030_s30 = smov %s11983_s10  ;;  %s17031_s10 = smov %s11987_s11 }
0x1365   : > { %s17033_s12 = smov %s11995_s13  ;;  %21 = sbr.rel (!%p19_p8) target bundleno = 13 (0xd), region = 152 }
0x1368   : > { %s17032_s11 = smov %s17028_s26 }
0x1369   : > { %s17034_s13 = smov %s17029_s4 }
0x136c   :  { %9363 = vsyncpa [#allocation5], 1 }
0x136d   :  { %9365 = vsyncpa [#allocation5 + $0x1], 1 }
0x136e   :  { %9366 = vsyncpa [#allocation8], 1 }
0x136f   :  { %9367 = vsyncpa [#allocation6], 1 }
0x1370   :  { %9369 = vsyncpa [#allocation6 + $0x1], 1 }

</bundles_post_ra>
